<compile_context>
chip_gen: v5e
topology: v5e:2x2
jax: 0.10.0
libtpu: 0.0.40
codegen_flags: <defaults>
</compile_context>

<pallas_src>
import jax
import jax.numpy as jnp
from jax.experimental import pallas as pl
from jax.experimental.pallas import tpu as pltpu

EPS = 1e-5   # nn.BatchNorm2d default eps
LANE = 128   # TPU lane width
K = 3        # 3x3 convs


def _round_up(v, m):
    return (v + m - 1) // m * m


@jax.jit
def residual_block_basic_2d(x, w1, g1, b1, w2, g2, b2):
    """x: (N, C, H, W) f32; conv weights (C, C, 3, 3); BN gamma/beta (C,)."""
    N, C_in, H, W = x.shape
    C_out = w1.shape[0]
    assert C_in == C_out, "identity residual (downsample=None) needs C_in == C_out"

    Hp, Wp = H + 2, W + 2
    P = Hp * Wp                     # rows of the padded spatial grid per image
    B = _round_up(Wp + 1, 8)        # zero-halo rows so every tap slab is in range
    E = P + 2 * B                   # extended flattened length
    Cp = _round_up(C_out, LANE)     # lane-dense channel padding
    cnt = float(N * H * W)          # #valid positions per channel (BN stats)
    f32, bf16 = jnp.float32, jnp.bfloat16

    # flattened-row offset of tap (kh, kw) inside the extended layout
    tap_offs = tuple(B + (kh - 1) * Wp + (kw - 1)
                     for kh in range(K) for kw in range(K))

    # ------------------- one-time layout plumbing (XLA) -------------------
    # x: NCHW -> spatially zero-padded NHWC, channels padded to Cp ->
    #    flattened padded rows (N, P, Cp) -> B zero halo rows front/back, bf16.
    x_nhwc = jnp.transpose(x, (0, 2, 3, 1)).astype(f32)
    x_padded = jnp.pad(x_nhwc, ((0, 0), (1, 1), (1, 1), (0, Cp - C_in)))
    x_ext = jnp.pad(x_padded.reshape(N, P, Cp),
                    ((0, 0), (B, B), (0, 0))).astype(bf16)

    def to_taps(w):  # (Cout, Cin, 3, 3) -> (9, Cp, Cp) [cin, cout], bf16
        wt = jnp.transpose(w, (2, 3, 1, 0)).reshape(K * K, C_in, C_out)
        return jnp.pad(wt, ((0, 0), (0, Cp - C_in), (0, Cp - C_out))).astype(bf16)

    def pad_chan(v):  # (C,) -> (1, Cp) f32 (zero pad => no NaN/Inf in pad lanes)
        return jnp.pad(v.astype(f32), (0, Cp - C_out)).reshape(1, Cp)

    w1t, w2t = to_taps(w1), to_taps(w2)
    g1p, b1p, g2p, b2p = pad_chan(g1), pad_chan(b1), pad_chan(g2), pad_chan(b2)

    # mask of valid (interior) output positions over the padded grid, (P, 1)
    hh = jnp.arange(Hp)
    ww = jnp.arange(Wp)
    valid = ((hh[:, None] >= 1) & (hh[:, None] <= H) &
             (ww[None, :] >= 1) & (ww[None, :] <= W))
    mask = valid.astype(f32).reshape(P, 1)

    # -------------------------- block specs --------------------------
    row_spec = pl.BlockSpec((None, P, Cp), lambda n: (n, 0, 0))
    ext_spec = pl.BlockSpec((None, E, Cp), lambda n: (n, 0, 0))
    tapw_spec = pl.BlockSpec((K * K, Cp, Cp), lambda n: (0, 0, 0))
    chan_spec = pl.BlockSpec((1, Cp), lambda n: (0, 0))
    mask_spec = pl.BlockSpec((P, 1), lambda n: (0, 0))
    stat_spec = pl.BlockSpec((None, 1, Cp), lambda n: (n, 0, 0))
    par = pltpu.CompilerParams(dimension_semantics=("parallel",))

    # ---- pass 1: conv1 via in-kernel tap accumulation + BN1 partial stats ----
    def conv1_kernel(x_ref, w_ref, m_ref, y_ref, s_ref, q_ref):
        acc = jnp.zeros((P, Cp), f32)
        for t, off in enumerate(tap_offs):          # 9 back-to-back MXU matmuls
            acc = acc + jnp.dot(x_ref[pl.ds(off, P), :], w_ref[t],
                                preferred_element_type=f32)
        m = m_ref[...]
        ym = acc * m                                 # mask out invalid rows
        s_ref[...] = jnp.sum(ym, axis=0, keepdims=True)
        q_ref[...] = jnp.sum(ym * acc, axis=0, keepdims=True)
        y_ref[...] = acc.astype(y_ref.dtype)         # bf16 store (lane dense)

    y1, s1p, q1p = pl.pallas_call(
        conv1_kernel,
        grid=(N,),
        in_specs=[ext_spec, tapw_spec, mask_spec],
        out_shape=(jax.ShapeDtypeStruct((N, P, Cp), bf16),
                   jax.ShapeDtypeStruct((N, 1, Cp), f32),
                   jax.ShapeDtypeStruct((N, 1, Cp), f32)),
        out_specs=(row_spec, stat_spec, stat_spec),
        compiler_params=par,
    )(x_ext, w1t, mask)

    def fold_bn(s_part, q_part, gamma_p, beta_p):
        # reduce per-step partials (tiny, O(N*Cp)) and fold BN into scale/shift
        s = jnp.sum(s_part, axis=0)                  # (1, Cp)
        q = jnp.sum(q_part, axis=0)
        mean = s / cnt
        var = jnp.maximum(q / cnt - mean * mean, 0.0)   # biased var (BN training)
        scale = gamma_p * jax.lax.rsqrt(var + EPS)
        shift = beta_p - mean * scale
        return scale, shift

    sc1, sh1 = fold_bn(s1p, q1p, g1p, b1p)

    # ---- pass 2: fused BN1-apply + ReLU + conv2 taps + BN2 partial stats ----
    def conv2_kernel(y1_ref, w_ref, s1_ref, b1_ref, m_ref,
                     y2_ref, s_ref, q_ref, a1_ref):
        m = m_ref[...]
        a1 = jnp.maximum(y1_ref[...].astype(f32) * s1_ref[...] + b1_ref[...],
                         0.0) * m                    # ReLU(BN1(y1)), zero border
        a1_ref[...] = jnp.zeros_like(a1_ref)         # zero halo (cheap, VMEM only)
        a1_ref[pl.ds(B, P), :] = a1.astype(a1_ref.dtype)
        acc = jnp.zeros((P, Cp), f32)
        for t, off in enumerate(tap_offs):
            acc = acc + jnp.dot(a1_ref[pl.ds(off, P), :], w_ref[t],
                                preferred_element_type=f32)
        ym = acc * m
        s_ref[...] = jnp.sum(ym, axis=0, keepdims=True)
        q_ref[...] = jnp.sum(ym * acc, axis=0, keepdims=True)
        y2_ref[...] = acc.astype(y2_ref.dtype)

    y2, s2p, q2p = pl.pallas_call(
        conv2_kernel,
        grid=(N,),
        in_specs=[row_spec, tapw_spec, chan_spec, chan_spec, mask_spec],
        out_shape=(jax.ShapeDtypeStruct((N, P, Cp), bf16),
                   jax.ShapeDtypeStruct((N, 1, Cp), f32),
                   jax.ShapeDtypeStruct((N, 1, Cp), f32)),
        out_specs=(row_spec, stat_spec, stat_spec),
        scratch_shapes=[pltpu.VMEM((E, Cp), bf16)],
        compiler_params=par,
    )(y1, w2t, sc1, sh1, mask)

    sc2, sh2 = fold_bn(s2p, q2p, g2p, b2p)

    # ---- pass 3: BN2-apply + identity residual + ReLU (lane-dense output) ----
    def bn2_res_kernel(y2_ref, x_ref, s2_ref, b2_ref, o_ref):
        r = x_ref[pl.ds(B, P), :].astype(f32)        # residual = padded-x interior
        o_ref[...] = jnp.maximum(
            y2_ref[...].astype(f32) * s2_ref[...] + b2_ref[...] + r, 0.0)

    out_flat = pl.pallas_call(
        bn2_res_kernel,
        grid=(N,),
        in_specs=[row_spec, ext_spec, chan_spec, chan_spec],
        out_shape=jax.ShapeDtypeStruct((N, P, Cp), f32),
        out_specs=row_spec,
        compiler_params=par,
    )(y2, x_ext, sc2, sh2)

    # extract valid interior positions / real channels and go back to NCHW
    out = out_flat.reshape(N, Hp, Wp, Cp)[:, 1:H + 1, 1:W + 1, :C_out]
    return jnp.transpose(out, (0, 3, 1, 2))


# ----------------------------- pure-JAX reference -----------------------------
def _conv_bn_ref(x, w, g, b):
    y = jax.lax.conv_general_dilated(
        x, w, window_strides=(1, 1), padding=[(1, 1), (1, 1)],
        dimension_numbers=("NCHW", "OIHW", "NCHW"))
    mean = jnp.mean(y, axis=(0, 2, 3), keepdims=True)
    var = jnp.mean((y - mean) ** 2, axis=(0, 2, 3), keepdims=True)
    y = (y - mean) * jax.lax.rsqrt(var + EPS)
    return y * g[None, :, None, None] + b[None, :, None, None]


def _reference(x, w1, g1, b1, w2, g2, b2):
    y = jax.nn.relu(_conv_bn_ref(x, w1, g1, b1))
    y = _conv_bn_ref(y, w2, g2, b2)
    return jax.nn.relu(y + x)


# ------------------------------------------------------------------------------
if __name__ == "__main__":
    # ResidualBlockBasic2d(in_channels=8, out_channels=8, stride=1, downsample=None)
    N, C, H, W = 2, 8, 16, 16

    key = jax.random.PRNGKey(0)
    kx, kw1, kw2 = jax.random.split(key, 3)

    x = jax.random.normal(kx, (N, C, H, W), dtype=jnp.float32)

    # kaiming_normal_(mode='fan_out', nonlinearity='relu'): std = sqrt(2/(C_out*K*K))
    std = (2.0 / (C * K * K)) ** 0.5
    w1 = jax.random.normal(kw1, (C, C, K, K), dtype=jnp.float32) * std
    w2 = jax.random.normal(kw2, (C, C, K, K), dtype=jnp.float32) * std

    # nn.init.constant_(norm.weight, 1); nn.init.constant_(norm.bias, 0)
    g1 = jnp.ones((C,), jnp.float32)
    b1 = jnp.zeros((C,), jnp.float32)
    g2 = jnp.ones((C,), jnp.float32)
    b2 = jnp.zeros((C,), jnp.float32)

    out = residual_block_basic_2d(x, w1, g1, b1, w2, g2, b2)
    out = jax.block_until_ready(out)

    ref = _reference(x, w1, g1, b1, w2, g2, b2)
    assert out.shape == (N, C, H, W)
    # bf16 matmul operands / bf16 intermediate storage -> ~1e-2-level deviations
    # from the all-f32 reference are expected; stats/accumulation stay f32.
    assert jnp.allclose(out, ref, atol=3e-2, rtol=3e-2), (
        f"mismatch vs reference, max abs err={float(jnp.max(jnp.abs(out - ref)))}")

    print("KERNEL_OK")
</pallas_src>

<mosaic_0001>
module attributes {stable_mosaic.version = 11 : i64} {
  func.func @conv1_kernel(%arg0: i32, %arg1: memref<1x372x128xbf16, #tpu.memory_space<vmem>>, %arg2: memref<9x128x128xbf16, #tpu.memory_space<vmem>>, %arg3: memref<324x1xf32, #tpu.memory_space<vmem>>, %arg4: memref<1x324x128xbf16, #tpu.memory_space<vmem>>, %arg5: memref<1x1x128xf32, #tpu.memory_space<vmem>>, %arg6: memref<1x1x128xf32, #tpu.memory_space<vmem>>) attributes {dimension_semantics = [#tpu.dimension_semantics<parallel>], iteration_bounds = array<i64: 2>, scalar_prefetch = 0 : i64, scratch_operands = 0 : i64, tpu.core_type = #tpu.core_type<tc>, window_params = [{transform_indices = @transform_0, window_bounds = array<i64: 1, 372, 128>}, {pipeline_mode = #tpu.pipeline_mode<synchronous>, transform_indices = @transform_1, window_bounds = array<i64: 9, 128, 128>}, {pipeline_mode = #tpu.pipeline_mode<synchronous>, transform_indices = @transform_2, window_bounds = array<i64: 324, 1>}, {transform_indices = @transform_3, window_bounds = array<i64: 1, 324, 128>}, {transform_indices = @transform_4, window_bounds = array<i64: 1, 1, 128>}, {transform_indices = @transform_5, window_bounds = array<i64: 1, 1, 128>}]} {
    %cst = arith.constant 0.000000e+00 : f32
    %0 = vector.broadcast %cst : f32 to vector<324x128xf32>
    %c0 = arith.constant 0 : index
    %c5 = arith.constant 5 : index
    %c0_0 = arith.constant 0 : index
    %1 = vector.load %arg1[%c0, %c5, %c0_0] : memref<1x372x128xbf16, #tpu.memory_space<vmem>>, vector<1x324x128xbf16>
    %2 = vector.shape_cast %1 : vector<1x324x128xbf16> to vector<324x128xbf16>
    %c0_1 = arith.constant 0 : index
    %c0_2 = arith.constant 0 : index
    %c0_3 = arith.constant 0 : index
    %3 = vector.load %arg2[%c0_1, %c0_2, %c0_3] : memref<9x128x128xbf16, #tpu.memory_space<vmem>>, vector<1x128x128xbf16>
    %4 = vector.shape_cast %3 : vector<1x128x128xbf16> to vector<128x128xbf16>
    %cst_4 = arith.constant dense<0.000000e+00> : vector<324x128xf32>
    %5 = tpu.matmul %2, %4, %cst_4 {dimension_numbers = #tpu.dot_dimension_numbers<[1], [0], [0], [1], [0, 0, 1, 1], [], []>} : vector<324x128xbf16>, vector<128x128xbf16>, vector<324x128xf32> -> vector<324x128xf32>
    %6 = arith.addf %0, %5 : vector<324x128xf32>
    %c0_5 = arith.constant 0 : index
    %c6 = arith.constant 6 : index
    %c0_6 = arith.constant 0 : index
    %7 = vector.load %arg1[%c0_5, %c6, %c0_6] : memref<1x372x128xbf16, #tpu.memory_space<vmem>>, vector<1x324x128xbf16>
    %8 = vector.shape_cast %7 : vector<1x324x128xbf16> to vector<324x128xbf16>
    %c1 = arith.constant 1 : index
    %c0_7 = arith.constant 0 : index
    %c0_8 = arith.constant 0 : index
    %9 = vector.load %arg2[%c1, %c0_7, %c0_8] : memref<9x128x128xbf16, #tpu.memory_space<vmem>>, vector<1x128x128xbf16>
    %10 = vector.shape_cast %9 : vector<1x128x128xbf16> to vector<128x128xbf16>
    %cst_9 = arith.constant dense<0.000000e+00> : vector<324x128xf32>
    %11 = tpu.matmul %8, %10, %cst_9 {dimension_numbers = #tpu.dot_dimension_numbers<[1], [0], [0], [1], [0, 0, 1, 1], [], []>} : vector<324x128xbf16>, vector<128x128xbf16>, vector<324x128xf32> -> vector<324x128xf32>
    %12 = arith.addf %6, %11 : vector<324x128xf32>
    %c0_10 = arith.constant 0 : index
    %c7 = arith.constant 7 : index
    %c0_11 = arith.constant 0 : index
    %13 = vector.load %arg1[%c0_10, %c7, %c0_11] : memref<1x372x128xbf16, #tpu.memory_space<vmem>>, vector<1x324x128xbf16>
    %14 = vector.shape_cast %13 : vector<1x324x128xbf16> to vector<324x128xbf16>
    %c2 = arith.constant 2 : index
    %c0_12 = arith.constant 0 : index
    %c0_13 = arith.constant 0 : index
    %15 = vector.load %arg2[%c2, %c0_12, %c0_13] : memref<9x128x128xbf16, #tpu.memory_space<vmem>>, vector<1x128x128xbf16>
    %16 = vector.shape_cast %15 : vector<1x128x128xbf16> to vector<128x128xbf16>
    %cst_14 = arith.constant dense<0.000000e+00> : vector<324x128xf32>
    %17 = tpu.matmul %14, %16, %cst_14 {dimension_numbers = #tpu.dot_dimension_numbers<[1], [0], [0], [1], [0, 0, 1, 1], [], []>} : vector<324x128xbf16>, vector<128x128xbf16>, vector<324x128xf32> -> vector<324x128xf32>
    %18 = arith.addf %12, %17 : vector<324x128xf32>
    %c0_15 = arith.constant 0 : index
    %c23 = arith.constant 23 : index
    %c0_16 = arith.constant 0 : index
    %19 = vector.load %arg1[%c0_15, %c23, %c0_16] : memref<1x372x128xbf16, #tpu.memory_space<vmem>>, vector<1x324x128xbf16>
    %20 = vector.shape_cast %19 : vector<1x324x128xbf16> to vector<324x128xbf16>
    %c3 = arith.constant 3 : index
    %c0_17 = arith.constant 0 : index
    %c0_18 = arith.constant 0 : index
    %21 = vector.load %arg2[%c3, %c0_17, %c0_18] : memref<9x128x128xbf16, #tpu.memory_space<vmem>>, vector<1x128x128xbf16>
    %22 = vector.shape_cast %21 : vector<1x128x128xbf16> to vector<128x128xbf16>
    %cst_19 = arith.constant dense<0.000000e+00> : vector<324x128xf32>
    %23 = tpu.matmul %20, %22, %cst_19 {dimension_numbers = #tpu.dot_dimension_numbers<[1], [0], [0], [1], [0, 0, 1, 1], [], []>} : vector<324x128xbf16>, vector<128x128xbf16>, vector<324x128xf32> -> vector<324x128xf32>
    %24 = arith.addf %18, %23 : vector<324x128xf32>
    %c0_20 = arith.constant 0 : index
    %c24 = arith.constant 24 : index
    %c0_21 = arith.constant 0 : index
    %25 = vector.load %arg1[%c0_20, %c24, %c0_21] : memref<1x372x128xbf16, #tpu.memory_space<vmem>>, vector<1x324x128xbf16>
    %26 = vector.shape_cast %25 : vector<1x324x128xbf16> to vector<324x128xbf16>
    %c4 = arith.constant 4 : index
    %c0_22 = arith.constant 0 : index
    %c0_23 = arith.constant 0 : index
    %27 = vector.load %arg2[%c4, %c0_22, %c0_23] : memref<9x128x128xbf16, #tpu.memory_space<vmem>>, vector<1x128x128xbf16>
    %28 = vector.shape_cast %27 : vector<1x128x128xbf16> to vector<128x128xbf16>
    %cst_24 = arith.constant dense<0.000000e+00> : vector<324x128xf32>
    %29 = tpu.matmul %26, %28, %cst_24 {dimension_numbers = #tpu.dot_dimension_numbers<[1], [0], [0], [1], [0, 0, 1, 1], [], []>} : vector<324x128xbf16>, vector<128x128xbf16>, vector<324x128xf32> -> vector<324x128xf32>
    %30 = arith.addf %24, %29 : vector<324x128xf32>
    %c0_25 = arith.constant 0 : index
    %c25 = arith.constant 25 : index
    %c0_26 = arith.constant 0 : index
    %31 = vector.load %arg1[%c0_25, %c25, %c0_26] : memref<1x372x128xbf16, #tpu.memory_space<vmem>>, vector<1x324x128xbf16>
    %32 = vector.shape_cast %31 : vector<1x324x128xbf16> to vector<324x128xbf16>
    %c5_27 = arith.constant 5 : index
    %c0_28 = arith.constant 0 : index
    %c0_29 = arith.constant 0 : index
    %33 = vector.load %arg2[%c5_27, %c0_28, %c0_29] : memref<9x128x128xbf16, #tpu.memory_space<vmem>>, vector<1x128x128xbf16>
    %34 = vector.shape_cast %33 : vector<1x128x128xbf16> to vector<128x128xbf16>
    %cst_30 = arith.constant dense<0.000000e+00> : vector<324x128xf32>
    %35 = tpu.matmul %32, %34, %cst_30 {dimension_numbers = #tpu.dot_dimension_numbers<[1], [0], [0], [1], [0, 0, 1, 1], [], []>} : vector<324x128xbf16>, vector<128x128xbf16>, vector<324x128xf32> -> vector<324x128xf32>
    %36 = arith.addf %30, %35 : vector<324x128xf32>
    %c0_31 = arith.constant 0 : index
    %c41 = arith.constant 41 : index
    %c0_32 = arith.constant 0 : index
    %37 = vector.load %arg1[%c0_31, %c41, %c0_32] : memref<1x372x128xbf16, #tpu.memory_space<vmem>>, vector<1x324x128xbf16>
    %38 = vector.shape_cast %37 : vector<1x324x128xbf16> to vector<324x128xbf16>
    %c6_33 = arith.constant 6 : index
    %c0_34 = arith.constant 0 : index
    %c0_35 = arith.constant 0 : index
    %39 = vector.load %arg2[%c6_33, %c0_34, %c0_35] : memref<9x128x128xbf16, #tpu.memory_space<vmem>>, vector<1x128x128xbf16>
    %40 = vector.shape_cast %39 : vector<1x128x128xbf16> to vector<128x128xbf16>
    %cst_36 = arith.constant dense<0.000000e+00> : vector<324x128xf32>
    %41 = tpu.matmul %38, %40, %cst_36 {dimension_numbers = #tpu.dot_dimension_numbers<[1], [0], [0], [1], [0, 0, 1, 1], [], []>} : vector<324x128xbf16>, vector<128x128xbf16>, vector<324x128xf32> -> vector<324x128xf32>
    %42 = arith.addf %36, %41 : vector<324x128xf32>
    %c0_37 = arith.constant 0 : index
    %c42 = arith.constant 42 : index
    %c0_38 = arith.constant 0 : index
    %43 = vector.load %arg1[%c0_37, %c42, %c0_38] : memref<1x372x128xbf16, #tpu.memory_space<vmem>>, vector<1x324x128xbf16>
    %44 = vector.shape_cast %43 : vector<1x324x128xbf16> to vector<324x128xbf16>
    %c7_39 = arith.constant 7 : index
    %c0_40 = arith.constant 0 : index
    %c0_41 = arith.constant 0 : index
    %45 = vector.load %arg2[%c7_39, %c0_40, %c0_41] : memref<9x128x128xbf16, #tpu.memory_space<vmem>>, vector<1x128x128xbf16>
    %46 = vector.shape_cast %45 : vector<1x128x128xbf16> to vector<128x128xbf16>
    %cst_42 = arith.constant dense<0.000000e+00> : vector<324x128xf32>
    %47 = tpu.matmul %44, %46, %cst_42 {dimension_numbers = #tpu.dot_dimension_numbers<[1], [0], [0], [1], [0, 0, 1, 1], [], []>} : vector<324x128xbf16>, vector<128x128xbf16>, vector<324x128xf32> -> vector<324x128xf32>
    %48 = arith.addf %42, %47 : vector<324x128xf32>
    %c0_43 = arith.constant 0 : index
    %c43 = arith.constant 43 : index
    %c0_44 = arith.constant 0 : index
    %49 = vector.load %arg1[%c0_43, %c43, %c0_44] : memref<1x372x128xbf16, #tpu.memory_space<vmem>>, vector<1x324x128xbf16>
    %50 = vector.shape_cast %49 : vector<1x324x128xbf16> to vector<324x128xbf16>
    %c8 = arith.constant 8 : index
    %c0_45 = arith.constant 0 : index
    %c0_46 = arith.constant 0 : index
    %51 = vector.load %arg2[%c8, %c0_45, %c0_46] : memref<9x128x128xbf16, #tpu.memory_space<vmem>>, vector<1x128x128xbf16>
    %52 = vector.shape_cast %51 : vector<1x128x128xbf16> to vector<128x128xbf16>
    %cst_47 = arith.constant dense<0.000000e+00> : vector<324x128xf32>
    %53 = tpu.matmul %50, %52, %cst_47 {dimension_numbers = #tpu.dot_dimension_numbers<[1], [0], [0], [1], [0, 0, 1, 1], [], []>} : vector<324x128xbf16>, vector<128x128xbf16>, vector<324x128xf32> -> vector<324x128xf32>
    %54 = arith.addf %48, %53 : vector<324x128xf32>
    %c0_48 = arith.constant 0 : index
    %c0_49 = arith.constant 0 : index
    %55 = vector.load %arg3[%c0_48, %c0_49] : memref<324x1xf32, #tpu.memory_space<vmem>>, vector<324x1xf32>
    %56 = vector.broadcast %55 : vector<324x1xf32> to vector<324x128xf32>
    %57 = arith.mulf %54, %56 : vector<324x128xf32>
    %cst_50 = arith.constant dense<0.000000e+00> : vector<128xf32>
    %58 = vector.multi_reduction <add>, %57, %cst_50 [0] : vector<324x128xf32> to vector<128xf32>
    %59 = vector.shape_cast %58 : vector<128xf32> to vector<1x128xf32>
    %c0_51 = arith.constant 0 : index
    %c0_52 = arith.constant 0 : index
    %c0_53 = arith.constant 0 : index
    %60 = vector.load %arg5[%c0_51, %c0_52, %c0_53] : memref<1x1x128xf32, #tpu.memory_space<vmem>>, vector<1x1x128xf32>
    %61 = vector.shape_cast %60 : vector<1x1x128xf32> to vector<1x128xf32>
    %62 = vector.shape_cast %59 : vector<1x128xf32> to vector<1x1x128xf32>
    tpu.vector_store %arg5[%c0_51, %c0_52, %c0_53], %62 {strides = array<i32>} : memref<1x1x128xf32, #tpu.memory_space<vmem>>, vector<1x1x128xf32>,
    %63 = arith.mulf %57, %54 : vector<324x128xf32>
    %cst_54 = arith.constant dense<0.000000e+00> : vector<128xf32>
    %64 = vector.multi_reduction <add>, %63, %cst_54 [0] : vector<324x128xf32> to vector<128xf32>
    %65 = vector.shape_cast %64 : vector<128xf32> to vector<1x128xf32>
    %c0_55 = arith.constant 0 : index
    %c0_56 = arith.constant 0 : index
    %c0_57 = arith.constant 0 : index
    %66 = vector.load %arg6[%c0_55, %c0_56, %c0_57] : memref<1x1x128xf32, #tpu.memory_space<vmem>>, vector<1x1x128xf32>
    %67 = vector.shape_cast %66 : vector<1x1x128xf32> to vector<1x128xf32>
    %68 = vector.shape_cast %65 : vector<1x128xf32> to vector<1x1x128xf32>
    tpu.vector_store %arg6[%c0_55, %c0_56, %c0_57], %68 {strides = array<i32>} : memref<1x1x128xf32, #tpu.memory_space<vmem>>, vector<1x1x128xf32>,
    %69 = arith.truncf %54 : vector<324x128xf32> to vector<324x128xbf16>
    %c0_58 = arith.constant 0 : index
    %c0_59 = arith.constant 0 : index
    %c0_60 = arith.constant 0 : index
    %70 = vector.load %arg4[%c0_58, %c0_59, %c0_60] : memref<1x324x128xbf16, #tpu.memory_space<vmem>>, vector<1x324x128xbf16>
    %71 = vector.shape_cast %70 : vector<1x324x128xbf16> to vector<324x128xbf16>
    %72 = vector.shape_cast %69 : vector<324x128xbf16> to vector<1x324x128xbf16>
    tpu.vector_store %arg4[%c0_58, %c0_59, %c0_60], %72 {strides = array<i32>} : memref<1x324x128xbf16, #tpu.memory_space<vmem>>, vector<1x324x128xbf16>,
    return
  }
  func.func @transform_0(%arg0: i32) -> (i32, i32, i32) {
    %c0_i32 = arith.constant 0 : i32
    %c0_i32_0 = arith.constant 0 : i32
    %c0_i32_1 = arith.constant 0 : i32
    return %arg0, %c0_i32, %c0_i32_0 : i32, i32, i32
  }
  func.func @transform_1(%arg0: i32) -> (i32, i32, i32) {
    %c0_i32 = arith.constant 0 : i32
    %c0_i32_0 = arith.constant 0 : i32
    %c0_i32_1 = arith.constant 0 : i32
    %c0_i32_2 = arith.constant 0 : i32
    return %c0_i32, %c0_i32_0, %c0_i32_1 : i32, i32, i32
  }
  func.func @transform_2(%arg0: i32) -> (i32, i32) {
    %c0_i32 = arith.constant 0 : i32
    %c0_i32_0 = arith.constant 0 : i32
    %c0_i32_1 = arith.constant 0 : i32
    return %c0_i32, %c0_i32_0 : i32, i32
  }
  func.func @transform_3(%arg0: i32) -> (i32, i32, i32) {
    %c0_i32 = arith.constant 0 : i32
    %c0_i32_0 = arith.constant 0 : i32
    %c0_i32_1 = arith.constant 0 : i32
    return %arg0, %c0_i32, %c0_i32_0 : i32, i32, i32
  }
  func.func @transform_4(%arg0: i32) -> (i32, i32, i32) {
    %c0_i32 = arith.constant 0 : i32
    %c0_i32_0 = arith.constant 0 : i32
    %c0_i32_1 = arith.constant 0 : i32
    return %arg0, %c0_i32, %c0_i32_0 : i32, i32, i32
  }
  func.func @transform_5(%arg0: i32) -> (i32, i32, i32) {
    %c0_i32 = arith.constant 0 : i32
    %c0_i32_0 = arith.constant 0 : i32
    %c0_i32_1 = arith.constant 0 : i32
    return %arg0, %c0_i32, %c0_i32_0 : i32, i32, i32
  }
}

module attributes {stable_mosaic.version = 11 : i64} {
  func.func @bn2_res_kernel(%arg0: i32, %arg1: memref<1x324x128xbf16, #tpu.memory_space<vmem>>, %arg2: memref<1x372x128xbf16, #tpu.memory_space<vmem>>, %arg3: memref<1x128xf32, #tpu.memory_space<vmem>>, %arg4: memref<1x128xf32, #tpu.memory_space<vmem>>, %arg5: memref<1x324x128xf32, #tpu.memory_space<vmem>>) attributes {dimension_semantics = [#tpu.dimension_semantics<parallel>], iteration_bounds = array<i64: 2>, scalar_prefetch = 0 : i64, scratch_operands = 0 : i64, tpu.core_type = #tpu.core_type<tc>, window_params = [{transform_indices = @transform_0, window_bounds = array<i64: 1, 324, 128>}, {transform_indices = @transform_1, window_bounds = array<i64: 1, 372, 128>}, {pipeline_mode = #tpu.pipeline_mode<synchronous>, transform_indices = @transform_2, window_bounds = array<i64: 1, 128>}, {pipeline_mode = #tpu.pipeline_mode<synchronous>, transform_indices = @transform_3, window_bounds = array<i64: 1, 128>}, {transform_indices = @transform_4, window_bounds = array<i64: 1, 324, 128>}]} {
    %c0 = arith.constant 0 : index
    %c24 = arith.constant 24 : index
    %c0_0 = arith.constant 0 : index
    %0 = vector.load %arg2[%c0, %c24, %c0_0] : memref<1x372x128xbf16, #tpu.memory_space<vmem>>, vector<1x324x128xbf16>
    %1 = vector.shape_cast %0 : vector<1x324x128xbf16> to vector<324x128xbf16>
    %2 = arith.extf %1 : vector<324x128xbf16> to vector<324x128xf32>
    %c0_1 = arith.constant 0 : index
    %c0_2 = arith.constant 0 : index
    %c0_3 = arith.constant 0 : index
    %3 = vector.load %arg1[%c0_1, %c0_2, %c0_3] : memref<1x324x128xbf16, #tpu.memory_space<vmem>>, vector<1x324x128xbf16>
    %4 = vector.shape_cast %3 : vector<1x324x128xbf16> to vector<324x128xbf16>
    %5 = arith.extf %4 : vector<324x128xbf16> to vector<324x128xf32>
    %c0_4 = arith.constant 0 : index
    %c0_5 = arith.constant 0 : index
    %6 = vector.load %arg3[%c0_4, %c0_5] : memref<1x128xf32, #tpu.memory_space<vmem>>, vector<1x128xf32>
    %7 = vector.broadcast %6 : vector<1x128xf32> to vector<324x128xf32>
    %8 = arith.mulf %5, %7 : vector<324x128xf32>
    %c0_6 = arith.constant 0 : index
    %c0_7 = arith.constant 0 : index
    %9 = vector.load %arg4[%c0_6, %c0_7] : memref<1x128xf32, #tpu.memory_space<vmem>>, vector<1x128xf32>
    %10 = vector.broadcast %9 : vector<1x128xf32> to vector<324x128xf32>
    %11 = arith.addf %8, %10 : vector<324x128xf32>
    %12 = arith.addf %11, %2 : vector<324x128xf32>
    %cst = arith.constant 0.000000e+00 : f32
    %13 = vector.broadcast %cst : f32 to vector<324x128xf32>
    %14 = arith.maximumf %12, %13 : vector<324x128xf32>
    %c0_8 = arith.constant 0 : index
    %c0_9 = arith.constant 0 : index
    %c0_10 = arith.constant 0 : index
    %15 = vector.load %arg5[%c0_8, %c0_9, %c0_10] : memref<1x324x128xf32, #tpu.memory_space<vmem>>, vector<1x324x128xf32>
    %16 = vector.shape_cast %15 : vector<1x324x128xf32> to vector<324x128xf32>
    %17 = vector.shape_cast %14 : vector<324x128xf32> to vector<1x324x128xf32>
    tpu.vector_store %arg5[%c0_8, %c0_9, %c0_10], %17 {strides = array<i32>} : memref<1x324x128xf32, #tpu.memory_space<vmem>>, vector<1x324x128xf32>,
    return
  }
  func.func @transform_0(%arg0: i32) -> (i32, i32, i32) {
    %c0_i32 = arith.constant 0 : i32
    %c0_i32_0 = arith.constant 0 : i32
    %c0_i32_1 = arith.constant 0 : i32
    return %arg0, %c0_i32, %c0_i32_0 : i32, i32, i32
  }
  func.func @transform_1(%arg0: i32) -> (i32, i32, i32) {
    %c0_i32 = arith.constant 0 : i32
    %c0_i32_0 = arith.constant 0 : i32
    %c0_i32_1 = arith.constant 0 : i32
    return %arg0, %c0_i32, %c0_i32_0 : i32, i32, i32
  }
  func.func @transform_2(%arg0: i32) -> (i32, i32) {
    %c0_i32 = arith.constant 0 : i32
    %c0_i32_0 = arith.constant 0 : i32
    %c0_i32_1 = arith.constant 0 : i32
    return %c0_i32, %c0_i32_0 : i32, i32
  }
  func.func @transform_3(%arg0: i32) -> (i32, i32) {
    %c0_i32 = arith.constant 0 : i32
    %c0_i32_0 = arith.constant 0 : i32
    %c0_i32_1 = arith.constant 0 : i32
    return %c0_i32, %c0_i32_0 : i32, i32
  }
  func.func @transform_4(%arg0: i32) -> (i32, i32, i32) {
    %c0_i32 = arith.constant 0 : i32
    %c0_i32_0 = arith.constant 0 : i32
    %c0_i32_1 = arith.constant 0 : i32
    return %arg0, %c0_i32, %c0_i32_0 : i32, i32, i32
  }
}

module attributes {stable_mosaic.version = 11 : i64} {
  func.func @conv2_kernel(%arg0: i32, %arg1: memref<1x324x128xbf16, #tpu.memory_space<vmem>>, %arg2: memref<9x128x128xbf16, #tpu.memory_space<vmem>>, %arg3: memref<1x128xf32, #tpu.memory_space<vmem>>, %arg4: memref<1x128xf32, #tpu.memory_space<vmem>>, %arg5: memref<324x1xf32, #tpu.memory_space<vmem>>, %arg6: memref<1x324x128xbf16, #tpu.memory_space<vmem>>, %arg7: memref<1x1x128xf32, #tpu.memory_space<vmem>>, %arg8: memref<1x1x128xf32, #tpu.memory_space<vmem>>, %arg9: memref<372x128xbf16, #tpu.memory_space<vmem>>) attributes {dimension_semantics = [#tpu.dimension_semantics<parallel>], iteration_bounds = array<i64: 2>, scalar_prefetch = 0 : i64, scratch_operands = 1 : i64, tpu.core_type = #tpu.core_type<tc>, window_params = [{transform_indices = @transform_0, window_bounds = array<i64: 1, 324, 128>}, {pipeline_mode = #tpu.pipeline_mode<synchronous>, transform_indices = @transform_1, window_bounds = array<i64: 9, 128, 128>}, {pipeline_mode = #tpu.pipeline_mode<synchronous>, transform_indices = @transform_2, window_bounds = array<i64: 1, 128>}, {pipeline_mode = #tpu.pipeline_mode<synchronous>, transform_indices = @transform_3, window_bounds = array<i64: 1, 128>}, {pipeline_mode = #tpu.pipeline_mode<synchronous>, transform_indices = @transform_4, window_bounds = array<i64: 324, 1>}, {transform_indices = @transform_5, window_bounds = array<i64: 1, 324, 128>}, {transform_indices = @transform_6, window_bounds = array<i64: 1, 1, 128>}, {transform_indices = @transform_7, window_bounds = array<i64: 1, 1, 128>}]} {
    %c0 = arith.constant 0 : index
    %c0_0 = arith.constant 0 : index
    %0 = vector.load %arg5[%c0, %c0_0] : memref<324x1xf32, #tpu.memory_space<vmem>>, vector<324x1xf32>
    %c0_1 = arith.constant 0 : index
    %c0_2 = arith.constant 0 : index
    %c0_3 = arith.constant 0 : index
    %1 = vector.load %arg1[%c0_1, %c0_2, %c0_3] : memref<1x324x128xbf16, #tpu.memory_space<vmem>>, vector<1x324x128xbf16>
    %2 = vector.shape_cast %1 : vector<1x324x128xbf16> to vector<324x128xbf16>
    %3 = arith.extf %2 : vector<324x128xbf16> to vector<324x128xf32>
    %c0_4 = arith.constant 0 : index
    %c0_5 = arith.constant 0 : index
    %4 = vector.load %arg3[%c0_4, %c0_5] : memref<1x128xf32, #tpu.memory_space<vmem>>, vector<1x128xf32>
    %5 = vector.broadcast %4 : vector<1x128xf32> to vector<324x128xf32>
    %6 = arith.mulf %3, %5 : vector<324x128xf32>
    %c0_6 = arith.constant 0 : index
    %c0_7 = arith.constant 0 : index
    %7 = vector.load %arg4[%c0_6, %c0_7] : memref<1x128xf32, #tpu.memory_space<vmem>>, vector<1x128xf32>
    %8 = vector.broadcast %7 : vector<1x128xf32> to vector<324x128xf32>
    %9 = arith.addf %6, %8 : vector<324x128xf32>
    %cst = arith.constant 0.000000e+00 : f32
    %10 = vector.broadcast %cst : f32 to vector<324x128xf32>
    %11 = arith.maximumf %9, %10 : vector<324x128xf32>
    %12 = vector.broadcast %0 : vector<324x1xf32> to vector<324x128xf32>
    %13 = arith.mulf %11, %12 : vector<324x128xf32>
    %cst_8 = arith.constant 0.000000e+00 : bf16
    %14 = vector.broadcast %cst_8 : bf16 to vector<372x128xbf16>
    %c0_9 = arith.constant 0 : index
    %c0_10 = arith.constant 0 : index
    %15 = vector.load %arg9[%c0_9, %c0_10] : memref<372x128xbf16, #tpu.memory_space<vmem>>, vector<372x128xbf16>
    tpu.vector_store %arg9[%c0_9, %c0_10], %14 {strides = array<i32>} : memref<372x128xbf16, #tpu.memory_space<vmem>>, vector<372x128xbf16>,
    %16 = arith.truncf %13 : vector<324x128xf32> to vector<324x128xbf16>
    %c24 = arith.constant 24 : index
    %c0_11 = arith.constant 0 : index
    %17 = vector.load %arg9[%c24, %c0_11] : memref<372x128xbf16, #tpu.memory_space<vmem>>, vector<324x128xbf16>
    tpu.vector_store %arg9[%c24, %c0_11], %16 {strides = array<i32>} : memref<372x128xbf16, #tpu.memory_space<vmem>>, vector<324x128xbf16>,
    %cst_12 = arith.constant 0.000000e+00 : f32
    %18 = vector.broadcast %cst_12 : f32 to vector<324x128xf32>
    %c5 = arith.constant 5 : index
    %c0_13 = arith.constant 0 : index
    %19 = vector.load %arg9[%c5, %c0_13] : memref<372x128xbf16, #tpu.memory_space<vmem>>, vector<324x128xbf16>
    %c0_14 = arith.constant 0 : index
    %c0_15 = arith.constant 0 : index
    %c0_16 = arith.constant 0 : index
    %20 = vector.load %arg2[%c0_14, %c0_15, %c0_16] : memref<9x128x128xbf16, #tpu.memory_space<vmem>>, vector<1x128x128xbf16>
    %21 = vector.shape_cast %20 : vector<1x128x128xbf16> to vector<128x128xbf16>
    %cst_17 = arith.constant dense<0.000000e+00> : vector<324x128xf32>
    %22 = tpu.matmul %19, %21, %cst_17 {dimension_numbers = #tpu.dot_dimension_numbers<[1], [0], [0], [1], [0, 0, 1, 1], [], []>} : vector<324x128xbf16>, vector<128x128xbf16>, vector<324x128xf32> -> vector<324x128xf32>
    %23 = arith.addf %18, %22 : vector<324x128xf32>
    %c6 = arith.constant 6 : index
    %c0_18 = arith.constant 0 : index
    %24 = vector.load %arg9[%c6, %c0_18] : memref<372x128xbf16, #tpu.memory_space<vmem>>, vector<324x128xbf16>
    %c1 = arith.constant 1 : index
    %c0_19 = arith.constant 0 : index
    %c0_20 = arith.constant 0 : index
    %25 = vector.load %arg2[%c1, %c0_19, %c0_20] : memref<9x128x128xbf16, #tpu.memory_space<vmem>>, vector<1x128x128xbf16>
    %26 = vector.shape_cast %25 : vector<1x128x128xbf16> to vector<128x128xbf16>
    %cst_21 = arith.constant dense<0.000000e+00> : vector<324x128xf32>
    %27 = tpu.matmul %24, %26, %cst_21 {dimension_numbers = #tpu.dot_dimension_numbers<[1], [0], [0], [1], [0, 0, 1, 1], [], []>} : vector<324x128xbf16>, vector<128x128xbf16>, vector<324x128xf32> -> vector<324x128xf32>
    %28 = arith.addf %23, %27 : vector<324x128xf32>
    %c7 = arith.constant 7 : index
    %c0_22 = arith.constant 0 : index
    %29 = vector.load %arg9[%c7, %c0_22] : memref<372x128xbf16, #tpu.memory_space<vmem>>, vector<324x128xbf16>
    %c2 = arith.constant 2 : index
    %c0_23 = arith.constant 0 : index
    %c0_24 = arith.constant 0 : index
    %30 = vector.load %arg2[%c2, %c0_23, %c0_24] : memref<9x128x128xbf16, #tpu.memory_space<vmem>>, vector<1x128x128xbf16>
    %31 = vector.shape_cast %30 : vector<1x128x128xbf16> to vector<128x128xbf16>
    %cst_25 = arith.constant dense<0.000000e+00> : vector<324x128xf32>
    %32 = tpu.matmul %29, %31, %cst_25 {dimension_numbers = #tpu.dot_dimension_numbers<[1], [0], [0], [1], [0, 0, 1, 1], [], []>} : vector<324x128xbf16>, vector<128x128xbf16>, vector<324x128xf32> -> vector<324x128xf32>
    %33 = arith.addf %28, %32 : vector<324x128xf32>
    %c23 = arith.constant 23 : index
    %c0_26 = arith.constant 0 : index
    %34 = vector.load %arg9[%c23, %c0_26] : memref<372x128xbf16, #tpu.memory_space<vmem>>, vector<324x128xbf16>
    %c3 = arith.constant 3 : index
    %c0_27 = arith.constant 0 : index
    %c0_28 = arith.constant 0 : index
    %35 = vector.load %arg2[%c3, %c0_27, %c0_28] : memref<9x128x128xbf16, #tpu.memory_space<vmem>>, vector<1x128x128xbf16>
    %36 = vector.shape_cast %35 : vector<1x128x128xbf16> to vector<128x128xbf16>
    %cst_29 = arith.constant dense<0.000000e+00> : vector<324x128xf32>
    %37 = tpu.matmul %34, %36, %cst_29 {dimension_numbers = #tpu.dot_dimension_numbers<[1], [0], [0], [1], [0, 0, 1, 1], [], []>} : vector<324x128xbf16>, vector<128x128xbf16>, vector<324x128xf32> -> vector<324x128xf32>
    %38 = arith.addf %33, %37 : vector<324x128xf32>
    %c24_30 = arith.constant 24 : index
    %c0_31 = arith.constant 0 : index
    %39 = vector.load %arg9[%c24_30, %c0_31] : memref<372x128xbf16, #tpu.memory_space<vmem>>, vector<324x128xbf16>
    %c4 = arith.constant 4 : index
    %c0_32 = arith.constant 0 : index
    %c0_33 = arith.constant 0 : index
    %40 = vector.load %arg2[%c4, %c0_32, %c0_33] : memref<9x128x128xbf16, #tpu.memory_space<vmem>>, vector<1x128x128xbf16>
    %41 = vector.shape_cast %40 : vector<1x128x128xbf16> to vector<128x128xbf16>
    %cst_34 = arith.constant dense<0.000000e+00> : vector<324x128xf32>
    %42 = tpu.matmul %39, %41, %cst_34 {dimension_numbers = #tpu.dot_dimension_numbers<[1], [0], [0], [1], [0, 0, 1, 1], [], []>} : vector<324x128xbf16>, vector<128x128xbf16>, vector<324x128xf32> -> vector<324x128xf32>
    %43 = arith.addf %38, %42 : vector<324x128xf32>
    %c25 = arith.constant 25 : index
    %c0_35 = arith.constant 0 : index
    %44 = vector.load %arg9[%c25, %c0_35] : memref<372x128xbf16, #tpu.memory_space<vmem>>, vector<324x128xbf16>
    %c5_36 = arith.constant 5 : index
    %c0_37 = arith.constant 0 : index
    %c0_38 = arith.constant 0 : index
    %45 = vector.load %arg2[%c5_36, %c0_37, %c0_38] : memref<9x128x128xbf16, #tpu.memory_space<vmem>>, vector<1x128x128xbf16>
    %46 = vector.shape_cast %45 : vector<1x128x128xbf16> to vector<128x128xbf16>
    %cst_39 = arith.constant dense<0.000000e+00> : vector<324x128xf32>
    %47 = tpu.matmul %44, %46, %cst_39 {dimension_numbers = #tpu.dot_dimension_numbers<[1], [0], [0], [1], [0, 0, 1, 1], [], []>} : vector<324x128xbf16>, vector<128x128xbf16>, vector<324x128xf32> -> vector<324x128xf32>
    %48 = arith.addf %43, %47 : vector<324x128xf32>
    %c41 = arith.constant 41 : index
    %c0_40 = arith.constant 0 : index
    %49 = vector.load %arg9[%c41, %c0_40] : memref<372x128xbf16, #tpu.memory_space<vmem>>, vector<324x128xbf16>
    %c6_41 = arith.constant 6 : index
    %c0_42 = arith.constant 0 : index
    %c0_43 = arith.constant 0 : index
    %50 = vector.load %arg2[%c6_41, %c0_42, %c0_43] : memref<9x128x128xbf16, #tpu.memory_space<vmem>>, vector<1x128x128xbf16>
    %51 = vector.shape_cast %50 : vector<1x128x128xbf16> to vector<128x128xbf16>
    %cst_44 = arith.constant dense<0.000000e+00> : vector<324x128xf32>
    %52 = tpu.matmul %49, %51, %cst_44 {dimension_numbers = #tpu.dot_dimension_numbers<[1], [0], [0], [1], [0, 0, 1, 1], [], []>} : vector<324x128xbf16>, vector<128x128xbf16>, vector<324x128xf32> -> vector<324x128xf32>
    %53 = arith.addf %48, %52 : vector<324x128xf32>
    %c42 = arith.constant 42 : index
    %c0_45 = arith.constant 0 : index
    %54 = vector.load %arg9[%c42, %c0_45] : memref<372x128xbf16, #tpu.memory_space<vmem>>, vector<324x128xbf16>
    %c7_46 = arith.constant 7 : index
    %c0_47 = arith.constant 0 : index
    %c0_48 = arith.constant 0 : index
    %55 = vector.load %arg2[%c7_46, %c0_47, %c0_48] : memref<9x128x128xbf16, #tpu.memory_space<vmem>>, vector<1x128x128xbf16>
    %56 = vector.shape_cast %55 : vector<1x128x128xbf16> to vector<128x128xbf16>
    %cst_49 = arith.constant dense<0.000000e+00> : vector<324x128xf32>
    %57 = tpu.matmul %54, %56, %cst_49 {dimension_numbers = #tpu.dot_dimension_numbers<[1], [0], [0], [1], [0, 0, 1, 1], [], []>} : vector<324x128xbf16>, vector<128x128xbf16>, vector<324x128xf32> -> vector<324x128xf32>
    %58 = arith.addf %53, %57 : vector<324x128xf32>
    %c43 = arith.constant 43 : index
    %c0_50 = arith.constant 0 : index
    %59 = vector.load %arg9[%c43, %c0_50] : memref<372x128xbf16, #tpu.memory_space<vmem>>, vector<324x128xbf16>
    %c8 = arith.constant 8 : index
    %c0_51 = arith.constant 0 : index
    %c0_52 = arith.constant 0 : index
    %60 = vector.load %arg2[%c8, %c0_51, %c0_52] : memref<9x128x128xbf16, #tpu.memory_space<vmem>>, vector<1x128x128xbf16>
    %61 = vector.shape_cast %60 : vector<1x128x128xbf16> to vector<128x128xbf16>
    %cst_53 = arith.constant dense<0.000000e+00> : vector<324x128xf32>
    %62 = tpu.matmul %59, %61, %cst_53 {dimension_numbers = #tpu.dot_dimension_numbers<[1], [0], [0], [1], [0, 0, 1, 1], [], []>} : vector<324x128xbf16>, vector<128x128xbf16>, vector<324x128xf32> -> vector<324x128xf32>
    %63 = arith.addf %58, %62 : vector<324x128xf32>
    %64 = vector.broadcast %0 : vector<324x1xf32> to vector<324x128xf32>
    %65 = arith.mulf %63, %64 : vector<324x128xf32>
    %cst_54 = arith.constant dense<0.000000e+00> : vector<128xf32>
    %66 = vector.multi_reduction <add>, %65, %cst_54 [0] : vector<324x128xf32> to vector<128xf32>
    %67 = vector.shape_cast %66 : vector<128xf32> to vector<1x128xf32>
    %c0_55 = arith.constant 0 : index
    %c0_56 = arith.constant 0 : index
    %c0_57 = arith.constant 0 : index
    %68 = vector.load %arg7[%c0_55, %c0_56, %c0_57] : memref<1x1x128xf32, #tpu.memory_space<vmem>>, vector<1x1x128xf32>
    %69 = vector.shape_cast %68 : vector<1x1x128xf32> to vector<1x128xf32>
    %70 = vector.shape_cast %67 : vector<1x128xf32> to vector<1x1x128xf32>
    tpu.vector_store %arg7[%c0_55, %c0_56, %c0_57], %70 {strides = array<i32>} : memref<1x1x128xf32, #tpu.memory_space<vmem>>, vector<1x1x128xf32>,
    %71 = arith.mulf %65, %63 : vector<324x128xf32>
    %cst_58 = arith.constant dense<0.000000e+00> : vector<128xf32>
    %72 = vector.multi_reduction <add>, %71, %cst_58 [0] : vector<324x128xf32> to vector<128xf32>
    %73 = vector.shape_cast %72 : vector<128xf32> to vector<1x128xf32>
    %c0_59 = arith.constant 0 : index
    %c0_60 = arith.constant 0 : index
    %c0_61 = arith.constant 0 : index
    %74 = vector.load %arg8[%c0_59, %c0_60, %c0_61] : memref<1x1x128xf32, #tpu.memory_space<vmem>>, vector<1x1x128xf32>
    %75 = vector.shape_cast %74 : vector<1x1x128xf32> to vector<1x128xf32>
    %76 = vector.shape_cast %73 : vector<1x128xf32> to vector<1x1x128xf32>
    tpu.vector_store %arg8[%c0_59, %c0_60, %c0_61], %76 {strides = array<i32>} : memref<1x1x128xf32, #tpu.memory_space<vmem>>, vector<1x1x128xf32>,
    %77 = arith.truncf %63 : vector<324x128xf32> to vector<324x128xbf16>
    %c0_62 = arith.constant 0 : index
    %c0_63 = arith.constant 0 : index
    %c0_64 = arith.constant 0 : index
    %78 = vector.load %arg6[%c0_62, %c0_63, %c0_64] : memref<1x324x128xbf16, #tpu.memory_space<vmem>>, vector<1x324x128xbf16>
    %79 = vector.shape_cast %78 : vector<1x324x128xbf16> to vector<324x128xbf16>
    %80 = vector.shape_cast %77 : vector<324x128xbf16> to vector<1x324x128xbf16>
    tpu.vector_store %arg6[%c0_62, %c0_63, %c0_64], %80 {strides = array<i32>} : memref<1x324x128xbf16, #tpu.memory_space<vmem>>, vector<1x324x128xbf16>,
    return
  }
  func.func @transform_0(%arg0: i32) -> (i32, i32, i32) {
    %c0_i32 = arith.constant 0 : i32
    %c0_i32_0 = arith.constant 0 : i32
    %c0_i32_1 = arith.constant 0 : i32
    return %arg0, %c0_i32, %c0_i32_0 : i32, i32, i32
  }
  func.func @transform_1(%arg0: i32) -> (i32, i32, i32) {
    %c0_i32 = arith.constant 0 : i32
    %c0_i32_0 = arith.constant 0 : i32
    %c0_i32_1 = arith.constant 0 : i32
    %c0_i32_2 = arith.constant 0 : i32
    return %c0_i32, %c0_i32_0, %c0_i32_1 : i32, i32, i32
  }
  func.func @transform_2(%arg0: i32) -> (i32, i32) {
    %c0_i32 = arith.constant 0 : i32
    %c0_i32_0 = arith.constant 0 : i32
    %c0_i32_1 = arith.constant 0 : i32
    return %c0_i32, %c0_i32_0 : i32, i32
  }
  func.func @transform_3(%arg0: i32) -> (i32, i32) {
    %c0_i32 = arith.constant 0 : i32
    %c0_i32_0 = arith.constant 0 : i32
    %c0_i32_1 = arith.constant 0 : i32
    return %c0_i32, %c0_i32_0 : i32, i32
  }
  func.func @transform_4(%arg0: i32) -> (i32, i32) {
    %c0_i32 = arith.constant 0 : i32
    %c0_i32_0 = arith.constant 0 : i32
    %c0_i32_1 = arith.constant 0 : i32
    return %c0_i32, %c0_i32_0 : i32, i32
  }
  func.func @transform_5(%arg0: i32) -> (i32, i32, i32) {
    %c0_i32 = arith.constant 0 : i32
    %c0_i32_0 = arith.constant 0 : i32
    %c0_i32_1 = arith.constant 0 : i32
    return %arg0, %c0_i32, %c0_i32_0 : i32, i32, i32
  }
  func.func @transform_6(%arg0: i32) -> (i32, i32, i32) {
    %c0_i32 = arith.constant 0 : i32
    %c0_i32_0 = arith.constant 0 : i32
    %c0_i32_1 = arith.constant 0 : i32
    return %arg0, %c0_i32, %c0_i32_0 : i32, i32, i32
  }
  func.func @transform_7(%arg0: i32) -> (i32, i32, i32) {
    %c0_i32 = arith.constant 0 : i32
    %c0_i32_0 = arith.constant 0 : i32
    %c0_i32_1 = arith.constant 0 : i32
    return %arg0, %c0_i32, %c0_i32_0 : i32, i32, i32
  }
}

</mosaic_0001>

<bundles_post_ra>
// kernel: residual_block_basic_2d.5
= control target key start
LH: loop header
LB: loop body
LE: loop exit
PB: predicated region body
PF: predicated region fallthrough
CT: control target
= control target key end

     0   :  { %s912_s15 = smov 0   ;;  %s1119_s0 = inlined_call_operand.vmem [shape: bf16[2,324,128], index: 0, kind: input, shape index: {}]   ;;  %s1120_s1 = inlined_call_operand.vmem [shape: bf16[2,372,128], index: 1, kind: input, shape index: {}]   ;;  %s1121_s2 = inlined_call_operand.vmem [shape: f32[1,128], index: 2, kind: input, shape index: {}]   ;;  %s1122_s3 = inlined_call_operand.vmem [shape: f32[1,128], index: 3, kind: input, shape index: {}]   ;;  %s1123_s4 = inlined_call_operand.vmem [shape: f32[2,324,128], index: 4, kind: output, shape index: {}]  }
   0x1 LB: > { %s662_s16 = sadd.s32 4294967295, %s885_s15   ;;  %p666_p0 = scmp.ge.s32.totalorder %s885_s15, 1  ;;  %s885_s15 = sphi %s912_s15, %s14_s15  }
   0x2   : > { %p172_p1 = scmp.lt.s32.totalorder %s885_s15, 3 }
   0x4   : > { %p173_p2 = pnand %p666_p0, %p172_p1 }
   0x5   : > { %p203_p3 = scmp.lt.s32.totalorder (!%p173_p2), %s662_s16, 1 }
   0x6   : > { %176 = sbr.rel (%p173_p2) target bundleno = 84 (0x54), region = 36 }
   0xb   : > { %s1125_s16 = smov (!%p203_p3, %s662_s16), 1  ;;  %v932_v0 = vld [vmem:[%s1121_s2] ss:$0 sm:$0xff] }
   0xc   : > { %s866_s17 = smul.u32 164, %s1125_s16  ;;  %v937_v1 = vld [vmem:[%s1122_s3] ss:$0 sm:$0xff] }
   0xd   : > { %s867_s18 = smul.u32 188, %s1125_s16 }
   0xe   : > { %s927_s21 = scalar_lea.vmem %s1119_s0, %s866_s17  ;;  %s868_s29 = smul.u32 328, %s1125_s16 }
   0xf   : > { %s942_s28 = scalar_lea.vmem %s1120_s1, %s867_s18  ;;  %v749_v2 = vld [vmem:[%s927_s21] sm:$0xff]   ;;  %v847_v3 = vld [vmem:[%s927_s21 + $0x8] sm:$0xff]   ;;  %v848_v4 = vld [vmem:[%s927_s21 + $0x10] sm:$0xff]  }
  0x10   : > { %v218_v5 = vld [vmem:[%s942_s28 + $0xc] sm:$0xf]  ;;  %v750_v6 = vunpack.c.l.bf16 %v749_v2  ;;  %v828_v7 = vld [vmem:[%s942_s28 + $0x10] sm:$0xff]   ;;  %v751_v8 = vunpack.c.h.bf16 %v749_v2  ;;  %v754_v9 = vunpack.c.l.bf16 %v847_v3  ;;  %v829_v10 = vld [vmem:[%s942_s28 + $0x18] sm:$0xff]   ;;  %v755_v11 = vunpack.c.h.bf16 %v847_v3  ;;  %s966_s6 = scalar_lea.vmem %s1123_s4, %s868_s29 }
  0x11   : > { %v259_v12 = vunpack.c.l.bf16 %v218_v5  ;;  %v674_v13 = vunpack.c.l.bf16 %v828_v7  ;;  %v675_v14 = vunpack.c.h.bf16 %v828_v7  ;;  %v678_v15 = vunpack.c.l.bf16 %v829_v10  ;;  %v830_v20 = vld [vmem:[%s942_s28 + $0x20] sm:$0xff]   ;;  %v849_v21 = vld [vmem:[%s927_s21 + $0x18] sm:$0xff]   ;;  %v831_v41 = vld [vmem:[%s942_s28 + $0x28] sm:$0xff]  }
  0x12   : > { %v386_v16 = vmul.f32 %v932_v0, %v750_v6  ;;  %v387_v17 = vmul.f32 %v932_v0, %v751_v8  ;;  %v388_v18 = vmul.f32 %v932_v0, %v754_v9  ;;  %v389_v19 = vmul.f32 %v932_v0, %v755_v11  ;;  %v850_v42 = vld [vmem:[%s927_s21 + $0x20] sm:$0xff]   ;;  %v832_v51 = vld [vmem:[%s942_s28 + $0x30] sm:$0xff]   ;;  %v851_v52 = vld [vmem:[%s927_s21 + $0x28] sm:$0xff]  }
  0x13   : > { %v679_v22 = vunpack.c.h.bf16 %v829_v10  ;;  %v758_v23 = vunpack.c.l.bf16 %v848_v4  ;;  %v759_v24 = vunpack.c.h.bf16 %v848_v4  ;;  %v682_v30 = vunpack.c.l.bf16 %v830_v20  ;;  %v833_v61 = vld [vmem:[%s942_s28 + $0x38] sm:$0xff]   ;;  %v852_v4 = vld [vmem:[%s927_s21 + $0x30] sm:$0xff]  }
  0x14   : > { %v431_v25 = vadd.f32 %v937_v1, %v386_v16  ;;  %v432_v26 = vadd.f32 %v937_v1, %v387_v17  ;;  %v433_v27 = vadd.f32 %v937_v1, %v388_v18  ;;  %v434_v28 = vadd.f32 %v937_v1, %v389_v19 }
  0x15   : > { %v390_v29 = vmul.f32 %v932_v0, %v758_v23  ;;  %v391_v31 = vmul.f32 %v932_v0, %v759_v24  ;;  %v762_v32 = vunpack.c.l.bf16 %v849_v21  ;;  %v683_v39 = vunpack.c.h.bf16 %v830_v20 }
  0x16   : > { %v472_v33 = vadd.f32 %v431_v25, %v259_v12  ;;  %v473_v34 = vadd.f32 %v674_v13, %v432_v26  ;;  %v474_v35 = vadd.f32 %v675_v14, %v433_v27  ;;  %v475_v36 = vadd.f32 %v678_v15, %v434_v28  ;;  %v834_v13 = vld [vmem:[%s942_s28 + $0x40] sm:$0xff]   ;;  %v835_v27 = vld [vmem:[%s942_s28 + $0x48] sm:$0xff]  }
  0x17   : > { %v435_v37 = vadd.f32 %v937_v1, %v390_v29  ;;  %v436_v38 = vadd.f32 %v937_v1, %v391_v31  ;;  %v392_v40 = vmul.f32 %v932_v0, %v762_v32  ;;  %v763_v50 = vunpack.c.h.bf16 %v849_v21  ;;  %v854_v32 = vld [vmem:[%s927_s21 + $0x40] sm:$0xff]  }
  0x18   : > { %v513_v43 = vmax.f32 %v472_v33, 0.0  ;;  %v514_v44 = vmax.f32 %v473_v34, 0.0  ;;  %v515_v45 = vmax.f32 %v474_v35, 0.0  ;;  %v516_v46 = vmax.f32 %v475_v36, 0.0 }
  0x19   : > { %v476_v47 = vadd.f32 %v679_v22, %v435_v37  ;;  %v477_v48 = vadd.f32 %v682_v30, %v436_v38  ;;  %v437_v49 = vadd.f32 %v937_v1, %v392_v40  ;;  %v686_v53 = vunpack.c.l.bf16 %v831_v41  ;;  %v853_v22 = vld [vmem:[%s927_s21 + $0x38] sm:$0xff]  }
  0x1a   : > { %554 = vst [vmem:[%s966_s6] sm:$0xff] %v513_v43  ;;  %v687_v54 = vunpack.c.h.bf16 %v831_v41  ;;  %v766_v55 = vunpack.c.l.bf16 %v850_v42  ;;  %v767_v56 = vunpack.c.h.bf16 %v850_v42  ;;  %v393_v60 = vmul.f32 %v932_v0, %v763_v50  ;;  %v836_v41 = vld [vmem:[%s942_s28 + $0x50] sm:$0xff]  }
  0x1b   : > { %555 = vst [vmem:[%s966_s6 + $0x8] sm:$0xff] %v514_v44  ;;  %v517_v57 = vmax.f32 %v476_v47, 0.0  ;;  %v518_v58 = vmax.f32 %v477_v48, 0.0  ;;  %v478_v59 = vadd.f32 %v683_v39, %v437_v49  ;;  %v690_v63 = vunpack.c.l.bf16 %v832_v51 }
  0x1c   : > { %556 = vst [vmem:[%s966_s6 + $0x10] sm:$0xff] %v515_v45  ;;  %v394_v62 = vmul.f32 %v932_v0, %v766_v55  ;;  %v395_v2 = vmul.f32 %v932_v0, %v767_v56  ;;  %v770_v3 = vunpack.c.l.bf16 %v851_v52  ;;  %v438_v6 = vadd.f32 %v937_v1, %v393_v60  ;;  %v837_v55 = vld [vmem:[%s942_s28 + $0x58] sm:$0xff]   ;;  %v856_v60 = vld [vmem:[%s927_s21 + $0x50] sm:$0xff]  }
  0x1d   : > { %557 = vst [vmem:[%s966_s6 + $0x18] sm:$0xff] %v516_v46  ;;  %v519_v5 = vmax.f32 %v478_v59, 0.0  ;;  %v691_v7 = vunpack.c.h.bf16 %v832_v51  ;;  %v771_v8 = vunpack.c.h.bf16 %v851_v52  ;;  %v694_v12 = vunpack.c.l.bf16 %v833_v61  ;;  %v855_v46 = vld [vmem:[%s927_s21 + $0x48] sm:$0xff]  }
  0x1e   : > { %558 = vst [vmem:[%s966_s6 + $0x20] sm:$0xff] %v517_v57  ;;  %v439_v9 = vadd.f32 %v937_v1, %v394_v62  ;;  %v440_v10 = vadd.f32 %v937_v1, %v395_v2  ;;  %v396_v11 = vmul.f32 %v932_v0, %v770_v3  ;;  %v479_v14 = vadd.f32 %v686_v53, %v438_v6 }
  0x1f   : > { %559 = vst [vmem:[%s966_s6 + $0x28] sm:$0xff] %v518_v58  ;;  %v397_v15 = vmul.f32 %v932_v0, %v771_v8  ;;  %v695_v16 = vunpack.c.h.bf16 %v833_v61  ;;  %v774_v17 = vunpack.c.l.bf16 %v852_v4  ;;  %v775_v21 = vunpack.c.h.bf16 %v852_v4 }
  0x20   : > { %560 = vst [vmem:[%s966_s6 + $0x30] sm:$0xff] %v519_v5  ;;  %v480_v18 = vadd.f32 %v687_v54, %v439_v9  ;;  %v481_v19 = vadd.f32 %v690_v63, %v440_v10  ;;  %v441_v20 = vadd.f32 %v937_v1, %v396_v11  ;;  %v520_v23 = vmax.f32 %v479_v14, 0.0  ;;  %v838_v11 = vld [vmem:[%s942_s28 + $0x60] sm:$0xff]  }
  0x21   : > { %v442_v24 = vadd.f32 %v937_v1, %v397_v15  ;;  %v398_v25 = vmul.f32 %v932_v0, %v774_v17  ;;  %v698_v26 = vunpack.c.l.bf16 %v834_v13  ;;  %v399_v31 = vmul.f32 %v932_v0, %v775_v21  ;;  %v839_v21 = vld [vmem:[%s942_s28 + $0x68] sm:$0xff]  }
  0x22   : > { %v521_v28 = vmax.f32 %v480_v18, 0.0  ;;  %v522_v29 = vmax.f32 %v481_v19, 0.0  ;;  %v482_v30 = vadd.f32 %v691_v7, %v441_v20  ;;  %561 = vst [vmem:[%s966_s6 + $0x38] sm:$0xff] %v520_v23  ;;  %v699_v35 = vunpack.c.h.bf16 %v834_v13 }
  0x23   : > { %v483_v33 = vadd.f32 %v694_v12, %v442_v24  ;;  %v443_v34 = vadd.f32 %v937_v1, %v398_v25  ;;  %v778_v36 = vunpack.c.l.bf16 %v853_v22  ;;  %v444_v38 = vadd.f32 %v937_v1, %v399_v31  ;;  %v857_v12 = vld [vmem:[%s927_s21 + $0x58] sm:$0xff]  }
  0x24   : > { %562 = vst [vmem:[%s966_s6 + $0x40] sm:$0xff] %v521_v28  ;;  %v523_v37 = vmax.f32 %v482_v30, 0.0  ;;  %v702_v39 = vunpack.c.l.bf16 %v835_v27  ;;  %v779_v40 = vunpack.c.h.bf16 %v853_v22  ;;  %v782_v45 = vunpack.c.l.bf16 %v854_v32 }
  0x25   : > { %563 = vst [vmem:[%s966_s6 + $0x48] sm:$0xff] %v522_v29  ;;  %v524_v42 = vmax.f32 %v483_v33, 0.0  ;;  %v484_v43 = vadd.f32 %v695_v16, %v443_v34  ;;  %v400_v44 = vmul.f32 %v932_v0, %v778_v36  ;;  %v485_v47 = vadd.f32 %v698_v26, %v444_v38  ;;  %v858_v26 = vld [vmem:[%s927_s21 + $0x60] sm:$0xff]  }
  0x26   : > { %564 = vst [vmem:[%s966_s6 + $0x50] sm:$0xff] %v523_v37  ;;  %v401_v48 = vmul.f32 %v932_v0, %v779_v40  ;;  %v703_v49 = vunpack.c.h.bf16 %v835_v27  ;;  %v783_v50 = vunpack.c.h.bf16 %v854_v32  ;;  %v402_v53 = vmul.f32 %v932_v0, %v782_v45  ;;  %v859_v40 = vld [vmem:[%s927_s21 + $0x68] sm:$0xff]  }
  0x27   : > { %565 = vst [vmem:[%s966_s6 + $0x58] sm:$0xff] %v524_v42  ;;  %v525_v51 = vmax.f32 %v484_v43, 0.0  ;;  %v445_v52 = vadd.f32 %v937_v1, %v400_v44  ;;  %v706_v54 = vunpack.c.l.bf16 %v836_v41  ;;  %v526_v56 = vmax.f32 %v485_v47, 0.0 }
  0x28   : > { %v446_v57 = vadd.f32 %v937_v1, %v401_v48  ;;  %v403_v58 = vmul.f32 %v932_v0, %v783_v50  ;;  %v786_v59 = vunpack.c.l.bf16 %v855_v46  ;;  %v447_v62 = vadd.f32 %v937_v1, %v402_v53  ;;  %v841_v53 = vld [vmem:[%s942_s28 + $0x78] sm:$0xff]  }
  0x29   : > { %566 = vst [vmem:[%s966_s6 + $0x60] sm:$0xff] %v525_v51  ;;  %v486_v61 = vadd.f32 %v699_v35, %v445_v52  ;;  %v707_v63 = vunpack.c.h.bf16 %v836_v41  ;;  %v787_v2 = vunpack.c.h.bf16 %v855_v46  ;;  %v710_v6 = vunpack.c.l.bf16 %v837_v55  ;;  %v840_v35 = vld [vmem:[%s942_s28 + $0x70] sm:$0xff]  }
  0x2a   : > { %567 = vst [vmem:[%s966_s6 + $0x68] sm:$0xff] %v526_v56  ;;  %v487_v3 = vadd.f32 %v702_v39, %v446_v57  ;;  %v448_v4 = vadd.f32 %v937_v1, %v403_v58  ;;  %v404_v5 = vmul.f32 %v932_v0, %v786_v59  ;;  %v488_v8 = vadd.f32 %v703_v49, %v447_v62 }
  0x2b   : > { %v527_v7 = vmax.f32 %v486_v61, 0.0  ;;  %v405_v9 = vmul.f32 %v932_v0, %v787_v2  ;;  %v790_v10 = vunpack.c.l.bf16 %v856_v60  ;;  %v711_v16 = vunpack.c.h.bf16 %v837_v55 }
  0x2c   : > { %v528_v13 = vmax.f32 %v487_v3, 0.0  ;;  %v489_v14 = vadd.f32 %v706_v54, %v448_v4  ;;  %v449_v15 = vadd.f32 %v937_v1, %v404_v5  ;;  %v529_v17 = vmax.f32 %v488_v8, 0.0  ;;  %v860_v54 = vld [vmem:[%s927_s21 + $0x70] sm:$0xff]   ;;  %v842_v5 = vld [vmem:[%s942_s28 + $0x80] sm:$0xff]  }
  0x2d   : > { %568 = vst [vmem:[%s966_s6 + $0x70] sm:$0xff] %v527_v7  ;;  %v450_v18 = vadd.f32 %v937_v1, %v405_v9  ;;  %v406_v19 = vmul.f32 %v932_v0, %v790_v10  ;;  %v791_v20 = vunpack.c.h.bf16 %v856_v60  ;;  %v714_v24 = vunpack.c.l.bf16 %v838_v11 }
  0x2e   : > { %569 = vst [vmem:[%s966_s6 + $0x78] sm:$0xff] %v528_v13  ;;  %v530_v22 = vmax.f32 %v489_v14, 0.0  ;;  %v490_v23 = vadd.f32 %v707_v63, %v449_v15  ;;  %v794_v25 = vunpack.c.l.bf16 %v857_v12  ;;  %v715_v30 = vunpack.c.h.bf16 %v838_v11  ;;  %v843_v15 = vld [vmem:[%s942_s28 + $0x88] sm:$0xff]  }
  0x2f   : > { %570 = vst [vmem:[%s966_s6 + $0x80] sm:$0xff] %v529_v17  ;;  %v491_v27 = vadd.f32 %v710_v6, %v450_v18  ;;  %v451_v28 = vadd.f32 %v937_v1, %v406_v19  ;;  %v407_v29 = vmul.f32 %v932_v0, %v791_v20  ;;  %v718_v33 = vunpack.c.l.bf16 %v839_v21  ;;  %v861_v6 = vld [vmem:[%s927_s21 + $0x78] sm:$0xff]   ;;  %v862_v20 = vld [vmem:[%s927_s21 + $0x80] sm:$0xff]  }
  0x30   : > { %571 = vst [vmem:[%s966_s6 + $0x88] sm:$0xff] %v530_v22  ;;  %v531_v31 = vmax.f32 %v490_v23, 0.0  ;;  %v408_v32 = vmul.f32 %v932_v0, %v794_v25  ;;  %v795_v34 = vunpack.c.h.bf16 %v857_v12  ;;  %v798_v39 = vunpack.c.l.bf16 %v858_v26 }
  0x31   : > { %v532_v36 = vmax.f32 %v491_v27, 0.0  ;;  %v492_v37 = vadd.f32 %v711_v16, %v451_v28  ;;  %v452_v38 = vadd.f32 %v937_v1, %v407_v29  ;;  %v719_v43 = vunpack.c.h.bf16 %v839_v21  ;;  %v844_v29 = vld [vmem:[%s942_s28 + $0x90] sm:$0xff]  }
  0x32   : > { %572 = vst [vmem:[%s966_s6 + $0x90] sm:$0xff] %v531_v31  ;;  %v453_v41 = vadd.f32 %v937_v1, %v408_v32  ;;  %v409_v42 = vmul.f32 %v932_v0, %v795_v34  ;;  %v799_v44 = vunpack.c.h.bf16 %v858_v26  ;;  %v410_v47 = vmul.f32 %v932_v0, %v798_v39  ;;  %v863_v34 = vld [vmem:[%s927_s21 + $0x88] sm:$0xff]  }
  0x33   : > { %573 = vst [vmem:[%s966_s6 + $0x98] sm:$0xff] %v532_v36  ;;  %v533_v45 = vmax.f32 %v492_v37, 0.0  ;;  %v493_v46 = vadd.f32 %v714_v24, %v452_v38  ;;  %v722_v48 = vunpack.c.l.bf16 %v840_v35  ;;  %v802_v52 = vunpack.c.l.bf16 %v859_v40 }
  0x34   : > { %v494_v49 = vadd.f32 %v715_v30, %v453_v41  ;;  %v454_v50 = vadd.f32 %v937_v1, %v409_v42  ;;  %v411_v51 = vmul.f32 %v932_v0, %v799_v44  ;;  %v455_v56 = vadd.f32 %v937_v1, %v410_v47  ;;  %v845_v47 = vld [vmem:[%s942_s28 + $0x98] sm:$0xff]  }
  0x35   : > { %574 = vst [vmem:[%s966_s6 + $0xa0] sm:$0xff] %v533_v45  ;;  %v534_v55 = vmax.f32 %v493_v46, 0.0  ;;  %v723_v57 = vunpack.c.h.bf16 %v840_v35  ;;  %v803_v58 = vunpack.c.h.bf16 %v859_v40  ;;  %v412_v62 = vmul.f32 %v932_v0, %v802_v52 }
  0x36   : > { %v535_v59 = vmax.f32 %v494_v49, 0.0  ;;  %v495_v60 = vadd.f32 %v718_v33, %v454_v50  ;;  %v456_v61 = vadd.f32 %v937_v1, %v411_v51  ;;  %v496_v63 = vadd.f32 %v719_v43, %v455_v56 }
  0x37   : > { %575 = vst [vmem:[%s966_s6 + $0xa8] sm:$0xff] %v534_v55  ;;  %v726_v2 = vunpack.c.l.bf16 %v841_v53  ;;  %v413_v3 = vmul.f32 %v932_v0, %v803_v58  ;;  %v806_v4 = vunpack.c.l.bf16 %v860_v54  ;;  %v457_v9 = vadd.f32 %v937_v1, %v412_v62 }
  0x38   : > { %576 = vst [vmem:[%s966_s6 + $0xb0] sm:$0xff] %v535_v59  ;;  %v536_v7 = vmax.f32 %v495_v60, 0.0  ;;  %v497_v8 = vadd.f32 %v722_v48, %v456_v61  ;;  %v727_v10 = vunpack.c.h.bf16 %v841_v53  ;;  %v537_v11 = vmax.f32 %v496_v63, 0.0  ;;  %v864_v48 = vld [vmem:[%s927_s21 + $0x90] sm:$0xff]   ;;  %v865_v61 = vld [vmem:[%s927_s21 + $0x98] sm:$0xff]  }
  0x39   : > { %v458_v12 = vadd.f32 %v937_v1, %v413_v3  ;;  %v414_v13 = vmul.f32 %v932_v0, %v806_v4  ;;  %v807_v14 = vunpack.c.h.bf16 %v860_v54  ;;  %v498_v17 = vadd.f32 %v723_v57, %v457_v9  ;;  %v846_v4 = vld [vmem:[%s942_s28 + $0xa0] sm:$0xff]  }
  0x3a   : > { %577 = vst [vmem:[%s966_s6 + $0xb8] sm:$0xff] %v536_v7  ;;  %v538_v16 = vmax.f32 %v497_v8, 0.0  ;;  %v730_v18 = vunpack.c.l.bf16 %v842_v5  ;;  %v810_v19 = vunpack.c.l.bf16 %v861_v6  ;;  %v731_v24 = vunpack.c.h.bf16 %v842_v5 }
  0x3b   : > { %578 = vst [vmem:[%s966_s6 + $0xc0] sm:$0xff] %v537_v11  ;;  %v499_v21 = vadd.f32 %v726_v2, %v458_v12  ;;  %v459_v22 = vadd.f32 %v937_v1, %v414_v13  ;;  %v415_v23 = vmul.f32 %v932_v0, %v807_v14  ;;  %v539_v25 = vmax.f32 %v498_v17, 0.0  ;;  %v340_v12 = vld [vmem:[%s927_s21 + $0xa0] sm:$0x3]  ;;  %v257_v17 = vld [vmem:[%s942_s28 + $0xa8] sm:$0xf] }
  0x3c   : > { %579 = vst [vmem:[%s966_s6 + $0xc8] sm:$0xff] %v538_v16  ;;  %v416_v26 = vmul.f32 %v932_v0, %v810_v19  ;;  %v734_v27 = vunpack.c.l.bf16 %v843_v15  ;;  %v811_v28 = vunpack.c.h.bf16 %v861_v6  ;;  %v814_v33 = vunpack.c.l.bf16 %v862_v20 }
  0x3d   : > { %v540_v30 = vmax.f32 %v499_v21, 0.0  ;;  %v500_v31 = vadd.f32 %v727_v10, %v459_v22  ;;  %v460_v32 = vadd.f32 %v937_v1, %v415_v23  ;;  %580 = vst [vmem:[%s966_s6 + $0xd0] sm:$0xff] %v539_v25  ;;  %v735_v37 = vunpack.c.h.bf16 %v843_v15  ;;  %v258_v22 = vld [vmem:[%s942_s28 + $0xac] sm:$0x3] }
  0x3e   : > { %v461_v35 = vadd.f32 %v937_v1, %v416_v26  ;;  %v417_v36 = vmul.f32 %v932_v0, %v811_v28  ;;  %v815_v38 = vunpack.c.h.bf16 %v862_v20  ;;  %v418_v41 = vmul.f32 %v932_v0, %v814_v33 }
  0x3f   : > { %581 = vst [vmem:[%s966_s6 + $0xd8] sm:$0xff] %v540_v30  ;;  %v541_v39 = vmax.f32 %v500_v31, 0.0  ;;  %v501_v40 = vadd.f32 %v730_v18, %v460_v32  ;;  %v738_v42 = vunpack.c.l.bf16 %v844_v29  ;;  %v818_v46 = vunpack.c.l.bf16 %v863_v34 }
  0x40   : > { %v502_v43 = vadd.f32 %v731_v24, %v461_v35  ;;  %v462_v44 = vadd.f32 %v937_v1, %v417_v36  ;;  %v419_v45 = vmul.f32 %v932_v0, %v815_v38  ;;  %v463_v50 = vadd.f32 %v937_v1, %v418_v41 }
  0x41   : > { %582 = vst [vmem:[%s966_s6 + $0xe0] sm:$0xff] %v541_v39  ;;  %v542_v49 = vmax.f32 %v501_v40, 0.0  ;;  %v739_v51 = vunpack.c.h.bf16 %v844_v29  ;;  %v819_v52 = vunpack.c.h.bf16 %v863_v34  ;;  %v420_v56 = vmul.f32 %v932_v0, %v818_v46 }
  0x42   : > { %v543_v53 = vmax.f32 %v502_v43, 0.0  ;;  %v503_v54 = vadd.f32 %v734_v27, %v462_v44  ;;  %v464_v55 = vadd.f32 %v937_v1, %v419_v45  ;;  %v504_v57 = vadd.f32 %v735_v37, %v463_v50 }
  0x43   : > { %583 = vst [vmem:[%s966_s6 + $0xe8] sm:$0xff] %v542_v49  ;;  %v742_v58 = vunpack.c.l.bf16 %v845_v47  ;;  %v421_v59 = vmul.f32 %v932_v0, %v819_v52  ;;  %v822_v60 = vunpack.c.l.bf16 %v864_v48  ;;  %v465_v2 = vadd.f32 %v937_v1, %v420_v56 }
  0x44   : > { %584 = vst [vmem:[%s966_s6 + $0xf0] sm:$0xff] %v543_v53  ;;  %v544_v62 = vmax.f32 %v503_v54, 0.0  ;;  %v505_v63 = vadd.f32 %v738_v42, %v464_v55  ;;  %v743_v3 = vunpack.c.h.bf16 %v845_v47  ;;  %v545_v5 = vmax.f32 %v504_v57, 0.0 }
  0x45   : > { %v466_v6 = vadd.f32 %v937_v1, %v421_v59  ;;  %v422_v7 = vmul.f32 %v932_v0, %v822_v60  ;;  %v823_v8 = vunpack.c.h.bf16 %v864_v48  ;;  %v506_v10 = vadd.f32 %v739_v51, %v465_v2 }
  0x46   : > { %585 = vst [vmem:[%s966_s6 + $0xf8] sm:$0xff] %v544_v62  ;;  %v546_v9 = vmax.f32 %v505_v63, 0.0  ;;  %v826_v11 = vunpack.c.l.bf16 %v865_v61  ;;  %v746_v15 = vunpack.c.l.bf16 %v846_v4  ;;  %v747_v19 = vunpack.c.h.bf16 %v846_v4 }
  0x47   : > { %586 = vst [vmem:[%s966_s6 + $0x100] sm:$0xff] %v545_v5  ;;  %v507_v13 = vadd.f32 %v742_v58, %v466_v6  ;;  %v467_v14 = vadd.f32 %v937_v1, %v422_v7  ;;  %v423_v16 = vmul.f32 %v932_v0, %v823_v8  ;;  %v547_v18 = vmax.f32 %v506_v10, 0.0 }
  0x48   : > { %587 = vst [vmem:[%s966_s6 + $0x108] sm:$0xff] %v546_v9  ;;  %v424_v20 = vmul.f32 %v932_v0, %v826_v11  ;;  %v827_v21 = vunpack.c.h.bf16 %v865_v61  ;;  %v381_v26 = vunpack.c.l.bf16 %v340_v12  ;;  %v298_v28 = vunpack.c.l.bf16 %v257_v17 }
  0x49   : > { %v548_v23 = vmax.f32 %v507_v13, 0.0  ;;  %v508_v24 = vadd.f32 %v743_v3, %v467_v14  ;;  %v468_v25 = vadd.f32 %v937_v1, %v423_v16  ;;  %588 = vst [vmem:[%s966_s6 + $0x110] sm:$0xff] %v547_v18  ;;  %v299_v32 = vunpack.c.l.bf16 %v258_v22 }
  0x4a   : > { %v469_v27 = vadd.f32 %v937_v1, %v424_v20  ;;  %v425_v29 = vmul.f32 %v932_v0, %v827_v21  ;;  %v426_v33 = vmul.f32 %v932_v0, %v381_v26 }
  0x4b   : > { %589 = vst [vmem:[%s966_s6 + $0x118] sm:$0xff] %v548_v23  ;;  %v549_v30 = vmax.f32 %v508_v24, 0.0  ;;  %v509_v31 = vadd.f32 %v746_v15, %v468_v25 }
  0x4c   : > { %v510_v34 = vadd.f32 %v747_v19, %v469_v27  ;;  %v470_v35 = vadd.f32 %v937_v1, %v425_v29  ;;  %v471_v37 = vadd.f32 %v937_v1, %v426_v33 }
  0x4d   : > { %590 = vst [vmem:[%s966_s6 + $0x120] sm:$0xff] %v549_v30  ;;  %v550_v36 = vmax.f32 %v509_v31, 0.0 }
  0x4e   : > { %v551_v38 = vmax.f32 %v510_v34, 0.0  ;;  %v511_v39 = vadd.f32 %v470_v35, %v298_v28  ;;  %v512_v40 = vadd.f32 %v471_v37, %v299_v32 }
  0x4f   : > { %591 = vst [vmem:[%s966_s6 + $0x128] sm:$0xff] %v550_v36 }
  0x50   : > { %592 = vst [vmem:[%s966_s6 + $0x130] sm:$0xff] %v551_v38  ;;  %v552_v41 = vmax.f32 %v511_v39, 0.0  ;;  %v553_v42 = vmax.f32 %v512_v40, 0.0 }
  0x52   : > { %593 = vst [vmem:[%s966_s6 + $0x138] sm:$0xff] %v552_v41 }
  0x53   : > { %594 = vst [vmem:[%s966_s6 + $0x140] sm:$0xf] %v553_v42 }
  0x54 PF: > { %s14_s15 = sadd.s32 1, %s885_s15  }
  0x55   : > { %p11_p4 = scmp.ge.s32.totalorder %s14_s15, 4  }
  0x57   :  { %13 = sbr.rel (!%p11_p4) target bundleno = 1 (0x1), region = 69 }

// kernel: residual_block_basic_2d.4
= control target key start
LH: loop header
LB: loop body
LE: loop exit
PB: predicated region body
PF: predicated region fallthrough
CT: control target
= control target key end

     0   :  { %s6181_s24 = smov 0   ;;  %s8128_s0 = inlined_call_operand.vmem [shape: bf16[2,324,128], index: 0, kind: input, shape index: {}]   ;;  %s8129_s1 = inlined_call_operand.vmem [shape: bf16[9,128,128], index: 1, kind: input, shape index: {}]   ;;  %s8130_s2 = inlined_call_operand.vmem [shape: f32[1,128], index: 2, kind: input, shape index: {}]   ;;  %s8131_s3 = inlined_call_operand.vmem [shape: f32[1,128], index: 3, kind: input, shape index: {}]   ;;  %s8132_s4 = inlined_call_operand.vmem [shape: f32[324,1], index: 4, kind: input, shape index: {}]   ;;  %s8133_s5 = inlined_call_operand.vmem [shape: bf16[2,324,128], index: 5, kind: output, shape index: {0}]   ;;  %s8134_s6 = inlined_call_operand.vmem [shape: f32[2,1,128], index: 6, kind: output, shape index: {1}]   ;;  %s8135_s7 = inlined_call_operand.vmem [shape: f32[2,1,128], index: 7, kind: output, shape index: {2}]  }
   0x1 LB: > { %s4832_s25 = sadd.s32 4294967295, %s6138_s24   ;;  %p4836_p0 = scmp.ge.s32.totalorder %s6138_s24, 1  ;;  %s6138_s24 = sphi %s6181_s24, %s18_s24  }
   0x2   : > { %p242_p1 = scmp.lt.s32.totalorder %s6138_s24, 3 }
   0x4   : > { %p243_p2 = pnand %p4836_p0, %p242_p1 }
   0x6   : > { %246 = sbr.rel (%p243_p2) target bundleno = 1083 (0x43b), region = 40 }
   0xb   : > { %v320_v0 = vld [vmem:[%s8132_s4 + $0xb8] sm:$0xff]  ;;  %v318_v1 = vld [vmem:[%s8132_s4 + $0xa8] sm:$0xff]  ;;  %v6140_v3 = vmov 0   ;;  %v321_v4 = vld [vmem:[%s8132_s4 + $0xc0] sm:$0xff]  ;;  %p280_p3 = scmp.lt.s32.totalorder %s4832_s25, 1  ;;  %vm1107_vm0 = vcmask 1044480  }
   0xc   : > { %v306_v2 = vld [vmem:[%s8132_s4 + $0x48] sm:$0xff]  ;;  %6108 = vset.pattern.permute.xlu2 %v6140_v3  ;;  %797 = vst [vmem:[#allocation2] sm:$0xf] %v6140_v3  ;;  %6107 = vset.pattern.permute.xlu1 %v6140_v3  ;;  %v319_v5 = vld [vmem:[%s8132_s4 + $0xb0] sm:$0xff]  ;;  %v309_v7 = vld [vmem:[%s8132_s4 + $0x60] sm:$0xff]  ;;  %vm3863_vm4 = vcmask 1046528  }
   0xd   : > { %798 = vst [vmem:[#allocation2 + $0x4] sm:$0xf] %v6140_v3  ;;  %6106 = vset.pattern.permute.xlu0 %v6140_v3  ;;  %668 = vperm.xlu1 %6107, %v320_v0   ;;  %v307_v6 = vld [vmem:[%s8132_s4 + $0x50] sm:$0xff]  ;;  %v308_v8 = vld [vmem:[%s8132_s4 + $0x58] sm:$0xff]  ;;  %v297_v9 = vld [vmem:[%s8132_s4] sm:$0xff]  ;;  %s8404_s25 = smov (!%p280_p3, %s4832_s25), 1 }
   0xe   : > { %799 = vst [vmem:[#allocation2 + $0x8] sm:$0xf] %v6140_v3  ;;  %658 = vperm.xlu0 %6106, %v318_v1   ;;  %598 = vperm.xlu2 %6108, %v306_v2   ;;  %v323_v10 = vld [vmem:[%s8132_s4 + $0xd0] sm:$0xff]  ;;  %v322_v11 = vld [vmem:[%s8132_s4 + $0xc8] sm:$0xff]  ;;  %v325_v16 = vld [vmem:[%s8132_s4 + $0xe0] sm:$0xff]  ;;  %s6096_s29 = smul.u32 164, %s8404_s25  ;;  %s292_s27 = scalar_lea.vmem %s8134_s6, %s8404_s25 }
   0xf   : > { %800 = vst [vmem:[#allocation2 + $0xc] sm:$0xf] %v6140_v3  ;;  %v310_v12 = vld [vmem:[%s8132_s4 + $0x68] sm:$0xff]  ;;  %v311_v14 = vld [vmem:[%s8132_s4 + $0x70] sm:$0xff]  ;;  %v324_v17 = vld [vmem:[%s8132_s4 + $0xd8] sm:$0xff]  ;;  %vm4546_vm6 = vcmask 1043456   ;;  %s295_s8 = scalar_lea.vmem %s8135_s7, %s8404_s25 }
  0x10   : > { %801 = vst [vmem:[#allocation2 + $0x10] sm:$0xf] %v6140_v3  ;;  %v298_v13 = vld [vmem:[%s8132_s4 + $0x8] sm:$0xff]  ;;  %v299_v15 = vld [vmem:[%s8132_s4 + $0x10] sm:$0xff]  ;;  %v312_v18 = vld [vmem:[%s8132_s4 + $0x78] sm:$0xff]  ;;  %s6361_s17 = scalar_lea.vmem %s8128_s0, %s6096_s29  ;;  %s7880_s23 = scalar_lea.vmem %s8133_s5, %s6096_s29 }
  0x11   : > { %802 = vst [vmem:[#allocation2 + $0x14] sm:$0xf] %v6140_v3  ;;  %v300_v19 = vld [vmem:[%s8132_s4 + $0x18] sm:$0xff]  ;;  %v313_v20 = vld [vmem:[%s8132_s4 + $0x80] sm:$0xff]  ;;  %v327_v22 = vld [vmem:[%s8132_s4 + $0xf0] sm:$0xff] }
  0x12   : > { %803 = vst [vmem:[#allocation2 + $0x18] sm:$0xf] %v6140_v3  ;;  %v301_v21 = vld [vmem:[%s8132_s4 + $0x20] sm:$0xff]  ;;  %v326_v23 = vld [vmem:[%s8132_s4 + $0xe8] sm:$0xff]  ;;  %v332_v25 = vld [vmem:[%s8132_s4 + $0x118] sm:$0xff] }
  0x13   : > { %804 = vst [vmem:[#allocation2 + $0x1c] sm:$0xf] %v6140_v3  ;;  %v330_v24 = vld [vmem:[%s8132_s4 + $0x108] sm:$0xff]  ;;  %v331_v26 = vld [vmem:[%s8132_s4 + $0x110] sm:$0xff]  ;;  %v333_v27 = vld [vmem:[%s8132_s4 + $0x120] sm:$0xff] }
  0x14   : > { %805 = vst [vmem:[#allocation2 + $0x20] sm:$0xf] %v6140_v3  ;;  %v5443_v28 = vld [vmem:[%s8129_s1 + $0x78] sm:$0xff]  ;;  %v315_v29 = vld [vmem:[%s8132_s4 + $0x90] sm:$0xff]  ;;  %v314_v31 = vld [vmem:[%s8132_s4 + $0x88] sm:$0xff] }
  0x15   : > { %806 = vst [vmem:[#allocation2 + $0x24] sm:$0xf] %v6140_v3  ;;  %673 = vperm.xlu1 %6107, %v321_v4   ;;  %1218 = vmatpush.bf16.msra.mxu0 %v5443_v28  ;;  %v5442_v30 = vld [vmem:[%s8129_s1 + $0x70] sm:$0xff]  ;;  %v302_v32 = vld [vmem:[%s8132_s4 + $0x28] sm:$0xff]  ;;  %v328_v34 = vld [vmem:[%s8132_s4 + $0xf8] sm:$0xff] }
  0x16   : > { %807 = vst [vmem:[#allocation2 + $0x28] sm:$0xf] %v6140_v3  ;;  %663 = vperm.xlu0 %6106, %v319_v5   ;;  %603 = vperm.xlu2 %6108, %v307_v6   ;;  %v5441_v33 = vld [vmem:[%s8129_s1 + $0x68] sm:$0xff]  ;;  %v5440_v35 = vld [vmem:[%s8129_s1 + $0x60] sm:$0xff]  ;;  %v303_v36 = vld [vmem:[%s8132_s4 + $0x30] sm:$0xff] }
  0x17   : > { %808 = vst [vmem:[#allocation2 + $0x2c] sm:$0xf] %v6140_v3  ;;  %6073 = vmatpush.bf16.msra.mxu2 %v5443_v28  ;;  %6072 = vmatpush.bf16.msra.mxu1 %v5443_v28  ;;  %v329_v37 = vld [vmem:[%s8132_s4 + $0x100] sm:$0xff]  ;;  %v6367_v39 = vld [vmem:[%s6361_s17 + $0x28] sm:$0xff]   ;;  %v5439_v40 = vld [vmem:[%s8129_s1 + $0x58] sm:$0xff] }
  0x18   : > { %809 = vst [vmem:[#allocation2 + $0x30] sm:$0xf] %v6140_v3  ;;  %6074 = vmatpush.bf16.msra.mxu3 %v5443_v28  ;;  %v6364_v38 = vld [vmem:[%s6361_s17 + $0x20] sm:$0xff]   ;;  %v5541_v43 = vunpack.c.l.bf16 %v6367_v39  ;;  %v5438_v44 = vld [vmem:[%s8129_s1 + $0x50] sm:$0xff]  ;;  %v334_v46 = vld [vmem:[%s8132_s4 + $0x128] sm:$0xff] }
  0x19   : > { %810 = vst [vmem:[#allocation2 + $0x34] sm:$0xf] %v6140_v3  ;;  %1219 = vmatpush.bf16.msra.mxu0 %v5442_v30  ;;  %v5538_v41 = vunpack.c.h.bf16 %v6364_v38  ;;  %v6376_v42 = vld [vmem:[%s8130_s2] ss:$0 sm:$0xff]  ;;  %v335_v45 = vld [vmem:[%s8132_s4 + $0x130] sm:$0xff]  ;;  %v316_v47 = vld [vmem:[%s8132_s4 + $0x98] sm:$0xff] }
  0x1a   : > { %811 = vst [vmem:[#allocation2 + $0x38] sm:$0xf] %v6140_v3  ;;  %v6395_v49 = vld [vmem:[%s8131_s3] ss:$0 sm:$0xff]  ;;  %v434_v50 = vmul.f32 %v6376_v42, %v5541_v43  ;;  %v5437_v52 = vld [vmem:[%s8129_s1 + $0x48] sm:$0xff]  ;;  %v304_v57 = vld [vmem:[%s8132_s4 + $0x38] sm:$0xff] }
  0x1b   : > { %812 = vst [vmem:[#allocation2 + $0x3c] sm:$0xf] %v6140_v3  ;;  %6076 = vmatpush.bf16.msra.mxu2 %v5442_v30  ;;  %6075 = vmatpush.bf16.msra.mxu1 %v5442_v30  ;;  %v433_v48 = vmul.f32 %v6376_v42, %v5538_v41  ;;  %v6399_v51 = vld [vmem:[%s6361_s17] sm:$0xff]   ;;  %v336_v6 = vld [vmem:[%s8132_s4 + $0x138] sm:$0xff]  ;;  %v6450_v28 = vld [vmem:[%s6361_s17 + $0x30] sm:$0xff]  }
  0x1c   : > { %813 = vst [vmem:[#allocation2 + $0x40] sm:$0xf] %v6140_v3  ;;  %6077 = vmatpush.bf16.msra.mxu3 %v5442_v30  ;;  %v479_v55 = vadd.f32 %v6395_v49, %v434_v50  ;;  %v5521_v56 = vunpack.c.l.bf16 %v6399_v51  ;;  %v5436_v58 = vld [vmem:[%s8129_s1 + $0x40] sm:$0xff]  ;;  %vm1726_vm1 = vsmask.f32 4352 }
  0x1d   : > { %814 = vst [vmem:[#allocation2 + $0x44] sm:$0xf] %v6140_v3  ;;  %613 = vperm.xlu1 %6107, %v309_v7   ;;  %1220 = vmatpush.bf16.msra.mxu0 %v5441_v33  ;;  %v478_v53 = vadd.f32 %v6395_v49, %v433_v48  ;;  %v317_v60 = vld [vmem:[%s8132_s4 + $0xa0] sm:$0xff]  ;;  %v6434_v7 = vld [vmem:[%s6361_s17 + $0x50] sm:$0xff]   ;;  %vm1334_vm2 = vsmask.f32 5376 }
  0x1e   : > { %815 = vst [vmem:[#allocation2 + $0x48] sm:$0xf] %v6140_v3  ;;  %608 = vperm.xlu0 %6106, %v308_v8   ;;  %553 = vperm.xlu2 %6108, %v297_v9   ;;  %v305_v61 = vld [vmem:[%s8132_s4 + $0x40] sm:$0xff]  ;;  %v520_v62 = vmax.f32 %v479_v55, 0.0  ;;  %v424_v63 = vmul.f32 %v6376_v42, %v5521_v56  ;;  %v5880_v9 = vld [vmem:[%s6361_s17 + $0x58] sm:$0xff]   ;;  %v6469_v55 = vld [vmem:[%s6361_s17 + $0x68] sm:$0xff]  }
  0x1f   : > { %816 = vst [vmem:[#allocation2 + $0x4c] sm:$0xf] %v6140_v3  ;;  %6079 = vmatpush.bf16.msra.mxu2 %v5441_v33  ;;  %6078 = vmatpush.bf16.msra.mxu1 %v5441_v33  ;;  %v519_v59 = vmax.f32 %v478_v53, 0.0  ;;  %v337_v4 = vld [vmem:[%s8132_s4 + $0x140] sm:$0xf] }
  0x20   : > { %817 = vst [vmem:[#allocation2 + $0x50] sm:$0xf] %v6140_v3  ;;  %6080 = vmatpush.bf16.msra.mxu3 %v5441_v33  ;;  %vm2900_vm3 = vsmask.f32 7424  ;;  %vm4149_vm5 = vsmask.f32 6400 }
  0x21   : > { %818 = vst [vmem:[#allocation2 + $0x54] sm:$0xf] %v6140_v3  ;;  %1221 = vmatpush.bf16.msra.mxu0 %v5440_v35 }
  0x22   : > { %819 = vst [vmem:[#allocation2 + $0x58] sm:$0xf] %v6140_v3 }
  0x23   : > { %820 = vst [vmem:[#allocation2 + $0x5c] sm:$0xf] %v6140_v3  ;;  %6082 = vmatpush.bf16.msra.mxu2 %v5440_v35  ;;  %6081 = vmatpush.bf16.msra.mxu1 %v5440_v35 }
  0x24   : > { %821 = vst [vmem:[#allocation2 + $0x60] sm:$0xf] %v6140_v3  ;;  %6083 = vmatpush.bf16.msra.mxu3 %v5440_v35 }
  0x25   : > { %822 = vst [vmem:[#allocation2 + $0x64] sm:$0xf] %v6140_v3  ;;  %683 = vperm.xlu1 %6107, %v323_v10   ;;  %1222 = vmatpush.bf16.msra.mxu0 %v5439_v40  ;;  %v6438_v10 = vld [vmem:[%s6361_s17 + $0x60] sm:$0xff]  }
  0x26   : > { %823 = vst [vmem:[#allocation2 + $0x68] sm:$0xf] %v6140_v3  ;;  %678 = vperm.xlu0 %6106, %v322_v11   ;;  %618 = vperm.xlu2 %6108, %v310_v12   ;;  %v5562_v11 = vunpack.c.h.bf16 %v6434_v7 }
  0x27   : > { %824 = vst [vmem:[#allocation2 + $0x6c] sm:$0xf] %v6140_v3  ;;  %6085 = vmatpush.bf16.msra.mxu2 %v5439_v40  ;;  %6084 = vmatpush.bf16.msra.mxu1 %v5439_v40 }
  0x28   : > { %825 = vst [vmem:[#allocation2 + $0x70] sm:$0xf] %v6140_v3  ;;  %6086 = vmatpush.bf16.msra.mxu3 %v5439_v40 }
  0x29   : > { %826 = vst [vmem:[#allocation2 + $0x74] sm:$0xf] %v6140_v3  ;;  %1223 = vmatpush.bf16.msra.mxu0 %v5438_v44 }
  0x2a   : > { %827 = vst [vmem:[#allocation2 + $0x78] sm:$0xf] %v6140_v3 }
  0x2b   : > { %828 = vst [vmem:[#allocation2 + $0x7c] sm:$0xf] %v6140_v3  ;;  %6088 = vmatpush.bf16.msra.mxu2 %v5438_v44  ;;  %6087 = vmatpush.bf16.msra.mxu1 %v5438_v44 }
  0x2c   : > { %829 = vst [vmem:[#allocation2 + $0x80] sm:$0xf] %v6140_v3  ;;  %6089 = vmatpush.bf16.msra.mxu3 %v5438_v44 }
  0x2d   : > { %830 = vst [vmem:[#allocation2 + $0x84] sm:$0xf] %v6140_v3  ;;  %558 = vperm.xlu1 %6107, %v298_v13   ;;  %1224 = vmatpush.bf16.msra.mxu0 %v5437_v52  ;;  %v5566_v13 = vunpack.c.h.bf16 %v5880_v9 }
  0x2e   : > { %831 = vst [vmem:[#allocation2 + $0x88] sm:$0xf] %v6140_v3  ;;  %623 = vperm.xlu0 %6106, %v311_v14   ;;  %563 = vperm.xlu2 %6108, %v299_v15   ;;  %v5569_v14 = vunpack.c.l.bf16 %v6438_v10  ;;  %v5565_v15 = vunpack.c.l.bf16 %v5880_v9 }
  0x2f   : > { %832 = vst [vmem:[#allocation2 + $0x8c] sm:$0xf] %v6140_v3  ;;  %6091 = vmatpush.bf16.msra.mxu2 %v5437_v52  ;;  %6090 = vmatpush.bf16.msra.mxu1 %v5437_v52 }
  0x30   : > { %833 = vst [vmem:[#allocation2 + $0x90] sm:$0xf] %v6140_v3  ;;  %6092 = vmatpush.bf16.msra.mxu3 %v5437_v52 }
  0x31   : > { %834 = vst [vmem:[#allocation2 + $0x94] sm:$0xf] %v6140_v3  ;;  %1225 = vmatpush.bf16.msra.mxu0 %v5436_v58 }
  0x32   : > { %835 = vst [vmem:[#allocation2 + $0x98] sm:$0xf] %v6140_v3 }
  0x33   : > { %836 = vst [vmem:[#allocation2 + $0x9c] sm:$0xf] %v6140_v3  ;;  %6094 = vmatpush.bf16.msra.mxu2 %v5436_v58  ;;  %6093 = vmatpush.bf16.msra.mxu1 %v5436_v58 }
  0x34   : > { %837 = vst [vmem:[#allocation2 + $0xa0] sm:$0xf] %v6140_v3  ;;  %6095 = vmatpush.bf16.msra.mxu3 %v5436_v58 }
  0x35   : > { %838 = vst [vmem:[#allocation2 + $0xa4] sm:$0xf] %v6140_v3  ;;  %693 = vperm.xlu1 %6107, %v325_v16   ;;  %v927_v16 = vld [vmem:[#allocation2 + $0x4] sm:$0xf] }
  0x36   : > { %839 = vst [vmem:[#allocation2 + $0xa8] sm:$0xf] %v6140_v3  ;;  %688 = vperm.xlu0 %6106, %v324_v17   ;;  %628 = vperm.xlu2 %6108, %v312_v18   ;;  %v984_v17 = vld [vmem:[#allocation2] sm:$0x8] }
  0x37   : > { %840 = vst [vmem:[#allocation2 + $0xac] sm:$0xf] %v6140_v3 }
  0x38   : > { %841 = vst [vmem:[#allocation2 + $0xb0] sm:$0xf] %v6140_v3 }
  0x39   : > { %842 = vst [vmem:[#allocation2 + $0xb4] sm:$0xf] %v6140_v3  ;;  %v469_v3 = vadd.f32 %v6395_v49, %v424_v63 }
  0x3b   : > { %v510_v8 = vmax.f32 %v469_v3, 0.0  ;;  %v5573_v3 = vunpack.c.l.bf16 %v6469_v55 }
  0x3d   : > { %568 = vperm.xlu1 %6107, %v300_v19   ;;  %v926_v19 = vld [vmem:[#allocation2] sm:$0xc] }
  0x3e   : > { %633 = vperm.xlu0 %6106, %v313_v20   ;;  %573 = vperm.xlu2 %6108, %v301_v21   ;;  %v445_v21 = vmul.f32 %v6376_v42, %v5562_v11 }
  0x40   : > { %v490_v30 = vadd.f32 %v6395_v49, %v445_v21  ;;  %v5546_v21 = vunpack.c.h.bf16 %v6450_v28 }
  0x45   : > { %703 = vperm.xlu1 %6107, %v327_v22   ;;  %v1044_v22 = vunpack.c.l.b16 %v984_v17  ;;  %v6490_v17 = vld [vmem:[%s6361_s17 + $0x8] sm:$0xff]  }
  0x46   : > { %698 = vperm.xlu0 %6106, %v326_v23   ;;  %718 = vperm.xlu2 %6108, %v330_v24   ;;  %v1045_v23 = vunpack.c.l.b16 %v927_v16  ;;  %v447_v24 = vmul.f32 %v6376_v42, %v5566_v13 }
  0x48   : > { %v1086_v33 = vpack.c.b16 %v1045_v23, %v1044_v22 }
  0x4a   : > { %v1728_v40 = vshrl.u32 %v1086_v33, 16  ;;  %v1731_v44 = vshll.u32 %v1086_v33, 16  ;;  %v1108_v53 = vrot.slane %v1086_v33, 3 }
  0x4c   : > { %v1730_v56 = vrot.slane %v1728_v40, 3 }
  0x4d   : > { %728 = vperm.xlu1 %6107, %v332_v25   ;;  %v448_v25 = vmul.f32 %v6376_v42, %v5569_v14  ;;  %v5570_v14 = vunpack.c.h.bf16 %v6438_v10 }
  0x4e   : > { %723 = vperm.xlu0 %6106, %v331_v26   ;;  %733 = vperm.xlu2 %6108, %v333_v27   ;;  %v446_v26 = vmul.f32 %v6376_v42, %v5565_v15  ;;  %v1332_v27 = vunpack.c.l.b16 %v926_v19 }
  0x50   : > { %v1333_v41 = vpack.c.b16 %v1045_v23, %v1332_v27  ;;  %v5876_v23 = vld [vmem:[%s6361_s17 + $0x38] sm:$0xff]  }
  0x52   : > { %v1339_v58 = vshll.u32 %v1333_v41, 16 }
  0x55   : > { %643 = vperm.xlu1 %6107, %v315_v29  }
  0x56   : > { %638 = vperm.xlu0 %6106, %v314_v31   ;;  %578 = vperm.xlu2 %6108, %v302_v32   ;;  %v5545_v31 = vunpack.c.l.bf16 %v6450_v28  ;;  %v5542_v32 = vunpack.c.h.bf16 %v6367_v39  ;;  %v449_v28 = vmul.f32 %v6376_v42, %v5570_v14 }
  0x58   : > { %v435_v39 = vmul.f32 %v6376_v42, %v5542_v32  ;;  %v5451_v32 = vld [vmem:[%s8129_s1 + $0xb8] sm:$0xff] }
  0x59   : > { %1889 = vmatpush.bf16.msrb.mxu2 %v5451_v32 }
  0x5d   : > { %708 = vperm.xlu1 %6107, %v328_v34   ;;  %v492_v34 = vadd.f32 %v6395_v49, %v447_v24 }
  0x5e   : > { %583 = vperm.xlu0 %6106, %v303_v36   ;;  %713 = vperm.xlu2 %6108, %v329_v37   ;;  %v493_v36 = vadd.f32 %v6395_v49, %v448_v25  ;;  %v491_v37 = vadd.f32 %v6395_v49, %v446_v26  ;;  %v450_v26 = vmul.f32 %v6376_v42, %v5573_v3 }
  0x60   : > { %v534_v48 = vmax.f32 %v493_v36, 0.0  ;;  %v532_v50 = vmax.f32 %v491_v37, 0.0 }
  0x65   : > { %743 = vperm.xlu1 %6107, %v335_v45   ;;  %v531_v45 = vmax.f32 %v490_v30, 0.0  ;;  %v5525_v30 = vunpack.c.l.bf16 %v6490_v17 }
  0x66   : > { %738 = vperm.xlu0 %6106, %v334_v46   ;;  %648 = vperm.xlu2 %6108, %v316_v47   ;;  %v436_v46 = vmul.f32 %v6376_v42, %v5545_v31  ;;  %v533_v47 = vmax.f32 %v492_v34, 0.0  ;;  %v5550_v34 = vunpack.c.h.bf16 %v5876_v23 }
  0x68   : > { %v6405_v54 = vpop.permute.xlu2 %598 }
  0x69   : > { %8197 = vst [vmem:[#allocation3_spill] sm:$0xff] %v6405_v54  ;;  %v765_v0 = vmul.f32 %v6405_v54, %v519_v59 }
  0x6d   : > { %588 = vperm.xlu1 %6107, %v304_v57   ;;  %v1336_v57 = vshrl.u32 %v1333_v41, 16  ;;  %v6511_v41 = vld [vmem:[%s6361_s17 + $0x10] sm:$0xff]  }
  0x6e   : > { %653 = vperm.xlu0 %6106, %v317_v60   ;;  %593 = vperm.xlu2 %6108, %v305_v61  }
  0x6f   : > { %v1338_v15 = vrot.slane %v1336_v57, 2 }
  0x70   : > { %v6423_v1 = vpop.permute.xlu2 %603 }
  0x71   : > { %8198 = vst [vmem:[#allocation4_spill] sm:$0xff] %v6423_v1  ;;  %v766_v2 = vmul.f32 %v6423_v1, %v520_v62  ;;  %v1733_v62 = vrot.slane %v1731_v44, 4  ;;  %v5549_v44 = vunpack.c.l.bf16 %v5876_v23 }
  0x73   : > { %v5622_v5 = vpack.c.bf16 %v766_v2, %v765_v0  ;;  %v481_v0 = vadd.f32 %v6395_v49, %v436_v46  ;;  %v480_v2 = vadd.f32 %v6395_v49, %v435_v39  ;;  %v6515_v46 = vld [vmem:[%s6361_s17 + $0x80] sm:$0xff]   ;;  %v438_v3 = vmul.f32 %v6376_v42, %v5549_v44  ;;  %v6580_v44 = vld [vmem:[%s6361_s17 + $0x90] sm:$0xff]  }
  0x75   : > { %5893 = vst [vmem:[#allocation2 + $0x30] sm:$0xff] %v5622_v5   ;;  %753 = vperm.xlu1 %6107, %v337_v4   ;;  %v522_v25 = vmax.f32 %v481_v0, 0.0  ;;  %v521_v31 = vmax.f32 %v480_v2, 0.0 }
  0x76   : > { %748 = vperm.xlu0 %6106, %v336_v6  }
  0x78   : > { %v6441_v12 = vpop.permute.xlu2 %553 }
  0x79   : > { %8199 = vst [vmem:[#allocation5_spill] sm:$0xff] %v6441_v12  ;;  %v756_v18 = vmul.f32 %v6441_v12, %v510_v8 }
  0x7b   : > { %v844_v20 = vpack.c.bf16 %v756_v18, %v756_v18  ;;  %v1734_v18 = vor.u32 %v1733_v62, %v1730_v56  ;;  %v426_v56 = vmul.f32 %v6376_v42, %v5525_v30 }
  0x7d   : > { %885 = vst [vmem:[#allocation2 + $0xc] sm:$0xf] %v844_v20  ;;  %v1341_v20 = vrot.slane %v1339_v58, 3  ;;  %v439_v58 = vmul.f32 %v6376_v42, %v5550_v34 }
  0x7f   : > { %v6452_v29 = vpop.permute.xlu1 %668  ;;  %v1342_v37 = vor.u32 %v1341_v20, %v1338_v15 }
  0x80   : > { %8200 = vst [vmem:[#allocation6_spill] sm:$0xff] %v6452_v29  ;;  %v6458_v35 = vpop.permute.xlu0 %658  ;;  %v6462_v43 = vpop.permute.xlu2 %618  ;;  %v779_v4 = vmul.f32 %v6452_v29, %v533_v47 }
  0x81   : > { %8201 = vst [vmem:[#allocation7_spill] sm:$0xff] %v6458_v35  ;;  %v777_v11 = vmul.f32 %v6458_v35, %v531_v45  ;;  %v5522_v45 = vunpack.c.h.bf16 %v6399_v51  ;;  %v494_v51 = vadd.f32 %v6395_v49, %v449_v28 }
  0x82   : > { %8202 = vst [vmem:[#allocation8_spill] sm:$0xff] %v6462_v43 }
  0x83   : > { %v535_v14 = vmax.f32 %v494_v51, 0.0 }
  0x84   : > { %v6466_v52 = vld [vmem:[#allocation2 + $0x8] sm:$0xff] }
  0x85   : > { %v8137_v59 = vrot.slane %v6466_v52, 3  ;;  %v1344_v60 = vshrl.u32 %v6466_v52, 16  ;;  %v1347_v61 = vshll.u32 %v6466_v52, 16 }
  0x87   : > { %v6474_v63 = vpop.permute.xlu1 %673  ;;  %v1110_v8 = vsel %vm1107_vm0, %v1108_v53, %v8137_v59  ;;  %v1735_v9 = vrot.slane %v1344_v60, 3  ;;  %v1736_v19 = vrot.slane %v1347_v61, 4  ;;  %v1346_v27 = vrot.slane %v1344_v60, 2 }
  0x88   : > { %8203 = vst [vmem:[#allocation9_spill] sm:$0xff] %v6474_v63  ;;  %v780_v5 = vmul.f32 %v6474_v63, %v534_v48  ;;  %v6481_v6 = vpop.permute.xlu0 %663  ;;  %1226 = vmatmul.bf16.vlgmr.msra.gmra.mxu0 %v1110_v8  ;;  %v6494_v24 = vpop.permute.xlu2 %563  ;;  %v1349_v33 = vrot.slane %v1347_v61, 3  ;;  %v437_v53 = vmul.f32 %v6376_v42, %v5546_v21  ;;  %v5529_v60 = vunpack.c.l.bf16 %v6511_v41 }
  0x89   : > { %8204 = vst [vmem:[#allocation10_spill] sm:$0xff] %v6481_v6  ;;  %v778_v13 = vmul.f32 %v6481_v6, %v532_v50  ;;  %v6497_v10 = vor.u32 %v1736_v19, %v1735_v9  ;;  %v495_v50 = vadd.f32 %v6395_v49, %v450_v26  ;;  %v5586_v61 = vunpack.c.h.bf16 %v6515_v46  ;;  %v5467_v19 = vld [vmem:[%s8129_s1 + $0x138] sm:$0xff] }
  0x8a   : > { %v5657_v16 = vpack.c.bf16 %v780_v5, %v779_v4  ;;  %8205 = vst [vmem:[#allocation11_spill] sm:$0xff] %v6494_v24  ;;  %v6517_v39 = vor.u32 %v1349_v33, %v1346_v27  ;;  %v425_v4 = vmul.f32 %v6376_v42, %v5522_v45  ;;  %v6538_v5 = vld [vmem:[#allocation2 + $0x30] sm:$0xff]  ;;  %v6559_v21 = vadd.f32 %v6395_v49, %v439_v58  ;;  %v6594_v58 = vld [vmem:[%s6361_s17 + $0x40] sm:$0xff]  }
  0x8b   : > { %v5652_v22 = vpack.c.bf16 %v778_v13, %v777_v11  ;;  %v6506_v36 = vsel %vm1726_vm1, %v1734_v18, %v6497_v10  ;;  %v536_v8 = vmax.f32 %v495_v50, 0.0  ;;  %v482_v11 = vadd.f32 %v6395_v49, %v437_v53  ;;  %v5435_v18 = vld [vmem:[%s8129_s1 + $0x38] sm:$0xff]  ;;  %2725 = vmatpush.bf16.msrb.mxu0 %v5467_v19 }
  0x8c   : > { %5900 = vst [vmem:[#allocation2 + $0x68] sm:$0xff] %v5657_v16   ;;  %v6532_v62 = vsel %vm1334_vm2, %v1342_v37, %v6517_v39  ;;  %v6544_v13 = vadd.f32 %v6395_v49, %v426_v56  ;;  %v6548_v16 = vld [vmem:[%s6361_s17 + $0x70] sm:$0xff]   ;;  %v483_v27 = vadd.f32 %v6395_v49, %v438_v3  ;;  %v470_v30 = vadd.f32 %v6395_v49, %v425_v4 }
  0x8d   : > { %5899 = vst [vmem:[#allocation2 + $0x60] sm:$0xff] %v5652_v22   ;;  %v428_v22 = vmul.f32 %v6376_v42, %v5529_v60  ;;  %1592 = vmatpush.bf16.msrb.mxu1 %v5435_v18  ;;  %v8139_v28 = vshrl.u32 %v6538_v5, 16  ;;  %v5577_v37 = vunpack.c.l.bf16 %v6548_v16  ;;  %v523_v45 = vmax.f32 %v482_v11, 0.0 }
  0x8e   : > { %v8140_v51 = vrot.slane %v6538_v5, 3  ;;  %v5593_v3 = vunpack.c.l.bf16 %v6580_v44  ;;  %v511_v4 = vmax.f32 %v470_v30, 0.0  ;;  %v5450_v30 = vld [vmem:[%s8129_s1 + $0xb0] sm:$0xff] }
  0x8f   : > { %v6508_v40 = vpop.permute.xlu1 %613  ;;  %v6587_v56 = vadd.f32 %v6395_v49, %v428_v22  ;;  %v452_v11 = vmul.f32 %v6376_v42, %v5577_v37  ;;  %v769_v19 = vmul.f32 %v6462_v43, %v523_v45  ;;  %v5553_v22 = vunpack.c.l.bf16 %v6594_v58  ;;  %1890 = vmatpush.bf16.msrb.mxu2 %v5450_v30 }
  0x90   : > { %8206 = vst [vmem:[#allocation12_spill] sm:$0xff] %v6508_v40  ;;  %v768_v47 = vmul.f32 %v6508_v40, %v522_v25  ;;  %v6520_v48 = vpop.permute.xlu0 %608  ;;  %v6556_v20 = vpop.permute.xlu2 %628  ;;  %v457_v25 = vmul.f32 %v6376_v42, %v5586_v61  ;;  %v524_v61 = vmax.f32 %v483_v27, 0.0  ;;  %v5530_v27 = vunpack.c.h.bf16 %v6511_v41 }
  0x91   : > { %8207 = vst [vmem:[#allocation13_spill] sm:$0xff] %v6520_v48  ;;  %v767_v57 = vmul.f32 %v6520_v48, %v521_v31  ;;  %v5574_v31 = vunpack.c.h.bf16 %v6469_v55  ;;  %v1392_v55 = vshll.u32 %v6538_v5, 16  ;;  %v460_v41 = vmul.f32 %v6376_v42, %v5593_v3 }
  0x92   : > { %8208 = vst [vmem:[#allocation14_spill] sm:$0xff] %v6556_v20  ;;  %v497_v3 = vadd.f32 %v6395_v49, %v452_v11  ;;  %v440_v30 = vmul.f32 %v6376_v42, %v5553_v22 }
  0x93   : > { %v5627_v0 = vpack.c.bf16 %v768_v47, %v767_v57  ;;  %v6534_v2 = vld [vmem:[#allocation2 + $0x68] sm:$0xff]  ;;  %v512_v47 = vmax.f32 %v6544_v13, 0.0  ;;  %v6590_v57 = vadd.f32 %v6395_v49, %v457_v25  ;;  %v6602_v13 = vld [vmem:[%s6361_s17 + $0x78] sm:$0xff]   ;;  %v1756_v18 = vrot.slane %v1392_v55, 4 }
  0x94   : > { %v6540_v9 = vld [vmem:[#allocation2 + $0x60] sm:$0xff]  ;;  %v8138_v15 = vrot.slane %v6534_v2, 3  ;;  %v5526_v25 = vunpack.c.h.bf16 %v6490_v17 }
  0x95   : > { %5894 = vst [vmem:[#allocation2 + $0x38] sm:$0xff] %v5627_v0   ;;  %v8136_v23 = vrot.slane %v6540_v9, 3  ;;  %v451_v0 = vmul.f32 %v6376_v42, %v5574_v31  ;;  %v5434_v31 = vld [vmem:[%s8129_s1 + $0x30] sm:$0xff]  ;;  %v758_v59 = vmul.f32 %v6494_v24, %v512_v47  ;;  %v8222_v63 = vshrl.u32 %v6540_v9, 16 }
  0x96   : > { %1593 = vmatpush.bf16.msrb.mxu1 %v5434_v31  ;;  %v427_v47 = vmul.f32 %v6376_v42, %v5526_v25  ;;  %v538_v25 = vmax.f32 %v497_v3, 0.0 }
  0x97   : > { %v6564_v26 = vpop.permute.xlu1 %683  ;;  %v1134_v34 = vsel %vm1107_vm0, %v8136_v23, %v8138_v15  ;;  %v496_v17 = vadd.f32 %v6395_v49, %v451_v0  ;;  %v5585_v23 = vunpack.c.l.bf16 %v6515_v46 }
  0x98   : > { %8209 = vst [vmem:[#allocation15_spill] sm:$0xff] %v6564_v26  ;;  %v782_v32 = vmul.f32 %v6564_v26, %v536_v8  ;;  %v6571_v33 = vpop.permute.xlu0 %678  ;;  %1286 = vmatmul.bf16.vlgmr.msra.gmra.mxu2 %v1134_v34  ;;  %v5578_v34 = vunpack.c.h.bf16 %v6548_v16  ;;  %v6627_v53 = vpop.permute.xlu2 %573 }
  0x99   : > { %8210 = vst [vmem:[#allocation16_spill] sm:$0xff] %v6571_v33  ;;  %v781_v50 = vmul.f32 %v6571_v33, %v535_v14  ;;  %v1755_v14 = vrot.slane %v8139_v28, 3 }
  0x9a   : > { %8212 = vst [vmem:[#allocation18_spill] sm:$0xff] %v6627_v53  ;;  %v453_v45 = vmul.f32 %v6376_v42, %v5578_v34 }
  0x9b   : > { %v5662_v60 = vpack.c.bf16 %v782_v32, %v781_v50  ;;  %v6651_v22 = vor.u32 %v1756_v18, %v1755_v14  ;;  %v5466_v14 = vld [vmem:[%s8129_s1 + $0x130] sm:$0xff]  ;;  %v5449_v18 = vld [vmem:[%s8129_s1 + $0xa8] sm:$0xff] }
  0x9c   : > { %v6598_v8 = vld [vmem:[#allocation2 + $0x38] sm:$0xff]  ;;  %v6679_v3 = vadd.f32 %v6395_v49, %v453_v45  ;;  %2726 = vmatpush.bf16.msrb.mxu0 %v5466_v14  ;;  %1891 = vmatpush.bf16.msrb.mxu2 %v5449_v18 }
  0x9d   : > { %5901 = vst [vmem:[#allocation2 + $0x70] sm:$0xff] %v5662_v60   ;;  %v8141_v32 = vrot.slane %v6598_v8, 3  ;;  %v8142_v37 = vshrl.u32 %v6598_v8, 16  ;;  %v5581_v60 = vunpack.c.l.bf16 %v6602_v13  ;;  %v8230_v48 = vrot.slane %v6598_v8, 3 }
  0x9f   : > { %v6620_v50 = vpop.permute.xlu1 %558  ;;  %v1122_v0 = vsel %vm1107_vm0, %v8140_v51, %v8141_v32  ;;  %v1759_v31 = vrot.slane %v8142_v37, 3  ;;  %v8214_v51 = vshll.u32 %v6598_v8, 16  ;;  %v1394_v37 = vrot.slane %v1392_v55, 3 }
  0xa0   : > { %8211 = vst [vmem:[#allocation17_spill] sm:$0xff] %v6620_v50  ;;  %v6629_v16 = vpop.permute.xlu0 %623  ;;  %v757_v15 = vmul.f32 %v6620_v50, %v511_v4  ;;  %1256 = vmatmul.bf16.vlgmr.msra.gmra.mxu1 %v1122_v0  ;;  %v429_v4 = vmul.f32 %v6376_v42, %v5530_v27  ;;  %v456_v0 = vmul.f32 %v6376_v42, %v5585_v23  ;;  %v8215_v27 = vshrl.u32 %v6538_v5, 16  ;;  %v6713_v33 = vpop.permute.xlu2 %718 }
  0xa1   : > { %8213 = vst [vmem:[#allocation19_spill] sm:$0xff] %v6629_v16  ;;  %v770_v46 = vmul.f32 %v6629_v16, %v524_v61  ;;  %v1760_v32 = vrot.slane %v8214_v51, 4  ;;  %v454_v61 = vmul.f32 %v6376_v42, %v5581_v60  ;;  %v537_v51 = vmax.f32 %v496_v17, 0.0 }
  0xa2   : > { %v6643_v28 = vpack.c.bf16 %v758_v59, %v757_v15  ;;  %v6655_v59 = vadd.f32 %v6395_v49, %v460_v41  ;;  %v1391_v34 = vrot.slane %v8215_v27, 2  ;;  %v472_v23 = vadd.f32 %v6395_v49, %v427_v47  ;;  %8220 = vst [vmem:[#allocation22_spill] sm:$0xff] %v6713_v33 }
  0xa3   : > { %v5632_v11 = vpack.c.bf16 %v770_v46, %v769_v19  ;;  %v6662_v19 = vadd.f32 %v6395_v49, %v440_v30  ;;  %v6671_v41 = vor.u32 %v1760_v32, %v1759_v31  ;;  %v514_v55 = vmax.f32 %v6587_v56, 0.0  ;;  %v5886_v31 = vld [vmem:[%s6361_s17 + $0x88] sm:$0xff]  }
  0xa4   : > { %5889 = vst [vmem:[#allocation2 + $0x10] sm:$0xff] %v6643_v28   ;;  %v6657_v15 = vld [vmem:[#allocation2 + $0x70] sm:$0xff]  ;;  %v6676_v17 = vadd.f32 %v6395_v49, %v429_v4  ;;  %v6685_v47 = vadd.f32 %v6395_v49, %v454_v61  ;;  %v6688_v32 = vadd.f32 %v6395_v49, %v456_v0  ;;  %v6704_v0 = vor.u32 %v1394_v37, %v1391_v34  ;;  %v6717_v34 = vld [vmem:[%s6361_s17 + $0x48] sm:$0xff]  }
  0xa5   : > { %5895 = vst [vmem:[#allocation2 + $0x40] sm:$0xff] %v5632_v11   ;;  %v8146_v60 = vrot.slane %v6657_v15, 3  ;;  %v6694_v56 = vsel %vm1726_vm1, %v6651_v22, %v6671_v41  ;;  %v8218_v11 = vrot.slane %v6534_v2, 3  ;;  %v526_v46 = vmax.f32 %v6662_v19, 0.0 }
  0xa6   : > { %v513_v26 = vmax.f32 %v472_v23, 0.0  ;;  %v5589_v37 = vunpack.c.l.bf16 %v5886_v31  ;;  %v760_v23 = vmul.f32 %v6627_v53, %v514_v55  ;;  %v5590_v18 = vunpack.c.h.bf16 %v5886_v31  ;;  %v5465_v55 = vld [vmem:[%s8129_s1 + $0x128] sm:$0xff] }
  0xa7   : > { %v6682_v30 = vpop.permute.xlu1 %693  ;;  %v1136_v61 = vsel %vm1107_vm0, %v8218_v11, %v8146_v60  ;;  %v8221_v11 = vshrl.u32 %v6598_v8, 16  ;;  %v1779_v60 = vrot.slane %v8222_v63, 3  ;;  %2727 = vmatpush.bf16.msrb.mxu0 %v5465_v55  ;;  %v2219_v63 = vshll.u32 %v6643_v28, 16 }
  0xa8   : > { %8216 = vst [vmem:[#allocation20_spill] sm:$0xff] %v6682_v30  ;;  %v6696_v45 = vpop.permute.xlu0 %688  ;;  %v784_v4 = vmul.f32 %v6682_v30, %v538_v25  ;;  %1291 = vmatmul.bf16.gmra.mxu2 %v1136_v61  ;;  %v8219_v25 = vmax.f32 %v6559_v21, 0.0  ;;  %v5433_v21 = vld [vmem:[%s8129_s1 + $0x28] sm:$0xff]  ;;  %v6775_v24 = vpop.permute.xlu2 %733 }
  0xa9   : > { %8217 = vst [vmem:[#allocation21_spill] sm:$0xff] %v6696_v45  ;;  %v783_v14 = vmul.f32 %v6696_v45, %v537_v51  ;;  %v1400_v45 = vrot.slane %v8221_v11, 2  ;;  %v8223_v11 = vshll.u32 %v6598_v8, 16  ;;  %1594 = vmatpush.bf16.msrb.mxu1 %v5433_v21  ;;  %v459_v21 = vmul.f32 %v6376_v42, %v5590_v18  ;;  %v5448_v18 = vld [vmem:[%s8129_s1 + $0xa0] sm:$0xff] }
  0xaa   : > { %v771_v30 = vmul.f32 %v6556_v20, %v8219_v25  ;;  %v8227_v20 = vrot.slane %v6466_v52, 3  ;;  %8231 = vst [vmem:[#allocation25_spill] sm:$0xff] %v6775_v24  ;;  %1892 = vmatpush.bf16.msrb.mxu2 %v5448_v18 }
  0xab   : > { %v5667_v51 = vpack.c.bf16 %v784_v4, %v783_v14  ;;  %v6720_v27 = vld [vmem:[#allocation2 + $0x10] sm:$0xff]  ;;  %v5558_v14 = vunpack.c.h.bf16 %v6717_v34  ;;  %v1403_v61 = vrot.slane %v8223_v11, 3  ;;  %v8224_v4 = vshll.u32 %v6540_v9, 16 }
  0xac   : > { %v6726_v25 = vld [vmem:[#allocation2 + $0x40] sm:$0xff]  ;;  %v1353_v31 = vshrl.u32 %v6720_v27, 16  ;;  %v1356_v19 = vshll.u32 %v6720_v27, 16  ;;  %v8226_v35 = vrot.slane %v6720_v27, 3  ;;  %v2216_v11 = vshrl.u32 %v6643_v28, 16 }
  0xad   : > { %5902 = vst [vmem:[#allocation2 + $0x78] sm:$0xff] %v5667_v51   ;;  %v458_v51 = vmul.f32 %v6376_v42, %v5589_v37  ;;  %v1780_v29 = vrot.slane %v8224_v4, 4  ;;  %v8229_v4 = vrot.slane %v6726_v25, 3  ;;  %v443_v55 = vmul.f32 %v6376_v42, %v5558_v14 }
  0xae   : > { %v1112_v16 = vsel %vm1107_vm0, %v8227_v20, %v8226_v35  ;;  %v1739_v37 = vrot.slane %v1353_v31, 3  ;;  %v1740_v1 = vrot.slane %v1356_v19, 4  ;;  %v1355_v35 = vrot.slane %v1353_v31, 2 }
  0xaf   : > { %v6748_v6 = vpop.permute.xlu1 %568  ;;  %1231 = vmatmul.bf16.gmra.mxu0 %v1112_v16  ;;  %v1124_v52 = vsel %vm1107_vm0, %v8230_v48, %v8229_v4  ;;  %v6768_v54 = vor.u32 %v1403_v61, %v1400_v45  ;;  %v1358_v16 = vrot.slane %v1356_v19, 3  ;;  %v5554_v48 = vunpack.c.h.bf16 %v6594_v58 }
  0xb0   : > { %8225 = vst [vmem:[#allocation23_spill] sm:$0xff] %v6748_v6  ;;  %v6757_v43 = vpop.permute.xlu0 %633  ;;  %v759_v40 = vmul.f32 %v6748_v6, %v513_v26  ;;  %1261 = vmatmul.bf16.gmra.mxu1 %v1124_v52  ;;  %v6770_v26 = vor.u32 %v1740_v1, %v1739_v37  ;;  %v6772_v6 = vor.u32 %v1780_v29, %v1779_v60  ;;  %v2218_v4 = vrot.slane %v2216_v11, 3  ;;  %v6817_v11 = vld [vmem:[%s6361_s17 + $0x18] sm:$0xff]  }
  0xb1   : > { %8228 = vst [vmem:[#allocation24_spill] sm:$0xff] %v6757_v43  ;;  %v772_v20 = vmul.f32 %v6757_v43, %v526_v46  ;;  %v2221_v31 = vrot.slane %v2219_v63, 4  ;;  %v6784_v29 = vor.u32 %v1358_v16, %v1355_v35  ;;  %v6787_v58 = vadd.f32 %v6395_v49, %v458_v51 }
  0xb2   : > { %v5607_v53 = vpack.c.bf16 %v760_v23, %v759_v40  ;;  %v6782_v45 = vsel %vm1726_vm1, %v6497_v10, %v6770_v26  ;;  %v6790_v60 = vadd.f32 %v6395_v49, %v459_v21  ;;  %v5432_v10 = vld [vmem:[%s8129_s1 + $0x20] sm:$0xff]  ;;  %v6813_v63 = vadd.f32 %v6395_v49, %v443_v55 }
  0xb3   : > { %v5637_v8 = vpack.c.bf16 %v772_v20, %v771_v30  ;;  %v5557_v30 = vunpack.c.l.bf16 %v6717_v34  ;;  %v6808_v34 = vsel %vm1334_vm2, %v6517_v39, %v6784_v29  ;;  %v441_v51 = vmul.f32 %v6376_v42, %v5554_v48  ;;  %1595 = vmatpush.bf16.msrb.mxu1 %v5432_v10 }
  0xb4   : > { %5890 = vst [vmem:[#allocation2 + $0x18] sm:$0xff] %v5607_v53   ;;  %v6777_v46 = vld [vmem:[#allocation2 + $0x78] sm:$0xff]  ;;  %v2225_v1 = vshrl.u32 %v5607_v53, 16  ;;  %v2228_v40 = vshll.u32 %v5607_v53, 16  ;;  %v6802_v53 = vsel %vm1334_vm2, %v6704_v0, %v6768_v54  ;;  %v6819_v37 = vor.u32 %v2221_v31, %v2218_v4 }
  0xb5   : > { %5896 = vst [vmem:[#allocation2 + $0x48] sm:$0xff] %v5637_v8   ;;  %v8162_v61 = vrot.slane %v6777_v46, 3  ;;  %v1407_v52 = vshrl.u32 %v6726_v25, 16  ;;  %v8235_v39 = vmax.f32 %v6685_v47, 0.0  ;;  %v8236_v21 = vrot.slane %v6657_v15, 3 }
  0xb6   : > { %8232 = vst [vmem:[#allocation26_spill] sm:$0xff] %v6802_v53  ;;  %v2227_v19 = vrot.slane %v2225_v1, 3  ;;  %v2230_v23 = vrot.slane %v2228_v40, 4  ;;  %v1410_v8 = vshll.u32 %v6726_v25, 16  ;;  %v8237_v48 = vmax.f32 %v6679_v3, 0.0 }
  0xb7   : > { %v6810_v14 = vpop.permute.xlu1 %703  ;;  %v1138_v55 = vsel %vm1107_vm0, %v8236_v21, %v8162_v61  ;;  %v544_v31 = vmax.f32 %v6787_v58, 0.0  ;;  %v442_v47 = vmul.f32 %v6376_v42, %v5557_v30  ;;  %v8238_v1 = vshrl.u32 %v6540_v9, 16 }
  0xb8   : > { %8233 = vst [vmem:[#allocation27_spill] sm:$0xff] %v6810_v14  ;;  %v6822_v35 = vpop.permute.xlu0 %698  ;;  %v786_v20 = vmul.f32 %v6810_v14, %v8235_v39  ;;  %v6832_v16 = vor.u32 %v2230_v23, %v2227_v19  ;;  %1296 = vmatmul.bf16.gmra.mxu2 %v1138_v55  ;;  %v5533_v18 = vunpack.c.l.bf16 %v6817_v11  ;;  %v1763_v19 = vrot.slane %v1407_v52, 3 }
  0xb9   : > { %8234 = vst [vmem:[#allocation28_spill] sm:$0xff] %v6822_v35  ;;  %v785_v4 = vmul.f32 %v6822_v35, %v8237_v48  ;;  %v6842_v40 = vrot.slane %v8238_v1, 2  ;;  %v1764_v3 = vrot.slane %v1410_v8, 4  ;;  %v545_v39 = vmax.f32 %v6790_v60, 0.0 }
  0xba   : > { %v6848_v10 = vsel %vm1726_vm1, %v6819_v37, %v6832_v16  ;;  %v5582_v30 = vunpack.c.h.bf16 %v6602_v13  ;;  %v8239_v55 = vmax.f32 %v6590_v57, 0.0  ;;  %v6861_v61 = vadd.f32 %v6395_v49, %v441_v51 }
  0xbb   : > { %v5672_v23 = vpack.c.bf16 %v786_v20, %v785_v4  ;;  %v6852_v21 = vld [vmem:[#allocation2 + $0x18] sm:$0xff]  ;;  %v5537_v20 = vunpack.c.l.bf16 %v6364_v38  ;;  %v6864_v4 = vor.u32 %v1764_v3, %v1763_v19  ;;  %v8240_v60 = vmax.f32 %v6655_v59, 0.0  ;;  %v6883_v19 = vpop.permute.xlu2 %578 }
  0xbc   : > { %v789_v48 = vmul.f32 %v6713_v33, %v8239_v55  ;;  %v6858_v1 = vld [vmem:[#allocation2 + $0x48] sm:$0xff]  ;;  %v6871_v57 = vadd.f32 %v6395_v49, %v442_v47  ;;  %v5464_v55 = vld [vmem:[%s8129_s1 + $0x120] sm:$0xff]  ;;  %v5447_v38 = vld [vmem:[%s8129_s1 + $0x98] sm:$0xff]  ;;  %v1362_v51 = vshrl.u32 %v6852_v21, 16  ;;  %8241 = vst [vmem:[#allocation29_spill] sm:$0xff] %v6883_v19  ;;  %v430_v47 = vmul.f32 %v6376_v42, %v5533_v18 }
  0xbd   : > { %v792_v58 = vmul.f32 %v6775_v24, %v8240_v60  ;;  %5903 = vst [vmem:[#allocation2 + $0x80] sm:$0xff] %v5672_v23   ;;  %v5459_v59 = vld [vmem:[%s8129_s1 + $0xf8] sm:$0xff]  ;;  %v1365_v60 = vshll.u32 %v6852_v21, 16  ;;  %v6894_v13 = vsel %vm1726_vm1, %v6671_v41, %v6864_v4  ;;  %v8244_v33 = vrot.slane %v6852_v21, 3  ;;  %2728 = vmatpush.bf16.msrb.mxu0 %v5464_v55  ;;  %1893 = vmatpush.bf16.msrb.mxu2 %v5447_v38 }
  0xbe   : > { %v6888_v23 = vld [vmem:[%s6361_s17 + $0x98] sm:$0xff]   ;;  %8242 = vst [vmem:[#allocation30_spill] sm:$0xff] %v6894_v13  ;;  %v8245_v14 = vrot.slane %v6720_v27, 3  ;;  %v455_v3 = vmul.f32 %v6376_v42, %v5582_v30  ;;  %v1743_v18 = vrot.slane %v1362_v51, 3  ;;  %v1409_v43 = vrot.slane %v1407_v52, 2  ;;  %2464 = vmatpush.bf16.msrb.mxu3 %v5459_v59  ;;  %v5458_v59 = vld [vmem:[%s8129_s1 + $0xf0] sm:$0xff] }
  0xbf   : > { %v6896_v24 = vpop.permute.xlu1 %728  ;;  %v8247_v41 = vrot.slane %v6858_v1, 3  ;;  %v8248_v53 = vrot.slane %v6726_v25, 3  ;;  %v1744_v27 = vrot.slane %v1365_v60, 4  ;;  %v6914_v30 = vmul.f32 %v6376_v42, %v5537_v20 }
  0xc0   : > { %8243 = vst [vmem:[#allocation31_spill] sm:$0xff] %v6896_v24  ;;  %v1114_v35 = vsel %vm1107_vm0, %v8245_v14, %v8244_v33  ;;  %v6904_v50 = vpop.permute.xlu0 %723  ;;  %v791_v12 = vmul.f32 %v6896_v24, %v545_v39  ;;  %v1412_v33 = vrot.slane %v1410_v8, 3  ;;  %v5594_v52 = vunpack.c.h.bf16 %v6580_v44 }
  0xc1   : > { %8246 = vst [vmem:[#allocation32_spill] sm:$0xff] %v6904_v50  ;;  %1236 = vmatmul.bf16.gmra.mxu0 %v1114_v35  ;;  %v1126_v13 = vsel %vm1107_vm0, %v8248_v53, %v8247_v41  ;;  %v790_v14 = vmul.f32 %v6904_v50, %v544_v31  ;;  %v5597_v39 = vunpack.c.l.bf16 %v6888_v23  ;;  %v6918_v55 = vor.u32 %v1744_v27, %v1743_v18 }
  0xc2   : > { %1266 = vmatmul.bf16.gmra.mxu1 %v1126_v13  ;;  %v5687_v35 = vpack.c.bf16 %v792_v58, %v791_v12  ;;  %v1364_v38 = vrot.slane %v1362_v51, 2  ;;  %v1367_v25 = vrot.slane %v1365_v60, 3  ;;  %v527_v53 = vmax.f32 %v6861_v61, 0.0  ;;  %2465 = vmatpush.bf16.msrb.mxu3 %v5458_v59 }
  0xc3   : > { %v5682_v24 = vpack.c.bf16 %v790_v14, %v789_v48  ;;  %v528_v8 = vmax.f32 %v6871_v57, 0.0  ;;  %v6923_v31 = vadd.f32 %v6395_v49, %v430_v47  ;;  %v6928_v44 = vadd.f32 %v6395_v49, %v455_v3  ;;  %v5431_v57 = vld [vmem:[%s8129_s1 + $0x18] sm:$0xff] }
  0xc4   : > { %5906 = vst [vmem:[#allocation2 + $0x98] sm:$0xff] %v5687_v35   ;;  %v6925_v20 = vld [vmem:[#allocation2 + $0x80] sm:$0xff]  ;;  %v6933_v12 = vsel %vm1726_vm1, %v6770_v26, %v6918_v55  ;;  %v6935_v58 = vor.u32 %v1367_v25, %v1364_v38  ;;  %v1413_v48 = vor.u32 %v1412_v33, %v1409_v43  ;;  %v461_v61 = vmul.f32 %v6376_v42, %v5594_v52  ;;  %v5463_v26 = vld [vmem:[%s8129_s1 + $0x118] sm:$0xff] }
  0xc5   : > { %5905 = vst [vmem:[#allocation2 + $0x90] sm:$0xff] %v5682_v24   ;;  %v462_v13 = vmul.f32 %v6376_v42, %v5597_v39  ;;  %v1416_v51 = vshrl.u32 %v6858_v1, 16  ;;  %v1452_v43 = vshrl.u32 %v6534_v2, 16  ;;  %v8173_v24 = vrot.slane %v6925_v20, 3  ;;  %1596 = vmatpush.bf16.msrb.mxu1 %v5431_v57  ;;  %2729 = vmatpush.bf16.msrb.mxu0 %v5463_v26 }
  0xc6   : > { %v6954_v3 = vsel %vm1334_vm2, %v6784_v29, %v6935_v58  ;;  %v6958_v47 = vsel %vm1334_vm2, %v6768_v54, %v1413_v48  ;;  %v1455_v60 = vshll.u32 %v6534_v2, 16  ;;  %v516_v41 = vmax.f32 %v6923_v31, 0.0  ;;  %v6967_v29 = vpop.permute.xlu2 %713 }
  0xc7   : > { %8249 = vst [vmem:[#allocation33_spill] sm:$0xff] %v6958_v47  ;;  %v6961_v18 = vpop.permute.xlu1 %643  ;;  %v1419_v27 = vshll.u32 %v6858_v1, 16  ;;  %v1767_v33 = vrot.slane %v1416_v51, 3  ;;  %v8251_v14 = vshll.u32 %v6540_v9, 16  ;;  %v8254_v2 = vrot.slane %v6777_v46, 3 }
  0xc8   : > { %8250 = vst [vmem:[#allocation34_spill] sm:$0xff] %v6961_v18  ;;  %v6969_v39 = vpop.permute.xlu0 %638  ;;  %v774_v54 = vmul.f32 %v6961_v18, %v528_v8  ;;  %v541_v38 = vmax.f32 %v6928_v44, 0.0  ;;  %v1418_v25 = vrot.slane %v1416_v51, 2  ;;  %v6980_v57 = vadd.f32 %v6395_v49, %v461_v61 }
  0xc9   : > { %v1448_v52 = vrot.slane %v8251_v14, 3  ;;  %8252 = vst [vmem:[#allocation35_spill] sm:$0xff] %v6967_v29  ;;  %v1140_v35 = vsel %vm1107_vm0, %v8254_v2, %v8173_v24  ;;  %v773_v31 = vmul.f32 %v6969_v39, %v527_v53  ;;  %v1768_v59 = vrot.slane %v1419_v27, 4 }
  0xca   : > { %8253 = vst [vmem:[#allocation36_spill] sm:$0xff] %v6969_v39  ;;  %1301 = vmatmul.bf16.gmra.mxu2 %v1140_v35  ;;  %v1421_v14 = vrot.slane %v1419_v27, 3  ;;  %v6983_v8 = vadd.f32 %v6395_v49, %v462_v13  ;;  %v5561_v50 = vunpack.c.l.bf16 %v6434_v7  ;;  %v1783_v18 = vrot.slane %v1452_v43, 3 }
  0xcb   : > { %v1784_v47 = vrot.slane %v1455_v60, 4  ;;  %v5642_v2 = vpack.c.bf16 %v774_v54, %v773_v31  ;;  %v6986_v24 = vld [vmem:[#allocation2 + $0x98] sm:$0xff]  ;;  %v5534_v44 = vunpack.c.h.bf16 %v6817_v11  ;;  %v6989_v26 = vor.u32 %v1768_v59, %v1767_v33  ;;  %v5446_v33 = vld [vmem:[%s8129_s1 + $0x90] sm:$0xff] }
  0xcc   : > { %v6991_v53 = vor.u32 %v1421_v14, %v1418_v25  ;;  %v6993_v61 = vld [vmem:[#allocation2 + $0x90] sm:$0xff]  ;;  %v6996_v51 = vor.u32 %v1448_v52, %v6842_v40  ;;  %v1454_v7 = vrot.slane %v1452_v43, 2  ;;  %v1457_v27 = vrot.slane %v1455_v60, 3  ;;  %v5457_v40 = vld [vmem:[%s8129_s1 + $0xe8] sm:$0xff]  ;;  %1894 = vmatpush.bf16.msrb.mxu2 %v5446_v33  ;;  %v5456_v33 = vld [vmem:[%s8129_s1 + $0xe0] sm:$0xff] }
  0xcd   : > { %v6998_v13 = vor.u32 %v1784_v47, %v1783_v18  ;;  %v8255_v54 = vmax.f32 %v6688_v32, 0.0  ;;  %5897 = vst [vmem:[#allocation2 + $0x50] sm:$0xff] %v5642_v2   ;;  %v8174_v11 = vrot.slane %v6986_v24, 3  ;;  %v5430_v43 = vld [vmem:[%s8129_s1 + $0x10] sm:$0xff]  ;;  %v7016_v32 = vsel %vm1726_vm1, %v6864_v4, %v6989_v26  ;;  %v378_v18 = vld [vmem:[%s6361_s17 + $0xa0] sm:$0x3]  ;;  %2466 = vmatpush.bf16.msrb.mxu3 %v5457_v40 }
  0xce   : > { %v7020_v47 = vsel %vm1334_vm2, %v1413_v48, %v6991_v53  ;;  %v7029_v25 = vor.u32 %v1457_v27, %v1454_v7  ;;  %v1461_v31 = vshrl.u32 %v6657_v15, 16  ;;  %v444_v4 = vmul.f32 %v6376_v42, %v5561_v50  ;;  %1597 = vmatpush.bf16.msrb.mxu1 %v5430_v43  ;;  %v5462_v40 = vld [vmem:[%s8129_s1 + $0x110] sm:$0xff]  ;;  %v5445_v43 = vld [vmem:[%s8129_s1 + $0x88] sm:$0xff] }
  0xcf   : > { %v788_v35 = vmul.f32 %v6967_v29, %v8255_v54  ;;  %v7027_v52 = vsel %vm1726_vm1, %v6772_v6, %v6998_v13  ;;  %v7032_v59 = vpop.permute.xlu1 %708  ;;  %v431_v14 = vmul.f32 %v6376_v42, %v5534_v44  ;;  %v5598_v48 = vunpack.c.h.bf16 %v6888_v23  ;;  %2730 = vmatpush.bf16.msrb.mxu0 %v5462_v40 }
  0xd0   : > { %8256 = vst [vmem:[#allocation37_spill] sm:$0xff] %v7032_v59  ;;  %v1464_v2 = vshll.u32 %v6657_v15, 16  ;;  %v7038_v54 = vpop.permute.xlu0 %583  ;;  %v787_v60 = vmul.f32 %v7032_v59, %v541_v38  ;;  %v8258_v7 = vrot.slane %v6993_v61, 3  ;;  %v7049_v42 = vsel %vm1334_vm2, %v6996_v51, %v7029_v25  ;;  %1895 = vmatpush.bf16.msrb.mxu2 %v5445_v43 }
  0xd1   : > { %8257 = vst [vmem:[#allocation38_spill] sm:$0xff] %v7038_v54  ;;  %v1787_v50 = vrot.slane %v1461_v31, 3  ;;  %v8260_v23 = vmax.f32 %v6676_v17, 0.0  ;;  %v762_v44 = vmul.f32 %v7038_v54, %v516_v41  ;;  %v419_v38 = vunpack.c.l.bf16 %v378_v18  ;;  %v7064_v17 = vpop.permute.xlu2 %648  ;;  %2467 = vmatpush.bf16.msrb.mxu3 %v5456_v33  ;;  %v5455_v54 = vld [vmem:[%s8129_s1 + $0xd8] sm:$0xff] }
  0xd2   : > { %v1146_v27 = vsel %vm1107_vm0, %v8258_v7, %v8174_v11  ;;  %8259 = vst [vmem:[#allocation39_spill] sm:$0xff] %v7049_v42  ;;  %v1788_v7 = vrot.slane %v1464_v2, 4  ;;  %v7068_v41 = vadd.f32 %v6395_v49, %v6914_v30  ;;  %v5677_v18 = vpack.c.bf16 %v788_v35, %v787_v60  ;;  %v6111_v35 = vld [vmem:[%s8131_s3] ss:$0 sm:$0xff] }
  0xd3   : > { %v761_v15 = vmul.f32 %v6883_v19, %v8260_v23  ;;  %1316 = vmatmul.bf16.vlgmr.msra.gmra.mxu3 %v1146_v27  ;;  %8261 = vst [vmem:[#allocation40_spill] sm:$0xff] %v7064_v17  ;;  %v5429_v27 = vld [vmem:[%s8129_s1 + $0x8] sm:$0xff]  ;;  %v1463_v23 = vrot.slane %v1461_v31, 2  ;;  %v1466_v11 = vrot.slane %v1464_v2, 3  ;;  %v547_v59 = vmax.f32 %v6980_v57, 0.0 }
  0xd4   : > { %v548_v39 = vmax.f32 %v6983_v8, 0.0  ;;  %v7078_v49 = vor.u32 %v1788_v7, %v1787_v50  ;;  %5904 = vst [vmem:[#allocation2 + $0x88] sm:$0xff] %v5677_v18   ;;  %v7080_v30 = vld [vmem:[#allocation2 + $0x50] sm:$0xff]  ;;  %v7085_v60 = vadd.f32 %v6111_v35, %v444_v4  ;;  %v7087_v57 = vadd.f32 %v6111_v35, %v431_v14  ;;  %v6112_v8 = vld [vmem:[%s8130_s2] ss:$0 sm:$0xff]  ;;  %1598 = vmatpush.bf16.msrb.mxu1 %v5429_v27 }
  0xd5   : > { %v5612_v29 = vpack.c.bf16 %v762_v44, %v761_v15  ;;  %v463_v31 = vmul.f32 %v6112_v8, %v5598_v48  ;;  %v464_v2 = vmul.f32 %v6112_v8, %v419_v38  ;;  %v7092_v44 = vor.u32 %v1466_v11, %v1463_v23  ;;  %2468 = vmatpush.bf16.msrb.mxu3 %v5455_v54 }
  0xd6   : > { %v8180_v33 = vrot.slane %v7080_v30, 3  ;;  %v1425_v4 = vshrl.u32 %v7080_v30, 16  ;;  %v1428_v14 = vshll.u32 %v7080_v30, 16  ;;  %v7100_v40 = vsel %vm1726_vm1, %v6998_v13, %v7078_v49 }
  0xd7   : > { %5891 = vst [vmem:[#allocation2 + $0x20] sm:$0xff] %v5612_v29   ;;  %v2234_v50 = vshrl.u32 %v5612_v29, 16  ;;  %v2237_v15 = vshll.u32 %v5612_v29, 16  ;;  %v7102_v48 = vpop.permute.xlu1 %743  ;;  %v1470_v29 = vshrl.u32 %v6777_v46, 16  ;;  %v1473_v11 = vshll.u32 %v6777_v46, 16 }
  0xd8   : > { %8262 = vst [vmem:[#allocation41_spill] sm:$0xff] %v7102_v48  ;;  %v7106_v7 = vpop.permute.xlu0 %738  ;;  %v794_v18 = vmul.f32 %v7102_v48, %v548_v39  ;;  %v8264_v27 = vrot.slane %v6858_v1, 3  ;;  %v1771_v23 = vrot.slane %v1425_v4, 3  ;;  %v1772_v8 = vrot.slane %v1428_v14, 4  ;;  %v5461_v48 = vld [vmem:[%s8129_s1 + $0x108] sm:$0xff] }
  0xd9   : > { %v2236_v43 = vrot.slane %v2234_v50, 3  ;;  %v2239_v38 = vrot.slane %v2237_v15, 4  ;;  %8263 = vst [vmem:[#allocation42_spill] sm:$0xff] %v7106_v7  ;;  %v793_v54 = vmul.f32 %v7106_v7, %v547_v59  ;;  %v7115_v50 = vadd.f32 %v6111_v35, %v463_v31  ;;  %2731 = vmatpush.bf16.msrb.mxu0 %v5461_v48  ;;  %v5453_v48 = vld [vmem:[%s8129_s1 + $0xc8] sm:$0xff] }
  0xda   : > { %v1128_v13 = vsel %vm1107_vm0, %v8264_v27, %v8180_v33  ;;  %v1427_v46 = vrot.slane %v1425_v4, 2  ;;  %v518_v19 = vmax.f32 %v7068_v41, 0.0  ;;  %v7120_v42 = vor.u32 %v1772_v8, %v1771_v23  ;;  %v7135_v41 = vpop.permute.xlu2 %593 }
  0xdb   : > { %1271 = vmatmul.bf16.gmra.mxu1 %v1128_v13  ;;  %v7117_v15 = vor.u32 %v2239_v38, %v2236_v43  ;;  %v1430_v39 = vrot.slane %v1428_v14, 3  ;;  %v7125_v1 = vsel %vm1334_vm2, %v7029_v25, %v7092_v44  ;;  %v5692_v27 = vpack.c.bf16 %v794_v18, %v793_v54  ;;  %v7128_v59 = vld [vmem:[#allocation2 + $0x88] sm:$0xff]  ;;  %8266 = vst [vmem:[#allocation44_spill] sm:$0xff] %v7135_v41  ;;  %v5454_v25 = vld [vmem:[%s8129_s1 + $0xd0] sm:$0xff] }
  0xdc   : > { %8265 = vst [vmem:[#allocation43_spill] sm:$0xff] %v7125_v1  ;;  %v530_v33 = vmax.f32 %v7085_v60, 0.0  ;;  %v1791_v4 = vrot.slane %v1470_v29, 3  ;;  %v517_v14 = vmax.f32 %v7087_v57, 0.0  ;;  %v5444_v60 = vld [vmem:[%s8129_s1 + $0x80] sm:$0xff]  ;;  %v1792_v18 = vrot.slane %v1473_v11, 4  ;;  %2469 = vmatpush.bf16.msrb.mxu3 %v5454_v25 }
  0xdd   : > { %v7133_v31 = vsel %vm1726_vm1, %v6832_v16, %v7117_v15  ;;  %v7149_v16 = vsel %vm1726_vm1, %v6989_v26, %v7120_v42  ;;  %v7151_v38 = vor.u32 %v1430_v39, %v1427_v46  ;;  %v8267_v57 = vmax.f32 %v6813_v63, 0.0  ;;  %5907 = vst [vmem:[#allocation2 + $0xa0] sm:$0xff] %v5692_v27   ;;  %1896 = vmatpush.bf16.msrb.mxu2 %v5444_v60 }
  0xde   : > { %v7138_v43 = vld [vmem:[#allocation2 + $0x20] sm:$0xff]  ;;  %v8186_v23 = vrot.slane %v7128_v59, 3  ;;  %v549_v8 = vmax.f32 %v7115_v50, 0.0  ;;  %v509_v54 = vadd.f32 %v6111_v35, %v464_v2  ;;  %v764_v50 = vmul.f32 %v7135_v41, %v518_v19 }
  0xdf   : > { %v775_v13 = vmul.f32 %v7064_v17, %v8267_v57  ;;  %v1371_v46 = vshrl.u32 %v7138_v43, 16  ;;  %v1374_v63 = vshll.u32 %v7138_v43, 16  ;;  %v7167_v39 = vsel %vm1334_vm2, %v6991_v53, %v7151_v38  ;;  %v7170_v35 = vpop.permute.xlu1 %588 }
  0xe0   : > { %8268 = vst [vmem:[#allocation45_spill] sm:$0xff] %v7170_v35  ;;  %v8269_v2 = vrot.slane %v6925_v20, 3  ;;  %v7177_v25 = vor.u32 %v1792_v18, %v1791_v4  ;;  %v1472_v60 = vrot.slane %v1470_v29, 2  ;;  %v7179_v57 = vpop.permute.xlu0 %653  ;;  %v763_v26 = vmul.f32 %v7170_v35, %v517_v14  ;;  %v5428_v29 = vld [vmem:[%s8129_s1] sm:$0xff]  ;;  %2470 = vmatpush.bf16.msrb.mxu3 %v5453_v48 }
  0xe1   : > { %8270 = vst [vmem:[#allocation46_spill] sm:$0xff] %v7179_v57  ;;  %v8271_v53 = vrot.slane %v7138_v43, 3  ;;  %v8272_v19 = vrot.slane %v6852_v21, 3  ;;  %v1747_v17 = vrot.slane %v1371_v46, 3  ;;  %v1748_v41 = vrot.slane %v1374_v63, 4  ;;  %1599 = vmatpush.bf16.msrb.mxu1 %v5428_v29 }
  0xe2   : > { %v1142_v27 = vsel %vm1107_vm0, %v8269_v2, %v8186_v23  ;;  %v776_v1 = vmul.f32 %v7179_v57, %v530_v33  ;;  %v1373_v4 = vrot.slane %v1371_v46, 2  ;;  %v1376_v14 = vrot.slane %v1374_v63, 3 }
  0xe3   : > { %v1116_v7 = vsel %vm1107_vm0, %v8272_v19, %v8271_v53  ;;  %1306 = vmatmul.bf16.gmra.mxu2 %v1142_v27  ;;  %v7197_v21 = vsel %vm1726_vm1, %v7078_v49, %v7177_v25  ;;  %v5617_v18 = vpack.c.bf16 %v764_v50, %v763_v26  ;;  %v550_v2 = vmax.f32 %v509_v54, 0.0  ;;  %v5452_v53 = vld [vmem:[%s8129_s1 + $0xc0] sm:$0xff] }
  0xe4   : > { %1241 = vmatmul.bf16.gmra.mxu0 %v1116_v7  ;;  %8273 = vst [vmem:[#allocation47_spill] sm:$0xff] %v7197_v21  ;;  %v7199_v27 = vor.u32 %v1748_v41, %v1747_v17  ;;  %v1475_v33 = vrot.slane %v1473_v11, 3  ;;  %v7201_v7 = vpack.c.bf16 %v776_v1, %v775_v13  ;;  %v7206_v46 = vor.u32 %v1376_v14, %v1373_v4  ;;  %v7210_v26 = vld [vmem:[#allocation2 + $0xa0] sm:$0xf]  ;;  %v967_v17 = vld [vmem:[#allocation2 + $0xa4] sm:$0x1] }
  0xe5   : > { %v1479_v63 = vshrl.u32 %v6925_v20, 16  ;;  %v1482_v49 = vshll.u32 %v6925_v20, 16  ;;  %5892 = vst [vmem:[#allocation2 + $0x28] sm:$0xff] %v5617_v18   ;;  %v2243_v1 = vshrl.u32 %v5617_v18, 16  ;;  %v8185_v13 = vunpack.c.l.b16 %v7210_v26  ;;  %2471 = vmatpush.bf16.msrb.mxu3 %v5452_v53 }
  0xe6   : > { %v7215_v11 = vsel %vm1726_vm1, %v6918_v55, %v7199_v27  ;;  %v7217_v41 = vor.u32 %v1475_v33, %v1472_v60  ;;  %5898 = vst [vmem:[#allocation2 + $0x58] sm:$0xff] %v7201_v7   ;;  %v1085_v54 = vunpack.c.l.b16 %v967_v17  ;;  %v2246_v50 = vshll.u32 %v5617_v18, 16 }
  0xe7   : > { %v7224_v20 = vsel %vm1334_vm2, %v6935_v58, %v7206_v46  ;;  %v2245_v19 = vrot.slane %v2243_v1, 3  ;;  %v7226_v48 = vpop.permute.xlu1 %753  ;;  %v1795_v4 = vrot.slane %v1479_v63, 3  ;;  %v1796_v18 = vrot.slane %v1482_v49, 4 }
  0xe8   : > { %8274 = vst [vmem:[#allocation48_spill] sm:$0xff] %v7226_v48  ;;  %v7230_v55 = vpack.c.b16 %v1085_v54, %v8185_v13  ;;  %v2248_v60 = vrot.slane %v2246_v50, 4  ;;  %v7235_v29 = vsel %vm1334_vm2, %v7092_v44, %v7217_v41  ;;  %v7237_v14 = vpop.permute.xlu0 %748  ;;  %v796_v58 = vmul.f32 %v7226_v48, %v550_v2 }
  0xe9   : > { %8275 = vst [vmem:[#allocation49_spill] sm:$0xff] %v7235_v29  ;;  %v795_v33 = vmul.f32 %v7237_v14, %v549_v8  ;;  %v7244_v53 = vor.u32 %v1796_v18, %v1795_v4  ;;  %v8277_v44 = vrot.slane %v6986_v24, 3  ;;  %v1481_v2 = vrot.slane %v1479_v63, 2  ;;  %v5502_v4 = vld [vmem:[%s8129_s1 + $0x1b8] sm:$0xff] }
  0xea   : > { %8276 = vst [vmem:[#allocation50_spill] sm:$0xff] %v7237_v14  ;;  %v8187_v17 = vrot.slane %v7230_v55, 3  ;;  %v7242_v1 = vor.u32 %v2248_v60, %v2245_v19  ;;  %v884_v54 = vpack.c.bf16 %v796_v58, %v796_v58  ;;  %v5460_v60 = vld [vmem:[%s8129_s1 + $0x100] sm:$0xff]  ;;  %3688 = vmatpush.bf16.msra.mxu2 %v5502_v4  ;;  %v8281_v48 = vrot.slane %v7128_v59, 3 }
  0xeb   : > { %v883_v50 = vpack.c.bf16 %v795_v33, %v795_v33  ;;  %v7269_v58 = vsel %vm1726_vm1, %v7177_v25, %v7244_v53  ;;  %2732 = vmatpush.bf16.msrb.mxu0 %v5460_v60  ;;  %v8283_v57 = vrot.slane %v7080_v30, 3 }
  0xec   : > { %v1148_v13 = vsel %vm1107_vm0, %v8277_v44, %v8187_v17  ;;  %v7251_v23 = vld [vmem:[#allocation2 + $0x28] sm:$0xff]  ;;  %v7256_v8 = vsel %vm1726_vm1, %v7117_v15, %v7242_v1  ;;  %925 = vst [vmem:[#allocation2 + $0xac] sm:$0x3] %v884_v54  ;;  %v1484_v15 = vrot.slane %v1482_v49, 3  ;;  %v8279_v49 = vrot.slane %v7138_v43, 3 }
  0xed   : > { %1321 = vmatmul.bf16.gmra.mxu3 %v1148_v13  ;;  %v7258_v19 = vld [vmem:[#allocation2 + $0x58] sm:$0xff]  ;;  %8278 = vst [vmem:[#allocation51_spill] sm:$0xff] %v7269_v58  ;;  %v8192_v63 = vrot.slane %v7251_v23, 3  ;;  %v1380_v18 = vshrl.u32 %v7251_v23, 16  ;;  %v1383_v33 = vshll.u32 %v7251_v23, 16  ;;  %v8280_v17 = vrot.slane %v6993_v61, 3 }
  0xee   : > { %924 = vst [vmem:[#allocation2 + $0xa8] sm:$0xf] %v883_v50  ;;  %v5510_v13 = vld [vmem:[%s8129_s1 + $0x1f8] sm:$0xff]  ;;  %v1434_v44 = vshrl.u32 %v7258_v19, 16  ;;  %v1437_v25 = vshll.u32 %v7258_v19, 16  ;;  %v8282_v4 = vrot.slane %v7258_v19, 3  ;;  %v1485_v58 = vor.u32 %v1484_v15, %v1481_v2 }
  0xef   : > { %v1118_v50 = vsel %vm1107_vm0, %v8279_v49, %v8192_v63  ;;  %v1144_v14 = vsel %vm1107_vm0, %v8281_v48, %v8280_v17  ;;  %3974 = vmatpush.bf16.msra.mxu3 %v5510_v13  ;;  %v1751_v54 = vrot.slane %v1380_v18, 3  ;;  %v1752_v60 = vrot.slane %v1383_v33, 4  ;;  %v5475_v49 = vld [vmem:[%s8129_s1 + $0x178] sm:$0xff] }
  0xf0   : > { %v1130_v35 = vsel %vm1107_vm0, %v8283_v57, %v8282_v4  ;;  %v1382_v29 = vrot.slane %v1380_v18, 2  ;;  %v1385_v43 = vrot.slane %v1383_v33, 3  ;;  %v5518_v48 = vld [vmem:[%s8129_s1 + $0x238] sm:$0xff]  ;;  %v1775_v13 = vrot.slane %v1434_v44, 3  ;;  %3137 = vmatpush.bf16.msra.mxu1 %v5475_v49  ;;  %v2043_v18 = vld [vmem:[#allocation2 + $0x8] sm:$0x8] }
  0xf1   : > { %1276 = vmatmul.bf16.gmra.mxu1 %v1130_v35  ;;  %v1753_v17 = vor.u32 %v1752_v60, %v1751_v54  ;;  %v1776_v63 = vrot.slane %v1437_v25, 4  ;;  %v1436_v30 = vrot.slane %v1434_v44, 2  ;;  %v1439_v57 = vrot.slane %v1437_v25, 3  ;;  %4312 = vmatpush.bf16.msra.mxu0 %v5518_v48  ;;  %v7310_v33 = vld [vmem:[#allocation2 + $0xc] sm:$0xf] }
  0xf2   : > { %v1386_v21 = vor.u32 %v1385_v43, %v1382_v29  ;;  %v1488_v15 = vshrl.u32 %v7128_v59, 16  ;;  %v2144_v25 = vunpack.c.l.b16 %v2043_v18  ;;  %v1497_v60 = vshrl.u32 %v6993_v61, 16 }
  0xf3   : > { %1311 = vmatmul.bf16.gmra.mxu2 %v1144_v14  ;;  %v7303_v14 = vsel %vm1726_vm1, %v7199_v27, %v1753_v17  ;;  %v7307_v35 = vsel %vm1726_vm1, %v1753_v17, %v6651_v22  ;;  %v1777_v2 = vor.u32 %v1776_v63, %v1775_v13  ;;  %v1440_v27 = vor.u32 %v1439_v57, %v1436_v30 }
  0xf4   : > { %1246 = vmatmul.bf16.gmra.mxu0 %v1118_v50  ;;  %v7314_v29 = vsel %vm1334_vm2, %v7206_v46, %v1386_v21  ;;  %v7318_v54 = vsel %vm1334_vm2, %v1386_v21, %v6704_v0  ;;  %v7330_v63 = vsel %vm1334_vm2, %v7217_v41, %v1485_v58  ;;  %v1491_v21 = vshll.u32 %v7128_v59, 16 }
  0xf5   : > { %v7322_v44 = vsel %vm1726_vm1, %v7120_v42, %v1777_v2  ;;  %v7326_v22 = vsel %vm1726_vm1, %v1777_v2, %v6772_v6  ;;  %v7334_v46 = vsel %vm1334_vm2, %v7151_v38, %v1440_v27  ;;  %v7338_v0 = vsel %vm1334_vm2, %v1440_v27, %v6996_v51  ;;  %v1705_v27 = vld [vmem:[#allocation2 + $0xa4] sm:$0x3] }
  0xf6   : > { %v1799_v42 = vrot.slane %v1488_v15, 3  ;;  %v2145_v50 = vunpack.c.l.b16 %v7310_v33  ;;  %v1490_v6 = vrot.slane %v1488_v15, 2  ;;  %v1800_v4 = vrot.slane %v1491_v21, 4 }
  0xf7   : > { %v1493_v41 = vrot.slane %v1491_v21, 3  ;;  %v1500_v43 = vshll.u32 %v6993_v61, 16  ;;  %v1803_v49 = vrot.slane %v1497_v60, 3  ;;  %v1499_v51 = vrot.slane %v1497_v60, 2 }
  0xf8   : > { %v1801_v38 = vor.u32 %v1800_v4, %v1799_v42  ;;  %v2186_v13 = vpack.c.b16 %v2145_v50, %v2144_v25  ;;  %v8284_v59 = vrot.slane %v7230_v55, 3  ;;  %v1506_v61 = vshrl.u32 %v6986_v24, 16 }
  0xf9   : > { %v1494_v48 = vor.u32 %v1493_v41, %v1490_v6  ;;  %v1804_v17 = vrot.slane %v1500_v43, 4  ;;  %v1502_v30 = vrot.slane %v1500_v43, 3  ;;  %v1509_v33 = vshll.u32 %v6986_v24, 16 }
  0xfa   : > { %v7348_v57 = vsel %vm1726_vm1, %v7244_v53, %v1801_v38  ;;  %v1807_v42 = vrot.slane %v1506_v61, 3  ;;  %v2208_v25 = vshrl.u32 %v2186_v13, 16  ;;  %v1508_v60 = vrot.slane %v1506_v61, 2 }
  0xfb   : > { %v7351_v2 = vsel %vm1334_vm2, %v1485_v58, %v1494_v48  ;;  %v1805_v15 = vor.u32 %v1804_v17, %v1803_v49  ;;  %v1503_v18 = vor.u32 %v1502_v30, %v1499_v51  ;;  %v1808_v53 = vrot.slane %v1509_v33, 4 }
  0xfc   : > { %v8285_v58 = vrot.slane %v6538_v5, 3  ;;  %v8286_v4 = vrot.slane %v7251_v23, 3  ;;  %v8287_v43 = vrot.slane %v6540_v9, 3  ;;  %v8288_v24 = vrot.slane %v7258_v19, 3 }
  0xfd   : > { %1326 = vmatmul.bf16.gmra.mxu3 %v8284_v59  ;;  %v7356_v21 = vsel %vm1726_vm1, %v1801_v38, %v1805_v15  ;;  %v7359_v6 = vsel %vm1334_vm2, %v1494_v48, %v1503_v18  ;;  %v1511_v38 = vrot.slane %v1509_v33, 3  ;;  %v1724_v17 = vunpack.c.l.b16 %v1705_v27 }
  0xfe   : > { %v1120_v41 = vsel %vm1107_vm0, %v8286_v4, %v8285_v58  ;;  %v1132_v49 = vsel %vm1107_vm0, %v8288_v24, %v8287_v43  ;;  %v2211_v48 = vshll.u32 %v2186_v13, 16  ;;  %v1809_v51 = vor.u32 %v1808_v53, %v1807_v42  ;;  %v5501_v24 = vld [vmem:[%s8129_s1 + $0x1b0] sm:$0xff] }
  0xff   : > { %v1515_v5 = vshrl.u32 %v7230_v55, 16  ;;  %v1518_v23 = vshll.u32 %v7230_v55, 16  ;;  %v1512_v30 = vor.u32 %v1511_v38, %v1508_v60  ;;  %v8289_v59 = vunpack.c.l.b16 %v7210_v26  ;;  %3689 = vmatpush.bf16.msra.mxu2 %v5501_v24  ;;  %v6040_v38 = vld [vmem:[#allocation2 + $0x1c] sm:$0xff]  }
 0x100   : > { %v7377_v19 = vsel %vm1726_vm1, %v1805_v15, %v1809_v51  ;;  %v2210_v13 = vrot.slane %v2208_v25, 3  ;;  %v2213_v42 = vrot.slane %v2211_v48, 4  ;;  %v5696_v25 = vunpack.c.l.b16 %v6643_v28 }
 0x101   : > { %1281 = vmatmul.bf16.gmra.mxu1 %v1132_v49  ;;  %v1725_v9 = vpack.c.b16 %v1724_v17, %v8289_v59  ;;  %v1517_v61 = vrot.slane %v1515_v5, 2  ;;  %v1520_v58 = vrot.slane %v1518_v23, 3  ;;  %v5509_v49 = vld [vmem:[%s8129_s1 + $0x1f0] sm:$0xff]  ;;  %v2917_v48 = vshll.u32 %v6040_v38, 16 }
 0x102   : > { %v2214_v15 = vor.u32 %v2213_v42, %v2210_v13  ;;  %v7397_v43 = vpack.c.b16 %v5696_v25, %v2145_v50  ;;  %3975 = vmatpush.bf16.msra.mxu3 %v5509_v49  ;;  %v2921_v23 = vshrl.u32 %v6040_v38, 16  ;;  %v6044_v13 = vld [vmem:[#allocation2 + $0x2c] sm:$0xff]  }
 0x103   : > { %1897 = vmatmul.bf16.vlgmr.msrb.gmra.mxu2 %v6506_v36  ;;  %v7380_v36 = vsel %vm1334_vm2, %v1503_v18, %v1512_v30  ;;  %v1812_v33 = vshrl.u32 %v1725_v9, 16  ;;  %v1815_v27 = vshll.u32 %v1725_v9, 16  ;;  %v7382_v53 = vor.u32 %v1520_v58, %v1517_v61  ;;  %v5500_v25 = vld [vmem:[%s8129_s1 + $0x1a8] sm:$0xff] }
 0x104   : > { %1251 = vmatmul.bf16.gmra.mxu0 %v1120_v41  ;;  %v2223_v18 = vsel %vm1726_vm1, %v2214_v15, %v6819_v37  ;;  %8290 = vst [vmem:[#allocation52_spill] sm:$0xff] %v7397_v43  ;;  %v5517_v37 = vld [vmem:[%s8129_s1 + $0x230] sm:$0xff]  ;;  %v2933_v42 = vshll.u32 %v6044_v13, 16  ;;  %3690 = vmatpush.bf16.msra.mxu2 %v5500_v25 }
 0x105   : > { %v1814_v4 = vrot.slane %v1812_v33, 3  ;;  %v1817_v55 = vrot.slane %v1815_v27, 4  ;;  %v7386_v26 = vsel %vm1334_vm2, %v1512_v30, %v7382_v53  ;;  %4313 = vmatpush.bf16.msra.mxu0 %v5517_v37  ;;  %v7423_v17 = vpop.f32.mrf.mxu0 }
 0x106   : > { %v7459_v49 = vrot.slane %v2933_v42, 1 }
 0x107   : > { %v7388_v60 = vor.u32 %v1817_v55, %v1814_v4  ;;  %v5912_v4 = vld [vmem:[#allocation2 + $0x30] sm:$0xff]  }
 0x108   : > { %v2252_v15 = vshrl.u32 %v5912_v4, 16  ;;  %8297 = vst [vmem:[#allocation59_spill] sm:$0xff] %v7459_v49 }
 0x109   : > { %v7392_v41 = vsel %vm1726_vm1, %v1809_v51, %v7388_v60  ;;  %v6042_v51 = vld [vmem:[#allocation2 + $0x24] sm:$0xff]  }
 0x10a   : > { %v2925_v30 = vshll.u32 %v6042_v51, 16  ;;  %v2929_v55 = vshrl.u32 %v6042_v51, 16 }
 0x10c   : > { %v2927_v61 = vrot.slane %v2925_v30, 1 }
 0x10d   : > { %2472 = vmatmul.bf16.vlgmr.msrb.gmra.mxu3 %v2223_v18  ;;  %v7432_v59 = vpop.f32.mrf.mxu0  ;;  %v2255_v18 = vshll.u32 %v5912_v4, 16 }
 0x10e   : > { %v2931_v24 = vor.u32 %v2929_v55, %v2927_v61 }
 0x10f   : > { %v2257_v37 = vrot.slane %v2255_v18, 4 }
 0x111   : > { %1600 = vmatmul.bf16.vlgmr.msrb.gmra.mxu1 %v6532_v62  ;;  %v5474_v62 = vld [vmem:[%s8129_s1 + $0x170] sm:$0xff] }
 0x112   : > { %3138 = vmatpush.bf16.msra.mxu1 %v5474_v62 }
 0x113   : > { %1902 = vmatmul.bf16.gmra.mxu2 %v6782_v45  ;;  %v6038_v45 = vld [vmem:[#allocation2 + $0x14] sm:$0xff]  }
 0x114   : > { %2733 = vmatmul.bf16.vlgmr.msrb.gmra.mxu0 %v7397_v43 }
 0x11b   : > { %v7409_v28 = vpop.f32.mrf.mxu2 }
 0x11d   : > { %2477 = vmatmul.bf16.gmra.mxu3 %v6848_v10  ;;  %v7419_v50 = vpop.f32.mrf.mxu1 }
 0x121   : > { %1605 = vmatmul.bf16.gmra.mxu1 %v6808_v34 }
 0x123   : > { %1907 = vmatmul.bf16.gmra.mxu2 %v6933_v12  ;;  %v7421_v10 = vpop.f32.mrf.mxu2  ;;  %v7430_v12 = vrot.slane %v2917_v48, 1 }
 0x124   : > { %2738 = vmatmul.bf16.gmra.mxu0 %v6038_v45  ;;  %8291 = vst [vmem:[#allocation53_spill] sm:$0xff] %v7421_v10  ;;  %v2254_v45 = vrot.slane %v2252_v15, 3 }
 0x125   : > { %v7425_v5 = vpop.f32.mrf.mxu1  ;;  %8293 = vst [vmem:[#allocation55_spill] sm:$0xff] %v7430_v12  ;;  %v2923_v9 = vor.u32 %v2921_v23, %v7430_v12 }
 0x126   : > { %v2258_v48 = vor.u32 %v2257_v37, %v2254_v45 }
 0x127   : > { %v7438_v58 = vsel %vm2900_vm3, %v2923_v9, %v2927_v61  ;;  %v5913_v9 = vld [vmem:[#allocation2 + $0x38] sm:$0xff]   ;;  %v5516_v61 = vld [vmem:[%s8129_s1 + $0x228] sm:$0xff] }
 0x128   : > { %8294 = vst [vmem:[#allocation56_spill] sm:$0xff] %v7438_v58  ;;  %v2259_v23 = vsel %vm1726_vm1, %v7242_v1, %v2258_v48  ;;  %4314 = vmatpush.bf16.msra.mxu0 %v5516_v61  ;;  %v2261_v42 = vshrl.u32 %v5913_v9, 16  ;;  %v2264_v4 = vshll.u32 %v5913_v9, 16 }
 0x12a   : > { %v2263_v15 = vrot.slane %v2261_v42, 3  ;;  %v2266_v1 = vrot.slane %v2264_v4, 4 }
 0x12b   : > { %v7428_v34 = vpop.f32.mrf.mxu2 }
 0x12c   : > { %8292 = vst [vmem:[#allocation54_spill] sm:$0xff] %v7428_v34  ;;  %v7444_v27 = vpop.f32.mrf.mxu0 }
 0x12d   : > { %2482 = vmatmul.bf16.gmra.mxu3 %v7133_v31  ;;  %v7442_v33 = vpop.f32.mrf.mxu1 }
 0x131   : > { %1610 = vmatmul.bf16.gmra.mxu1 %v6954_v3 }
 0x133   : > { %1912 = vmatmul.bf16.gmra.mxu2 %v7215_v11  ;;  %v7440_v31 = vpop.f32.mrf.mxu2 }
 0x134   : > { %2743 = vmatmul.bf16.gmra.mxu0 %v6040_v38  ;;  %8295 = vst [vmem:[#allocation57_spill] sm:$0xff] %v7440_v31  ;;  %v7461_v62 = vpop.f32.mrf.mxu0 }
 0x135   : > { %v7449_v3 = vpop.f32.mrf.mxu1 }
 0x13b   : > { %v7447_v11 = vpop.f32.mrf.mxu2 }
 0x13c   : > { %8296 = vst [vmem:[#allocation58_spill] sm:$0xff] %v7447_v11 }
 0x13d   : > { %2487 = vmatmul.bf16.gmra.mxu3 %v7256_v8  ;;  %v5508_v8 = vld [vmem:[%s8129_s1 + $0x1e8] sm:$0xff] }
 0x13e   : > { %3976 = vmatpush.bf16.msra.mxu3 %v5508_v8  ;;  %v7476_v30 = vpop.f32.mrf.mxu0  ;;  %v2267_v8 = vor.u32 %v2266_v1, %v2263_v15 }
 0x141   : > { %1615 = vmatmul.bf16.gmra.mxu1 %v7224_v20  ;;  %v5473_v20 = vld [vmem:[%s8129_s1 + $0x168] sm:$0xff] }
 0x142   : > { %3139 = vmatpush.bf16.msra.mxu1 %v5473_v20  ;;  %v2268_v20 = vsel %vm1726_vm1, %v2258_v48, %v2267_v8 }
 0x143   : > { %1917 = vmatmul.bf16.gmra.mxu2 %v7303_v14  ;;  %v7468_v14 = vsel %vm2900_vm3, %v2931_v24, %v7459_v49  ;;  %v7470_v38 = vpop.f32.mrf.mxu2 }
 0x144   : > { %2748 = vmatmul.bf16.gmra.mxu0 %v6042_v51  ;;  %8298 = vst [vmem:[#allocation60_spill] sm:$0xff] %v7468_v14  ;;  %v7472_v51 = vpop.f32.mrf.mxu1 }
 0x145   : > { %8299 = vst [vmem:[#allocation61_spill] sm:$0xff] %v7470_v38 }
 0x146   : > { %v7487_v25 = vpop.f32.mrf.mxu0 }
 0x14c   : > { %v7485_v18 = vpop.f32.mrf.mxu1 }
 0x14d   : > { %2492 = vmatmul.bf16.gmra.mxu3 %v2259_v23  ;;  %v7482_v55 = vpop.f32.mrf.mxu2 }
 0x14e   : > { %8300 = vst [vmem:[#allocation62_spill] sm:$0xff] %v7482_v55  ;;  %v6050_v55 = vld [vmem:[#allocation2 + $0x44] sm:$0xff]  }
 0x151   : > { %1620 = vmatmul.bf16.gmra.mxu1 %v7314_v29  ;;  %v6046_v29 = vld [vmem:[#allocation2 + $0x34] sm:$0xff]  }
 0x153   : > { %1922 = vmatmul.bf16.gmra.mxu2 %v7307_v35  ;;  %v5914_v35 = vld [vmem:[#allocation2 + $0x40] sm:$0xff]  }
 0x154   : > { %2753 = vmatmul.bf16.gmra.mxu0 %v6044_v13  ;;  %v2270_v13 = vshrl.u32 %v5914_v35, 16  ;;  %v2273_v9 = vshll.u32 %v5914_v35, 16  ;;  %v5507_v35 = vld [vmem:[%s8129_s1 + $0x1e0] sm:$0xff] }
 0x155   : > { %v7489_v24 = vpop.f32.mrf.mxu2  ;;  %3977 = vmatpush.bf16.msra.mxu3 %v5507_v35 }
 0x156   : > { %8301 = vst [vmem:[#allocation63_spill] sm:$0xff] %v7489_v24  ;;  %v7494_v37 = vpop.f32.mrf.mxu3  ;;  %v2272_v42 = vrot.slane %v2270_v13, 3  ;;  %v2275_v48 = vrot.slane %v2273_v9, 4  ;;  %v5472_v24 = vld [vmem:[%s8129_s1 + $0x160] sm:$0xff] }
 0x157   : > { %8302 = vst [vmem:[#allocation64_spill] sm:$0xff] %v7494_v37  ;;  %3140 = vmatpush.bf16.msra.mxu1 %v5472_v24 }
 0x158   : > { %v7492_v45 = vpop.f32.mrf.mxu1 }
 0x15d   : > { %2497 = vmatmul.bf16.gmra.mxu3 %v2268_v20  ;;  %v2276_v20 = vor.u32 %v2275_v48, %v2272_v42  ;;  %v8307_v48 = vld [vmem:[#allocation30_spill] sm:$0xff] }
 0x15e   : > { %v7506_v1 = vpop.f32.mrf.mxu3 }
 0x15f   : > { %8304 = vst [vmem:[#allocation66_spill] sm:$0xff] %v7506_v1  ;;  %v2277_v37 = vsel %vm1726_vm1, %v2267_v8, %v2276_v20  ;;  %v6048_v8 = vld [vmem:[#allocation2 + $0x3c] sm:$0xff]   ;;  %v8308_v1 = vld [vmem:[#allocation26_spill] sm:$0xff] }
 0x160   : > { %v7502_v4 = vpop.f32.mrf.mxu1 }
 0x161   : > { %v7496_v23 = vpop.f32.mrf.mxu0  ;;  %1625 = vmatmul.bf16.gmra.mxu1 %v7318_v54  ;;  %v5499_v54 = vld [vmem:[%s8129_s1 + $0x1a0] sm:$0xff] }
 0x162   : > { %3691 = vmatpush.bf16.msra.mxu2 %v5499_v54  ;;  %v5515_v54 = vld [vmem:[%s8129_s1 + $0x220] sm:$0xff] }
 0x163   : > { %1927 = vmatmul.bf16.gmra.mxu2 %v6694_v56  ;;  %v5915_v56 = vld [vmem:[#allocation2 + $0x48] sm:$0xff]   ;;  %4315 = vmatpush.bf16.msra.mxu0 %v5515_v54 }
 0x164   : > { %2758 = vmatmul.bf16.gmra.mxu0 %v6046_v29  ;;  %v2279_v42 = vshrl.u32 %v5915_v56, 16 }
 0x166   : > { %v7500_v61 = vpop.f32.mrf.mxu2  ;;  %v2281_v14 = vrot.slane %v2279_v42, 3 }
 0x167   : > { %8303 = vst [vmem:[#allocation65_spill] sm:$0xff] %v7500_v61 }
 0x169   : > { %v7504_v15 = vpop.f32.mrf.mxu0 }
 0x16d   : > { %2502 = vmatmul.bf16.gmra.mxu3 %v2277_v37  ;;  %v2282_v37 = vshll.u32 %v5915_v56, 16 }
 0x16e   : > { %v7509_v49 = vpop.f32.mrf.mxu2  ;;  %v7519_v13 = vpop.f32.mrf.mxu1 }
 0x16f   : > { %8305 = vst [vmem:[#allocation67_spill] sm:$0xff] %v7509_v49  ;;  %v2284_v61 = vrot.slane %v2282_v37, 4  ;;  %v5916_v37 = vld [vmem:[#allocation2 + $0x50] sm:$0xff]  }
 0x170   : > { %v7521_v9 = vpop.f32.mrf.mxu3  ;;  %v2288_v38 = vshrl.u32 %v5916_v37, 16  ;;  %v2291_v12 = vshll.u32 %v5916_v37, 16 }
 0x171   : > { %v7517_v29 = vpop.f32.mrf.mxu0  ;;  %8306 = vst [vmem:[#allocation68_spill] sm:$0xff] %v7521_v9  ;;  %1630 = vmatmul.bf16.gmra.mxu1 %v8308_v1  ;;  %v2285_v1 = vor.u32 %v2284_v61, %v2281_v14  ;;  %v8313_v14 = vld [vmem:[#allocation33_spill] sm:$0xff] }
 0x172   : > { %v2290_v61 = vrot.slane %v2288_v38, 3 }
 0x173   : > { %1932 = vmatmul.bf16.gmra.mxu2 %v8307_v48 }
 0x174   : > { %2763 = vmatmul.bf16.gmra.mxu0 %v6048_v8  ;;  %v2286_v8 = vsel %vm1726_vm1, %v2276_v20, %v2285_v1  ;;  %v2293_v20 = vrot.slane %v2291_v12, 4  ;;  %v2300_v12 = vshll.u32 %v7201_v7, 16 }
 0x176   : > { %v7525_v49 = vpop.f32.mrf.mxu2  ;;  %v7535_v56 = vpop.f32.mrf.mxu1 }
 0x177   : > { %8309 = vst [vmem:[#allocation30_spill] sm:$0xff] %v7525_v49 }
 0x178   : > { %v7537_v48 = vpop.f32.mrf.mxu3 }
 0x179   : > { %v7533_v35 = vpop.f32.mrf.mxu0  ;;  %8310 = vst [vmem:[#allocation26_spill] sm:$0xff] %v7537_v48 }
 0x17d   : > { %2507 = vmatmul.bf16.gmra.mxu3 %v2286_v8 }
 0x17e   : > { %v7540_v42 = vpop.f32.mrf.mxu2  ;;  %v7544_v49 = vpop.f32.mrf.mxu1 }
 0x17f   : > { %8311 = vst [vmem:[#allocation69_spill] sm:$0xff] %v7540_v42  ;;  %v2294_v42 = vor.u32 %v2293_v20, %v2290_v61 }
 0x180   : > { %v7546_v58 = vpop.f32.mrf.mxu3 }
 0x181   : > { %v7542_v9 = vpop.f32.mrf.mxu0  ;;  %8312 = vst [vmem:[#allocation70_spill] sm:$0xff] %v7546_v58  ;;  %1635 = vmatmul.bf16.gmra.mxu1 %v8313_v14  ;;  %v2295_v11 = vsel %vm1726_vm1, %v2285_v1, %v2294_v42  ;;  %v6052_v14 = vld [vmem:[#allocation2 + $0x4c] sm:$0xff]  }
 0x183   : > { %1937 = vmatmul.bf16.gmra.mxu2 %v7016_v32 }
 0x184   : > { %2768 = vmatmul.bf16.gmra.mxu0 %v6050_v55  ;;  %v2297_v55 = vshrl.u32 %v7201_v7, 16 }
 0x186   : > { %v1898_v24 = vpop.f32.mrf.mxu2  ;;  %v7552_v8 = vpop.f32.mrf.mxu1  ;;  %v2299_v61 = vrot.slane %v2297_v55, 3  ;;  %v5471_v55 = vld [vmem:[%s8129_s1 + $0x158] sm:$0xff] }
 0x187   : > { %3141 = vmatpush.bf16.msra.mxu1 %v5471_v55 }
 0x188   : > { %v1329_v48 = vpop.f32.mrf.mxu3 }
 0x189   : > { %v7550_v54 = vpop.f32.mrf.mxu0 }
 0x18d   : > { %2512 = vmatmul.bf16.gmra.mxu3 %v2295_v11  ;;  %v2302_v11 = vrot.slane %v2300_v12, 4 }
 0x18e   : > { %v1900_v58 = vpop.f32.mrf.mxu2  ;;  %v1601_v31 = vpop.f32.mrf.mxu1 }
 0x18f   : > { %v1602_v32 = vadd.f32 %v1601_v31, %v7423_v17  ;;  %v5498_v17 = vld [vmem:[%s8129_s1 + $0x198] sm:$0xff] }
 0x190   : > { %v2473_v34 = vpop.f32.mrf.mxu3  ;;  %3692 = vmatpush.bf16.msra.mxu2 %v5498_v17 }
 0x191   : > { %v2734_v37 = vpop.f32.mrf.mxu0  ;;  %v2002_v38 = vadd.f32 %v1898_v24, %v1602_v32  ;;  %1640 = vmatmul.bf16.gmra.mxu1 %v7020_v47 }
 0x193   : > { %1942 = vmatmul.bf16.gmra.mxu2 %v7149_v16  ;;  %v2577_v48 = vadd.f32 %v2473_v34, %v2002_v38  ;;  %v2303_v16 = vor.u32 %v2302_v11, %v2299_v61  ;;  %v5918_v38 = vld [vmem:[#allocation2 + $0x60] sm:$0xff]  }
 0x194   : > { %2773 = vmatmul.bf16.gmra.mxu0 %v6052_v14  ;;  %v2309_v61 = vshll.u32 %v5918_v38, 16 }
 0x195   : > { %v7560_v20 = vadd.f32 %v2734_v37, %v2577_v48  ;;  %v2304_v34 = vsel %vm1726_vm1, %v2294_v42, %v2303_v16  ;;  %v5506_v37 = vld [vmem:[%s8129_s1 + $0x1d8] sm:$0xff]  ;;  %v2306_v42 = vshrl.u32 %v5918_v38, 16 }
 0x196   : > { %v1903_v1 = vpop.f32.mrf.mxu2  ;;  %v1603_v31 = vpop.f32.mrf.mxu1  ;;  %v6054_v48 = vld [vmem:[#allocation2 + $0x54] sm:$0xff]   ;;  %3978 = vmatpush.bf16.msra.mxu3 %v5506_v37 }
 0x197   : > { %v1604_v7 = vadd.f32 %v1603_v31, %v7432_v59 }
 0x198   : > { %v2475_v43 = vpop.f32.mrf.mxu3 }
 0x199   : > { %v2736_v10 = vpop.f32.mrf.mxu0  ;;  %v2003_v24 = vadd.f32 %v1900_v58, %v1604_v7  ;;  %v2308_v7 = vrot.slane %v2306_v42, 3 }
 0x19b   : > { %v2578_v47 = vadd.f32 %v2475_v43, %v2003_v24  ;;  %v2311_v24 = vrot.slane %v2309_v61, 4  ;;  %v6056_v61 = vld [vmem:[#allocation2 + $0x5c] sm:$0xff]  }
 0x19d   : > { %2517 = vmatmul.bf16.gmra.mxu3 %v2304_v34  ;;  %v7567_v14 = vadd.f32 %v2736_v10, %v2578_v47  ;;  %v2312_v37 = vor.u32 %v2311_v24, %v2308_v7 }
 0x19e   : > { %v1905_v32 = vpop.f32.mrf.mxu2  ;;  %v1606_v59 = vpop.f32.mrf.mxu1 }
 0x19f   : > { %v1607_v58 = vadd.f32 %v1606_v59, %v7444_v27  ;;  %v5514_v27 = vld [vmem:[%s8129_s1 + $0x218] sm:$0xff]  ;;  %v2313_v59 = vsel %vm1726_vm1, %v2303_v16, %v2312_v37 }
 0x1a0   : > { %v2478_v43 = vpop.f32.mrf.mxu3  ;;  %4316 = vmatpush.bf16.msra.mxu0 %v5514_v27 }
 0x1a1   : > { %v2739_v12 = vpop.f32.mrf.mxu0  ;;  %v2004_v10 = vadd.f32 %v1903_v1, %v1607_v58  ;;  %1645 = vmatmul.bf16.gmra.mxu1 %v7167_v39 }
 0x1a3   : > { %1947 = vmatmul.bf16.gmra.mxu2 %v7322_v44  ;;  %v2579_v11 = vadd.f32 %v2478_v43, %v2004_v10 }
 0x1a4   : > { %2778 = vmatmul.bf16.gmra.mxu0 %v6054_v48 }
 0x1a5   : > { %v7578_v31 = vadd.f32 %v2739_v12, %v2579_v11  ;;  %v5919_v12 = vld [vmem:[#allocation2 + $0x68] sm:$0xff]  }
 0x1a6   : > { %v1908_v17 = vpop.f32.mrf.mxu2  ;;  %v1608_v47 = vpop.f32.mrf.mxu1  ;;  %v2315_v11 = vshrl.u32 %v5919_v12, 16 }
 0x1a7   : > { %v1609_v44 = vadd.f32 %v1608_v47, %v7461_v62  ;;  %v2318_v62 = vshll.u32 %v5919_v12, 16 }
 0x1a8   : > { %v2480_v1 = vpop.f32.mrf.mxu3  ;;  %v2317_v24 = vrot.slane %v2315_v11, 3 }
 0x1a9   : > { %v2741_v34 = vpop.f32.mrf.mxu0  ;;  %v2005_v39 = vadd.f32 %v1905_v32, %v1609_v44  ;;  %v2320_v27 = vrot.slane %v2318_v62, 4 }
 0x1ab   : > { %v2580_v55 = vadd.f32 %v2480_v1, %v2005_v39  ;;  %v2321_v39 = vor.u32 %v2320_v27, %v2317_v24  ;;  %v5505_v27 = vld [vmem:[%s8129_s1 + $0x1d0] sm:$0xff] }
 0x1ac   : > { %3979 = vmatpush.bf16.msra.mxu3 %v5505_v27 }
 0x1ad   : > { %2522 = vmatmul.bf16.gmra.mxu3 %v2313_v59  ;;  %v7585_v58 = vadd.f32 %v2741_v34, %v2580_v55 }
 0x1ae   : > { %v1910_v38 = vpop.f32.mrf.mxu2  ;;  %v1611_v43 = vpop.f32.mrf.mxu1 }
 0x1af   : > { %v1612_v10 = vadd.f32 %v1611_v43, %v7476_v30 }
 0x1b0   : > { %v2483_v42 = vpop.f32.mrf.mxu3 }
 0x1b1   : > { %v2744_v48 = vpop.f32.mrf.mxu0  ;;  %v2006_v32 = vadd.f32 %v1908_v17, %v1612_v10  ;;  %1650 = vmatmul.bf16.gmra.mxu1 %v7334_v46  ;;  %v5920_v46 = vld [vmem:[#allocation2 + $0x70] sm:$0xff]  }
 0x1b2   : > { %v2324_v11 = vshrl.u32 %v5920_v46, 16  ;;  %v2327_v62 = vshll.u32 %v5920_v46, 16  ;;  %v5921_v46 = vld [vmem:[#allocation2 + $0x78] sm:$0xff]  }
 0x1b3   : > { %1952 = vmatmul.bf16.gmra.mxu2 %v7326_v22  ;;  %v2581_v16 = vadd.f32 %v2483_v42, %v2006_v32  ;;  %v2322_v22 = vsel %vm1726_vm1, %v2312_v37, %v2321_v39 }
 0x1b4   : > { %2783 = vmatmul.bf16.gmra.mxu0 %v6056_v61  ;;  %v6058_v61 = vld [vmem:[#allocation2 + $0x64] sm:$0xff]   ;;  %v2326_v32 = vrot.slane %v2324_v11, 3  ;;  %v6060_v11 = vld [vmem:[#allocation2 + $0x6c] sm:$0xff]  }
 0x1b5   : > { %v7590_v47 = vadd.f32 %v2744_v48, %v2581_v16  ;;  %v2329_v16 = vrot.slane %v2327_v62, 4  ;;  %v2333_v62 = vshrl.u32 %v5921_v46, 16 }
 0x1b6   : > { %v1913_v7 = vpop.f32.mrf.mxu2  ;;  %v1613_v34 = vpop.f32.mrf.mxu1 }
 0x1b7   : > { %v1614_v30 = vadd.f32 %v1613_v34, %v7487_v25 }
 0x1b8   : > { %v2485_v1 = vpop.f32.mrf.mxu3 }
 0x1b9   : > { %v2746_v44 = vpop.f32.mrf.mxu0  ;;  %v2007_v55 = vadd.f32 %v1910_v38, %v1614_v30  ;;  %v2330_v30 = vor.u32 %v2329_v16, %v2326_v32  ;;  %v2335_v16 = vrot.slane %v2333_v62, 3 }
 0x1bb   : > { %v2582_v59 = vadd.f32 %v2485_v1, %v2007_v55 }
 0x1bd   : > { %2527 = vmatmul.bf16.gmra.mxu3 %v2322_v22  ;;  %v7594_v12 = vadd.f32 %v2746_v44, %v2582_v59  ;;  %v2331_v59 = vsel %vm1726_vm1, %v2321_v39, %v2330_v30 }
 0x1be   : > { %v1915_v17 = vpop.f32.mrf.mxu2  ;;  %v1616_v43 = vpop.f32.mrf.mxu1 }
 0x1bf   : > { %v1617_v48 = vadd.f32 %v1616_v43, %v7496_v23  ;;  %v5497_v23 = vld [vmem:[%s8129_s1 + $0x190] sm:$0xff] }
 0x1c0   : > { %v2488_v42 = vpop.f32.mrf.mxu3  ;;  %3693 = vmatpush.bf16.msra.mxu2 %v5497_v23 }
 0x1c1   : > { %v2749_v10 = vpop.f32.mrf.mxu0  ;;  %v2008_v25 = vadd.f32 %v1913_v7, %v1617_v48  ;;  %1655 = vmatmul.bf16.gmra.mxu1 %v7338_v0 }
 0x1c3   : > { %1957 = vmatmul.bf16.gmra.mxu2 %v7027_v52  ;;  %v2583_v37 = vadd.f32 %v2488_v42, %v2008_v25  ;;  %v5470_v52 = vld [vmem:[%s8129_s1 + $0x150] sm:$0xff]  ;;  %v8314_v25 = vld [vmem:[#allocation39_spill] sm:$0xff] }
 0x1c4   : > { %2788 = vmatmul.bf16.gmra.mxu0 %v6058_v61  ;;  %3142 = vmatpush.bf16.msra.mxu1 %v5470_v52 }
 0x1c5   : > { %v7599_v24 = vadd.f32 %v2749_v10, %v2583_v37  ;;  %v5513_v10 = vld [vmem:[%s8129_s1 + $0x210] sm:$0xff] }
 0x1c6   : > { %v1918_v38 = vpop.f32.mrf.mxu2  ;;  %v1618_v0 = vpop.f32.mrf.mxu1  ;;  %4317 = vmatpush.bf16.msra.mxu0 %v5513_v10 }
 0x1c7   : > { %v1619_v34 = vadd.f32 %v1618_v0, %v7504_v15 }
 0x1c8   : > { %v2490_v44 = vpop.f32.mrf.mxu3 }
 0x1c9   : > { %v2751_v7 = vpop.f32.mrf.mxu0  ;;  %v2009_v1 = vadd.f32 %v1915_v17, %v1619_v34  ;;  %v2336_v17 = vshll.u32 %v5921_v46, 16 }
 0x1cb   : > { %v2584_v55 = vadd.f32 %v2490_v44, %v2009_v1  ;;  %v2338_v23 = vrot.slane %v2336_v17, 4 }
 0x1cd   : > { %2532 = vmatmul.bf16.gmra.mxu3 %v2331_v59  ;;  %v7612_v43 = vadd.f32 %v2751_v7, %v2584_v55  ;;  %v2339_v34 = vor.u32 %v2338_v23, %v2335_v16  ;;  %v5922_v55 = vld [vmem:[#allocation2 + $0x80] sm:$0xff]  }
 0x1ce   : > { %v1920_v22 = vpop.f32.mrf.mxu2  ;;  %v1621_v48 = vpop.f32.mrf.mxu1 }
 0x1cf   : > { %v1622_v42 = vadd.f32 %v1621_v48, %v7517_v29 }
 0x1d0   : > { %v2493_v61 = vpop.f32.mrf.mxu3 }
 0x1d1   : > { %v2754_v15 = vpop.f32.mrf.mxu0  ;;  %v2010_v39 = vadd.f32 %v1918_v38, %v1622_v42  ;;  %1660 = vmatmul.bf16.gmra.mxu1 %v8314_v25  ;;  %v6062_v42 = vld [vmem:[#allocation2 + $0x74] sm:$0xff]  }
 0x1d3   : > { %1962 = vmatmul.bf16.gmra.mxu2 %v7100_v40  ;;  %v2585_v37 = vadd.f32 %v2493_v61, %v2010_v39  ;;  %v2340_v40 = vsel %vm1726_vm1, %v2330_v30, %v2339_v34  ;;  %v2342_v61 = vshrl.u32 %v5922_v55, 16 }
 0x1d4   : > { %2793 = vmatmul.bf16.gmra.mxu0 %v6060_v11  ;;  %v2345_v11 = vshll.u32 %v5922_v55, 16  ;;  %v5496_v55 = vld [vmem:[%s8129_s1 + $0x188] sm:$0xff] }
 0x1d5   : > { %v7620_v27 = vadd.f32 %v2754_v15, %v2585_v37  ;;  %v2344_v39 = vrot.slane %v2342_v61, 3  ;;  %3694 = vmatpush.bf16.msra.mxu2 %v5496_v55 }
 0x1d6   : > { %v1923_v32 = vpop.f32.mrf.mxu2  ;;  %v1623_v52 = vpop.f32.mrf.mxu1  ;;  %v2347_v25 = vrot.slane %v2345_v11, 4  ;;  %v8317_v11 = vld [vmem:[#allocation51_spill] sm:$0xff] }
 0x1d7   : > { %v1624_v29 = vadd.f32 %v1623_v52, %v7533_v35  ;;  %v8315_v35 = vld [vmem:[#allocation47_spill] sm:$0xff] }
 0x1d8   : > { %v2495_v7 = vpop.f32.mrf.mxu3 }
 0x1d9   : > { %v2756_v0 = vpop.f32.mrf.mxu0  ;;  %v2011_v44 = vadd.f32 %v1920_v22, %v1624_v29  ;;  %v8316_v22 = vld [vmem:[#allocation43_spill] sm:$0xff] }
 0x1db   : > { %v2586_v1 = vadd.f32 %v2495_v7, %v2011_v44 }
 0x1dd   : > { %2537 = vmatmul.bf16.gmra.mxu3 %v2340_v40  ;;  %v7624_v59 = vadd.f32 %v2756_v0, %v2586_v1  ;;  %v2348_v0 = vor.u32 %v2347_v25, %v2344_v39  ;;  %v5923_v1 = vld [vmem:[#allocation2 + $0x88] sm:$0xff]  }
 0x1de   : > { %v1925_v38 = vpop.f32.mrf.mxu2  ;;  %v1626_v46 = vpop.f32.mrf.mxu1  ;;  %v2354_v61 = vshll.u32 %v5923_v1, 16 }
 0x1df   : > { %v1627_v48 = vadd.f32 %v1626_v46, %v7542_v9  ;;  %v2349_v44 = vsel %vm1726_vm1, %v2339_v34, %v2348_v0  ;;  %v5504_v46 = vld [vmem:[%s8129_s1 + $0x1c8] sm:$0xff] }
 0x1e0   : > { %v2498_v15 = vpop.f32.mrf.mxu3  ;;  %3980 = vmatpush.bf16.msra.mxu3 %v5504_v46  ;;  %v2356_v25 = vrot.slane %v2354_v61, 4 }
 0x1e1   : > { %v2759_v10 = vpop.f32.mrf.mxu0  ;;  %v2012_v62 = vadd.f32 %v1923_v32, %v1627_v48  ;;  %1665 = vmatmul.bf16.gmra.mxu1 %v8316_v22 }
 0x1e3   : > { %1967 = vmatmul.bf16.gmra.mxu2 %v8315_v35  ;;  %v2587_v30 = vadd.f32 %v2498_v15, %v2012_v62  ;;  %v6064_v15 = vld [vmem:[#allocation2 + $0x7c] sm:$0xff]   ;;  %v8318_v62 = vld [vmem:[#allocation49_spill] sm:$0xff] }
 0x1e4   : > { %2798 = vmatmul.bf16.gmra.mxu0 %v6062_v42  ;;  %v2351_v42 = vshrl.u32 %v5923_v1, 16 }
 0x1e5   : > { %v7629_v37 = vadd.f32 %v2759_v10, %v2587_v30 }
 0x1e6   : > { %v1928_v17 = vpop.f32.mrf.mxu2  ;;  %v1628_v16 = vpop.f32.mrf.mxu1  ;;  %v2353_v39 = vrot.slane %v2351_v42, 3 }
 0x1e7   : > { %v1629_v9 = vadd.f32 %v1628_v16, %v7550_v54  ;;  %v5469_v54 = vld [vmem:[%s8129_s1 + $0x148] sm:$0xff] }
 0x1e8   : > { %v2500_v52 = vpop.f32.mrf.mxu3  ;;  %3143 = vmatpush.bf16.msra.mxu1 %v5469_v54 }
 0x1e9   : > { %v2761_v23 = vpop.f32.mrf.mxu0  ;;  %v2013_v29 = vadd.f32 %v1925_v38, %v1629_v9 }
 0x1eb   : > { %v2588_v7 = vadd.f32 %v2500_v52, %v2013_v29 }
 0x1ed   : > { %2542 = vmatmul.bf16.gmra.mxu3 %v2349_v44  ;;  %v7633_v40 = vadd.f32 %v2761_v23, %v2588_v7  ;;  %v2357_v7 = vor.u32 %v2356_v25, %v2353_v39 }
 0x1ee   : > { %v1930_v32 = vpop.f32.mrf.mxu2  ;;  %v1631_v38 = vpop.f32.mrf.mxu1 }
 0x1ef   : > { %v1632_v34 = vadd.f32 %v1631_v38, %v7419_v50  ;;  %v5512_v50 = vld [vmem:[%s8129_s1 + $0x208] sm:$0xff]  ;;  %v2358_v1 = vsel %vm1726_vm1, %v2348_v0, %v2357_v7 }
 0x1f0   : > { %v2503_v48 = vpop.f32.mrf.mxu3  ;;  %4318 = vmatpush.bf16.msra.mxu0 %v5512_v50 }
 0x1f1   : > { %v2764_v10 = vpop.f32.mrf.mxu0  ;;  %v2014_v35 = vadd.f32 %v1928_v17, %v1632_v34  ;;  %1670 = vmatmul.bf16.gmra.mxu1 %v8318_v62 }
 0x1f3   : > { %1972 = vmatmul.bf16.gmra.mxu2 %v8317_v11  ;;  %v2589_v22 = vadd.f32 %v2503_v48, %v2014_v35 }
 0x1f4   : > { %2803 = vmatmul.bf16.gmra.mxu0 %v6064_v15  ;;  %v6066_v15 = vld [vmem:[#allocation2 + $0x84] sm:$0xff]  }
 0x1f5   : > { %v7647_v16 = vadd.f32 %v2764_v10, %v2589_v22  ;;  %v5924_v10 = vld [vmem:[#allocation2 + $0x90] sm:$0xff]  }
 0x1f6   : > { %v1933_v30 = vpop.f32.mrf.mxu2  ;;  %v1633_v23 = vpop.f32.mrf.mxu1  ;;  %v2363_v42 = vshll.u32 %v5924_v10, 16 }
 0x1f7   : > { %v1634_v52 = vadd.f32 %v1633_v23, %v7425_v5 }
 0x1f8   : > { %v2505_v29 = vpop.f32.mrf.mxu3  ;;  %v2365_v62 = vrot.slane %v2363_v42, 4 }
 0x1f9   : > { %v2766_v9 = vpop.f32.mrf.mxu0  ;;  %v2015_v17 = vadd.f32 %v1930_v32, %v1634_v52  ;;  %v2360_v32 = vshrl.u32 %v5924_v10, 16 }
 0x1fb   : > { %v2590_v44 = vadd.f32 %v2505_v29, %v2015_v17  ;;  %v2362_v35 = vrot.slane %v2360_v32, 3 }
 0x1fd   : > { %2547 = vmatmul.bf16.gmra.mxu3 %v2358_v1  ;;  %v7654_v46 = vadd.f32 %v2766_v9, %v2590_v44  ;;  %v2366_v23 = vor.u32 %v2365_v62, %v2362_v35  ;;  %v5925_v9 = vld [vmem:[#allocation2 + $0x98] sm:$0xff]  }
 0x1fe   : > { %v1935_v55 = vpop.f32.mrf.mxu2  ;;  %v1636_v54 = vpop.f32.mrf.mxu1  ;;  %v2372_v10 = vshll.u32 %v5925_v9, 16 }
 0x1ff   : > { %v1637_v34 = vadd.f32 %v1636_v54, %v7442_v33  ;;  %v6068_v54 = vld [vmem:[#allocation2 + $0x8c] sm:$0xff]  }
 0x200   : > { %v2508_v48 = vpop.f32.mrf.mxu3 }
 0x201   : > { %v2769_v38 = vpop.f32.mrf.mxu0  ;;  %v2016_v5 = vadd.f32 %v1933_v30, %v1637_v34  ;;  %1675 = vmatmul.bf16.gmra.mxu1 %v7330_v63  ;;  %v2367_v30 = vsel %vm1726_vm1, %v2357_v7, %v2366_v23 }
 0x203   : > { %1977 = vmatmul.bf16.gmra.mxu2 %v7348_v57  ;;  %v2591_v0 = vadd.f32 %v2508_v48, %v2016_v5  ;;  %v2374_v48 = vrot.slane %v2372_v10, 4  ;;  %v5503_v5 = vld [vmem:[%s8129_s1 + $0x1c0] sm:$0xff]  ;;  %v2083_v10 = vld [vmem:[#allocation2 + $0xa8] sm:$0xf] }
 0x204   : > { %2808 = vmatmul.bf16.gmra.mxu0 %v6066_v15  ;;  %3981 = vmatpush.bf16.msra.mxu3 %v5503_v5 }
 0x205   : > { %v7659_v11 = vadd.f32 %v2769_v38, %v2591_v0  ;;  %v2369_v38 = vshrl.u32 %v5925_v9, 16 }
 0x206   : > { %v1938_v61 = vpop.f32.mrf.mxu2  ;;  %v1638_v22 = vpop.f32.mrf.mxu1 }
 0x207   : > { %v1639_v33 = vadd.f32 %v1638_v22, %v7449_v3  ;;  %v2371_v34 = vrot.slane %v2369_v38, 3 }
 0x208   : > { %v2510_v25 = vpop.f32.mrf.mxu3 }
 0x209   : > { %v2771_v39 = vpop.f32.mrf.mxu0  ;;  %v2017_v50 = vadd.f32 %v1935_v55, %v1639_v33  ;;  %v2375_v0 = vor.u32 %v2374_v48, %v2371_v34 }
 0x20b   : > { %v2592_v57 = vadd.f32 %v2510_v25, %v2017_v50  ;;  %v2376_v62 = vsel %vm1726_vm1, %v2366_v23, %v2375_v0  ;;  %v5468_v25 = vld [vmem:[%s8129_s1 + $0x140] sm:$0xff]  ;;  %v6070_v23 = vld [vmem:[#allocation2 + $0x94] sm:$0xff]  }
 0x20c   : > { %3144 = vmatpush.bf16.msra.mxu1 %v5468_v25 }
 0x20d   : > { %2552 = vmatmul.bf16.gmra.mxu3 %v2367_v30  ;;  %v7663_v52 = vadd.f32 %v2771_v39, %v2592_v57  ;;  %v7678_v39 = vld [vmem:[#allocation2 + $0xa0] sm:$0xff]  }
 0x20e   : > { %v1940_v63 = vpop.f32.mrf.mxu2  ;;  %v1641_v29 = vpop.f32.mrf.mxu1  ;;  %v2378_v9 = vshrl.u32 %v7678_v39, 16 }
 0x20f   : > { %v1642_v44 = vadd.f32 %v1641_v29, %v7472_v51  ;;  %v5495_v51 = vld [vmem:[%s8129_s1 + $0x180] sm:$0xff]  ;;  %v2381_v29 = vshll.u32 %v7678_v39, 16 }
 0x210   : > { %v2513_v1 = vpop.f32.mrf.mxu3  ;;  %3695 = vmatpush.bf16.msra.mxu2 %v5495_v51 }
 0x211   : > { %v2774_v17 = vpop.f32.mrf.mxu0  ;;  %v2018_v3 = vadd.f32 %v1938_v61, %v1642_v44  ;;  %1680 = vmatmul.bf16.gmra.mxu1 %v7351_v2  ;;  %v2383_v38 = vrot.slane %v2381_v29, 4 }
 0x213   : > { %1982 = vmatmul.bf16.gmra.mxu2 %v7356_v21  ;;  %v2593_v7 = vadd.f32 %v2513_v1, %v2018_v3 }
 0x214   : > { %2813 = vmatmul.bf16.gmra.mxu0 %v6068_v54  ;;  %v2380_v54 = vrot.slane %v2378_v9, 3 }
 0x215   : > { %v7668_v15 = vadd.f32 %v2774_v17, %v2593_v7 }
 0x216   : > { %v1943_v55 = vpop.f32.mrf.mxu2  ;;  %v1643_v32 = vpop.f32.mrf.mxu1  ;;  %v2384_v5 = vor.u32 %v2383_v38, %v2380_v54 }
 0x217   : > { %v1644_v42 = vadd.f32 %v1643_v32, %v7485_v18  ;;  %v5511_v18 = vld [vmem:[%s8129_s1 + $0x200] sm:$0xff]  ;;  %v2184_v32 = vunpack.c.l.b16 %v2083_v10  ;;  %v3291_v10 = vld [vmem:[#allocation2 + $0x14] sm:$0xff]  }
 0x218   : > { %v2515_v2 = vpop.f32.mrf.mxu3  ;;  %4319 = vmatpush.bf16.msra.mxu0 %v5511_v18  ;;  %v6071_v18 = vld [vmem:[#allocation2 + $0x9c] sm:$0xff]  }
 0x219   : > { %v2776_v21 = vpop.f32.mrf.mxu0  ;;  %v2019_v61 = vadd.f32 %v1940_v63, %v1644_v42 }
 0x21b   : > { %v2594_v35 = vadd.f32 %v2515_v2, %v2019_v61 }
 0x21d   : > { %2557 = vmatmul.bf16.gmra.mxu3 %v2376_v62  ;;  %v7680_v33 = vadd.f32 %v2776_v21, %v2594_v35  ;;  %v2385_v21 = vsel %vm1726_vm1, %v2375_v0, %v2384_v5 }
 0x21e   : > { %v1945_v22 = vpop.f32.mrf.mxu2  ;;  %v1646_v50 = vpop.f32.mrf.mxu1 }
 0x21f   : > { %v1647_v30 = vadd.f32 %v1646_v50, %v7492_v45  ;;  %v2084_v45 = vld [vmem:[#allocation2 + $0xac] sm:$0x3] }
 0x220   : > { %v2518_v63 = vpop.f32.mrf.mxu3 }
 0x221   : > { %v2779_v57 = vpop.f32.mrf.mxu0  ;;  %v2020_v17 = vadd.f32 %v1943_v55, %v1647_v30  ;;  %1685 = vmatmul.bf16.gmra.mxu1 %v7359_v6 }
 0x223   : > { %1987 = vmatmul.bf16.gmra.mxu2 %v7377_v19  ;;  %v2595_v44 = vadd.f32 %v2518_v63, %v2020_v17  ;;  %v7696_v19 = vunpack.c.l.b16 %v2084_v45  ;;  %v6129_v45 = vld [vmem:[#allocation2 + $0x14] sm:$0xf0] }
 0x224   : > { %2818 = vmatmul.bf16.gmra.mxu0 %v6070_v23 }
 0x225   : > { %v7693_v3 = vadd.f32 %v2779_v57, %v2595_v44  ;;  %v2206_v2 = vpack.c.b16 %v7696_v19, %v2184_v32 }
 0x226   : > { %v1948_v1 = vpop.f32.mrf.mxu2  ;;  %v1648_v7 = vpop.f32.mrf.mxu1 }
 0x227   : > { %v1649_v48 = vadd.f32 %v1648_v7, %v7502_v4  ;;  %v2387_v50 = vshrl.u32 %v2206_v2, 16  ;;  %v2390_v57 = vshll.u32 %v2206_v2, 16  ;;  %v7718_v2 = vld [vmem:[#allocation2 + $0x1c] sm:$0xff] }
 0x228   : > { %v2520_v51 = vpop.f32.mrf.mxu3 }
 0x229   : > { %v2781_v34 = vpop.f32.mrf.mxu0  ;;  %v2021_v55 = vadd.f32 %v1945_v22, %v1649_v48  ;;  %v2389_v63 = vrot.slane %v2387_v50, 3  ;;  %v2392_v23 = vrot.slane %v2390_v57, 4  ;;  %v3453_v57 = vshrl.u32 %v3291_v10, 16 }
 0x22b   : > { %v2596_v6 = vadd.f32 %v2520_v51, %v2021_v55  ;;  %v2393_v54 = vor.u32 %v2392_v23, %v2389_v63  ;;  %v6130_v63 = vld [vmem:[#allocation2 + $0x14] sm:$0xe] }
 0x22d   : > { %2562 = vmatmul.bf16.gmra.mxu3 %v2385_v21  ;;  %v7700_v61 = vadd.f32 %v2781_v34, %v2596_v6  ;;  %v5769_v34 = vunpack.c.h.b16 %v7678_v39  ;;  %v3455_v39 = vshll.u32 %v3291_v10, 16 }
 0x22e   : > { %v1950_v42 = vpop.f32.mrf.mxu2  ;;  %v1651_v35 = vpop.f32.mrf.mxu1 }
 0x22f   : > { %v1652_v25 = vadd.f32 %v1651_v35, %v7519_v13 }
 0x230   : > { %v2523_v4 = vpop.f32.mrf.mxu3 }
 0x231   : > { %v2784_v62 = vpop.f32.mrf.mxu0  ;;  %v2022_v22 = vadd.f32 %v1948_v1, %v1652_v25  ;;  %1690 = vmatmul.bf16.gmra.mxu1 %v7380_v36  ;;  %v2394_v1 = vsel %vm1726_vm1, %v2384_v5, %v2393_v54 }
 0x233   : > { %1992 = vmatmul.bf16.gmra.mxu2 %v7392_v41  ;;  %v2597_v0 = vadd.f32 %v2523_v4, %v2022_v22  ;;  %v3460_v4 = vshll.u32 %v7718_v2, 16 }
 0x234   : > { %2823 = vmatmul.bf16.gmra.mxu0 %v6071_v18  ;;  %v3457_v18 = vrot.slane %v3455_v39, 1  ;;  %v6113_v39 = vld [vmem:[#allocation2 + $0x14] sm:$0xff]  }
 0x235   : > { %v7705_v9 = vadd.f32 %v2784_v62, %v2597_v0  ;;  %v3462_v22 = vrot.slane %v3460_v4, 1 }
 0x236   : > { %v1953_v30 = vpop.f32.mrf.mxu2  ;;  %v1653_v29 = vpop.f32.mrf.mxu1 }
 0x237   : > { %v1654_v13 = vadd.f32 %v1653_v29, %v7535_v56  ;;  %v7713_v56 = vpack.c.b16 %v2184_v32, %v5769_v34 }
 0x238   : > { %v2525_v44 = vpop.f32.mrf.mxu3 }
 0x239   : > { %v2786_v17 = vpop.f32.mrf.mxu0  ;;  %v2023_v38 = vadd.f32 %v1950_v42, %v1654_v13 }
 0x23b   : > { %v2598_v41 = vadd.f32 %v2525_v44, %v2023_v38 }
 0x23d   : > { %2567 = vmatmul.bf16.gmra.mxu3 %v2394_v1  ;;  %v7709_v7 = vadd.f32 %v2786_v17, %v2598_v41  ;;  %v7731_v1 = vld [vmem:[#allocation2 + $0x24] sm:$0xff] }
 0x23e   : > { %v1955_v36 = vpop.f32.mrf.mxu2  ;;  %v1656_v48 = vpop.f32.mrf.mxu1 }
 0x23f   : > { %v1657_v55 = vadd.f32 %v1656_v48, %v7544_v49 }
 0x240   : > { %v2528_v6 = vpop.f32.mrf.mxu3 }
 0x241   : > { %v2789_v51 = vpop.f32.mrf.mxu0  ;;  %v2024_v21 = vadd.f32 %v1953_v30, %v1657_v55  ;;  %1695 = vmatmul.bf16.gmra.mxu1 %v7386_v26  ;;  %v3458_v30 = vor.u32 %v3457_v18, %v3453_v57 }
 0x243   : > { %1997 = vmatmul.bf16.gmra.mxu2 %v7388_v60  ;;  %v2599_v5 = vadd.f32 %v2528_v6, %v2024_v21  ;;  %v3463_v44 = vsel %vm2900_vm3, %v3458_v30, %v3462_v22  ;;  %v8320_v21 = vld [vmem:[#allocation53_spill] sm:$0xff] }
 0x244   : > { %2828 = vmatmul.bf16.gmra.mxu0 %v7713_v56 }
 0x245   : > { %v7720_v35 = vadd.f32 %v2789_v51, %v2599_v5 }
 0x246   : > { %v1958_v42 = vpop.f32.mrf.mxu2  ;;  %v1658_v62 = vpop.f32.mrf.mxu1 }
 0x247   : > { %v1659_v49 = vadd.f32 %v1658_v62, %v7552_v8  ;;  %v2655_v8 = vpack.c.b16 %v7696_v19, %v7696_v19  ;;  %v2909_v62 = vshll.u32 %v6113_v39, 16 }
 0x248   : > { %v2530_v32 = vpop.f32.mrf.mxu3 }
 0x249   : > { %v2791_v25 = vpop.f32.mrf.mxu0  ;;  %v2025_v60 = vadd.f32 %v1955_v36, %v1659_v49  ;;  %v3464_v36 = vshrl.u32 %v7718_v2, 16  ;;  %v4159_v49 = vrot.slane %v3460_v4, 2 }
 0x24b   : > { %v2600_v50 = vadd.f32 %v2530_v32, %v2025_v60 }
 0x24d   : > { %2572 = vmatmul.bf16.gmra.mxu3 %v2393_v54  ;;  %v7724_v0 = vadd.f32 %v2791_v25, %v2600_v50  ;;  %v6131_v54 = vor.u32 %v6130_v63, %v6129_v45  ;;  %v3468_v45 = vshll.u32 %v7731_v1, 16  ;;  %v4158_v25 = vrot.slane %v3464_v36, 1 }
 0x24e   : > { %v1960_v26 = vpop.f32.mrf.mxu2  ;;  %v1661_v23 = vpop.f32.mrf.mxu1 }
 0x24f   : > { %v1662_v17 = vadd.f32 %v1661_v23, %v7409_v28  ;;  %v8319_v28 = vld [vmem:[#allocation52_spill] sm:$0xff]  ;;  %v4151_v55 = vshrl.u32 %v6131_v54, 16  ;;  %v4154_v6 = vshll.u32 %v6131_v54, 16  ;;  %v3864_v60 = vrot.slane %v6131_v54, 1 }
 0x250   : > { %v2533_v13 = vpop.f32.mrf.mxu3  ;;  %v2904_v48 = vshll.u32 %v8319_v28, 16 }
 0x251   : > { %v2794_v29 = vpop.f32.mrf.mxu0  ;;  %v2026_v38 = vadd.f32 %v1958_v42, %v1662_v17  ;;  %1700 = vmatmul.bf16.gmra.mxu1 %v7382_v53  ;;  %v3865_v53 = vrot.slane %v7718_v2, 1  ;;  %v4153_v50 = vrot.slane %v4151_v55, 1  ;;  %v4156_v57 = vrot.slane %v4154_v6, 2 }
 0x252   : > { %v2906_v18 = vrot.slane %v2904_v48, 1  ;;  %v2902_v17 = vshrl.u32 %v8319_v28, 16  ;;  %v2911_v2 = vrot.slane %v2909_v62, 1 }
 0x253   : > { %3696 = vmatmul.bf16.vlgmr.msra.gmra.mxu2 %v3463_v44  ;;  %v2601_v10 = vadd.f32 %v2533_v13, %v2026_v38  ;;  %v3866_v63 = vsel %vm3863_vm4, %v3864_v60, %v3865_v53  ;;  %v4160_v13 = vor.u32 %v4159_v49, %v4158_v25  ;;  %v3466_v44 = vor.u32 %v3464_v36, %v3462_v22  ;;  %v8322_v49 = vld [vmem:[#allocation57_spill] sm:$0xff] }
 0x254   : > { %2833 = vmatmul.bf16.gmra.mxu0 %v2655_v8  ;;  %v2907_v38 = vor.u32 %v2906_v18, %v2902_v17  ;;  %v4157_v54 = vor.u32 %v4156_v57, %v4153_v50  ;;  %v3472_v36 = vshrl.u32 %v7731_v1, 16  ;;  %v3867_v18 = vrot.slane %v7731_v1, 1  ;;  %v8323_v1 = vld [vmem:[#allocation58_spill] sm:$0xff] }
 0x255   : > { %v7734_v34 = vadd.f32 %v2794_v29, %v2601_v10  ;;  %v3470_v29 = vrot.slane %v3468_v45, 1  ;;  %v8321_v10 = vld [vmem:[#allocation54_spill] sm:$0xff]  ;;  %v4163_v57 = vrot.slane %v3468_v45, 2 }
 0x256   : > { %v1963_v41 = vpop.f32.mrf.mxu2  ;;  %v1663_v51 = vpop.f32.mrf.mxu1  ;;  %v2912_v6 = vsel %vm2900_vm3, %v2907_v38, %v2911_v2  ;;  %v4161_v28 = vsel %vm4149_vm5, %v4157_v54, %v4160_v13  ;;  %v4162_v50 = vrot.slane %v3472_v36, 1  ;;  %v3868_v17 = vsel %vm3863_vm4, %v3865_v53, %v3867_v18 }
 0x257   : > { %v1664_v5 = vadd.f32 %v1663_v51, %v8320_v21  ;;  %v3471_v55 = vsel %vm2900_vm3, %v3466_v44, %v3470_v29 }
 0x258   : > { %v2535_v42 = vpop.f32.mrf.mxu3  ;;  %v4164_v38 = vor.u32 %v4163_v57, %v4162_v50 }
 0x259   : > { %v2796_v19 = vpop.f32.mrf.mxu0  ;;  %v2027_v32 = vadd.f32 %v1960_v26, %v1664_v5 }
 0x25a   : > { %v4165_v53 = vsel %vm4149_vm5, %v4160_v13, %v4164_v38 }
 0x25b   : > { %v2602_v30 = vadd.f32 %v2535_v42, %v2027_v32  ;;  %v7751_v42 = vld [vmem:[#allocation2 + $0x2c] sm:$0xff] }
 0x25c   : > { %v3869_v57 = vrot.slane %v7751_v42, 1 }
 0x25d   : > { %3982 = vmatmul.bf16.vlgmr.msra.gmra.mxu3 %v3866_v63  ;;  %v7742_v8 = vadd.f32 %v2796_v19, %v2602_v30  ;;  %v3476_v30 = vshll.u32 %v7751_v42, 16 }
 0x25e   : > { %v1965_v23 = vpop.f32.mrf.mxu2  ;;  %v1666_v4 = vpop.f32.mrf.mxu1 }
 0x25f   : > { %v1667_v48 = vadd.f32 %v1666_v4, %v8321_v10  ;;  %v3474_v4 = vor.u32 %v3472_v36, %v3470_v29  ;;  %v3478_v10 = vrot.slane %v3476_v30, 1  ;;  %v3480_v36 = vshrl.u32 %v7751_v42, 16 }
 0x260   : > { %v2538_v51 = vpop.f32.mrf.mxu3  ;;  %v4167_v13 = vrot.slane %v3476_v30, 2 }
 0x261   : > { %v2799_v26 = vpop.f32.mrf.mxu0  ;;  %v2028_v21 = vadd.f32 %v1963_v41, %v1667_v48  ;;  %3145 = vmatmul.bf16.vlgmr.msra.gmra.mxu1 %v2912_v6 }
 0x263   : > { %3701 = vmatmul.bf16.gmra.mxu2 %v3471_v55  ;;  %v2603_v19 = vadd.f32 %v2538_v51, %v2028_v21 }
 0x264   : > { %4320 = vmatmul.bf16.vlgmr.msra.gmra.mxu0 %v4161_v28  ;;  %v8324_v28 = vld [vmem:[#allocation55_spill] sm:$0xff] }
 0x265   : > { %v7749_v5 = vadd.f32 %v2799_v26, %v2603_v19  ;;  %v2913_v26 = vshrl.u32 %v6113_v39, 16 }
 0x266   : > { %v1968_v22 = vpop.f32.mrf.mxu2  ;;  %v1668_v62 = vpop.f32.mrf.mxu1 }
 0x267   : > { %v1669_v32 = vadd.f32 %v1668_v62, %v8322_v49  ;;  %v2915_v55 = vor.u32 %v2913_v26, %v2911_v2  ;;  %v7767_v2 = vld [vmem:[#allocation2 + $0x34] sm:$0xff] }
 0x268   : > { %v2540_v60 = vpop.f32.mrf.mxu3 }
 0x269   : > { %v2801_v25 = vpop.f32.mrf.mxu0  ;;  %v2029_v41 = vadd.f32 %v1965_v23, %v1669_v32  ;;  %v3479_v23 = vsel %vm2900_vm3, %v3474_v4, %v3478_v10  ;;  %v2920_v21 = vsel %vm2900_vm3, %v2915_v55, %v8324_v28  ;;  %v8326_v32 = vld [vmem:[#allocation61_spill] sm:$0xff]  ;;  %v3870_v4 = vsel %vm3863_vm4, %v3867_v18, %v3869_v57 }
 0x26b   : > { %v2604_v63 = vadd.f32 %v2540_v60, %v2029_v41  ;;  %v4166_v41 = vrot.slane %v3480_v36, 1 }
 0x26d   : > { %3987 = vmatmul.bf16.gmra.mxu3 %v3868_v17  ;;  %v7757_v54 = vadd.f32 %v2801_v25, %v2604_v63  ;;  %v3484_v63 = vshll.u32 %v7767_v2, 16 }
 0x26e   : > { %v1970_v44 = vpop.f32.mrf.mxu2  ;;  %v1671_v48 = vpop.f32.mrf.mxu1 }
 0x26f   : > { %v1672_v6 = vadd.f32 %v1671_v48, %v8323_v1  ;;  %v3482_v48 = vor.u32 %v3480_v36, %v3478_v10  ;;  %v3486_v1 = vrot.slane %v3484_v63, 1 }
 0x270   : > { %v2543_v45 = vpop.f32.mrf.mxu3 }
 0x271   : > { %v2804_v51 = vpop.f32.mrf.mxu0  ;;  %v2030_v29 = vadd.f32 %v1968_v22, %v1672_v6  ;;  %3150 = vmatmul.bf16.gmra.mxu1 %v2920_v21  ;;  %v3487_v30 = vsel %vm2900_vm3, %v3482_v48, %v3486_v1 }
 0x273   : > { %3706 = vmatmul.bf16.gmra.mxu2 %v3479_v23  ;;  %v2605_v39 = vadd.f32 %v2543_v45, %v2030_v29  ;;  %v8328_v23 = vld [vmem:[#allocation62_spill] sm:$0xff]  ;;  %v7779_v29 = vld [vmem:[#allocation2 + $0x3c] sm:$0xff] }
 0x274   : > { %4325 = vmatmul.bf16.gmra.mxu0 %v4165_v53  ;;  %v8329_v53 = vld [vmem:[#allocation56_spill] sm:$0xff] }
 0x275   : > { %v7765_v62 = vadd.f32 %v2804_v51, %v2605_v39  ;;  %v4168_v51 = vor.u32 %v4167_v13, %v4166_v41  ;;  %v3492_v41 = vshll.u32 %v7779_v29, 16 }
 0x276   : > { %v1973_v19 = vpop.f32.mrf.mxu2  ;;  %v1673_v25 = vpop.f32.mrf.mxu1 }
 0x277   : > { %8325 = vst [vmem:[#allocation33_spill] sm:$0xff] %v7765_v62  ;;  %v1674_v60 = vadd.f32 %v1673_v25, %v8326_v32  ;;  %v8331_v32 = vld [vmem:[#allocation63_spill] sm:$0xff] }
 0x278   : > { %v2545_v50 = vpop.f32.mrf.mxu3 }
 0x279   : > { %v2806_v49 = vpop.f32.mrf.mxu0  ;;  %v2031_v22 = vadd.f32 %v1970_v44, %v1674_v60  ;;  %v4169_v44 = vsel %vm4149_vm5, %v4164_v38, %v4168_v51 }
 0x27b   : > { %v2606_v17 = vadd.f32 %v2545_v50, %v2031_v22  ;;  %v4171_v22 = vrot.slane %v3484_v63, 2 }
 0x27d   : > { %3992 = vmatmul.bf16.gmra.mxu3 %v3870_v4  ;;  %v7773_v55 = vadd.f32 %v2806_v49, %v2606_v17  ;;  %v3488_v49 = vshrl.u32 %v7767_v2, 16 }
 0x27e   : > { %v1975_v26 = vpop.f32.mrf.mxu2  ;;  %v1676_v6 = vpop.f32.mrf.mxu1 }
 0x27f   : > { %8327 = vst [vmem:[#allocation39_spill] sm:$0xff] %v7773_v55  ;;  %v1677_v28 = vadd.f32 %v1676_v6, %v8328_v23  ;;  %v4170_v13 = vrot.slane %v3488_v49, 1  ;;  %v3494_v6 = vrot.slane %v3492_v41, 1  ;;  %v3490_v23 = vor.u32 %v3488_v49, %v3486_v1 }
 0x280   : > { %v2548_v42 = vpop.f32.mrf.mxu3  ;;  %v3496_v1 = vshrl.u32 %v7779_v29, 16 }
 0x281   : > { %v2809_v45 = vpop.f32.mrf.mxu0  ;;  %v2032_v21 = vadd.f32 %v1973_v19, %v1677_v28  ;;  %3155 = vmatmul.bf16.gmra.mxu1 %v8329_v53  ;;  %v3871_v19 = vrot.slane %v7767_v2, 1 }
 0x283   : > { %3711 = vmatmul.bf16.gmra.mxu2 %v3487_v30  ;;  %v2607_v18 = vadd.f32 %v2548_v42, %v2032_v21  ;;  %v3872_v4 = vsel %vm3863_vm4, %v3869_v57, %v3871_v19  ;;  %v4172_v30 = vor.u32 %v4171_v22, %v4170_v13  ;;  %v3873_v22 = vrot.slane %v7779_v29, 1 }
 0x284   : > { %4330 = vmatmul.bf16.gmra.mxu0 %v4169_v44  ;;  %v8333_v44 = vld [vmem:[#allocation65_spill] sm:$0xff]  ;;  %v3498_v29 = vor.u32 %v3496_v1, %v3494_v6 }
 0x285   : > { %v7781_v39 = vadd.f32 %v2809_v45, %v2607_v18  ;;  %v4173_v2 = vsel %vm4149_vm5, %v4168_v51, %v4172_v30  ;;  %v8334_v18 = vld [vmem:[#allocation60_spill] sm:$0xff] }
 0x286   : > { %v1978_v10 = vpop.f32.mrf.mxu2  ;;  %v1678_v36 = vpop.f32.mrf.mxu1 }
 0x287   : > { %8330 = vst [vmem:[#allocation47_spill] sm:$0xff] %v7781_v39  ;;  %v1679_v60 = vadd.f32 %v1678_v36, %v8331_v32  ;;  %v8343_v39 = vld [vmem:[#allocation64_spill] sm:$0xff] }
 0x288   : > { %v2550_v50 = vpop.f32.mrf.mxu3 }
 0x289   : > { %v2811_v25 = vpop.f32.mrf.mxu0  ;;  %v2033_v38 = vadd.f32 %v1975_v26, %v1679_v60  ;;  %v3495_v26 = vsel %vm2900_vm3, %v3490_v23, %v3494_v6  ;;  %v6114_v23 = vld [vmem:[#allocation2 + $0x2c] sm:$0xff]  }
 0x28b   : > { %v2608_v17 = vadd.f32 %v2550_v50, %v2033_v38  ;;  %v8336_v50 = vld [vmem:[#allocation67_spill] sm:$0xff] }
 0x28d   : > { %3997 = vmatmul.bf16.gmra.mxu3 %v3872_v4  ;;  %v7788_v45 = vadd.f32 %v2811_v25, %v2608_v17  ;;  %v7794_v25 = vld [vmem:[#allocation2 + $0x44] sm:$0xff]  ;;  %v4175_v17 = vrot.slane %v3492_v41, 2 }
 0x28e   : > { %v1980_v48 = vpop.f32.mrf.mxu2  ;;  %v1681_v28 = vpop.f32.mrf.mxu1  ;;  %v3500_v51 = vshll.u32 %v7794_v25, 16  ;;  %v3504_v6 = vshrl.u32 %v7794_v25, 16 }
 0x28f   : > { %8332 = vst [vmem:[#allocation43_spill] sm:$0xff] %v7788_v45  ;;  %v1682_v21 = vadd.f32 %v1681_v28, %v8333_v44  ;;  %v2937_v28 = vshrl.u32 %v6114_v23, 16  ;;  %v6115_v44 = vld [vmem:[#allocation2 + $0x34] sm:$0xff]  }
 0x290   : > { %v2553_v53 = vpop.f32.mrf.mxu3 }
 0x291   : > { %v2814_v42 = vpop.f32.mrf.mxu0  ;;  %v2034_v63 = vadd.f32 %v1978_v10, %v1682_v21  ;;  %3160 = vmatmul.bf16.gmra.mxu1 %v8334_v18  ;;  %v4174_v10 = vrot.slane %v3496_v1, 1  ;;  %v2941_v21 = vshll.u32 %v6115_v44, 16 }
 0x293   : > { %3716 = vmatmul.bf16.gmra.mxu2 %v3495_v26  ;;  %v2609_v57 = vadd.f32 %v2553_v53, %v2034_v63  ;;  %v8337_v63 = vld [vmem:[#allocation59_spill] sm:$0xff]  ;;  %v2943_v41 = vrot.slane %v2941_v21, 1 }
 0x294   : > { %4335 = vmatmul.bf16.gmra.mxu0 %v4173_v2  ;;  %v3502_v2 = vrot.slane %v3500_v51, 1  ;;  %v2939_v18 = vor.u32 %v2937_v28, %v8337_v63 }
 0x295   : > { %v7797_v49 = vadd.f32 %v2814_v42, %v2609_v57  ;;  %v3874_v42 = vsel %vm3863_vm4, %v3871_v19, %v3873_v22  ;;  %v4176_v57 = vor.u32 %v4175_v17, %v4174_v10  ;;  %v7810_v17 = vld [vmem:[#allocation2 + $0x4c] sm:$0xff] }
 0x296   : > { %v1983_v36 = vpop.f32.mrf.mxu2  ;;  %v1683_v32 = vpop.f32.mrf.mxu1  ;;  %v3503_v45 = vsel %vm2900_vm3, %v3498_v29, %v3502_v2  ;;  %v4178_v29 = vrot.slane %v3504_v6, 1 }
 0x297   : > { %8335 = vst [vmem:[#allocation51_spill] sm:$0xff] %v7797_v49  ;;  %v1684_v38 = vadd.f32 %v1683_v32, %v8336_v50  ;;  %v4177_v19 = vsel %vm4149_vm5, %v4172_v30, %v4176_v57  ;;  %v3508_v30 = vshll.u32 %v7810_v17, 16 }
 0x298   : > { %v2555_v13 = vpop.f32.mrf.mxu3 }
 0x299   : > { %v2816_v60 = vpop.f32.mrf.mxu0  ;;  %v2035_v4 = vadd.f32 %v1980_v48, %v1684_v38  ;;  %v8339_v48 = vld [vmem:[#allocation30_spill] sm:$0xff] }
 0x29b   : > { %v2610_v53 = vadd.f32 %v2555_v13, %v2035_v4  ;;  %v2944_v13 = vsel %vm2900_vm3, %v2939_v18, %v2943_v41 }
 0x29d   : > { %4002 = vmatmul.bf16.gmra.mxu3 %v3874_v42  ;;  %v7804_v32 = vadd.f32 %v2816_v60, %v2610_v53  ;;  %v8341_v53 = vld [vmem:[#allocation69_spill] sm:$0xff] }
 0x29e   : > { %v1985_v26 = vpop.f32.mrf.mxu2  ;;  %v1686_v50 = vpop.f32.mrf.mxu1 }
 0x29f   : > { %8338 = vst [vmem:[#allocation49_spill] sm:$0xff] %v7804_v32  ;;  %v1687_v38 = vadd.f32 %v1686_v50, %v8339_v48  ;;  %v4179_v50 = vrot.slane %v3500_v51, 2 }
 0x2a0   : > { %v2558_v23 = vpop.f32.mrf.mxu3 }
 0x2a1   : > { %v2819_v49 = vpop.f32.mrf.mxu0  ;;  %v2036_v4 = vadd.f32 %v1983_v36, %v1687_v38  ;;  %3165 = vmatmul.bf16.gmra.mxu1 %v2944_v13  ;;  %v6116_v36 = vld [vmem:[#allocation2 + $0x3c] sm:$0xff]  }
 0x2a2   : > { %v2949_v18 = vshll.u32 %v6116_v36, 16 }
 0x2a3   : > { %3721 = vmatmul.bf16.gmra.mxu2 %v3503_v45  ;;  %v2611_v10 = vadd.f32 %v2558_v23, %v2036_v4  ;;  %v3875_v45 = vrot.slane %v7794_v25, 1 }
 0x2a4   : > { %4340 = vmatmul.bf16.gmra.mxu0 %v4177_v19  ;;  %v2945_v19 = vshrl.u32 %v6115_v44, 16  ;;  %v2951_v4 = vrot.slane %v2949_v18, 1  ;;  %v8345_v18 = vld [vmem:[#allocation66_spill] sm:$0xff] }
 0x2a5   : > { %v7813_v1 = vadd.f32 %v2819_v49, %v2611_v10  ;;  %v3876_v23 = vsel %vm3863_vm4, %v3873_v22, %v3875_v45  ;;  %v3510_v49 = vrot.slane %v3508_v30, 1  ;;  %v4180_v10 = vor.u32 %v4179_v50, %v4178_v29 }
 0x2a6   : > { %v1988_v60 = vpop.f32.mrf.mxu2  ;;  %v1688_v28 = vpop.f32.mrf.mxu1  ;;  %v2947_v32 = vor.u32 %v2945_v19, %v2943_v41 }
 0x2a7   : > { %8340 = vst [vmem:[#allocation52_spill] sm:$0xff] %v7813_v1  ;;  %v1689_v42 = vadd.f32 %v1688_v28, %v8341_v53  ;;  %v3506_v53 = vor.u32 %v3504_v6, %v3502_v2  ;;  %v4181_v22 = vsel %vm4149_vm5, %v4176_v57, %v4180_v10  ;;  %v3512_v2 = vshrl.u32 %v7810_v17, 16 }
 0x2a8   : > { %v2560_v63 = vpop.f32.mrf.mxu3 }
 0x2a9   : > { %v2821_v21 = vpop.f32.mrf.mxu0  ;;  %v2037_v48 = vadd.f32 %v1985_v26, %v1689_v42  ;;  %v3511_v51 = vsel %vm2900_vm3, %v3506_v53, %v3510_v49  ;;  %v2952_v26 = vsel %vm2900_vm3, %v2947_v32, %v2951_v4  ;;  %v3877_v32 = vrot.slane %v7810_v17, 1 }
 0x2ab   : > { %v2612_v38 = vadd.f32 %v2560_v63, %v2037_v48  ;;  %v7825_v63 = vld [vmem:[#allocation2 + $0x54] sm:$0xff]  ;;  %v4182_v48 = vrot.slane %v3512_v2, 1  ;;  %v3878_v19 = vsel %vm3863_vm4, %v3875_v45, %v3877_v32 }
 0x2ac   : > { %v3516_v57 = vshll.u32 %v7825_v63, 16 }
 0x2ad   : > { %4007 = vmatmul.bf16.gmra.mxu3 %v3876_v23  ;;  %v7819_v28 = vadd.f32 %v2821_v21, %v2612_v38 }
 0x2ae   : > { %v1990_v13 = vpop.f32.mrf.mxu2  ;;  %v1691_v25 = vpop.f32.mrf.mxu1 }
 0x2af   : > { %8342 = vst [vmem:[#allocation53_spill] sm:$0xff] %v7819_v28  ;;  %v1692_v55 = vadd.f32 %v1691_v25, %v8343_v39  ;;  %v2953_v25 = vshrl.u32 %v6116_v36, 16 }
 0x2b0   : > { %v2563_v62 = vpop.f32.mrf.mxu3 }
 0x2b1   : > { %v2824_v1 = vpop.f32.mrf.mxu0  ;;  %v2038_v42 = vadd.f32 %v1988_v60, %v1692_v55  ;;  %3170 = vmatmul.bf16.gmra.mxu1 %v2952_v26  ;;  %v6117_v55 = vld [vmem:[#allocation2 + $0x44] sm:$0xff]  }
 0x2b2   : > { %v2957_v60 = vshll.u32 %v6117_v55, 16 }
 0x2b3   : > { %3726 = vmatmul.bf16.gmra.mxu2 %v3511_v51  ;;  %v2613_v44 = vadd.f32 %v2563_v62, %v2038_v42  ;;  %v4183_v62 = vrot.slane %v3508_v30, 2  ;;  %v3514_v42 = vor.u32 %v3512_v2, %v3510_v49  ;;  %v3520_v49 = vshrl.u32 %v7825_v63, 16 }
 0x2b4   : > { %4345 = vmatmul.bf16.gmra.mxu0 %v4181_v22  ;;  %v2959_v51 = vrot.slane %v2957_v60, 1 }
 0x2b5   : > { %v7828_v41 = vadd.f32 %v2824_v1, %v2613_v44  ;;  %v3518_v1 = vrot.slane %v3516_v57, 1  ;;  %v4184_v26 = vor.u32 %v4183_v62, %v4182_v48  ;;  %v8347_v48 = vld [vmem:[#allocation26_spill] sm:$0xff] }
 0x2b6   : > { %v1993_v21 = vpop.f32.mrf.mxu2  ;;  %v1693_v39 = vpop.f32.mrf.mxu1 }
 0x2b7   : > { %8344 = vst [vmem:[#allocation54_spill] sm:$0xff] %v7828_v41  ;;  %v1694_v29 = vadd.f32 %v1693_v39, %v8345_v18  ;;  %v2955_v39 = vor.u32 %v2953_v25, %v2951_v4  ;;  %v8346_v18 = vld [vmem:[#allocation68_spill] sm:$0xff]  ;;  %v3519_v30 = vsel %vm2900_vm3, %v3514_v42, %v3518_v1  ;;  %v4185_v45 = vsel %vm4149_vm5, %v4180_v10, %v4184_v26  ;;  %v7843_v4 = vld [vmem:[#allocation2 + $0x5c] sm:$0xff] }
 0x2b8   : > { %v2565_v50 = vpop.f32.mrf.mxu3 }
 0x2b9   : > { %v2826_v6 = vpop.f32.mrf.mxu0  ;;  %v2039_v38 = vadd.f32 %v1990_v13, %v1694_v29  ;;  %v2960_v13 = vsel %vm2900_vm3, %v2955_v39, %v2959_v51  ;;  %v3522_v39 = vor.u32 %v3520_v49, %v3518_v1 }
 0x2bb   : > { %v2614_v23 = vadd.f32 %v2565_v50, %v2039_v38 }
 0x2bd   : > { %4012 = vmatmul.bf16.gmra.mxu3 %v3878_v19  ;;  %v7834_v22 = vadd.f32 %v2826_v6, %v2614_v23  ;;  %v3879_v23 = vrot.slane %v7825_v63, 1  ;;  %v6118_v19 = vld [vmem:[#allocation2 + $0x4c] sm:$0xff]  }
 0x2be   : > { %v1995_v53 = vpop.f32.mrf.mxu2  ;;  %v1696_v17 = vpop.f32.mrf.mxu1  ;;  %v2965_v10 = vshll.u32 %v6118_v19, 16 }
 0x2bf   : > { %v1697_v41 = vadd.f32 %v1696_v17, %v8346_v18  ;;  %v3880_v17 = vsel %vm3863_vm4, %v3877_v32, %v3879_v23  ;;  %v2961_v18 = vshrl.u32 %v6117_v55, 16 }
 0x2c0   : > { %v2568_v28 = vpop.f32.mrf.mxu3 }
 0x2c1   : > { %v2829_v44 = vpop.f32.mrf.mxu0  ;;  %v2040_v29 = vadd.f32 %v1993_v21, %v1697_v41  ;;  %3175 = vmatmul.bf16.gmra.mxu1 %v2960_v13  ;;  %v4186_v21 = vrot.slane %v3520_v49, 1  ;;  %v4187_v41 = vrot.slane %v3516_v57, 2 }
 0x2c3   : > { %3731 = vmatmul.bf16.gmra.mxu2 %v3519_v30  ;;  %v2615_v36 = vadd.f32 %v2568_v28, %v2040_v29  ;;  %v3524_v28 = vshll.u32 %v7843_v4, 16  ;;  %v2967_v30 = vrot.slane %v2965_v10, 1  ;;  %v4188_v13 = vor.u32 %v4187_v41, %v4186_v21 }
 0x2c4   : > { %4350 = vmatmul.bf16.gmra.mxu0 %v4185_v45 }
 0x2c5   : > { %v7841_v2 = vadd.f32 %v2829_v44, %v2615_v36  ;;  %v3526_v29 = vrot.slane %v3524_v28, 1  ;;  %v4189_v32 = vsel %vm4149_vm5, %v4184_v26, %v4188_v13  ;;  %v4191_v26 = vrot.slane %v3524_v28, 2 }
 0x2c6   : > { %v1998_v6 = vpop.f32.mrf.mxu2  ;;  %v1698_v50 = vpop.f32.mrf.mxu1 }
 0x2c7   : > { %v1699_v62 = vadd.f32 %v1698_v50, %v8347_v48  ;;  %v2963_v50 = vor.u32 %v2961_v18, %v2959_v51  ;;  %v8349_v48 = vld [vmem:[#allocation70_spill] sm:$0xff]  ;;  %v7858_v51 = vld [vmem:[#allocation2 + $0x64] sm:$0xff] }
 0x2c8   : > { %v2570_v38 = vpop.f32.mrf.mxu3 }
 0x2c9   : > { %v2831_v60 = vpop.f32.mrf.mxu0  ;;  %v2041_v25 = vadd.f32 %v1995_v53, %v1699_v62  ;;  %v3527_v62 = vsel %vm2900_vm3, %v3522_v39, %v3526_v29 }
 0x2cb   : > { %v2616_v42 = vadd.f32 %v2570_v38, %v2041_v25  ;;  %v2968_v38 = vsel %vm2900_vm3, %v2963_v50, %v2967_v30 }
 0x2cd   : > { %4017 = vmatmul.bf16.gmra.mxu3 %v3880_v17  ;;  %v7849_v45 = vadd.f32 %v2831_v60, %v2616_v42  ;;  %v3528_v60 = vshrl.u32 %v7843_v4, 16  ;;  %v3881_v42 = vrot.slane %v7843_v4, 1  ;;  %v6119_v17 = vld [vmem:[#allocation2 + $0x54] sm:$0xff]  }
 0x2ce   : > { %v2000_v44 = vpop.f32.mrf.mxu2  ;;  %v1701_v63 = vpop.f32.mrf.mxu1 }
 0x2cf   : > { %8348 = vst [vmem:[#allocation57_spill] sm:$0xff] %v7849_v45  ;;  %v1702_v57 = vadd.f32 %v1701_v63, %v8349_v48  ;;  %v2973_v44 = vshll.u32 %v6119_v17, 16  ;;  %v4190_v39 = vrot.slane %v3528_v60, 1  ;;  %v3882_v18 = vsel %vm3863_vm4, %v3879_v23, %v3881_v42 }
 0x2d0   : > { %v2573_v53 = vpop.f32.mrf.mxu3  ;;  %v3530_v50 = vor.u32 %v3528_v60, %v3526_v29  ;;  %v7867_v29 = vld [vmem:[#allocation2 + $0x6c] sm:$0xff] }
 0x2d1   : > { %v2834_v36 = vpop.f32.mrf.mxu0  ;;  %v2042_v1 = vadd.f32 %v1998_v6, %v1702_v57  ;;  %3180 = vmatmul.bf16.gmra.mxu1 %v2968_v38  ;;  %v3532_v6 = vshll.u32 %v7858_v51, 16  ;;  %v2975_v48 = vrot.slane %v2973_v44, 1  ;;  %v4192_v57 = vor.u32 %v4191_v26, %v4190_v39 }
 0x2d2   : > { %v3540_v39 = vshll.u32 %v7867_v29, 16 }
 0x2d3   : > { %3736 = vmatmul.bf16.gmra.mxu2 %v3527_v62  ;;  %v2617_v55 = vadd.f32 %v2573_v53, %v2042_v1  ;;  %v3534_v53 = vrot.slane %v3532_v6, 1  ;;  %v4193_v23 = vsel %vm4149_vm5, %v4188_v13, %v4192_v57  ;;  %v3883_v13 = vrot.slane %v7858_v51, 1 }
 0x2d4   : > { %4355 = vmatmul.bf16.gmra.mxu0 %v4189_v32 }
 0x2d5   : > { %v7856_v10 = vadd.f32 %v2834_v36, %v2617_v55  ;;  %v2969_v36 = vshrl.u32 %v6118_v19, 16  ;;  %v3535_v55 = vsel %vm2900_vm3, %v3530_v50, %v3534_v53  ;;  %v6120_v50 = vld [vmem:[#allocation2 + $0x5c] sm:$0xff]  }
 0x2d6   : > { %v3697_v49 = vpop.f32.mrf.mxu2  ;;  %v1703_v21 = vpop.f32.mrf.mxu1 }
 0x2d7   : > { %8350 = vst [vmem:[#allocation58_spill] sm:$0xff] %v7856_v10  ;;  %v2971_v32 = vor.u32 %v2969_v36, %v2967_v30  ;;  %v3536_v30 = vshrl.u32 %v7858_v51, 16  ;;  %v2981_v36 = vshll.u32 %v6120_v50, 16 }
 0x2d8   : > { %v2575_v25 = vpop.f32.mrf.mxu3 }
 0x2d9   : > { %v2836_v41 = vpop.f32.mrf.mxu0  ;;  %v2976_v28 = vsel %vm2900_vm3, %v2971_v32, %v2975_v48  ;;  %v4195_v32 = vrot.slane %v3532_v6, 2  ;;  %v2983_v6 = vrot.slane %v2981_v36, 1 }
 0x2dd   : > { %4022 = vmatmul.bf16.gmra.mxu3 %v3882_v18 }
 0x2de   : > { %v3699_v63 = vpop.f32.mrf.mxu2  ;;  %v3146_v62 = vpop.f32.mrf.mxu1 }
 0x2df   : > { %v3250_v4 = vadd.f32 %v3146_v62, %v7560_v20  ;;  %v4194_v62 = vrot.slane %v3536_v30, 1 }
 0x2e0   : > { %v3983_v1 = vpop.f32.mrf.mxu3 }
 0x2e1   : > { %v4321_v38 = vpop.f32.mrf.mxu0  ;;  %v3801_v21 = vadd.f32 %v3697_v49, %v3250_v4  ;;  %3185 = vmatmul.bf16.gmra.mxu1 %v2976_v28  ;;  %v2977_v49 = vshrl.u32 %v6119_v17, 16  ;;  %v3542_v28 = vrot.slane %v3540_v39, 1 }
 0x2e3   : > { %3741 = vmatmul.bf16.gmra.mxu2 %v3535_v55  ;;  %v4087_v60 = vadd.f32 %v3983_v1, %v3801_v21  ;;  %v3884_v1 = vsel %vm3863_vm4, %v3881_v42, %v3883_v13  ;;  %v2979_v21 = vor.u32 %v2977_v49, %v2975_v48  ;;  %v8352_v42 = vld [vmem:[#allocation17_spill] sm:$0xff] }
 0x2e4   : > { %4360 = vmatmul.bf16.gmra.mxu0 %v4193_v23  ;;  %v8351_v23 = vld [vmem:[#allocation5_spill] sm:$0xff] }
 0x2e5   : > { %v4425_v26 = vadd.f32 %v4321_v38, %v4087_v60  ;;  %v3538_v38 = vor.u32 %v3536_v30, %v3534_v53 }
 0x2e6   : > { %v3702_v19 = vpop.f32.mrf.mxu2  ;;  %v3148_v41 = vpop.f32.mrf.mxu1 }
 0x2e7   : > { %v3251_v20 = vadd.f32 %v3148_v41, %v7567_v14  ;;  %v4466_v14 = vmul.f32 %v4425_v26, %v8351_v23  ;;  %v3543_v48 = vsel %vm2900_vm3, %v3538_v38, %v3542_v28  ;;  %v7888_v23 = vld [vmem:[#allocation2 + $0x74] sm:$0xff] }
 0x2e8   : > { %v3985_v44 = vpop.f32.mrf.mxu3 }
 0x2e9   : > { %v4323_v25 = vpop.f32.mrf.mxu0  ;;  %v3802_v18 = vadd.f32 %v3699_v63, %v3251_v20  ;;  %v4196_v63 = vor.u32 %v4195_v32, %v4194_v62  ;;  %v4556_v53 = vmul.f32 %v4466_v14, %v4425_v26 }
 0x2eb   : > { %v4088_v4 = vadd.f32 %v3985_v44, %v3802_v18  ;;  %v4197_v30 = vsel %vm4149_vm5, %v4192_v57, %v4196_v63 }
 0x2ed   : > { %4027 = vmatmul.bf16.gmra.mxu3 %v3884_v1  ;;  %v4426_v41 = vadd.f32 %v4323_v25, %v4088_v4  ;;  %v2984_v25 = vsel %vm2900_vm3, %v2979_v21, %v2983_v6  ;;  %v8353_v21 = vld [vmem:[#allocation11_spill] sm:$0xff] }
 0x2ee   : > { %v3704_v55 = vpop.f32.mrf.mxu2  ;;  %v3151_v51 = vpop.f32.mrf.mxu1 }
 0x2ef   : > { %v4467_v60 = vmul.f32 %v4426_v41, %v8352_v42  ;;  %v5773_v20 = vpack.c.bf16 %v4426_v41, %v4425_v26  ;;  %v3252_v44 = vadd.f32 %v3151_v51, %v7578_v31  ;;  %v3544_v31 = vshrl.u32 %v7867_v29, 16 }
 0x2f0   : > { %v3988_v18 = vpop.f32.mrf.mxu3 }
 0x2f1   : > { %v4326_v17 = vpop.f32.mrf.mxu0  ;;  %v4507_v49 = vadd.f32 %v4467_v60, %v4466_v14  ;;  %v4557_v4 = vmul.f32 %v4467_v60, %v4426_v41  ;;  %5774 = vst [vmem:[%s7880_s23] sm:$0xff] %v5773_v20   ;;  %v3803_v1 = vadd.f32 %v3702_v19, %v3252_v44  ;;  %3190 = vmatmul.bf16.gmra.mxu1 %v2984_v25  ;;  %v3885_v41 = vrot.slane %v7867_v29, 1  ;;  %v7895_v25 = vld [vmem:[#allocation2 + $0x64] sm:$0xff]  }
 0x2f2   : > { %v3548_v19 = vshll.u32 %v7888_v23, 16  ;;  %v4198_v60 = vrot.slane %v3544_v31, 1  ;;  %v4199_v20 = vrot.slane %v3540_v39, 2  ;;  %v3546_v39 = vor.u32 %v3544_v31, %v3542_v28 }
 0x2f3   : > { %3746 = vmatmul.bf16.gmra.mxu2 %v3543_v48  ;;  %v4597_v36 = vadd.f32 %v4557_v4, %v4556_v53  ;;  %v4089_v62 = vadd.f32 %v3988_v18, %v3803_v1  ;;  %v2985_v53 = vshrl.u32 %v6120_v50, 16  ;;  %v3886_v1 = vsel %vm3863_vm4, %v3883_v13, %v3885_v41  ;;  %v8354_v50 = vld [vmem:[#allocation23_spill] sm:$0xff] }
 0x2f4   : > { %4365 = vmatmul.bf16.gmra.mxu0 %v4197_v30 }
 0x2f5   : > { %v4427_v38 = vadd.f32 %v4326_v17, %v4089_v62  ;;  %v2989_v17 = vshll.u32 %v7895_v25, 16  ;;  %v3550_v62 = vrot.slane %v3548_v19, 1  ;;  %v2987_v29 = vor.u32 %v2985_v53, %v2983_v6 }
 0x2f6   : > { %v3707_v32 = vpop.f32.mrf.mxu2  ;;  %v3153_v26 = vpop.f32.mrf.mxu1 }
 0x2f7   : > { %v4468_v42 = vmul.f32 %v4427_v38, %v8353_v21  ;;  %v3253_v57 = vadd.f32 %v3153_v26, %v7585_v58  ;;  %v4200_v26 = vor.u32 %v4199_v20, %v4198_v60 }
 0x2f8   : > { %v3990_v14 = vpop.f32.mrf.mxu3 }
 0x2f9   : > { %v4328_v51 = vpop.f32.mrf.mxu0  ;;  %v4508_v44 = vadd.f32 %v4507_v49, %v4468_v42  ;;  %v4558_v18 = vmul.f32 %v4468_v42, %v4427_v38  ;;  %v3804_v48 = vadd.f32 %v3704_v55, %v3253_v57  ;;  %v2991_v55 = vrot.slane %v2989_v17, 1 }
 0x2fa   : > { %v4201_v6 = vsel %vm4149_vm5, %v4196_v63, %v4200_v26 }
 0x2fb   : > { %v4598_v30 = vadd.f32 %v4597_v36, %v4558_v18  ;;  %v4090_v4 = vadd.f32 %v3990_v14, %v3804_v48  ;;  %v3551_v14 = vsel %vm2900_vm3, %v3546_v39, %v3550_v62  ;;  %v2992_v13 = vsel %vm2900_vm3, %v2987_v29, %v2991_v55 }
 0x2fd   : > { %4032 = vmatmul.bf16.gmra.mxu3 %v3886_v1  ;;  %v4428_v21 = vadd.f32 %v4328_v51, %v4090_v4  ;;  %v8355_v4 = vld [vmem:[#allocation18_spill] sm:$0xff] }
 0x2fe   : > { %v3709_v58 = vpop.f32.mrf.mxu2  ;;  %v3156_v49 = vpop.f32.mrf.mxu1 }
 0x2ff   : > { %v4469_v57 = vmul.f32 %v4428_v21, %v8354_v50  ;;  %v5778_v10 = vpack.c.bf16 %v4428_v21, %v4427_v38  ;;  %v3254_v45 = vadd.f32 %v3156_v49, %v7590_v47  ;;  %v7905_v38 = vld [vmem:[#allocation2 + $0x7c] sm:$0xff]  ;;  %v3552_v47 = vshrl.u32 %v7888_v23, 16 }
 0x300   : > { %v3993_v36 = vpop.f32.mrf.mxu3 }
 0x301   : > { %v4331_v42 = vpop.f32.mrf.mxu0  ;;  %v4509_v60 = vadd.f32 %v4508_v44, %v4469_v57  ;;  %v4559_v20 = vmul.f32 %v4469_v57, %v4428_v21  ;;  %6017 = vst [vmem:[%s7880_s23 + $0x8] sm:$0xff] %v5778_v10   ;;  %v3805_v28 = vadd.f32 %v3707_v32, %v3254_v45  ;;  %3195 = vmatmul.bf16.gmra.mxu1 %v2992_v13  ;;  %v3887_v10 = vrot.slane %v7888_v23, 1  ;;  %v7912_v32 = vld [vmem:[#allocation2 + $0x6c] sm:$0xff]  }
 0x302   : > { %v3556_v45 = vshll.u32 %v7905_v38, 16  ;;  %v4202_v29 = vrot.slane %v3552_v47, 1  ;;  %v4203_v21 = vrot.slane %v3548_v19, 2  ;;  %v2993_v23 = vshrl.u32 %v7895_v25, 16 }
 0x303   : > { %3751 = vmatmul.bf16.gmra.mxu2 %v3551_v14  ;;  %v4599_v31 = vadd.f32 %v4598_v30, %v4559_v20  ;;  %v4091_v51 = vadd.f32 %v3993_v36, %v3805_v28  ;;  %v2997_v30 = vshll.u32 %v7912_v32, 16  ;;  %v3888_v36 = vsel %vm3863_vm4, %v3885_v41, %v3887_v10 }
 0x304   : > { %4370 = vmatmul.bf16.gmra.mxu0 %v4201_v6  ;;  %v4204_v6 = vor.u32 %v4203_v21, %v4202_v29  ;;  %v3554_v28 = vor.u32 %v3552_v47, %v3550_v62  ;;  %v2995_v19 = vor.u32 %v2993_v23, %v2991_v55  ;;  %v7930_v23 = vld [vmem:[#allocation2 + $0x74] sm:$0xff]  }
 0x305   : > { %v4429_v48 = vadd.f32 %v4331_v42, %v4091_v51  ;;  %v2999_v13 = vrot.slane %v2997_v30, 1 }
 0x306   : > { %v3712_v18 = vpop.f32.mrf.mxu2  ;;  %v3158_v53 = vpop.f32.mrf.mxu1  ;;  %v4205_v25 = vsel %vm4149_vm5, %v4200_v26, %v4204_v6 }
 0x307   : > { %v4470_v1 = vmul.f32 %v4429_v48, %v8355_v4  ;;  %v3255_v63 = vadd.f32 %v3158_v53, %v7594_v12  ;;  %v3558_v12 = vrot.slane %v3556_v45, 1 }
 0x308   : > { %v3995_v44 = vpop.f32.mrf.mxu3 }
 0x309   : > { %v4333_v17 = vpop.f32.mrf.mxu0  ;;  %v4510_v39 = vadd.f32 %v4509_v60, %v4470_v1  ;;  %v4560_v49 = vmul.f32 %v4470_v1, %v4429_v48  ;;  %v3806_v42 = vadd.f32 %v3709_v58, %v3255_v63  ;;  %v8356_v60 = vld [vmem:[#allocation29_spill] sm:$0xff]  ;;  %v3559_v41 = vsel %vm2900_vm3, %v3554_v28, %v3558_v12 }
 0x30a   : > { %v3000_v63 = vsel %vm2900_vm3, %v2995_v19, %v2999_v13  ;;  %v4207_v28 = vrot.slane %v3556_v45, 2 }
 0x30b   : > { %v4600_v50 = vadd.f32 %v4599_v31, %v4560_v49  ;;  %v4092_v57 = vadd.f32 %v3995_v44, %v3806_v42  ;;  %v8357_v42 = vld [vmem:[#allocation38_spill] sm:$0xff] }
 0x30d   : > { %4037 = vmatmul.bf16.gmra.mxu3 %v3888_v36  ;;  %v4430_v20 = vadd.f32 %v4333_v17, %v4092_v57  ;;  %v3889_v36 = vrot.slane %v7905_v38, 1 }
 0x30e   : > { %v3714_v14 = vpop.f32.mrf.mxu2  ;;  %v3161_v51 = vpop.f32.mrf.mxu1 }
 0x30f   : > { %v4471_v4 = vmul.f32 %v4430_v20, %v8356_v60  ;;  %v5783_v58 = vpack.c.bf16 %v4430_v20, %v4429_v48  ;;  %v3256_v31 = vadd.f32 %v3161_v51, %v7599_v24  ;;  %v7923_v48 = vld [vmem:[#allocation2 + $0x84] sm:$0xff]  ;;  %v3560_v24 = vshrl.u32 %v7905_v38, 16 }
 0x310   : > { %v3998_v1 = vpop.f32.mrf.mxu3  ;;  %v3001_v38 = vshrl.u32 %v7912_v32, 16 }
 0x311   : > { %v4336_v53 = vpop.f32.mrf.mxu0  ;;  %v4511_v44 = vadd.f32 %v4510_v39, %v4471_v4  ;;  %v4561_v30 = vmul.f32 %v4471_v4, %v4430_v20  ;;  %6018 = vst [vmem:[%s7880_s23 + $0x10] sm:$0xff] %v5783_v58   ;;  %v3807_v62 = vadd.f32 %v3712_v18, %v3256_v31  ;;  %3200 = vmatmul.bf16.gmra.mxu1 %v3000_v63  ;;  %v3564_v18 = vshll.u32 %v7923_v48, 16 }
 0x312   : > { %v4206_v20 = vrot.slane %v3560_v24, 1  ;;  %v3890_v58 = vsel %vm3863_vm4, %v3887_v10, %v3889_v36  ;;  %v3003_v45 = vor.u32 %v3001_v38, %v2999_v13 }
 0x313   : > { %3756 = vmatmul.bf16.gmra.mxu2 %v3559_v41  ;;  %v4601_v55 = vadd.f32 %v4600_v50, %v4561_v30  ;;  %v4093_v47 = vadd.f32 %v3998_v1, %v3807_v62  ;;  %v3005_v50 = vshll.u32 %v7930_v23, 16 }
 0x314   : > { %4375 = vmatmul.bf16.gmra.mxu0 %v4205_v25  ;;  %v4208_v41 = vor.u32 %v4207_v28, %v4206_v20  ;;  %v3562_v25 = vor.u32 %v3560_v24, %v3558_v12  ;;  %v8359_v28 = vld [vmem:[#allocation44_spill] sm:$0xff] }
 0x315   : > { %v4431_v29 = vadd.f32 %v4336_v53, %v4093_v47  ;;  %v3007_v1 = vrot.slane %v3005_v50, 1 }
 0x316   : > { %v3717_v17 = vpop.f32.mrf.mxu2  ;;  %v3163_v21 = vpop.f32.mrf.mxu1  ;;  %v4209_v32 = vsel %vm4149_vm5, %v4204_v6, %v4208_v41 }
 0x317   : > { %v4472_v57 = vmul.f32 %v4431_v29, %v8357_v42  ;;  %v3257_v26 = vadd.f32 %v3163_v21, %v7612_v43  ;;  %v3566_v43 = vrot.slane %v3564_v18, 1  ;;  %v3008_v42 = vsel %vm2900_vm3, %v3003_v45, %v3007_v1 }
 0x318   : > { %v4000_v39 = vpop.f32.mrf.mxu3 }
 0x319   : > { %v4338_v49 = vpop.f32.mrf.mxu0  ;;  %v4512_v51 = vadd.f32 %v4511_v44, %v4472_v57  ;;  %v4562_v19 = vmul.f32 %v4472_v57, %v4431_v29  ;;  %v3808_v53 = vadd.f32 %v3714_v14, %v3257_v26  ;;  %v8358_v44 = vld [vmem:[#allocation45_spill] sm:$0xff]  ;;  %v3567_v10 = vsel %vm2900_vm3, %v3562_v25, %v3566_v43 }
 0x31b   : > { %v4602_v60 = vadd.f32 %v4601_v55, %v4562_v19  ;;  %v4094_v4 = vadd.f32 %v4000_v39, %v3808_v53  ;;  %v7942_v39 = vld [vmem:[#allocation2 + $0x8c] sm:$0xff]  ;;  %v3891_v53 = vrot.slane %v7923_v48, 1 }
 0x31d   : > { %4042 = vmatmul.bf16.gmra.mxu3 %v3890_v58  ;;  %v4432_v63 = vadd.f32 %v4338_v49, %v4094_v4  ;;  %v4211_v58 = vrot.slane %v3564_v18, 2 }
 0x31e   : > { %v3719_v31 = vpop.f32.mrf.mxu2  ;;  %v3166_v30 = vpop.f32.mrf.mxu1 }
 0x31f   : > { %v4473_v47 = vmul.f32 %v4432_v63, %v8358_v44  ;;  %v5788_v14 = vpack.c.bf16 %v4432_v63, %v4431_v29  ;;  %v3258_v55 = vadd.f32 %v3166_v30, %v7620_v27  ;;  %v3568_v29 = vshrl.u32 %v7923_v48, 16 }
 0x320   : > { %v4003_v21 = vpop.f32.mrf.mxu3  ;;  %v3572_v30 = vshll.u32 %v7942_v39, 16  ;;  %v3892_v44 = vsel %vm3863_vm4, %v3889_v36, %v3891_v53  ;;  %v3009_v48 = vshrl.u32 %v7930_v23, 16 }
 0x321   : > { %v4341_v62 = vpop.f32.mrf.mxu0  ;;  %v4513_v57 = vadd.f32 %v4512_v51, %v4473_v47  ;;  %v4563_v26 = vmul.f32 %v4473_v47, %v4432_v63  ;;  %6019 = vst [vmem:[%s7880_s23 + $0x18] sm:$0xff] %v5788_v14   ;;  %v3809_v12 = vadd.f32 %v3717_v17, %v3258_v55  ;;  %3205 = vmatmul.bf16.gmra.mxu1 %v3008_v42  ;;  %v7947_v17 = vld [vmem:[#allocation2 + $0x7c] sm:$0xff]   ;;  %v4210_v4 = vrot.slane %v3568_v29, 1 }
 0x323   : > { %3761 = vmatmul.bf16.gmra.mxu2 %v3567_v10  ;;  %v4603_v13 = vadd.f32 %v4602_v60, %v4563_v26  ;;  %v4095_v24 = vadd.f32 %v4003_v21, %v3809_v12  ;;  %v3013_v60 = vshll.u32 %v7947_v17, 16  ;;  %v4212_v55 = vor.u32 %v4211_v58, %v4210_v4 }
 0x324   : > { %4380 = vmatmul.bf16.gmra.mxu0 %v4209_v32  ;;  %v3574_v10 = vrot.slane %v3572_v30, 1  ;;  %v3011_v32 = vor.u32 %v3009_v48, %v3007_v1 }
 0x325   : > { %v4433_v27 = vadd.f32 %v4341_v62, %v4095_v24  ;;  %v3015_v14 = vrot.slane %v3013_v60, 1  ;;  %v4213_v23 = vsel %vm4149_vm5, %v4208_v41, %v4212_v55  ;;  %v8361_v60 = vld [vmem:[#allocation4_spill] sm:$0xff] }
 0x326   : > { %v3722_v49 = vpop.f32.mrf.mxu2  ;;  %v3168_v50 = vpop.f32.mrf.mxu1 }
 0x327   : > { %v4474_v19 = vmul.f32 %v4433_v27, %v8359_v28  ;;  %v3259_v6 = vadd.f32 %v3168_v50, %v7624_v59  ;;  %v3570_v59 = vor.u32 %v3568_v29, %v3566_v43  ;;  %v3016_v43 = vsel %vm2900_vm3, %v3011_v32, %v3015_v14 }
 0x328   : > { %v4005_v51 = vpop.f32.mrf.mxu3 }
 0x329   : > { %v4343_v20 = vpop.f32.mrf.mxu0  ;;  %v4514_v38 = vadd.f32 %v4513_v57, %v4474_v19  ;;  %v4564_v63 = vmul.f32 %v4474_v19, %v4433_v27  ;;  %v3810_v25 = vadd.f32 %v3719_v31, %v3259_v6  ;;  %v8360_v31 = vld [vmem:[#allocation3_spill] sm:$0xff]  ;;  %v3575_v36 = vsel %vm2900_vm3, %v3570_v59, %v3574_v10  ;;  %v7960_v19 = vld [vmem:[#allocation2 + $0x94] sm:$0xff] }
 0x32a   : > { %v3580_v48 = vshll.u32 %v7960_v19, 16 }
 0x32b   : > { %v4604_v62 = vadd.f32 %v4603_v13, %v4564_v63  ;;  %v4096_v45 = vadd.f32 %v4005_v51, %v3810_v25 }
 0x32d   : > { %4047 = vmatmul.bf16.gmra.mxu3 %v3892_v44  ;;  %v4434_v21 = vadd.f32 %v4343_v20, %v4096_v45 }
 0x32e   : > { %v3724_v47 = vpop.f32.mrf.mxu2  ;;  %v3171_v18 = vpop.f32.mrf.mxu1 }
 0x32f   : > { %v4475_v57 = vmul.f32 %v4434_v21, %v8360_v31  ;;  %v5793_v26 = vpack.c.bf16 %v4434_v21, %v4433_v27  ;;  %v3260_v12 = vadd.f32 %v3171_v18, %v7629_v37  ;;  %v3576_v27 = vshrl.u32 %v7942_v39, 16 }
 0x330   : > { %v4008_v13 = vpop.f32.mrf.mxu3 }
 0x331   : > { %v4346_v42 = vpop.f32.mrf.mxu0  ;;  %v4515_v24 = vadd.f32 %v4514_v38, %v4475_v57  ;;  %v4565_v29 = vmul.f32 %v4475_v57, %v4434_v21  ;;  %6020 = vst [vmem:[%s7880_s23 + $0x20] sm:$0xff] %v5793_v26   ;;  %v3811_v50 = vadd.f32 %v3722_v49, %v3260_v12  ;;  %3210 = vmatmul.bf16.gmra.mxu1 %v3016_v43  ;;  %v3893_v38 = vrot.slane %v7942_v39, 1  ;;  %v7965_v49 = vld [vmem:[#allocation2 + $0x84] sm:$0xff]  }
 0x332   : > { %v3021_v63 = vshll.u32 %v7965_v49, 16  ;;  %v4214_v25 = vrot.slane %v3576_v27, 1  ;;  %v3017_v39 = vshrl.u32 %v7947_v17, 16  ;;  %v3582_v12 = vrot.slane %v3580_v48, 1 }
 0x333   : > { %3766 = vmatmul.bf16.gmra.mxu2 %v3575_v36  ;;  %v4605_v1 = vadd.f32 %v4604_v62, %v4565_v29  ;;  %v4097_v20 = vadd.f32 %v4008_v13, %v3811_v50  ;;  %v4215_v62 = vrot.slane %v3572_v30, 2 }
 0x334   : > { %4385 = vmatmul.bf16.gmra.mxu0 %v4213_v23  ;;  %v3023_v31 = vrot.slane %v3021_v63, 1  ;;  %v3019_v36 = vor.u32 %v3017_v39, %v3015_v14 }
 0x335   : > { %v4435_v37 = vadd.f32 %v4346_v42, %v4097_v20  ;;  %v3894_v42 = vsel %vm3863_vm4, %v3891_v53, %v3893_v38  ;;  %v4216_v57 = vor.u32 %v4215_v62, %v4214_v25 }
 0x336   : > { %v3727_v28 = vpop.f32.mrf.mxu2  ;;  %v3173_v6 = vpop.f32.mrf.mxu1 }
 0x337   : > { %v4476_v4 = vmul.f32 %v4435_v37, %v8361_v60  ;;  %v3261_v41 = vadd.f32 %v3173_v6, %v7633_v40  ;;  %v3578_v40 = vor.u32 %v3576_v27, %v3574_v10  ;;  %v3024_v10 = vsel %vm2900_vm3, %v3019_v36, %v3023_v31 }
 0x338   : > { %v4010_v58 = vpop.f32.mrf.mxu3  ;;  %v4217_v17 = vsel %vm4149_vm5, %v4212_v55, %v4216_v57 }
 0x339   : > { %v4348_v51 = vpop.f32.mrf.mxu0  ;;  %v4516_v45 = vadd.f32 %v4515_v24, %v4476_v4  ;;  %v4566_v44 = vmul.f32 %v4476_v4, %v4435_v37  ;;  %v3812_v59 = vadd.f32 %v3724_v47, %v3261_v41  ;;  %v8362_v47 = vld [vmem:[#allocation13_spill] sm:$0xff]  ;;  %v3583_v53 = vsel %vm2900_vm3, %v3578_v40, %v3582_v12  ;;  %v8363_v41 = vld [vmem:[#allocation12_spill] sm:$0xff] }
 0x33a   : > { %v3584_v4 = vshrl.u32 %v7960_v19, 16  ;;  %v4219_v40 = vrot.slane %v3580_v48, 2 }
 0x33b   : > { %v4606_v21 = vadd.f32 %v4605_v1, %v4566_v44  ;;  %v4098_v18 = vadd.f32 %v4010_v58, %v3812_v59  ;;  %v3895_v44 = vrot.slane %v7960_v19, 1  ;;  %v3025_v59 = vshrl.u32 %v7965_v49, 16  ;;  %v8364_v49 = vld [vmem:[#allocation8_spill] sm:$0xff] }
 0x33d   : > { %4052 = vmatmul.bf16.gmra.mxu3 %v3894_v42  ;;  %v4436_v26 = vadd.f32 %v4348_v51, %v4098_v18  ;;  %v4218_v42 = vrot.slane %v3584_v4, 1  ;;  %v3027_v36 = vor.u32 %v3025_v59, %v3023_v31 }
 0x33e   : > { %v3729_v32 = vpop.f32.mrf.mxu2  ;;  %v3176_v30 = vpop.f32.mrf.mxu1 }
 0x33f   : > { %v4477_v43 = vmul.f32 %v4436_v26, %v8362_v47  ;;  %v5798_v23 = vpack.c.bf16 %v4436_v26, %v4435_v37  ;;  %v3262_v24 = vadd.f32 %v3176_v30, %v7647_v16  ;;  %v7977_v37 = vld [vmem:[#allocation2 + $0x9c] sm:$0xff]  ;;  %v3896_v30 = vsel %vm3863_vm4, %v3893_v38, %v3895_v44 }
 0x340   : > { %v4013_v29 = vpop.f32.mrf.mxu3  ;;  %v3588_v25 = vshll.u32 %v7977_v37, 16 }
 0x341   : > { %v4351_v13 = vpop.f32.mrf.mxu0  ;;  %v4517_v50 = vadd.f32 %v4516_v45, %v4477_v43  ;;  %v4567_v1 = vmul.f32 %v4477_v43, %v4436_v26  ;;  %6021 = vst [vmem:[%s7880_s23 + $0x28] sm:$0xff] %v5798_v23   ;;  %v3813_v20 = vadd.f32 %v3727_v28, %v3262_v24  ;;  %3215 = vmatmul.bf16.gmra.mxu1 %v3024_v10 }
 0x342   : > { %v3586_v43 = vor.u32 %v3584_v4, %v3582_v12  ;;  %v4220_v24 = vor.u32 %v4219_v40, %v4218_v42  ;;  %v7999_v40 = vld [vmem:[#allocation2 + $0x94] sm:$0xff]  }
 0x343   : > { %3771 = vmatmul.bf16.gmra.mxu2 %v3583_v53  ;;  %v4607_v14 = vadd.f32 %v4606_v21, %v4567_v1  ;;  %v4099_v27 = vadd.f32 %v4013_v29, %v3813_v20  ;;  %v6126_v21 = vld [vmem:[#allocation2 + $0x8c] sm:$0xff]  }
 0x344   : > { %4390 = vmatmul.bf16.gmra.mxu0 %v4217_v17  ;;  %v3029_v18 = vshll.u32 %v6126_v21, 16  ;;  %v4221_v31 = vsel %vm4149_vm5, %v4216_v57, %v4220_v24  ;;  %v3033_v42 = vshrl.u32 %v6126_v21, 16 }
 0x345   : > { %v4437_v16 = vadd.f32 %v4351_v13, %v4099_v27 }
 0x346   : > { %v3732_v6 = vpop.f32.mrf.mxu2  ;;  %v3178_v51 = vpop.f32.mrf.mxu1  ;;  %v3031_v19 = vrot.slane %v3029_v18, 1 }
 0x347   : > { %v4478_v58 = vmul.f32 %v4437_v16, %v8363_v41  ;;  %v3263_v55 = vadd.f32 %v3178_v51, %v7654_v46  ;;  %v3590_v46 = vrot.slane %v3588_v25, 1  ;;  %v8365_v41 = vld [vmem:[#allocation19_spill] sm:$0xff] }
 0x348   : > { %v4015_v63 = vpop.f32.mrf.mxu3  ;;  %v3032_v38 = vsel %vm2900_vm3, %v3027_v36, %v3031_v19 }
 0x349   : > { %v4353_v60 = vpop.f32.mrf.mxu0  ;;  %v4518_v28 = vadd.f32 %v4517_v50, %v4478_v58  ;;  %v4568_v62 = vmul.f32 %v4478_v58, %v4437_v16  ;;  %v3814_v45 = vadd.f32 %v3729_v32, %v3263_v55  ;;  %v3591_v17 = vsel %vm2900_vm3, %v3586_v43, %v3590_v46 }
 0x34b   : > { %v4608_v39 = vadd.f32 %v4607_v14, %v4568_v62  ;;  %v4100_v26 = vadd.f32 %v4015_v63, %v3814_v45  ;;  %v3897_v63 = vrot.slane %v7977_v37, 1  ;;  %v4223_v62 = vrot.slane %v3588_v25, 2 }
 0x34d   : > { %4057 = vmatmul.bf16.gmra.mxu3 %v3896_v30  ;;  %v4438_v47 = vadd.f32 %v4353_v60, %v4100_v26  ;;  %v3898_v36 = vsel %vm3863_vm4, %v3895_v44, %v3897_v63 }
 0x34e   : > { %v3734_v13 = vpop.f32.mrf.mxu2  ;;  %v3181_v32 = vpop.f32.mrf.mxu1 }
 0x34f   : > { %v4479_v29 = vmul.f32 %v4438_v47, %v8364_v49  ;;  %v5803_v53 = vpack.c.bf16 %v4438_v47, %v4437_v16  ;;  %v3264_v48 = vadd.f32 %v3181_v32, %v7659_v11  ;;  %v7992_v16 = vld [vmem:[#allocation2 + $0xa4] sm:$0xff]  ;;  %v3592_v11 = vshrl.u32 %v7977_v37, 16  ;;  %v8366_v49 = vld [vmem:[#allocation14_spill] sm:$0xff] }
 0x350   : > { %v4018_v10 = vpop.f32.mrf.mxu3  ;;  %v3035_v37 = vor.u32 %v3033_v42, %v3031_v19 }
 0x351   : > { %v4356_v23 = vpop.f32.mrf.mxu0  ;;  %v4519_v50 = vadd.f32 %v4518_v28, %v4479_v29  ;;  %v4569_v1 = vmul.f32 %v4479_v29, %v4438_v47  ;;  %6022 = vst [vmem:[%s7880_s23 + $0x30] sm:$0xff] %v5803_v53   ;;  %v3815_v12 = vadd.f32 %v3732_v6, %v3264_v48  ;;  %3220 = vmatmul.bf16.gmra.mxu1 %v3032_v38  ;;  %v3596_v6 = vshll.u32 %v7992_v16, 16 }
 0x352   : > { %v4222_v28 = vrot.slane %v3592_v11, 1  ;;  %v3594_v32 = vor.u32 %v3592_v11, %v3590_v46 }
 0x353   : > { %3776 = vmatmul.bf16.gmra.mxu2 %v3591_v17  ;;  %v4609_v20 = vadd.f32 %v4608_v39, %v4569_v1  ;;  %v4101_v14 = vadd.f32 %v4018_v10, %v3815_v12  ;;  %v3037_v39 = vshll.u32 %v7999_v40, 16  ;;  %v3598_v47 = vrot.slane %v3596_v6, 1 }
 0x354   : > { %4395 = vmatmul.bf16.gmra.mxu0 %v4221_v31  ;;  %v8003_v43 = vor.u32 %v4223_v62, %v4222_v28  ;;  %v4227_v28 = vrot.slane %v3596_v6, 2  ;;  %v3331_v6 = vld [vmem:[#allocation2 + $0xb4] sm:$0x7] }
 0x355   : > { %v4439_v51 = vadd.f32 %v4356_v23, %v4101_v14  ;;  %v3039_v21 = vrot.slane %v3037_v39, 1  ;;  %v3599_v44 = vsel %vm2900_vm3, %v3594_v32, %v3598_v47  ;;  %v8013_v14 = vld [vmem:[#allocation2 + $0xac] sm:$0xff] }
 0x356   : > { %v3737_v27 = vpop.f32.mrf.mxu2  ;;  %v3183_v60 = vpop.f32.mrf.mxu1  ;;  %v4225_v19 = vsel %vm4149_vm5, %v4220_v24, %v8003_v43 }
 0x357   : > { %v4480_v58 = vmul.f32 %v4439_v51, %v8365_v41  ;;  %v3265_v57 = vadd.f32 %v3183_v60, %v7663_v52  ;;  %v3040_v17 = vsel %vm2900_vm3, %v3035_v37, %v3039_v21  ;;  %v8367_v60 = vld [vmem:[#allocation24_spill] sm:$0xff] }
 0x358   : > { %v4020_v55 = vpop.f32.mrf.mxu3 }
 0x359   : > { %v4358_v4 = vpop.f32.mrf.mxu0  ;;  %v4520_v45 = vadd.f32 %v4519_v50, %v4480_v58  ;;  %v4570_v59 = vmul.f32 %v4480_v58, %v4439_v51  ;;  %v3816_v18 = vadd.f32 %v3734_v13, %v3265_v57  ;;  %v3899_v58 = vrot.slane %v7992_v16, 1 }
 0x35b   : > { %v4610_v26 = vadd.f32 %v4609_v20, %v4570_v59  ;;  %v4102_v30 = vadd.f32 %v4020_v55, %v3816_v18  ;;  %v3604_v18 = vshll.u32 %v8013_v14, 16 }
 0x35d   : > { %4062 = vmatmul.bf16.gmra.mxu3 %v3898_v36  ;;  %v4440_v25 = vadd.f32 %v4358_v4, %v4102_v30  ;;  %v3606_v32 = vrot.slane %v3604_v18, 1 }
 0x35e   : > { %v3739_v52 = vpop.f32.mrf.mxu2  ;;  %v3186_v23 = vpop.f32.mrf.mxu1 }
 0x35f   : > { %v4481_v29 = vmul.f32 %v4440_v25, %v8366_v49  ;;  %v5808_v53 = vpack.c.bf16 %v4440_v25, %v4439_v51  ;;  %v3266_v48 = vadd.f32 %v3186_v23, %v7668_v15  ;;  %v3600_v15 = vshrl.u32 %v7992_v16, 16  ;;  %v8368_v49 = vld [vmem:[#allocation36_spill] sm:$0xff] }
 0x360   : > { %v4023_v10 = vpop.f32.mrf.mxu3  ;;  %v3041_v16 = vshrl.u32 %v7999_v40, 16 }
 0x361   : > { %v4361_v13 = vpop.f32.mrf.mxu0  ;;  %v4521_v38 = vadd.f32 %v4520_v45, %v4481_v29  ;;  %v4571_v31 = vmul.f32 %v4481_v29, %v4440_v25  ;;  %6023 = vst [vmem:[%s7880_s23 + $0x38] sm:$0xff] %v5808_v53   ;;  %v3817_v46 = vadd.f32 %v3737_v27, %v3266_v48  ;;  %3225 = vmatmul.bf16.gmra.mxu1 %v3040_v17  ;;  %v8018_v27 = vld [vmem:[#allocation2 + $0x9c] sm:$0xff]   ;;  %v4226_v55 = vrot.slane %v3600_v15, 1 }
 0x362   : > { %v3045_v57 = vshll.u32 %v8018_v27, 16 }
 0x363   : > { %3781 = vmatmul.bf16.gmra.mxu2 %v3599_v44  ;;  %v4611_v50 = vadd.f32 %v4610_v26, %v4571_v31  ;;  %v4103_v1 = vadd.f32 %v4023_v10, %v3817_v46  ;;  %v3900_v26 = vsel %vm3863_vm4, %v3897_v63, %v3899_v58  ;;  %v8024_v37 = vor.u32 %v4227_v28, %v4226_v55 }
 0x364   : > { %4400 = vmatmul.bf16.gmra.mxu0 %v4225_v19  ;;  %v3047_v36 = vrot.slane %v3045_v57, 1  ;;  %v3430_v44 = vunpack.c.l.b16 %v3331_v6  ;;  %v3608_v46 = vshrl.u32 %v8013_v14, 16  ;;  %v4231_v57 = vrot.slane %v3604_v18, 2 }
 0x365   : > { %v4441_v20 = vadd.f32 %v4361_v13, %v4103_v1  ;;  %v3043_v13 = vor.u32 %v3041_v16, %v3039_v21  ;;  %v4229_v10 = vsel %vm4149_vm5, %v8003_v43, %v8024_v37  ;;  %v8369_v43 = vld [vmem:[#allocation34_spill] sm:$0xff]  ;;  %v3049_v16 = vshrl.u32 %v8018_v27, 16 }
 0x366   : > { %v3742_v12 = vpop.f32.mrf.mxu2  ;;  %v3188_v11 = vpop.f32.mrf.mxu1  ;;  %v8035_v1 = vpack.c.b16 %v3430_v44, %v3430_v44 }
 0x367   : > { %v4482_v4 = vmul.f32 %v4441_v20, %v8367_v60  ;;  %v3267_v24 = vadd.f32 %v3188_v11, %v7680_v33  ;;  %v3602_v33 = vor.u32 %v3600_v15, %v3598_v47  ;;  %v3048_v40 = vsel %vm2900_vm3, %v3043_v13, %v3047_v36 }
 0x368   : > { %v4025_v41 = vpop.f32.mrf.mxu3  ;;  %v3901_v11 = vrot.slane %v8013_v14, 1  ;;  %v3051_v13 = vor.u32 %v3049_v16, %v3047_v36 }
 0x369   : > { %v4363_v51 = vpop.f32.mrf.mxu0  ;;  %v4522_v62 = vadd.f32 %v4521_v38, %v4482_v4  ;;  %v4572_v45 = vmul.f32 %v4482_v4, %v4441_v20  ;;  %v3818_v59 = vadd.f32 %v3739_v52, %v3267_v24  ;;  %v3607_v47 = vsel %vm2900_vm3, %v3602_v33, %v3606_v32 }
 0x36a   : > { %v3053_v24 = vshll.u32 %v7713_v56, 16  ;;  %v3610_v33 = vor.u32 %v3608_v46, %v3606_v32 }
 0x36b   : > { %v4612_v42 = vadd.f32 %v4611_v50, %v4572_v45  ;;  %v4104_v39 = vadd.f32 %v4025_v41, %v3818_v59  ;;  %v4230_v41 = vrot.slane %v3608_v46, 1  ;;  %v4128_v45 = vld [vmem:[#allocation2 + $0xb4] sm:$0xf]  ;;  %v3902_v59 = vsel %vm3863_vm4, %v3899_v58, %v3901_v11 }
 0x36d   : > { %4067 = vmatmul.bf16.gmra.mxu3 %v3900_v26  ;;  %v4442_v25 = vadd.f32 %v4363_v51, %v4104_v39  ;;  %v4232_v6 = vor.u32 %v4231_v57, %v4230_v41 }
 0x36e   : > { %v3744_v30 = vpop.f32.mrf.mxu2  ;;  %v3191_v23 = vpop.f32.mrf.mxu1 }
 0x36f   : > { %v4483_v29 = vmul.f32 %v4442_v25, %v8368_v49  ;;  %v5813_v53 = vpack.c.bf16 %v4442_v25, %v4441_v20  ;;  %v3268_v63 = vadd.f32 %v3191_v23, %v7693_v3  ;;  %v4147_v23 = vunpack.c.l.b16 %v4128_v45  ;;  %v8370_v49 = vld [vmem:[#allocation40_spill] sm:$0xff] }
 0x370   : > { %v4028_v48 = vpop.f32.mrf.mxu3  ;;  %v4233_v27 = vsel %vm4149_vm5, %v8024_v37, %v4232_v6 }
 0x371   : > { %v4366_v52 = vpop.f32.mrf.mxu0  ;;  %v4523_v17 = vadd.f32 %v4522_v62, %v4483_v29  ;;  %v4573_v19 = vmul.f32 %v4483_v29, %v4442_v25  ;;  %6024 = vst [vmem:[%s7880_s23 + $0x40] sm:$0xff] %v5813_v53   ;;  %v3819_v21 = vadd.f32 %v3742_v12, %v3268_v63  ;;  %3230 = vmatmul.bf16.gmra.mxu1 %v3048_v40  ;;  %v3612_v12 = vshll.u32 %v8035_v1, 16 }
 0x372   : > { %v3055_v25 = vrot.slane %v3053_v24, 1  ;;  %v4148_v40 = vpack.c.b16 %v4147_v23, %v4147_v23  ;;  %v3616_v24 = vshrl.u32 %v8035_v1, 16 }
 0x373   : > { %3786 = vmatmul.bf16.gmra.mxu2 %v3607_v47  ;;  %v4613_v38 = vadd.f32 %v4612_v42, %v4573_v19  ;;  %v4105_v31 = vadd.f32 %v4028_v48, %v3819_v21  ;;  %v2879_v48 = vld [vmem:[#allocation2 + $0xac] sm:$0x7] }
 0x374   : > { %4405 = vmatmul.bf16.gmra.mxu0 %v4229_v10  ;;  %v3056_v47 = vsel %vm2900_vm3, %v3051_v13, %v3055_v25 }
 0x375   : > { %v4443_v50 = vadd.f32 %v4366_v52, %v4105_v31  ;;  %v4238_v31 = vshll.u32 %v4148_v40, 16 }
 0x376   : > { %v3747_v3 = vpop.f32.mrf.mxu2  ;;  %v3193_v15 = vpop.f32.mrf.mxu1 }
 0x377   : > { %v4484_v51 = vmul.f32 %v4443_v50, %v8369_v43  ;;  %v3269_v60 = vadd.f32 %v3193_v15, %v7700_v61  ;;  %v3614_v61 = vrot.slane %v3612_v12, 1  ;;  %v8371_v43 = vld [vmem:[#allocation46_spill] sm:$0xff]  ;;  %v4240_v12 = vrot.slane %v4238_v31, 2 }
 0x378   : > { %v4030_v4 = vpop.f32.mrf.mxu3 }
 0x379   : > { %v4368_v20 = vpop.f32.mrf.mxu0  ;;  %v4524_v55 = vadd.f32 %v4523_v17, %v4484_v51  ;;  %v4574_v28 = vmul.f32 %v4484_v51, %v4443_v50  ;;  %v3820_v62 = vadd.f32 %v3744_v30, %v3269_v60  ;;  %v3615_v32 = vsel %vm2900_vm3, %v3610_v33, %v3614_v61 }
 0x37a   : > { %v2898_v17 = vunpack.c.l.b16 %v2879_v48  ;;  %v3618_v16 = vor.u32 %v3616_v24, %v3614_v61 }
 0x37b   : > { %v4614_v42 = vadd.f32 %v4613_v38, %v4574_v28  ;;  %v4106_v39 = vadd.f32 %v4030_v4, %v3820_v62  ;;  %v4235_v38 = vshrl.u32 %v4148_v40, 16  ;;  %v3057_v28 = vshrl.u32 %v7713_v56, 16 }
 0x37d   : > { %4072 = vmatmul.bf16.gmra.mxu3 %v3902_v59  ;;  %v4444_v18 = vadd.f32 %v4368_v20, %v4106_v39  ;;  %v8053_v20 = vpack.c.b16 %v2898_v17, %v2898_v17  ;;  %v4237_v4 = vrot.slane %v4235_v38, 1  ;;  %v3059_v39 = vor.u32 %v3057_v28, %v3055_v25  ;;  %v8375_v28 = vld [vmem:[#allocation9_spill] sm:$0xff] }
 0x37e   : > { %v3749_v26 = vpop.f32.mrf.mxu2  ;;  %v3196_v52 = vpop.f32.mrf.mxu1 }
 0x37f   : > { %v4485_v29 = vmul.f32 %v4444_v18, %v8370_v49  ;;  %v5818_v53 = vpack.c.bf16 %v4444_v18, %v4443_v50  ;;  %v3270_v58 = vadd.f32 %v3196_v52, %v7705_v9  ;;  %v3061_v62 = vshll.u32 %v8053_v20, 16  ;;  %v8372_v52 = vld [vmem:[#allocation7_spill] sm:$0xff] }
 0x380   : > { %v4033_v63 = vpop.f32.mrf.mxu3  ;;  %v4241_v33 = vor.u32 %v4240_v12, %v4237_v4  ;;  %v3065_v38 = vshrl.u32 %v8053_v20, 16 }
 0x381   : > { %v4371_v30 = vpop.f32.mrf.mxu0  ;;  %v4525_v10 = vadd.f32 %v4524_v55, %v4485_v29  ;;  %v4575_v44 = vmul.f32 %v4485_v29, %v4444_v18  ;;  %6025 = vst [vmem:[%s7880_s23 + $0x48] sm:$0xff] %v5818_v53   ;;  %v3821_v36 = vadd.f32 %v3747_v3, %v3270_v58  ;;  %3235 = vmatmul.bf16.gmra.mxu1 %v3056_v47  ;;  %v3903_v3 = vrot.slane %v8035_v1, 1 }
 0x383   : > { %3791 = vmatmul.bf16.gmra.mxu2 %v3615_v32  ;;  %v4615_v19 = vadd.f32 %v4614_v42, %v4575_v44  ;;  %v4107_v9 = vadd.f32 %v4033_v63, %v3821_v36 }
 0x384   : > { %4410 = vmatmul.bf16.gmra.mxu0 %v4233_v27  ;;  %v8373_v27 = vld [vmem:[#allocation10_spill] sm:$0xff] }
 0x385   : > { %v4445_v46 = vadd.f32 %v4371_v30, %v4107_v9 }
 0x386   : > { %v3752_v21 = vpop.f32.mrf.mxu2  ;;  %v3198_v50 = vpop.f32.mrf.mxu1 }
 0x387   : > { %v4486_v37 = vmul.f32 %v4445_v46, %v8371_v43  ;;  %v3271_v51 = vadd.f32 %v3198_v50, %v7709_v7  ;;  %v3904_v7 = vsel %vm3863_vm4, %v3901_v11, %v3903_v3  ;;  %v4242_v11 = vsel %vm4149_vm5, %v4232_v6, %v4241_v33  ;;  %v8374_v50 = vld [vmem:[#allocation6_spill] sm:$0xff] }
 0x388   : > { %v4035_v60 = vpop.f32.mrf.mxu3 }
 0x389   : > { %v4373_v15 = vpop.f32.mrf.mxu0  ;;  %v4526_v41 = vadd.f32 %v4525_v10, %v4486_v37  ;;  %v4576_v57 = vmul.f32 %v4486_v37, %v4445_v46  ;;  %v3822_v55 = vadd.f32 %v3749_v26, %v3271_v51  ;;  %v3063_v26 = vrot.slane %v3061_v62, 1 }
 0x38b   : > { %v4616_v45 = vadd.f32 %v4615_v19, %v4576_v57  ;;  %v4108_v59 = vadd.f32 %v4035_v60, %v3822_v55  ;;  %v3064_v14 = vsel %vm2900_vm3, %v3059_v39, %v3063_v26  ;;  %v3067_v51 = vor.u32 %v3065_v38, %v3063_v26  ;;  %v8376_v26 = vld [vmem:[#allocation16_spill] sm:$0xff]  ;;  %v8379_v38 = vld [vmem:[#allocation33_spill] sm:$0xff] }
 0x38d   : > { %4077 = vmatmul.bf16.gmra.mxu3 %v3904_v7  ;;  %v4446_v1 = vadd.f32 %v4373_v15, %v4108_v59 }
 0x38e   : > { %v3754_v42 = vpop.f32.mrf.mxu2  ;;  %v3201_v23 = vpop.f32.mrf.mxu1 }
 0x38f   : > { %v4487_v56 = vmul.f32 %v4446_v1, %v8372_v52  ;;  %v5823_v30 = vpack.c.bf16 %v4446_v1, %v4445_v46  ;;  %v3272_v13 = vadd.f32 %v3201_v23, %v7720_v35 }
 0x390   : > { %v4038_v49 = vpop.f32.mrf.mxu3 }
 0x391   : > { %v4376_v18 = vpop.f32.mrf.mxu0  ;;  %v4527_v29 = vadd.f32 %v4526_v41, %v4487_v56  ;;  %v4577_v25 = vmul.f32 %v4487_v56, %v4446_v1  ;;  %6026 = vst [vmem:[%s7880_s23 + $0x50] sm:$0xff] %v5823_v30   ;;  %v3823_v53 = vadd.f32 %v3752_v21, %v3272_v13  ;;  %3240 = vmatmul.bf16.gmra.mxu1 %v3064_v14 }
 0x393   : > { %3796 = vmatmul.bf16.gmra.mxu2 %v3618_v16  ;;  %v4617_v61 = vadd.f32 %v4616_v45, %v4577_v25  ;;  %v4109_v58 = vadd.f32 %v4038_v49, %v3823_v53 }
 0x394   : > { %4415 = vmatmul.bf16.gmra.mxu0 %v4242_v11 }
 0x395   : > { %v4447_v32 = vadd.f32 %v4376_v18, %v4109_v58 }
 0x396   : > { %v3757_v63 = vpop.f32.mrf.mxu2  ;;  %v3203_v48 = vpop.f32.mrf.mxu1 }
 0x397   : > { %v4488_v35 = vmul.f32 %v4447_v32, %v8373_v27  ;;  %v3273_v40 = vadd.f32 %v3203_v48, %v7724_v0 }
 0x398   : > { %v4040_v10 = vpop.f32.mrf.mxu3 }
 0x399   : > { %v4378_v47 = vpop.f32.mrf.mxu0  ;;  %v4528_v44 = vadd.f32 %v4527_v29, %v4488_v35  ;;  %v4578_v6 = vmul.f32 %v4488_v35, %v4447_v32  ;;  %v3824_v36 = vadd.f32 %v3754_v42, %v3273_v40 }
 0x39b   : > { %v4618_v17 = vadd.f32 %v4617_v61, %v4578_v6  ;;  %v4110_v19 = vadd.f32 %v4040_v10, %v3824_v36 }
 0x39d   : > { %4082 = vmatmul.bf16.gmra.mxu3 %v3903_v3  ;;  %v4448_v21 = vadd.f32 %v4378_v47, %v4110_v19  ;;  %v8378_v19 = vld [vmem:[#allocation21_spill] sm:$0xff] }
 0x39e   : > { %v3759_v9 = vpop.f32.mrf.mxu2  ;;  %v3206_v31 = vpop.f32.mrf.mxu1 }
 0x39f   : > { %v4489_v15 = vmul.f32 %v4448_v21, %v8374_v50  ;;  %v5828_v43 = vpack.c.bf16 %v4448_v21, %v4447_v32  ;;  %v3274_v37 = vadd.f32 %v3206_v31, %v7734_v34 }
 0x3a0   : > { %v4043_v0 = vpop.f32.mrf.mxu3 }
 0x3a1   : > { %v4381_v46 = vpop.f32.mrf.mxu0  ;;  %v4529_v60 = vadd.f32 %v4528_v44, %v4489_v15  ;;  %v4579_v4 = vmul.f32 %v4489_v15, %v4448_v21  ;;  %6027 = vst [vmem:[%s7880_s23 + $0x58] sm:$0xff] %v5828_v43   ;;  %v3825_v12 = vadd.f32 %v3757_v63, %v3274_v37  ;;  %3245 = vmatmul.bf16.gmra.mxu1 %v3067_v51  ;;  %v8377_v63 = vld [vmem:[#allocation15_spill] sm:$0xff] }
 0x3a3   : > { %v4619_v24 = vadd.f32 %v4618_v17, %v4579_v4  ;;  %v4111_v3 = vadd.f32 %v4043_v0, %v3825_v12  ;;  %v8380_v12 = vld [vmem:[#allocation20_spill] sm:$0xff] }
 0x3a4   : > { %4420 = vmatmul.bf16.gmra.mxu0 %v4241_v33 }
 0x3a5   : > { %v4449_v57 = vadd.f32 %v4381_v46, %v4111_v3  ;;  %v8381_v3 = vld [vmem:[#allocation39_spill] sm:$0xff] }
 0x3a6   : > { %v3762_v41 = vpop.f32.mrf.mxu2  ;;  %v3208_v20 = vpop.f32.mrf.mxu1 }
 0x3a7   : > { %v4490_v62 = vmul.f32 %v4449_v57, %v8375_v28  ;;  %v3275_v45 = vadd.f32 %v3208_v20, %v7742_v8 }
 0x3a8   : > { %v4045_v59 = vpop.f32.mrf.mxu3 }
 0x3a9   : > { %v4383_v55 = vpop.f32.mrf.mxu0  ;;  %v4530_v34 = vadd.f32 %v4529_v60, %v4490_v62  ;;  %v4580_v7 = vmul.f32 %v4490_v62, %v4449_v57  ;;  %v3826_v42 = vadd.f32 %v3759_v9, %v3275_v45 }
 0x3ab   : > { %v4620_v39 = vadd.f32 %v4619_v24, %v4580_v7  ;;  %v4112_v16 = vadd.f32 %v4045_v59, %v3826_v42 }
 0x3ad   : > { %v4450_v23 = vadd.f32 %v4383_v55, %v4112_v16 }
 0x3ae   : > { %v3764_v1 = vpop.f32.mrf.mxu2  ;;  %v3211_v33 = vpop.f32.mrf.mxu1 }
 0x3af   : > { %v4491_v52 = vmul.f32 %v4450_v23, %v8376_v26  ;;  %v5833_v56 = vpack.c.bf16 %v4450_v23, %v4449_v57  ;;  %v3276_v30 = vadd.f32 %v3211_v33, %v7749_v5 }
 0x3b0   : > { %v4048_v13 = vpop.f32.mrf.mxu3 }
 0x3b1   : > { %v4386_v18 = vpop.f32.mrf.mxu0  ;;  %v4531_v49 = vadd.f32 %v4530_v34, %v4491_v52  ;;  %v4581_v14 = vmul.f32 %v4491_v52, %v4450_v23  ;;  %6028 = vst [vmem:[%s7880_s23 + $0x60] sm:$0xff] %v5833_v56   ;;  %v3827_v8 = vadd.f32 %v3762_v41, %v3276_v30  ;;  %v8383_v23 = vld [vmem:[#allocation47_spill] sm:$0xff] }
 0x3b3   : > { %v4621_v11 = vadd.f32 %v4620_v39, %v4581_v14  ;;  %v4113_v29 = vadd.f32 %v4048_v13, %v3827_v8  ;;  %v8382_v39 = vld [vmem:[#allocation28_spill] sm:$0xff] }
 0x3b5   : > { %v4451_v53 = vadd.f32 %v4386_v18, %v4113_v29  ;;  %v8384_v29 = vld [vmem:[#allocation27_spill] sm:$0xff] }
 0x3b6   : > { %v3767_v25 = vpop.f32.mrf.mxu2  ;;  %v3213_v61 = vpop.f32.mrf.mxu1 }
 0x3b7   : > { %v4492_v32 = vmul.f32 %v4451_v53, %v8377_v63  ;;  %v3277_v48 = vadd.f32 %v3213_v61, %v7757_v54 }
 0x3b8   : > { %v4050_v47 = vpop.f32.mrf.mxu3 }
 0x3b9   : > { %v4388_v58 = vpop.f32.mrf.mxu0  ;;  %v4532_v27 = vadd.f32 %v4531_v49, %v4492_v32  ;;  %v4582_v35 = vmul.f32 %v4492_v32, %v4451_v53  ;;  %v3828_v5 = vadd.f32 %v3764_v1, %v3277_v48 }
 0x3bb   : > { %v4622_v40 = vadd.f32 %v4621_v11, %v4582_v35  ;;  %v4114_v10 = vadd.f32 %v4050_v47, %v3828_v5 }
 0x3bd   : > { %v4452_v6 = vadd.f32 %v4388_v58, %v4114_v10 }
 0x3be   : > { %v3769_v44 = vpop.f32.mrf.mxu2  ;;  %v3216_v36 = vpop.f32.mrf.mxu1 }
 0x3bf   : > { %v4493_v9 = vmul.f32 %v4452_v6, %v8378_v19  ;;  %v5838_v21 = vpack.c.bf16 %v4452_v6, %v4451_v53  ;;  %v3278_v31 = vadd.f32 %v3216_v36, %v8379_v38  ;;  %v8385_v53 = vld [vmem:[#allocation43_spill] sm:$0xff] }
 0x3c0   : > { %v4053_v46 = vpop.f32.mrf.mxu3 }
 0x3c1   : > { %v4391_v17 = vpop.f32.mrf.mxu0  ;;  %v4533_v50 = vadd.f32 %v4532_v27, %v4493_v9  ;;  %v4583_v15 = vmul.f32 %v4493_v9, %v4452_v6  ;;  %6029 = vst [vmem:[%s7880_s23 + $0x68] sm:$0xff] %v5838_v21   ;;  %v3829_v54 = vadd.f32 %v3767_v25, %v3278_v31 }
 0x3c3   : > { %v4623_v43 = vadd.f32 %v4622_v40, %v4583_v15  ;;  %v4115_v37 = vadd.f32 %v4053_v46, %v3829_v54 }
 0x3c5   : > { %v4453_v51 = vadd.f32 %v4391_v17, %v4115_v37  ;;  %v8387_v17 = vld [vmem:[#allocation51_spill] sm:$0xff] }
 0x3c6   : > { %v3772_v0 = vpop.f32.mrf.mxu2  ;;  %v3218_v60 = vpop.f32.mrf.mxu1 }
 0x3c7   : > { %v4494_v24 = vmul.f32 %v4453_v51, %v8380_v12  ;;  %v3279_v41 = vadd.f32 %v3218_v60, %v8381_v3  ;;  %v8389_v60 = vld [vmem:[#allocation49_spill] sm:$0xff] }
 0x3c8   : > { %v4055_v57 = vpop.f32.mrf.mxu3 }
 0x3c9   : > { %v4393_v4 = vpop.f32.mrf.mxu0  ;;  %v4534_v20 = vadd.f32 %v4533_v50, %v4494_v24  ;;  %v4584_v55 = vmul.f32 %v4494_v24, %v4453_v51  ;;  %v3830_v28 = vadd.f32 %v3769_v44, %v3279_v41  ;;  %v8386_v44 = vld [vmem:[#allocation37_spill] sm:$0xff] }
 0x3cb   : > { %v4624_v62 = vadd.f32 %v4623_v43, %v4584_v55  ;;  %v4116_v45 = vadd.f32 %v4055_v57, %v3830_v28 }
 0x3cd   : > { %v4454_v34 = vadd.f32 %v4393_v4, %v4116_v45 }
 0x3ce   : > { %v3774_v59 = vpop.f32.mrf.mxu2  ;;  %v3221_v7 = vpop.f32.mrf.mxu1 }
 0x3cf   : > { %v4495_v16 = vmul.f32 %v4454_v34, %v8382_v39  ;;  %v5843_v1 = vpack.c.bf16 %v4454_v34, %v4453_v51  ;;  %v3280_v33 = vadd.f32 %v3221_v7, %v8383_v23 }
 0x3d0   : > { %v4058_v18 = vpop.f32.mrf.mxu3 }
 0x3d1   : > { %v4396_v42 = vpop.f32.mrf.mxu0  ;;  %v4535_v26 = vadd.f32 %v4534_v20, %v4495_v16  ;;  %v4585_v52 = vmul.f32 %v4495_v16, %v4454_v34  ;;  %6030 = vst [vmem:[%s7880_s23 + $0x70] sm:$0xff] %v5843_v1   ;;  %v3831_v56 = vadd.f32 %v3772_v0, %v3280_v33  ;;  %v8388_v0 = vld [vmem:[#allocation35_spill] sm:$0xff] }
 0x3d3   : > { %v4625_v30 = vadd.f32 %v4624_v62, %v4585_v52  ;;  %v4117_v13 = vadd.f32 %v4058_v18, %v3831_v56 }
 0x3d5   : > { %v4455_v14 = vadd.f32 %v4396_v42, %v4117_v13  ;;  %v8391_v42 = vld [vmem:[#allocation52_spill] sm:$0xff] }
 0x3d6   : > { %v3777_v49 = vpop.f32.mrf.mxu2  ;;  %v3223_v8 = vpop.f32.mrf.mxu1 }
 0x3d7   : > { %v4496_v25 = vmul.f32 %v4455_v14, %v8384_v29  ;;  %v3281_v61 = vadd.f32 %v3223_v8, %v8385_v53  ;;  %v8393_v8 = vld [vmem:[#allocation53_spill] sm:$0xff] }
 0x3d8   : > { %v4060_v58 = vpop.f32.mrf.mxu3 }
 0x3d9   : > { %v4398_v11 = vpop.f32.mrf.mxu0  ;;  %v4536_v63 = vadd.f32 %v4535_v26, %v4496_v25  ;;  %v4586_v32 = vmul.f32 %v4496_v25, %v4455_v14  ;;  %v3832_v48 = vadd.f32 %v3774_v59, %v3281_v61  ;;  %v8390_v59 = vld [vmem:[#allocation22_spill] sm:$0xff] }
 0x3db   : > { %v4626_v47 = vadd.f32 %v4625_v30, %v4586_v32  ;;  %v4118_v27 = vadd.f32 %v4060_v58, %v3832_v48 }
 0x3dd   : > { %v4456_v5 = vadd.f32 %v4398_v11, %v4118_v27 }
 0x3de   : > { %v3779_v35 = vpop.f32.mrf.mxu2  ;;  %v3226_v40 = vpop.f32.mrf.mxu1 }
 0x3df   : > { %v4497_v6 = vmul.f32 %v4456_v5, %v8386_v44  ;;  %v5848_v36 = vpack.c.bf16 %v4456_v5, %v4455_v14  ;;  %v3282_v19 = vadd.f32 %v3226_v40, %v8387_v17 }
 0x3e0   : > { %v4063_v9 = vpop.f32.mrf.mxu3 }
 0x3e1   : > { %v4401_v10 = vpop.f32.mrf.mxu0  ;;  %v4537_v21 = vadd.f32 %v4536_v63, %v4497_v6  ;;  %v4587_v38 = vmul.f32 %v4497_v6, %v4456_v5  ;;  %6031 = vst [vmem:[%s7880_s23 + $0x78] sm:$0xff] %v5848_v36   ;;  %v3833_v31 = vadd.f32 %v3777_v49, %v3282_v19  ;;  %v8392_v49 = vld [vmem:[#allocation32_spill] sm:$0xff] }
 0x3e3   : > { %v4627_v46 = vadd.f32 %v4626_v47, %v4587_v38  ;;  %v4119_v50 = vadd.f32 %v4063_v9, %v3833_v31 }
 0x3e5   : > { %v4457_v54 = vadd.f32 %v4401_v10, %v4119_v50  ;;  %v8395_v10 = vld [vmem:[#allocation54_spill] sm:$0xff] }
 0x3e6   : > { %v3782_v15 = vpop.f32.mrf.mxu2  ;;  %v3228_v43 = vpop.f32.mrf.mxu1 }
 0x3e7   : > { %v4498_v51 = vmul.f32 %v4457_v54, %v8388_v0  ;;  %v3283_v4 = vadd.f32 %v3228_v43, %v8389_v60 }
 0x3e8   : > { %v4065_v12 = vpop.f32.mrf.mxu3 }
 0x3e9   : > { %v4403_v37 = vpop.f32.mrf.mxu0  ;;  %v4538_v24 = vadd.f32 %v4537_v21, %v4498_v51  ;;  %v4588_v3 = vmul.f32 %v4498_v51, %v4457_v54  ;;  %v3834_v41 = vadd.f32 %v3779_v35, %v3283_v4  ;;  %v8394_v35 = vld [vmem:[#allocation31_spill] sm:$0xff] }
 0x3eb   : > { %v4628_v57 = vadd.f32 %v4627_v46, %v4588_v3  ;;  %v4120_v20 = vadd.f32 %v4065_v12, %v3834_v41 }
 0x3ed   : > { %v4458_v28 = vadd.f32 %v4403_v37, %v4120_v20  ;;  %v8397_v20 = vld [vmem:[#allocation42_spill] sm:$0xff] }
 0x3ee   : > { %v3784_v55 = vpop.f32.mrf.mxu2  ;;  %v3231_v62 = vpop.f32.mrf.mxu1 }
 0x3ef   : > { %v4499_v34 = vmul.f32 %v4458_v28, %v8390_v59  ;;  %v5853_v7 = vpack.c.bf16 %v4458_v28, %v4457_v54  ;;  %v3284_v39 = vadd.f32 %v3231_v62, %v8391_v42 }
 0x3f0   : > { %v4068_v16 = vpop.f32.mrf.mxu3 }
 0x3f1   : > { %v4406_v45 = vpop.f32.mrf.mxu0  ;;  %v4539_v1 = vadd.f32 %v4538_v24, %v4499_v34  ;;  %v4589_v23 = vmul.f32 %v4499_v34, %v4458_v28  ;;  %6032 = vst [vmem:[%s7880_s23 + $0x80] sm:$0xff] %v5853_v7   ;;  %v3835_v33 = vadd.f32 %v3782_v15, %v3284_v39  ;;  %v8396_v15 = vld [vmem:[#allocation25_spill] sm:$0xff] }
 0x3f3   : > { %v4629_v18 = vadd.f32 %v4628_v57, %v4589_v23  ;;  %v4121_v26 = vadd.f32 %v4068_v16, %v3835_v33  ;;  %v8398_v33 = vld [vmem:[#allocation41_spill] sm:$0xff] }
 0x3f5   : > { %v4459_v56 = vadd.f32 %v4406_v45, %v4121_v26  ;;  %v8399_v26 = vld [vmem:[#allocation57_spill] sm:$0xff] }
 0x3f6   : > { %v3787_v52 = vpop.f32.mrf.mxu2  ;;  %v3233_v30 = vpop.f32.mrf.mxu1 }
 0x3f7   : > { %v4500_v14 = vmul.f32 %v4459_v56, %v8392_v49  ;;  %v3285_v11 = vadd.f32 %v3233_v30, %v8393_v8 }
 0x3f8   : > { %v4070_v29 = vpop.f32.mrf.mxu3 }
 0x3f9   : > { %v4408_v13 = vpop.f32.mrf.mxu0  ;;  %v4540_v25 = vadd.f32 %v4539_v1, %v4500_v14  ;;  %v4590_v53 = vmul.f32 %v4500_v14, %v4459_v56  ;;  %v3836_v61 = vadd.f32 %v3784_v55, %v3285_v11 }
 0x3fb   : > { %v4630_v58 = vadd.f32 %v4629_v18, %v4590_v53  ;;  %v4122_v63 = vadd.f32 %v4070_v29, %v3836_v61  ;;  %v8400_v53 = vld [vmem:[#allocation50_spill] sm:$0xff] }
 0x3fd   : > { %v4460_v48 = vadd.f32 %v4408_v13, %v4122_v63  ;;  %v8401_v63 = vld [vmem:[#allocation58_spill] sm:$0xff] }
 0x3fe   : > { %v3789_v32 = vpop.f32.mrf.mxu2  ;;  %v3236_v47 = vpop.f32.mrf.mxu1 }
 0x3ff   : > { %v4501_v5 = vmul.f32 %v4460_v48, %v8394_v35  ;;  %v5858_v40 = vpack.c.bf16 %v4460_v48, %v4459_v56  ;;  %v3286_v44 = vadd.f32 %v3236_v47, %v8395_v10 }
 0x400   : > { %v4073_v6 = vpop.f32.mrf.mxu3 }
 0x401   : > { %v4411_v27 = vpop.f32.mrf.mxu0  ;;  %v4541_v36 = vadd.f32 %v4540_v25, %v4501_v5  ;;  %v4591_v17 = vmul.f32 %v4501_v5, %v4460_v48  ;;  %6033 = vst [vmem:[%s7880_s23 + $0x88] sm:$0xff] %v5858_v40   ;;  %v3837_v19 = vadd.f32 %v3787_v52, %v3286_v44 }
 0x403   : > { %v4631_v9 = vadd.f32 %v4630_v58, %v4591_v17  ;;  %v4123_v21 = vadd.f32 %v4073_v6, %v3837_v19 }
 0x405   : > { %v4461_v31 = vadd.f32 %v4411_v27, %v4123_v21 }
 0x406   : > { %v3792_v38 = vpop.f32.mrf.mxu2  ;;  %v3238_v46 = vpop.f32.mrf.mxu1 }
 0x407   : > { %v4502_v54 = vmul.f32 %v4461_v31, %v8396_v15  ;;  %v3287_v43 = vadd.f32 %v3238_v46, %v7834_v22 }
 0x408   : > { %v4075_v37 = vpop.f32.mrf.mxu3 }
 0x409   : > { %v4413_v50 = vpop.f32.mrf.mxu0  ;;  %v4542_v0 = vadd.f32 %v4541_v36, %v4502_v54  ;;  %v4592_v51 = vmul.f32 %v4502_v54, %v4461_v31  ;;  %v3838_v60 = vadd.f32 %v3789_v32, %v3287_v43  ;;  %v8402_v36 = vld [vmem:[#allocation48_spill] sm:$0xff] }
 0x40b   : > { %v4632_v4 = vadd.f32 %v4631_v9, %v4592_v51  ;;  %v4124_v12 = vadd.f32 %v4075_v37, %v3838_v60 }
 0x40d   : > { %v4462_v3 = vadd.f32 %v4413_v50, %v4124_v12 }
 0x40e   : > { %v3794_v24 = vpop.f32.mrf.mxu2  ;;  %v3241_v41 = vpop.f32.mrf.mxu1 }
 0x40f   : > { %v4503_v55 = vmul.f32 %v4462_v3, %v8397_v20  ;;  %v5863_v28 = vpack.c.bf16 %v4462_v3, %v4461_v31  ;;  %v3288_v62 = vadd.f32 %v3241_v41, %v7841_v2 }
 0x410   : > { %v4078_v45 = vpop.f32.mrf.mxu3 }
 0x411   : > { %v4416_v57 = vpop.f32.mrf.mxu0  ;;  %v4543_v59 = vadd.f32 %v4542_v0, %v4503_v55  ;;  %v4593_v34 = vmul.f32 %v4503_v55, %v4462_v3  ;;  %6034 = vst [vmem:[%s7880_s23 + $0x90] sm:$0xff] %v5863_v28   ;;  %v3839_v22 = vadd.f32 %v3792_v38, %v3288_v62 }
 0x413   : > { %v4633_v7 = vadd.f32 %v4632_v4, %v4593_v34  ;;  %v4125_v42 = vadd.f32 %v4078_v45, %v3839_v22 }
 0x415   : > { %v4463_v16 = vadd.f32 %v4416_v57, %v4125_v42 }
 0x416   : > { %v3797_v39 = vpop.f32.mrf.mxu2  ;;  %v3243_v1 = vpop.f32.mrf.mxu1 }
 0x417   : > { %v4504_v18 = vmul.f32 %v4463_v16, %v8398_v33  ;;  %v3289_v52 = vadd.f32 %v3243_v1, %v8399_v26 }
 0x418   : > { %v4080_v56 = vpop.f32.mrf.mxu3 }
 0x419   : > { %v4418_v23 = vpop.f32.mrf.mxu0  ;;  %v4544_v30 = vadd.f32 %v4543_v59, %v4504_v18  ;;  %v4594_v13 = vmul.f32 %v4504_v18, %v4463_v16  ;;  %v3840_v2 = vadd.f32 %v3794_v24, %v3289_v52 }
 0x41b   : > { %v4634_v49 = vadd.f32 %v4633_v7, %v4594_v13  ;;  %v4126_v14 = vadd.f32 %v4080_v56, %v3840_v2 }
 0x41d   : > { %v4464_v11 = vadd.f32 %v4418_v23, %v4126_v14 }
 0x41e   : > { %v3799_v8 = vpop.f32.mrf.mxu2  ;;  %v3246_v29 = vpop.f32.mrf.mxu1 }
 0x41f   : > { %v4505_v61 = vmul.f32 %v4464_v11, %v8400_v53  ;;  %v5868_v58 = vpack.c.bf16 %v4464_v11, %v4463_v16  ;;  %v3290_v32 = vadd.f32 %v3246_v29, %v8401_v63 }
 0x420   : > { %v4083_v48 = vpop.f32.mrf.mxu3 }
 0x421   : > { %v4421_v25 = vpop.f32.mrf.mxu0  ;;  %v4545_v47 = vadd.f32 %v4544_v30, %v4505_v61  ;;  %v4595_v27 = vmul.f32 %v4505_v61, %v4464_v11  ;;  %6035 = vst [vmem:[%s7880_s23 + $0x98] sm:$0xff] %v5868_v58   ;;  %v3841_v35 = vadd.f32 %v3797_v39, %v3290_v32 }
 0x423   : > { %v4635_v5 = vadd.f32 %v4634_v49, %v4595_v27  ;;  %v4127_v40 = vadd.f32 %v4083_v48, %v3841_v35 }
 0x425   : > { %v4465_v10 = vadd.f32 %v4421_v25, %v4127_v40 }
 0x426   : > { %v3248_v44 = vpop.f32.mrf.mxu1 }
 0x427   : > { %v4506_v17 = vmul.f32 %v4465_v10, %v8402_v36  ;;  %v4685_v19 = vpack.c.bf16 %v4465_v10, %v4465_v10 }
 0x428   : > { %v4085_v9 = vpop.f32.mrf.mxu3 }
 0x429   : > { %v4423_v6 = vpop.f32.mrf.mxu0  ;;  %v4547_v21 = vsel %vm4546_vm6, %v4506_v17, 0.0  ;;  %v4596_v38 = vmul.f32 %v4506_v17, %v4465_v10  ;;  %4726 = vst [vmem:[%s7880_s23 + $0xa0] sm:$0x3] %v4685_v19 }
 0x42a   : > { %v4548_v31 = vadd.f32 %v4547_v21, %v4545_v47 }
 0x42b   : > { %v4636_v46 = vsel %vm4546_vm6, %v4596_v38, 0.0 }
 0x42c   : > { %v4549_v50 = vrot.slane %v4548_v31, 4  ;;  %v4637_v15 = vadd.f32 %v4636_v46, %v4635_v5 }
 0x42e   : > { %v4550_v54 = vadd.f32 %v4549_v50, %v4548_v31  ;;  %v4638_v43 = vrot.slane %v4637_v15, 4 }
 0x430   : > { %v4551_v37 = vrot.slane %v4550_v54, 2  ;;  %v4639_v0 = vadd.f32 %v4638_v43, %v4637_v15 }
 0x432   : > { %v4552_v51 = vadd.f32 %v4551_v37, %v4550_v54  ;;  %v4640_v60 = vrot.slane %v4639_v0, 2 }
 0x434   : > { %v4553_v4 = vrot.slane %v4552_v51, 1  ;;  %v4641_v12 = vadd.f32 %v4640_v60, %v4639_v0 }
 0x436   : > { %v4554_v24 = vadd.f32 %v4553_v4, %v4552_v51  ;;  %v4642_v3 = vrot.slane %v4641_v12, 1 }
 0x438   : > { %4555 = vst [vmem:[%s292_s27] sm:$0x1] %v4554_v24  ;;  %v4643_v41 = vadd.f32 %v4642_v3, %v4641_v12 }
 0x43a   : > { %4644 = vst [vmem:[%s295_s8] sm:$0x1] %v4643_v41 }
 0x43b PF: > { %s18_s24 = sadd.s32 1, %s6138_s24  }
 0x43c   : > { %p15_p4 = scmp.ge.s32.totalorder %s18_s24, 4  }
 0x43e   :  { %17 = sbr.rel (!%p15_p4) target bundleno = 1 (0x1), region = 102 }

// kernel: residual_block_basic_2d.3
= control target key start
LH: loop header
LB: loop body
LE: loop exit
PB: predicated region body
PF: predicated region fallthrough
CT: control target
= control target key end

     0   :  { %s5527_s18 = smov 0   ;;  %s7081_s0 = inlined_call_operand.vmem [shape: bf16[2,372,128], index: 0, kind: input, shape index: {}]   ;;  %s7082_s1 = inlined_call_operand.vmem [shape: bf16[9,128,128], index: 1, kind: input, shape index: {}]   ;;  %s7083_s2 = inlined_call_operand.vmem [shape: f32[324,1], index: 2, kind: input, shape index: {}]   ;;  %s7084_s3 = inlined_call_operand.vmem [shape: bf16[2,324,128], index: 3, kind: output, shape index: {0}]   ;;  %s7085_s4 = inlined_call_operand.vmem [shape: f32[2,1,128], index: 4, kind: output, shape index: {1}]   ;;  %s7086_s5 = inlined_call_operand.vmem [shape: f32[2,1,128], index: 5, kind: output, shape index: {2}]  }
   0x1 LB: > { %s4394_s19 = sadd.s32 4294967295, %s5494_s18   ;;  %p4398_p0 = scmp.ge.s32.totalorder %s5494_s18, 1  ;;  %s5494_s18 = sphi %s5527_s18, %s16_s18  }
   0x2   : > { %p192_p1 = scmp.lt.s32.totalorder %s5494_s18, 3 }
   0x4   : > { %p193_p2 = pnand %p4398_p0, %p192_p1 }
   0x6   : > { %196 = sbr.rel (%p193_p2) target bundleno = 953 (0x3b9), region = 32 }
   0xb   : > { %v5005_v0 = vld [vmem:[%s7082_s1 + $0x78] sm:$0xff]  ;;  %p226_p3 = scmp.lt.s32.totalorder %s4394_s19, 1  ;;  %v5004_v1 = vld [vmem:[%s7082_s1 + $0x70] sm:$0xff]  ;;  %v5003_v2 = vld [vmem:[%s7082_s1 + $0x68] sm:$0xff]  ;;  %vm423_vm0 = vcmask 1044480   ;;  %vm3179_vm3 = vcmask 1046528  }
   0xc   : > { %5421 = vmatpush.bf16.msra.mxu1 %v5005_v0  ;;  %5422 = vmatpush.bf16.msra.mxu2 %v5005_v0  ;;  %v5002_v3 = vld [vmem:[%s7082_s1 + $0x60] sm:$0xff]  ;;  %v5001_v4 = vld [vmem:[%s7082_s1 + $0x58] sm:$0xff]  ;;  %v5000_v7 = vld [vmem:[%s7082_s1 + $0x50] sm:$0xff]  ;;  %vm1042_vm1 = vsmask.f32 4352  ;;  %vm4108_vm6 = vcmask 1043456  }
   0xd   : > { %534 = vmatpush.bf16.msra.mxu0 %v5005_v0  ;;  %5423 = vmatpush.bf16.msra.mxu3 %v5005_v0  ;;  %s7154_s19 = smov (!%p226_p3, %s4394_s19), 1  ;;  %v4999_v10 = vld [vmem:[%s7082_s1 + $0x48] sm:$0xff]  ;;  %v4998_v17 = vld [vmem:[%s7082_s1 + $0x40] sm:$0xff]  ;;  %v5013_v22 = vld [vmem:[%s7082_s1 + $0xb8] sm:$0xff]  ;;  %vm650_vm2 = vsmask.f32 5376 }
   0xe   : > { %s5445_s26 = smul.u32 188, %s7154_s19  ;;  %v4997_v25 = vld [vmem:[%s7082_s1 + $0x38] sm:$0xff]  ;;  %v5012_v30 = vld [vmem:[%s7082_s1 + $0xb0] sm:$0xff]  ;;  %v5011_v33 = vld [vmem:[%s7082_s1 + $0xa8] sm:$0xff]  ;;  %vm2216_vm4 = vsmask.f32 7424  ;;  %s238_s12 = scalar_lea.vmem %s7085_s4, %s7154_s19 }
   0xf   : > { %v5029_v26 = vld [vmem:[%s7082_s1 + $0x138] sm:$0xff]  ;;  %v4996_v31 = vld [vmem:[%s7082_s1 + $0x30] sm:$0xff]  ;;  %v4995_v36 = vld [vmem:[%s7082_s1 + $0x28] sm:$0xff]  ;;  %vm3465_vm5 = vsmask.f32 6400  ;;  %s5446_s27 = smul.u32 164, %s7154_s19  ;;  %s241_s14 = scalar_lea.vmem %s7086_s5, %s7154_s19 }
  0x10   : > { %5424 = vmatpush.bf16.msra.mxu1 %v5004_v1  ;;  %5425 = vmatpush.bf16.msra.mxu2 %v5004_v1  ;;  %s5553_s6 = scalar_lea.vmem %s7081_s0, %s5445_s26  ;;  %v5028_v32 = vld [vmem:[%s7082_s1 + $0x130] sm:$0xff]  ;;  %v5027_v37 = vld [vmem:[%s7082_s1 + $0x128] sm:$0xff]  ;;  %v5010_v43 = vld [vmem:[%s7082_s1 + $0xa0] sm:$0xff] }
  0x11   : > { %535 = vmatpush.bf16.msra.mxu0 %v5004_v1  ;;  %5426 = vmatpush.bf16.msra.mxu3 %v5004_v1  ;;  %v5559_v5 = vld [vmem:[%s5553_s6 + $0x4] sm:$0xf]  ;;  %v300_v6 = vld [vmem:[%s5553_s6] sm:$0x8]  ;;  %v5570_v11 = vld [vmem:[%s5553_s6 + $0x30] sm:$0xff]  ;;  %s6609_s8 = scalar_lea.vmem %s7084_s3, %s5446_s27 }
  0x12   : > { %v360_v8 = vunpack.c.l.b16 %v300_v6  ;;  %v361_v9 = vunpack.c.l.b16 %v5559_v5  ;;  %v5573_v12 = vld [vmem:[%s5553_s6 + $0x38] sm:$0xff]  ;;  %v5576_v13 = vld [vmem:[%s5553_s6 + $0x60] sm:$0xff]  ;;  %v5579_v14 = vld [vmem:[%s5553_s6 + $0x68] sm:$0xff]  ;;  %v435_v18 = vrot.slane %v5570_v11, 3 }
  0x13   : > { %v5582_v15 = vld [vmem:[%s5553_s6 + $0x8] sm:$0xff]  ;;  %v437_v19 = vrot.slane %v5573_v12, 3  ;;  %v447_v20 = vrot.slane %v5576_v13, 3  ;;  %v449_v21 = vrot.slane %v5579_v14, 3  ;;  %v5626_v34 = vld [vmem:[%s5553_s6 + $0x90] sm:$0xff]  ;;  %v4989_v35 = vld [vmem:[%s5553_s6 + $0x98] sm:$0xff] }
  0x14   : > { %5427 = vmatpush.bf16.msra.mxu1 %v5003_v2  ;;  %5428 = vmatpush.bf16.msra.mxu2 %v5003_v2  ;;  %v5586_v16 = vpack.c.b16 %v361_v9, %v360_v8  ;;  %v425_v24 = vrot.slane %v5582_v15, 3  ;;  %v459_v38 = vrot.slane %v5626_v34, 3  ;;  %v461_v39 = vrot.slane %v4989_v35, 3  ;;  %v5637_v40 = vld [vmem:[%s5553_s6 + $0x40] sm:$0xff]  ;;  %v4984_v41 = vld [vmem:[%s5553_s6 + $0x70] sm:$0xff]  ;;  %v5009_v53 = vld [vmem:[%s7082_s1 + $0x98] sm:$0xff] }
  0x15   : > { %536 = vmatpush.bf16.msra.mxu0 %v5003_v2  ;;  %5429 = vmatpush.bf16.msra.mxu3 %v5003_v2  ;;  %v438_v27 = vsel %vm423_vm0, %v435_v18, %v437_v19  ;;  %v450_v28 = vsel %vm423_vm0, %v447_v20, %v449_v21  ;;  %v5641_v42 = vld [vmem:[%s5553_s6 + $0x10] sm:$0xff]  ;;  %v4994_v45 = vld [vmem:[%s7082_s1 + $0x20] sm:$0xff]  ;;  %v439_v47 = vrot.slane %v5637_v40, 3  ;;  %v451_v48 = vrot.slane %v4984_v41, 3  ;;  %v5021_v54 = vld [vmem:[%s7082_s1 + $0xf8] sm:$0xff] }
  0x16   : > { %v424_v23 = vrot.slane %v5586_v16, 3  ;;  %v462_v44 = vsel %vm423_vm0, %v459_v38, %v461_v39  ;;  %v5026_v46 = vld [vmem:[%s7082_s1 + $0x120] sm:$0xff]  ;;  %v427_v49 = vrot.slane %v5641_v42, 3  ;;  %v4993_v55 = vld [vmem:[%s7082_s1 + $0x18] sm:$0xff]  ;;  %v5020_v59 = vld [vmem:[%s7082_s1 + $0xf0] sm:$0xff]  ;;  %v1044_v13 = vshrl.u32 %v5586_v16, 16 }
  0x17   : > { %v440_v50 = vsel %vm423_vm0, %v437_v19, %v439_v47  ;;  %v452_v51 = vsel %vm423_vm0, %v449_v21, %v451_v48  ;;  %v5670_v56 = vld [vmem:[%s5553_s6 + $0xa0] sm:$0xf]  ;;  %v283_v57 = vld [vmem:[%s5553_s6 + $0xa4] sm:$0x1]  ;;  %v5025_v58 = vld [vmem:[%s7082_s1 + $0x118] sm:$0xff] }
  0x18   : > { %5430 = vmatpush.bf16.msra.mxu1 %v5002_v3  ;;  %5431 = vmatpush.bf16.msra.mxu2 %v5002_v3  ;;  %v426_v29 = vsel %vm423_vm0, %v424_v23, %v425_v24  ;;  %v428_v52 = vsel %vm423_vm0, %v425_v24, %v427_v49  ;;  %v7087_v60 = vunpack.c.l.b16 %v5670_v56  ;;  %v401_v61 = vunpack.c.l.b16 %v283_v57  ;;  %v5008_v62 = vld [vmem:[%s7082_s1 + $0x90] sm:$0xff]  ;;  %v5684_v63 = vld [vmem:[%s5553_s6 + $0x48] sm:$0xff]  ;;  %v4985_v0 = vld [vmem:[%s5553_s6 + $0x78] sm:$0xff] }
  0x19   : > { %537 = vmatpush.bf16.msra.mxu0 %v5002_v3  ;;  %5432 = vmatpush.bf16.msra.mxu3 %v5002_v3  ;;  %v5692_v2 = vld [vmem:[%s5553_s6 + $0x18] sm:$0xff]  ;;  %v441_v6 = vrot.slane %v5684_v63, 3  ;;  %v4992_v21 = vld [vmem:[%s7082_s1 + $0x10] sm:$0xff]  ;;  %v5007_v24 = vld [vmem:[%s7082_s1 + $0x88] sm:$0xff] }
  0x1a   : > { %v5689_v1 = vpack.c.b16 %v401_v61, %v7087_v60  ;;  %v5024_v23 = vld [vmem:[%s7082_s1 + $0x110] sm:$0xff]  ;;  %v5739_v41 = vld [vmem:[%s5553_s6 + $0xc] sm:$0xf]  ;;  %v5022_v57 = vld [vmem:[%s7082_s1 + $0x100] sm:$0xff] }
  0x1b   : > { %v442_v14 = vsel %vm423_vm0, %v439_v47, %v441_v6  ;;  %v5006_v47 = vld [vmem:[%s7082_s1 + $0x80] sm:$0xff] }
  0x1c   : > { %5433 = vmatpush.bf16.msra.mxu1 %v5001_v4  ;;  %5434 = vmatpush.bf16.msra.mxu2 %v5001_v4  ;;  %v463_v3 = vrot.slane %v5689_v1, 3 }
  0x1d   : > { %538 = vmatpush.bf16.msra.mxu0 %v5001_v4  ;;  %5435 = vmatpush.bf16.msra.mxu3 %v5001_v4  ;;  %v5019_v4 = vld [vmem:[%s7082_s1 + $0xe8] sm:$0xff] }
  0x1e   : > { %v464_v8 = vsel %vm423_vm0, %v461_v39, %v463_v3  ;;  %v1359_v39 = vld [vmem:[%s5553_s6 + $0x8] sm:$0x8] }
  0x20   : > { %5436 = vmatpush.bf16.msra.mxu1 %v5000_v7  ;;  %5437 = vmatpush.bf16.msra.mxu2 %v5000_v7 }
  0x21   : > { %539 = vmatpush.bf16.msra.mxu0 %v5000_v7  ;;  %5438 = vmatpush.bf16.msra.mxu3 %v5000_v7  ;;  %v453_v7 = vrot.slane %v4985_v0, 3 }
  0x24   : > { %5439 = vmatpush.bf16.msra.mxu1 %v4999_v10  ;;  %5440 = vmatpush.bf16.msra.mxu2 %v4999_v10 }
  0x25   : > { %540 = vmatpush.bf16.msra.mxu0 %v4999_v10  ;;  %5441 = vmatpush.bf16.msra.mxu3 %v4999_v10  ;;  %v429_v10 = vrot.slane %v5692_v2, 3 }
  0x27   : > { %v430_v19 = vsel %vm423_vm0, %v427_v49, %v429_v10  ;;  %v4990_v49 = vld [vmem:[%s7082_s1] sm:$0xff] }
  0x28   : > { %5442 = vmatpush.bf16.msra.mxu1 %v4998_v17  ;;  %5443 = vmatpush.bf16.msra.mxu2 %v4998_v17 }
  0x29   : > { %541 = vmatpush.bf16.msra.mxu0 %v4998_v17  ;;  %5444 = vmatpush.bf16.msra.mxu3 %v4998_v17  ;;  %v454_v17 = vsel %vm423_vm0, %v451_v48, %v453_v7 }
  0x2b   : > { %572 = vmatmul.bf16.vlgmr.msra.gmra.mxu1 %v438_v27  ;;  %602 = vmatmul.bf16.vlgmr.msra.gmra.mxu2 %v450_v28  ;;  %v5723_v27 = vld [vmem:[%s5553_s6 + $0x50] sm:$0xff]  ;;  %v4986_v28 = vld [vmem:[%s5553_s6 + $0x80] sm:$0xff] }
  0x2c   : > { %1205 = vmatpush.bf16.msrb.mxu2 %v5013_v22  ;;  %908 = vmatpush.bf16.msrb.mxu1 %v4997_v25  ;;  %v5018_v22 = vld [vmem:[%s7082_s1 + $0xe0] sm:$0xff]  ;;  %v4991_v25 = vld [vmem:[%s7082_s1 + $0x8] sm:$0xff] }
  0x2d   : > { %2041 = vmatpush.bf16.msrb.mxu0 %v5029_v26  ;;  %632 = vmatmul.bf16.vlgmr.msra.gmra.mxu3 %v462_v44  ;;  %v5017_v26 = vld [vmem:[%s7082_s1 + $0xd8] sm:$0xff]  ;;  %v1461_v44 = vunpack.c.l.b16 %v5739_v41 }
  0x2e   : > { %542 = vmatmul.bf16.vlgmr.msra.gmra.mxu0 %v426_v29  ;;  %1780 = vmatpush.bf16.msrb.mxu3 %v5021_v54  ;;  %v5727_v29 = vld [vmem:[%s5553_s6 + $0x20] sm:$0xff] }
  0x30   : > { %1206 = vmatpush.bf16.msrb.mxu2 %v5012_v30  ;;  %909 = vmatpush.bf16.msrb.mxu1 %v4996_v31  ;;  %v5016_v30 = vld [vmem:[%s7082_s1 + $0xd0] sm:$0xff]  ;;  %v443_v31 = vrot.slane %v5723_v27, 3 }
  0x31   : > { %2042 = vmatpush.bf16.msrb.mxu0 %v5028_v32  ;;  %v455_v32 = vrot.slane %v4986_v28, 3 }
  0x32   : > { %1781 = vmatpush.bf16.msrb.mxu3 %v5020_v59  ;;  %v444_v35 = vsel %vm423_vm0, %v441_v6, %v443_v31  ;;  %v4987_v59 = vld [vmem:[%s5553_s6 + $0x88] sm:$0xff] }
  0x34   : > { %1207 = vmatpush.bf16.msrb.mxu2 %v5011_v33  ;;  %910 = vmatpush.bf16.msrb.mxu1 %v4995_v36  ;;  %v431_v33 = vrot.slane %v5727_v29, 3  ;;  %v456_v36 = vsel %vm423_vm0, %v453_v7, %v455_v32 }
  0x35   : > { %2043 = vmatpush.bf16.msrb.mxu0 %v5027_v37 }
  0x36   : > { %1782 = vmatpush.bf16.msrb.mxu3 %v5019_v4  ;;  %v432_v37 = vsel %vm423_vm0, %v429_v10, %v431_v33  ;;  %v5772_v4 = vld [vmem:[%s5553_s6 + $0x28] sm:$0xff]  ;;  %v457_v10 = vrot.slane %v4987_v59, 3 }
  0x38   : > { %1208 = vmatpush.bf16.msrb.mxu2 %v5010_v43  ;;  %911 = vmatpush.bf16.msrb.mxu1 %v4994_v45  ;;  %v1460_v43 = vunpack.c.l.b16 %v1359_v39  ;;  %v5023_v45 = vld [vmem:[%s7082_s1 + $0x108] sm:$0xff] }
  0x39   : > { %2044 = vmatpush.bf16.msrb.mxu0 %v5026_v46  ;;  %v5015_v46 = vld [vmem:[%s7082_s1 + $0xc8] sm:$0xff] }
  0x3a   : > { %1783 = vmatpush.bf16.msrb.mxu3 %v5018_v22  ;;  %v1502_v48 = vpack.c.b16 %v1461_v44, %v1460_v43 }
  0x3b   : > { %577 = vmatmul.bf16.gmra.mxu1 %v440_v50  ;;  %607 = vmatmul.bf16.gmra.mxu2 %v452_v51  ;;  %v5757_v50 = vld [vmem:[%s5553_s6 + $0x10] sm:$0xff]   ;;  %v5014_v51 = vld [vmem:[%s7082_s1 + $0xc0] sm:$0xff] }
  0x3c   : > { %1209 = vmatpush.bf16.msrb.mxu2 %v5009_v53  ;;  %912 = vmatpush.bf16.msrb.mxu1 %v4993_v55  ;;  %v1527_v53 = vshll.u32 %v1502_v48, 16  ;;  %v1532_v54 = vshrl.u32 %v5757_v50, 16  ;;  %v1535_v55 = vshll.u32 %v5757_v50, 16 }
  0x3d   : > { %2045 = vmatpush.bf16.msrb.mxu0 %v5025_v58  ;;  %637 = vmatmul.bf16.gmra.mxu3 %v464_v8  ;;  %v5768_v58 = vld [vmem:[%s5553_s6 + $0x58] sm:$0xff] }
  0x3e   : > { %547 = vmatmul.bf16.gmra.mxu0 %v428_v52  ;;  %1784 = vmatpush.bf16.msrb.mxu3 %v5017_v26  ;;  %v1524_v52 = vshrl.u32 %v1502_v48, 16  ;;  %v1534_v0 = vrot.slane %v1532_v54, 3  ;;  %v445_v8 = vrot.slane %v5768_v58, 3  ;;  %v5258_v26 = vld [vmem:[%s5553_s6 + $0x18] sm:$0xff]   ;;  %v660_v48 = vshrl.u32 %v5582_v15, 16 }
  0x3f   : > { %v1541_v28 = vshrl.u32 %v5258_v26, 16  ;;  %v1046_v54 = vrot.slane %v1044_v13, 3 }
  0x40   : > { %1210 = vmatpush.bf16.msrb.mxu2 %v5008_v62  ;;  %913 = vmatpush.bf16.msrb.mxu1 %v4992_v21  ;;  %v1526_v61 = vrot.slane %v1524_v52, 3  ;;  %v1529_v62 = vrot.slane %v1527_v53, 4  ;;  %v458_v21 = vsel %vm423_vm0, %v455_v32, %v457_v10  ;;  %v448_v43 = vsel %vm423_vm0, %v445_v8, %v447_v20 }
  0x41   : > { %2046 = vmatpush.bf16.msrb.mxu0 %v5024_v23  ;;  %v5064_v23 = vld [vmem:[%s7082_s1 + $0x1b8] sm:$0xff]  ;;  %v1543_v32 = vrot.slane %v1541_v28, 3  ;;  %v1047_v20 = vshll.u32 %v5586_v16, 16  ;;  %v662_v52 = vrot.slane %v660_v48, 2 }
  0x42   : > { %1785 = vmatpush.bf16.msrb.mxu3 %v5016_v30  ;;  %v1530_v6 = vor.u32 %v1529_v62, %v1526_v61  ;;  %v1544_v30 = vshll.u32 %v5258_v26, 16  ;;  %v1051_v61 = vrot.slane %v660_v48, 3  ;;  %v5261_v48 = vld [vmem:[%s5553_s6 + $0x30] sm:$0xff]  }
  0x43   : > { %v1568_v13 = vshrl.u32 %v5261_v48, 16 }
  0x44   : > { %1211 = vmatpush.bf16.msrb.mxu2 %v5007_v24  ;;  %914 = vmatpush.bf16.msrb.mxu1 %v4991_v25  ;;  %v5072_v24 = vld [vmem:[%s7082_s1 + $0x1f8] sm:$0xff] }
  0x45   : > { %2047 = vmatpush.bf16.msrb.mxu0 %v5023_v45  ;;  %v5037_v25 = vld [vmem:[%s7082_s1 + $0x178] sm:$0xff]  ;;  %v460_v45 = vsel %vm423_vm0, %v457_v10, %v459_v38  ;;  %v5083_v10 = vunpack.c.l.b16 %v5757_v50 }
  0x46   : > { %1786 = vmatpush.bf16.msrb.mxu3 %v5015_v46 }
  0x48   : > { %1212 = vmatpush.bf16.msrb.mxu2 %v5006_v47  ;;  %915 = vmatpush.bf16.msrb.mxu1 %v4990_v49  ;;  %v663_v49 = vshll.u32 %v5582_v15, 16 }
  0x49   : > { %2048 = vmatpush.bf16.msrb.mxu0 %v5022_v57 }
  0x4a   : > { %1787 = vmatpush.bf16.msrb.mxu3 %v5014_v51  ;;  %v5259_v51 = vld [vmem:[%s5553_s6 + $0x20] sm:$0xff]   ;;  %v665_v53 = vrot.slane %v663_v49, 3  ;;  %v1052_v62 = vrot.slane %v663_v49, 4  ;;  %v5079_v49 = vld [vmem:[%s7082_s1 + $0x230] sm:$0xff] }
  0x4b   : > { %582 = vmatmul.bf16.gmra.mxu1 %v442_v14  ;;  %612 = vmatmul.bf16.gmra.mxu2 %v454_v17  ;;  %v433_v17 = vrot.slane %v5772_v4, 3  ;;  %v1550_v5 = vshrl.u32 %v5259_v51, 16 }
  0x4c   : > { %3004 = vmatpush.bf16.msra.mxu2 %v5064_v23  ;;  %2453 = vmatpush.bf16.msra.mxu1 %v5037_v25  ;;  %v5260_v23 = vld [vmem:[%s5553_s6 + $0x28] sm:$0xff]  }
  0x4d   : > { %642 = vmatmul.bf16.gmra.mxu3 %v463_v3  ;;  %v1537_v3 = vrot.slane %v1535_v55, 4  ;;  %v434_v22 = vsel %vm423_vm0, %v431_v33, %v433_v17  ;;  %v1546_v33 = vrot.slane %v1544_v30, 4  ;;  %v436_v47 = vsel %vm423_vm0, %v433_v17, %v435_v18 }
  0x4e   : > { %552 = vmatmul.bf16.gmra.mxu0 %v430_v19  ;;  %v446_v19 = vsel %vm423_vm0, %v443_v31, %v445_v8  ;;  %v5080_v31 = vld [vmem:[%s7082_s1 + $0x238] sm:$0xff]  ;;  %3290 = vmatpush.bf16.msra.mxu3 %v5072_v24  ;;  %v1049_v18 = vrot.slane %v1047_v20, 4  ;;  %v1552_v55 = vrot.slane %v1550_v5, 3  ;;  %v1053_v8 = vor.u32 %v1052_v62, %v1051_v61 }
  0x4f   : > { %v1538_v7 = vor.u32 %v1537_v3, %v1534_v0  ;;  %3628 = vmatpush.bf16.msra.mxu0 %v5080_v31  ;;  %v666_v3 = vor.u32 %v665_v53, %v662_v52  ;;  %v1559_v50 = vshrl.u32 %v5260_v23, 16  ;;  %v1562_v24 = vshll.u32 %v5260_v23, 16 }
  0x50   : > { %v1571_v20 = vshll.u32 %v5261_v48, 16  ;;  %v687_v62 = vshrl.u32 %v5727_v29, 16 }
  0x51   : > { %v1539_v14 = vsel %vm1042_vm1, %v1530_v6, %v1538_v7  ;;  %v1561_v31 = vrot.slane %v1559_v50, 3  ;;  %v1564_v41 = vrot.slane %v1562_v24, 4 }
  0x52   : > { %v1573_v52 = vrot.slane %v1571_v20, 4 }
  0x53   : > { %3629 = vmatpush.bf16.msra.mxu0 %v5079_v49 }
  0x5b   : > { %587 = vmatmul.bf16.gmra.mxu1 %v444_v35  ;;  %617 = vmatmul.bf16.gmra.mxu2 %v456_v36  ;;  %v242_v35 = vld [vmem:[%s5553_s6] sm:$0xc]  ;;  %v1547_v36 = vor.u32 %v1546_v33, %v1543_v32  ;;  %v1565_v32 = vor.u32 %v1564_v41, %v1561_v31 }
  0x5c   : > { %v648_v39 = vunpack.c.l.b16 %v242_v35 }
  0x5d   : > { %1788 = vmatmul.bf16.vlgmr.msrb.gmra.mxu3 %v1539_v14 }
  0x5e   : > { %557 = vmatmul.bf16.gmra.mxu0 %v432_v37  ;;  %v1548_v37 = vsel %vm1042_vm1, %v1538_v7, %v1547_v36  ;;  %v649_v46 = vpack.c.b16 %v361_v9, %v648_v39  ;;  %v1553_v9 = vshll.u32 %v5259_v51, 16  ;;  %v1050_v7 = vor.u32 %v1049_v18, %v1046_v54 }
  0x60   : > { %v652_v34 = vshrl.u32 %v649_v46, 16  ;;  %v655_v38 = vshll.u32 %v649_v46, 16  ;;  %v1555_v57 = vrot.slane %v1553_v9, 4  ;;  %v1054_v17 = vsel %vm1042_vm1, %v1050_v7, %v1053_v8 }
  0x61   : > { %v678_v46 = vshrl.u32 %v5692_v2, 16  ;;  %v1570_v9 = vrot.slane %v1568_v13, 3 }
  0x62   : > { %v654_v59 = vrot.slane %v652_v34, 2  ;;  %v657_v15 = vrot.slane %v655_v38, 3  ;;  %v1556_v0 = vor.u32 %v1555_v57, %v1552_v55 }
  0x63   : > { %v680_v34 = vrot.slane %v678_v46, 2  ;;  %v1059_v51 = vrot.slane %v678_v46, 3  ;;  %v1574_v53 = vor.u32 %v1573_v52, %v1570_v9 }
  0x64   : > { %v1557_v16 = vsel %vm1042_vm1, %v1547_v36, %v1556_v0  ;;  %v658_v6 = vor.u32 %v657_v15, %v654_v59  ;;  %v1566_v35 = vsel %vm1042_vm1, %v1556_v0, %v1565_v32  ;;  %v5071_v36 = vld [vmem:[%s7082_s1 + $0x1f0] sm:$0xff]  ;;  %v5389_v15 = vld [vmem:[%s5553_s6 + $0x1c] sm:$0xff]   ;;  %v690_v0 = vshll.u32 %v5727_v29, 16 }
  0x65   : > { %3291 = vmatpush.bf16.msra.mxu3 %v5071_v36  ;;  %v1575_v18 = vsel %vm1042_vm1, %v1565_v32, %v1574_v53  ;;  %v5263_v36 = vld [vmem:[%s5553_s6 + $0x40] sm:$0xff]  }
  0x66   : > { %v667_v14 = vsel %vm650_vm2, %v658_v6, %v666_v3 }
  0x6b   : > { %592 = vmatmul.bf16.gmra.mxu1 %v446_v19  ;;  %622 = vmatmul.bf16.gmra.mxu2 %v458_v21  ;;  %v5817_v19 = vpack.c.b16 %v5083_v10, %v1461_v44  ;;  %v669_v21 = vshrl.u32 %v5641_v42, 16  ;;  %v5063_v44 = vld [vmem:[%s7082_s1 + $0x1b0] sm:$0xff]  ;;  %v692_v10 = vrot.slane %v690_v0, 3 }
  0x6c   : > { %3005 = vmatpush.bf16.msra.mxu2 %v5063_v44  ;;  %v5391_v44 = vld [vmem:[%s5553_s6 + $0x24] sm:$0xff]  }
  0x6d   : > { %1793 = vmatmul.bf16.gmra.mxu3 %v1548_v37  ;;  %v671_v25 = vrot.slane %v669_v21, 2  ;;  %v1055_v28 = vrot.slane %v669_v21, 3  ;;  %v1064_v21 = vrot.slane %v690_v0, 4  ;;  %v5078_v0 = vld [vmem:[%s7082_s1 + $0x228] sm:$0xff] }
  0x6e   : > { %562 = vmatmul.bf16.gmra.mxu0 %v434_v22  ;;  %v672_v22 = vshll.u32 %v5641_v42, 16 }
  0x6f   : > { %3630 = vmatpush.bf16.msra.mxu0 %v5078_v0 }
  0x70   : > { %v674_v26 = vrot.slane %v672_v22, 3  ;;  %v1056_v30 = vrot.slane %v672_v22, 4 }
  0x72   : > { %v675_v33 = vor.u32 %v674_v26, %v671_v25  ;;  %v1057_v42 = vor.u32 %v1056_v30, %v1055_v28 }
  0x74   : > { %v676_v37 = vsel %vm650_vm2, %v666_v3, %v675_v33  ;;  %v1058_v39 = vsel %vm1042_vm1, %v1053_v8, %v1057_v42  ;;  %v5262_v3 = vld [vmem:[%s5553_s6 + $0x38] sm:$0xff]   ;;  %v689_v8 = vrot.slane %v687_v62, 2 }
  0x75   : > { %v1577_v6 = vshrl.u32 %v5262_v3, 16  ;;  %v1580_v7 = vshll.u32 %v5262_v3, 16 }
  0x76   : > { %v693_v25 = vor.u32 %v692_v10, %v689_v8  ;;  %v5264_v8 = vld [vmem:[%s5553_s6 + $0x48] sm:$0xff]  }
  0x77   : > { %v1579_v22 = vrot.slane %v1577_v6, 3  ;;  %v1582_v23 = vrot.slane %v1580_v7, 4  ;;  %v705_v6 = vshrl.u32 %v5570_v11, 16  ;;  %v708_v7 = vshll.u32 %v5570_v11, 16 }
  0x79   : > { %v1583_v24 = vor.u32 %v1582_v23, %v1579_v22  ;;  %v707_v22 = vrot.slane %v705_v6, 2  ;;  %v710_v23 = vrot.slane %v708_v7, 3 }
  0x7b   : > { %597 = vmatmul.bf16.gmra.mxu1 %v448_v43  ;;  %627 = vmatmul.bf16.gmra.mxu2 %v460_v45  ;;  %v5387_v43 = vld [vmem:[%s5553_s6 + $0x14] sm:$0xff]   ;;  %v1584_v26 = vsel %vm1042_vm1, %v1574_v53, %v1583_v24 }
  0x7c   : > { %v5036_v45 = vld [vmem:[%s7082_s1 + $0x170] sm:$0xff] }
  0x7d   : > { %1798 = vmatmul.bf16.gmra.mxu3 %v1557_v16  ;;  %2454 = vmatpush.bf16.msra.mxu1 %v5036_v45  ;;  %v1589_v45 = vshll.u32 %v5263_v36, 16 }
  0x7e   : > { %567 = vmatmul.bf16.gmra.mxu0 %v436_v47  ;;  %v681_v47 = vshll.u32 %v5692_v2, 16 }
  0x80   : > { %v683_v38 = vrot.slane %v681_v47, 3  ;;  %v1060_v5 = vrot.slane %v681_v47, 4 }
  0x82   : > { %v684_v54 = vor.u32 %v683_v38, %v680_v34  ;;  %v1061_v2 = vor.u32 %v1060_v5, %v1059_v51  ;;  %v1591_v38 = vrot.slane %v1589_v45, 4  ;;  %v5035_v5 = vld [vmem:[%s7082_s1 + $0x168] sm:$0xff] }
  0x83   : > { %2455 = vmatpush.bf16.msra.mxu1 %v5035_v5 }
  0x84   : > { %v685_v57 = vsel %vm650_vm2, %v675_v33, %v684_v54  ;;  %v1062_v59 = vsel %vm1042_vm1, %v1057_v42, %v1061_v2  ;;  %v694_v31 = vsel %vm650_vm2, %v684_v54, %v693_v25  ;;  %v696_v42 = vshrl.u32 %v5772_v4, 16 }
  0x86   : > { %v698_v46 = vrot.slane %v696_v42, 2  ;;  %v1067_v49 = vrot.slane %v696_v42, 3  ;;  %v711_v42 = vor.u32 %v710_v23, %v707_v22 }
  0x8b   : > { %916 = vmatmul.bf16.vlgmr.msrb.gmra.mxu1 %v667_v14  ;;  %1213 = vmatmul.bf16.vlgmr.msrb.gmra.mxu2 %v1054_v17  ;;  %v1063_v17 = vrot.slane %v687_v62, 3 }
  0x8d   : > { %1803 = vmatmul.bf16.gmra.mxu3 %v1566_v35  ;;  %v1065_v29 = vor.u32 %v1064_v21, %v1063_v17  ;;  %v699_v35 = vshll.u32 %v5772_v4, 16  ;;  %v5070_v4 = vld [vmem:[%s7082_s1 + $0x1e8] sm:$0xff]  ;;  %v1595_v17 = vshrl.u32 %v5264_v8, 16  ;;  %v1598_v21 = vshll.u32 %v5264_v8, 16 }
  0x8e   : > { %2049 = vmatmul.bf16.vlgmr.msrb.gmra.mxu0 %v5817_v19  ;;  %3292 = vmatpush.bf16.msra.mxu3 %v5070_v4  ;;  %v714_v4 = vshrl.u32 %v5573_v12, 16 }
  0x8f   : > { %v1066_v41 = vsel %vm1042_vm1, %v1061_v2, %v1065_v29  ;;  %v701_v47 = vrot.slane %v699_v35, 3  ;;  %v1068_v13 = vrot.slane %v699_v35, 4 }
  0x91   : > { %v702_v52 = vor.u32 %v701_v47, %v698_v46  ;;  %v1069_v53 = vor.u32 %v1068_v13, %v1067_v49  ;;  %v5395_v47 = vld [vmem:[%s5553_s6 + $0x34] sm:$0xff]  }
  0x93   : > { %v712_v45 = vsel %vm650_vm2, %v702_v52, %v711_v42 }
  0x9b   : > { %921 = vmatmul.bf16.gmra.mxu1 %v676_v37  ;;  %1218 = vmatmul.bf16.gmra.mxu2 %v1058_v39  ;;  %v5062_v39 = vld [vmem:[%s7082_s1 + $0x1a8] sm:$0xff] }
  0x9c   : > { %3006 = vmatpush.bf16.msra.mxu2 %v5062_v39 }
  0x9d   : > { %1808 = vmatmul.bf16.gmra.mxu3 %v1575_v18 }
  0x9e   : > { %2054 = vmatmul.bf16.gmra.mxu0 %v5387_v43  ;;  %v1586_v43 = vshrl.u32 %v5263_v36, 16 }
  0xa0   : > { %v1588_v34 = vrot.slane %v1586_v43, 3 }
  0xa2   : > { %v1592_v9 = vor.u32 %v1591_v38, %v1588_v34  ;;  %v717_v34 = vshll.u32 %v5573_v12, 16  ;;  %v5265_v38 = vld [vmem:[%s5553_s6 + $0x50] sm:$0xff]  }
  0xa4   : > { %v1593_v54 = vsel %vm1042_vm1, %v1583_v24, %v1592_v9 }
  0xa8   : > { %v5843_v55 = vpop.f32.mrf.mxu1 }
  0xab   : > { %v5848_v61 = vpop.f32.mrf.mxu0  ;;  %926 = vmatmul.bf16.gmra.mxu1 %v685_v57  ;;  %1223 = vmatmul.bf16.gmra.mxu2 %v1062_v59  ;;  %v703_v57 = vsel %vm650_vm2, %v693_v25, %v702_v52  ;;  %v1070_v59 = vsel %vm1042_vm1, %v1065_v29, %v1069_v53  ;;  %v1071_v25 = vrot.slane %v705_v6, 3  ;;  %v1072_v29 = vrot.slane %v708_v7, 4 }
  0xac   : > { %v716_v52 = vrot.slane %v714_v4, 2 }
  0xad   : > { %1813 = vmatmul.bf16.gmra.mxu3 %v1584_v26  ;;  %v1073_v35 = vor.u32 %v1072_v29, %v1071_v25 }
  0xae   : > { %2059 = vmatmul.bf16.gmra.mxu0 %v5389_v15  ;;  %v5853_v16 = vpop.f32.mrf.mxu2  ;;  %v5393_v15 = vld [vmem:[%s5553_s6 + $0x2c] sm:$0xff]  }
  0xaf   : > { %v1074_v46 = vsel %vm1042_vm1, %v1069_v53, %v1073_v35 }
  0xb0   : > { %v5855_v14 = vpop.f32.mrf.mxu1  ;;  %v5867_v32 = vpop.f32.mrf.mxu3 }
  0xb1   : > { %7092 = vst [vmem:[#allocation2_spill] sm:$0xff] %v5867_v32 }
  0xb3   : > { %v5857_v50 = vpop.f32.mrf.mxu0 }
  0xb6   : > { %v5860_v28 = vpop.f32.mrf.mxu2 }
  0xb8   : > { %v5862_v30 = vpop.f32.mrf.mxu1  ;;  %v5881_v20 = vpop.f32.mrf.mxu3 }
  0xb9   : > { %7093 = vst [vmem:[#allocation3_spill] sm:$0xff] %v5881_v20 }
  0xbb   : > { %v5869_v33 = vpop.f32.mrf.mxu0  ;;  %931 = vmatmul.bf16.gmra.mxu1 %v694_v31  ;;  %1228 = vmatmul.bf16.gmra.mxu2 %v1066_v41  ;;  %v1597_v31 = vrot.slane %v1595_v17, 3  ;;  %v1600_v41 = vrot.slane %v1598_v21, 4 }
  0xbd   : > { %1818 = vmatmul.bf16.gmra.mxu3 %v1593_v54  ;;  %v1601_v11 = vor.u32 %v1600_v41, %v1597_v31  ;;  %v1607_v54 = vshll.u32 %v5265_v38, 16  ;;  %v5397_v41 = vld [vmem:[%s5553_s6 + $0x3c] sm:$0xff]  }
  0xbe   : > { %2064 = vmatmul.bf16.gmra.mxu0 %v5391_v44  ;;  %v5874_v37 = vpop.f32.mrf.mxu2 }
  0xbf   : > { %v1602_v36 = vsel %vm1042_vm1, %v1592_v9, %v1601_v11  ;;  %v1604_v9 = vshrl.u32 %v5265_v38, 16  ;;  %v1609_v7 = vrot.slane %v1607_v54, 4 }
  0xc0   : > { %v5879_v48 = vpop.f32.mrf.mxu1  ;;  %v5899_v62 = vpop.f32.mrf.mxu3 }
  0xc1   : > { %7094 = vst [vmem:[#allocation4_spill] sm:$0xff] %v5899_v62  ;;  %v1606_v6 = vrot.slane %v1604_v9, 3 }
  0xc3   : > { %v5886_v51 = vpop.f32.mrf.mxu0  ;;  %v1610_v17 = vor.u32 %v1609_v7, %v1606_v6 }
  0xc5   : > { %v1611_v22 = vsel %vm1042_vm1, %v1601_v11, %v1610_v17  ;;  %v723_v11 = vshrl.u32 %v5637_v40, 16 }
  0xc6   : > { %v5892_v2 = vpop.f32.mrf.mxu2 }
  0xc7   : > { %v725_v54 = vrot.slane %v723_v11, 2 }
  0xc8   : > { %v5894_v18 = vpop.f32.mrf.mxu1  ;;  %v5913_v26 = vpop.f32.mrf.mxu3 }
  0xc9   : > { %7095 = vst [vmem:[#allocation5_spill] sm:$0xff] %v5913_v26 }
  0xcb   : > { %v5904_v3 = vpop.f32.mrf.mxu0  ;;  %936 = vmatmul.bf16.gmra.mxu1 %v703_v57  ;;  %1233 = vmatmul.bf16.gmra.mxu2 %v1070_v59  ;;  %v719_v57 = vrot.slane %v717_v34, 3  ;;  %v1075_v59 = vrot.slane %v714_v4, 3  ;;  %v5266_v4 = vld [vmem:[%s5553_s6 + $0x58] sm:$0xff]  }
  0xcc   : > { %v1613_v38 = vshrl.u32 %v5266_v4, 16  ;;  %v1616_v9 = vshll.u32 %v5266_v4, 16  ;;  %v5399_v4 = vld [vmem:[%s5553_s6 + $0x44] sm:$0xff]  }
  0xcd   : > { %1823 = vmatmul.bf16.gmra.mxu3 %v1602_v36  ;;  %v720_v12 = vor.u32 %v719_v57, %v716_v52  ;;  %v1079_v57 = vrot.slane %v723_v11, 3 }
  0xce   : > { %2069 = vmatmul.bf16.gmra.mxu0 %v5393_v15  ;;  %v5909_v10 = vpop.f32.mrf.mxu2  ;;  %v1076_v15 = vrot.slane %v717_v34, 4  ;;  %v1618_v6 = vrot.slane %v1616_v9, 4 }
  0xcf   : > { %v721_v29 = vsel %vm650_vm2, %v711_v42, %v720_v12  ;;  %v5069_v42 = vld [vmem:[%s7082_s1 + $0x1e0] sm:$0xff] }
  0xd0   : > { %v5911_v24 = vpop.f32.mrf.mxu1  ;;  %v5925_v49 = vpop.f32.mrf.mxu3  ;;  %v1077_v21 = vor.u32 %v1076_v15, %v1075_v59  ;;  %3293 = vmatpush.bf16.msra.mxu3 %v5069_v42 }
  0xd1   : > { %7096 = vst [vmem:[#allocation6_spill] sm:$0xff] %v5925_v49 }
  0xd2   : > { %v1078_v31 = vsel %vm1042_vm1, %v1073_v35, %v1077_v21  ;;  %v5034_v35 = vld [vmem:[%s7082_s1 + $0x160] sm:$0xff] }
  0xd3   : > { %v5915_v44 = vpop.f32.mrf.mxu0  ;;  %2456 = vmatpush.bf16.msra.mxu1 %v5034_v35 }
  0xd6   : > { %v5918_v39 = vpop.f32.mrf.mxu2 }
  0xd8   : > { %v5920_v43 = vpop.f32.mrf.mxu1  ;;  %v645_v0 = vpop.f32.mrf.mxu3 }
  0xd9   : > { %v1615_v0 = vrot.slane %v1613_v38, 3 }
  0xdb   : > { %v5927_v13 = vpop.f32.mrf.mxu0  ;;  %941 = vmatmul.bf16.gmra.mxu1 %v712_v45  ;;  %1238 = vmatmul.bf16.gmra.mxu2 %v1074_v46  ;;  %v5061_v46 = vld [vmem:[%s7082_s1 + $0x1a0] sm:$0xff] }
  0xdc   : > { %3007 = vmatpush.bf16.msra.mxu2 %v5061_v46 }
  0xdd   : > { %1828 = vmatmul.bf16.gmra.mxu3 %v1611_v22  ;;  %v5077_v22 = vld [vmem:[%s7082_s1 + $0x220] sm:$0xff] }
  0xde   : > { %2074 = vmatmul.bf16.gmra.mxu0 %v5395_v47  ;;  %v5932_v5 = vpop.f32.mrf.mxu2  ;;  %v726_v47 = vshll.u32 %v5637_v40, 16 }
  0xdf   : > { %7097 = vst [vmem:[#allocation7_spill] sm:$0xff] %v5932_v5  ;;  %3631 = vmatpush.bf16.msra.mxu0 %v5077_v22 }
  0xe0   : > { %v5934_v53 = vpop.f32.mrf.mxu1  ;;  %v5946_v36 = vpop.f32.mrf.mxu3  ;;  %v728_v52 = vrot.slane %v726_v47, 3  ;;  %v1080_v59 = vrot.slane %v726_v47, 4 }
  0xe3   : > { %v5936_v8 = vpop.f32.mrf.mxu0 }
  0xe6   : > { %v5939_v23 = vpop.f32.mrf.mxu2 }
  0xe7   : > { %7098 = vst [vmem:[#allocation8_spill] sm:$0xff] %v5939_v23 }
  0xe8   : > { %v5941_v25 = vpop.f32.mrf.mxu1  ;;  %v5966_v15 = vpop.f32.mrf.mxu3 }
  0xeb   : > { %v5948_v45 = vpop.f32.mrf.mxu0  ;;  %946 = vmatmul.bf16.gmra.mxu1 %v721_v29  ;;  %1243 = vmatmul.bf16.gmra.mxu2 %v1078_v31  ;;  %v1619_v29 = vor.u32 %v1618_v6, %v1615_v0  ;;  %v729_v31 = vor.u32 %v728_v52, %v725_v54  ;;  %v732_v54 = vshrl.u32 %v5684_v63, 16  ;;  %v5267_v52 = vld [vmem:[%s5553_s6 + $0x60] sm:$0xff]  }
  0xec   : > { %v1625_v0 = vshll.u32 %v5267_v52, 16 }
  0xed   : > { %v1620_v46 = vsel %vm1042_vm1, %v1610_v17, %v1619_v29  ;;  %v730_v42 = vsel %vm650_vm2, %v720_v12, %v729_v31  ;;  %v735_v17 = vshll.u32 %v5684_v63, 16  ;;  %v734_v12 = vrot.slane %v732_v54, 2 }
  0xee   : > { %2079 = vmatmul.bf16.gmra.mxu0 %v5397_v41  ;;  %v5962_v34 = vpop.f32.mrf.mxu2  ;;  %v1081_v41 = vor.u32 %v1080_v59, %v1079_v57  ;;  %1833 = vmatmul.bf16.gmra.mxu3 %v1620_v46  ;;  %v1622_v59 = vshrl.u32 %v5267_v52, 16  ;;  %v1083_v22 = vrot.slane %v732_v54, 3 }
  0xef   : > { %7099 = vst [vmem:[#allocation9_spill] sm:$0xff] %v5962_v34  ;;  %v737_v6 = vrot.slane %v735_v17, 3  ;;  %v1084_v46 = vrot.slane %v735_v17, 4  ;;  %v5401_v17 = vld [vmem:[%s5553_s6 + $0x4c] sm:$0xff]  }
  0xf0   : > { %v5964_v40 = vpop.f32.mrf.mxu1  ;;  %v1082_v35 = vsel %vm1042_vm1, %v1077_v21, %v1081_v41  ;;  %v5981_v38 = vpop.f32.mrf.mxu3 }
  0xf1   : > { %v1085_v26 = vor.u32 %v1084_v46, %v1083_v22 }
  0xf3   : > { %v5968_v7 = vpop.f32.mrf.mxu0  ;;  %v1086_v54 = vsel %vm1042_vm1, %v1081_v41, %v1085_v26 }
  0xf6   : > { %v5974_v11 = vpop.f32.mrf.mxu2 }
  0xf7   : > { %7100 = vst [vmem:[#allocation10_spill] sm:$0xff] %v5974_v11 }
  0xf8   : > { %v5976_v47 = vpop.f32.mrf.mxu1  ;;  %v5992_v60 = vpop.f32.mrf.mxu3 }
  0xfb   : > { %v5983_v9 = vpop.f32.mrf.mxu0  ;;  %951 = vmatmul.bf16.gmra.mxu1 %v730_v42  ;;  %1248 = vmatmul.bf16.gmra.mxu2 %v1082_v35  ;;  %v1624_v42 = vrot.slane %v1622_v59, 3  ;;  %v1627_v35 = vrot.slane %v1625_v0, 4  ;;  %v741_v0 = vshrl.u32 %v5723_v27, 16 }
  0xfd   : > { %v1628_v63 = vor.u32 %v1627_v35, %v1624_v42  ;;  %v743_v42 = vrot.slane %v741_v0, 2 }
  0xfe   : > { %2084 = vmatmul.bf16.gmra.mxu0 %v5399_v4  ;;  %v5988_v57 = vpop.f32.mrf.mxu2  ;;  %v738_v4 = vor.u32 %v737_v6, %v734_v12  ;;  %v744_v12 = vshll.u32 %v5723_v27, 16 }
  0xff   : > { %7101 = vst [vmem:[#allocation11_spill] sm:$0xff] %v5988_v57  ;;  %v1629_v62 = vsel %vm1042_vm1, %v1619_v29, %v1628_v63  ;;  %v5268_v29 = vld [vmem:[%s5553_s6 + $0x68] sm:$0xff]  }
 0x100   : > { %v5990_v21 = vpop.f32.mrf.mxu1  ;;  %1838 = vmatmul.bf16.gmra.mxu3 %v1629_v62  ;;  %v739_v32 = vsel %vm650_vm2, %v729_v31, %v738_v4  ;;  %v6002_v57 = vpop.f32.mrf.mxu3  ;;  %v1631_v22 = vshrl.u32 %v5268_v29, 16  ;;  %v1634_v46 = vshll.u32 %v5268_v29, 16  ;;  %v746_v41 = vrot.slane %v744_v12, 3 }
 0x101   : > { %v1088_v11 = vrot.slane %v744_v12, 4 }
 0x102   : > { %v747_v12 = vor.u32 %v746_v41, %v743_v42 }
 0x103   : > { %v5994_v49 = vpop.f32.mrf.mxu0 }
 0x106   : > { %v5997_v52 = vpop.f32.mrf.mxu2 }
 0x107   : > { %7102 = vst [vmem:[#allocation12_spill] sm:$0xff] %v5997_v52  ;;  %v1087_v52 = vrot.slane %v741_v0, 3 }
 0x108   : > { %v917_v20 = vpop.f32.mrf.mxu1  ;;  %v6008_v34 = vpop.f32.mrf.mxu3 }
 0x109   : > { %v918_v62 = vadd.f32 %v917_v20, %v5848_v61  ;;  %v5060_v61 = vld [vmem:[%s7082_s1 + $0x198] sm:$0xff] }
 0x10a   : > { %v5068_v20 = vld [vmem:[%s7082_s1 + $0x1d8] sm:$0xff]  ;;  %3008 = vmatpush.bf16.msra.mxu2 %v5060_v61 }
 0x10b   : > { %v2050_v59 = vpop.f32.mrf.mxu0  ;;  %956 = vmatmul.bf16.gmra.mxu1 %v739_v32  ;;  %1253 = vmatmul.bf16.gmra.mxu2 %v1086_v54  ;;  %v1633_v32 = vrot.slane %v1631_v22, 3  ;;  %v1636_v54 = vrot.slane %v1634_v46, 4 }
 0x10c   : > { %3294 = vmatpush.bf16.msra.mxu3 %v5068_v20 }
 0x10e   : > { %2089 = vmatmul.bf16.gmra.mxu0 %v5401_v17  ;;  %v1214_v6 = vpop.f32.mrf.mxu2  ;;  %v1637_v17 = vor.u32 %v1636_v54, %v1633_v32  ;;  %v5403_v32 = vld [vmem:[%s5553_s6 + $0x54] sm:$0xff]  }
 0x10f   : > { %v1318_v31 = vadd.f32 %v1214_v6, %v918_v62  ;;  %v1089_v62 = vor.u32 %v1088_v11, %v1087_v52  ;;  %v5033_v11 = vld [vmem:[%s7082_s1 + $0x158] sm:$0xff]  ;;  %v5269_v52 = vld [vmem:[%s5553_s6 + $0x70] sm:$0xff]  }
 0x110   : > { %v919_v35 = vpop.f32.mrf.mxu1  ;;  %v1638_v29 = vsel %vm1042_vm1, %v1628_v63, %v1637_v17  ;;  %v6024_v54 = vpop.f32.mrf.mxu3  ;;  %v753_v63 = vshll.u32 %v5768_v58, 16  ;;  %2457 = vmatpush.bf16.msra.mxu1 %v5033_v11  ;;  %v1640_v41 = vshrl.u32 %v5269_v52, 16 }
 0x111   : > { %v1893_v23 = vadd.f32 %v5946_v36, %v1318_v31  ;;  %v920_v36 = vadd.f32 %v919_v35, %v5857_v50  ;;  %1843 = vmatmul.bf16.gmra.mxu3 %v1638_v29  ;;  %v748_v31 = vsel %vm650_vm2, %v738_v4, %v747_v12  ;;  %v1090_v5 = vsel %vm1042_vm1, %v1085_v26, %v1089_v62  ;;  %v5076_v26 = vld [vmem:[%s7082_s1 + $0x218] sm:$0xff] }
 0x112   : > { %v750_v50 = vshrl.u32 %v5768_v58, 16  ;;  %3632 = vmatpush.bf16.msra.mxu0 %v5076_v26  ;;  %v1643_v35 = vshll.u32 %v5269_v52, 16  ;;  %v755_v20 = vrot.slane %v753_v63, 3 }
 0x113   : > { %v2052_v27 = vpop.f32.mrf.mxu0  ;;  %v6017_v0 = vadd.f32 %v2050_v59, %v1893_v23 }
 0x114   : > { %v752_v61 = vrot.slane %v750_v50, 2  ;;  %v1091_v58 = vrot.slane %v750_v50, 3 }
 0x116   : > { %v1216_v6 = vpop.f32.mrf.mxu2 }
 0x117   : > { %v1319_v22 = vadd.f32 %v1216_v6, %v920_v36  ;;  %v1642_v6 = vrot.slane %v1640_v41, 3  ;;  %v5405_v41 = vld [vmem:[%s5553_s6 + $0x5c] sm:$0xff]  }
 0x118   : > { %v922_v46 = vpop.f32.mrf.mxu1  ;;  %v6039_v36 = vpop.f32.mrf.mxu3 }
 0x119   : > { %v1894_v23 = vadd.f32 %v5966_v15, %v1319_v22  ;;  %v923_v15 = vadd.f32 %v922_v46, %v5869_v33  ;;  %v1645_v22 = vrot.slane %v1643_v35, 4 }
 0x11b   : > { %v2055_v59 = vpop.f32.mrf.mxu0  ;;  %961 = vmatmul.bf16.gmra.mxu1 %v748_v31  ;;  %1258 = vmatmul.bf16.gmra.mxu2 %v1090_v5  ;;  %v6032_v4 = vadd.f32 %v2052_v27, %v1894_v23  ;;  %v1092_v27 = vrot.slane %v753_v63, 4  ;;  %v1646_v33 = vor.u32 %v1645_v22, %v1642_v6  ;;  %v756_v23 = vor.u32 %v755_v20, %v752_v61 }
 0x11d   : > { %v1093_v11 = vor.u32 %v1092_v27, %v1091_v58  ;;  %v1647_v26 = vsel %vm1042_vm1, %v1637_v17, %v1646_v33  ;;  %v5459_v17 = vld [vmem:[%s5553_s6 + $0x60] sm:$0xff]  ;;  %v5270_v58 = vld [vmem:[%s5553_s6 + $0x78] sm:$0xff]  }
 0x11e   : > { %2094 = vmatmul.bf16.gmra.mxu0 %v5403_v32  ;;  %v1219_v42 = vpop.f32.mrf.mxu2  ;;  %v759_v61 = vshrl.u32 %v5459_v17, 16  ;;  %v1649_v27 = vshrl.u32 %v5270_v58, 16 }
 0x11f   : > { %v1320_v5 = vadd.f32 %v1219_v42, %v923_v15  ;;  %v757_v42 = vsel %vm650_vm2, %v747_v12, %v756_v23 }
 0x120   : > { %v924_v29 = vpop.f32.mrf.mxu1  ;;  %v6049_v35 = vpop.f32.mrf.mxu3  ;;  %v761_v22 = vrot.slane %v759_v61, 2 }
 0x121   : > { %v1895_v31 = vadd.f32 %v5981_v38, %v1320_v5  ;;  %v925_v15 = vadd.f32 %v924_v29, %v5886_v51  ;;  %1848 = vmatmul.bf16.gmra.mxu3 %v1647_v26  ;;  %v1094_v38 = vsel %vm1042_vm1, %v1089_v62, %v1093_v11  ;;  %v762_v51 = vshll.u32 %v5459_v17, 16 }
 0x122   : > { %v1652_v62 = vshll.u32 %v5270_v58, 16 }
 0x123   : > { %v2057_v32 = vpop.f32.mrf.mxu0  ;;  %v6042_v46 = vadd.f32 %v2055_v59, %v1895_v31  ;;  %v764_v31 = vrot.slane %v762_v51, 3 }
 0x126   : > { %v1221_v50 = vpop.f32.mrf.mxu2 }
 0x127   : > { %v1321_v63 = vadd.f32 %v1221_v50, %v925_v15  ;;  %v1096_v15 = vrot.slane %v762_v51, 4 }
 0x128   : > { %v927_v52 = vpop.f32.mrf.mxu1  ;;  %v6057_v50 = vpop.f32.mrf.mxu3 }
 0x129   : > { %v1896_v59 = vadd.f32 %v5992_v60, %v1321_v63  ;;  %v928_v29 = vadd.f32 %v927_v52, %v5904_v3  ;;  %v1095_v60 = vrot.slane %v759_v61, 3  ;;  %v1651_v63 = vrot.slane %v1649_v27, 3  ;;  %v5407_v27 = vld [vmem:[%s5553_s6 + $0x64] sm:$0xff]  }
 0x12a   : > { %v765_v52 = vor.u32 %v764_v31, %v761_v22 }
 0x12b   : > { %v2060_v5 = vpop.f32.mrf.mxu0  ;;  %966 = vmatmul.bf16.gmra.mxu1 %v757_v42  ;;  %1263 = vmatmul.bf16.gmra.mxu2 %v1094_v38  ;;  %v6053_v20 = vadd.f32 %v2057_v32, %v1896_v59  ;;  %v1654_v42 = vrot.slane %v1652_v62, 4  ;;  %v1097_v59 = vor.u32 %v1096_v15, %v1095_v60 }
 0x12e   : > { %2099 = vmatmul.bf16.gmra.mxu0 %v5405_v41  ;;  %v1224_v12 = vpop.f32.mrf.mxu2  ;;  %v1655_v41 = vor.u32 %v1654_v42, %v1651_v63 }
 0x12f   : > { %v1322_v6 = vadd.f32 %v1224_v12, %v928_v29  ;;  %v766_v12 = vsel %vm650_vm2, %v756_v23, %v765_v52  ;;  %v5059_v23 = vld [vmem:[%s7082_s1 + $0x190] sm:$0xff] }
 0x130   : > { %v929_v26 = vpop.f32.mrf.mxu1  ;;  %v1656_v17 = vsel %vm1042_vm1, %v1646_v33, %v1655_v41  ;;  %v6067_v62 = vpop.f32.mrf.mxu3  ;;  %v5460_v33 = vld [vmem:[%s5553_s6 + $0x68] sm:$0xff]  ;;  %3009 = vmatpush.bf16.msra.mxu2 %v5059_v23 }
 0x131   : > { %v1897_v32 = vadd.f32 %v6002_v57, %v1322_v6  ;;  %v930_v29 = vadd.f32 %v929_v26, %v5915_v44  ;;  %1853 = vmatmul.bf16.gmra.mxu3 %v1656_v17  ;;  %v1098_v57 = vsel %vm1042_vm1, %v1093_v11, %v1097_v59  ;;  %v768_v22 = vshrl.u32 %v5460_v33, 16  ;;  %v5271_v26 = vld [vmem:[%s5553_s6 + $0x80] sm:$0xff]  }
 0x132   : > { %v771_v44 = vshll.u32 %v5460_v33, 16  ;;  %v1658_v15 = vshrl.u32 %v5271_v26, 16 }
 0x133   : > { %v2062_v38 = vpop.f32.mrf.mxu0  ;;  %v6060_v3 = vadd.f32 %v2060_v5, %v1897_v32  ;;  %v770_v42 = vrot.slane %v768_v22, 2 }
 0x134   : > { %v773_v32 = vrot.slane %v771_v44, 3 }
 0x136   : > { %v1226_v61 = vpop.f32.mrf.mxu2 }
 0x137   : > { %v1323_v51 = vadd.f32 %v1226_v61, %v930_v29  ;;  %v1099_v29 = vrot.slane %v768_v22, 3  ;;  %v1100_v61 = vrot.slane %v771_v44, 4  ;;  %v774_v22 = vor.u32 %v773_v32, %v770_v42 }
 0x138   : > { %v932_v58 = vpop.f32.mrf.mxu1 }
 0x139   : > { %v1898_v5 = vadd.f32 %v6008_v34, %v1323_v51  ;;  %v933_v11 = vadd.f32 %v932_v58, %v5927_v13  ;;  %v1661_v34 = vshll.u32 %v5271_v26, 16  ;;  %v1660_v51 = vrot.slane %v1658_v15, 3  ;;  %v5067_v13 = vld [vmem:[%s7082_s1 + $0x1d0] sm:$0xff] }
 0x13a   : > { %v5032_v58 = vld [vmem:[%s7082_s1 + $0x150] sm:$0xff]  ;;  %3295 = vmatpush.bf16.msra.mxu3 %v5067_v13  ;;  %v1101_v44 = vor.u32 %v1100_v61, %v1099_v29  ;;  %v775_v15 = vsel %vm650_vm2, %v765_v52, %v774_v22 }
 0x13b   : > { %v2065_v6 = vpop.f32.mrf.mxu0  ;;  %971 = vmatmul.bf16.gmra.mxu1 %v766_v12  ;;  %1268 = vmatmul.bf16.gmra.mxu2 %v1098_v57  ;;  %v6071_v31 = vadd.f32 %v2062_v38, %v1898_v5  ;;  %v6078_v38 = vpop.f32.mrf.mxu3  ;;  %v1663_v12 = vrot.slane %v1661_v34, 4 }
 0x13c   : > { %2458 = vmatpush.bf16.msra.mxu1 %v5032_v58  ;;  %v1102_v34 = vsel %vm1042_vm1, %v1097_v59, %v1101_v44  ;;  %v5272_v59 = vld [vmem:[%s5553_s6 + $0x88] sm:$0xff]  }
 0x13d   : > { %v1664_v5 = vor.u32 %v1663_v12, %v1660_v51  ;;  %v1667_v12 = vshrl.u32 %v5272_v59, 16 }
 0x13e   : > { %2104 = vmatmul.bf16.gmra.mxu0 %v5407_v27  ;;  %v1229_v60 = vpop.f32.mrf.mxu2 }
 0x13f   : > { %v1324_v63 = vadd.f32 %v1229_v60, %v933_v11 }
 0x140   : > { %v934_v17 = vpop.f32.mrf.mxu1 }
 0x141   : > { %v1899_v57 = vadd.f32 %v6024_v54, %v1324_v63  ;;  %v1665_v54 = vsel %vm1042_vm1, %v1655_v41, %v1664_v5  ;;  %v935_v23 = vadd.f32 %v934_v17, %v5936_v8  ;;  %v5409_v63 = vld [vmem:[%s5553_s6 + $0x6c] sm:$0xff]  }
 0x142   : > { %1858 = vmatmul.bf16.gmra.mxu3 %v1665_v54  ;;  %v5075_v41 = vld [vmem:[%s7082_s1 + $0x210] sm:$0xff] }
 0x143   : > { %v2067_v27 = vpop.f32.mrf.mxu0  ;;  %v6087_v33 = vadd.f32 %v2065_v6, %v1899_v57  ;;  %v6094_v51 = vpop.f32.mrf.mxu3  ;;  %v5461_v8 = vld [vmem:[%s5553_s6 + $0x70] sm:$0xff]  ;;  %3633 = vmatpush.bf16.msra.mxu0 %v5075_v41 }
 0x144   : > { %v777_v32 = vshrl.u32 %v5461_v8, 16  ;;  %v780_v17 = vshll.u32 %v5461_v8, 16 }
 0x146   : > { %v1231_v11 = vpop.f32.mrf.mxu2  ;;  %v779_v13 = vrot.slane %v777_v32, 2  ;;  %v782_v58 = vrot.slane %v780_v17, 3 }
 0x147   : > { %v1325_v26 = vadd.f32 %v1231_v11, %v935_v23  ;;  %v1103_v23 = vrot.slane %v777_v32, 3  ;;  %v1104_v11 = vrot.slane %v780_v17, 4 }
 0x148   : > { %v937_v60 = vpop.f32.mrf.mxu1 }
 0x149   : > { %v1900_v6 = vadd.f32 %v6039_v36, %v1325_v26  ;;  %v938_v52 = vadd.f32 %v937_v60, %v5948_v45  ;;  %v1670_v36 = vshll.u32 %v5272_v59, 16  ;;  %v1105_v41 = vor.u32 %v1104_v11, %v1103_v23  ;;  %v5273_v23 = vld [vmem:[%s5553_s6 + $0x90] sm:$0xff]  }
 0x14a   : > { %v1676_v11 = vshrl.u32 %v5273_v23, 16 }
 0x14b   : > { %v2070_v42 = vpop.f32.mrf.mxu0  ;;  %976 = vmatmul.bf16.gmra.mxu1 %v775_v15  ;;  %1273 = vmatmul.bf16.gmra.mxu2 %v1102_v34  ;;  %v6101_v29 = vadd.f32 %v2067_v27, %v1900_v6  ;;  %v6105_v26 = vpop.f32.mrf.mxu3  ;;  %v1669_v15 = vrot.slane %v1667_v12, 3  ;;  %v1672_v27 = vrot.slane %v1670_v36, 4  ;;  %v783_v6 = vor.u32 %v782_v58, %v779_v13  ;;  %v5411_v12 = vld [vmem:[%s5553_s6 + $0x74] sm:$0xff]  }
 0x14d   : > { %v1673_v45 = vor.u32 %v1672_v27, %v1669_v15 }
 0x14e   : > { %2109 = vmatmul.bf16.gmra.mxu0 %v5409_v63  ;;  %v1234_v61 = vpop.f32.mrf.mxu2 }
 0x14f   : > { %v1326_v57 = vadd.f32 %v1234_v61, %v938_v52  ;;  %v1674_v8 = vsel %vm1042_vm1, %v1664_v5, %v1673_v45  ;;  %v784_v61 = vsel %vm650_vm2, %v774_v22, %v783_v6  ;;  %v5462_v5 = vld [vmem:[%s5553_s6 + $0x78] sm:$0xff] }
 0x150   : > { %v939_v54 = vpop.f32.mrf.mxu1  ;;  %v786_v13 = vshrl.u32 %v5462_v5, 16 }
 0x151   : > { %v1901_v34 = vadd.f32 %v6049_v35, %v1326_v57  ;;  %v940_v52 = vadd.f32 %v939_v54, %v5968_v7  ;;  %v1106_v35 = vsel %vm1042_vm1, %v1101_v44, %v1105_v41  ;;  %v789_v7 = vshll.u32 %v5462_v5, 16 }
 0x152   : > { %1863 = vmatmul.bf16.gmra.mxu3 %v1674_v8  ;;  %v1679_v44 = vshll.u32 %v5273_v23, 16  ;;  %v788_v27 = vrot.slane %v786_v13, 2 }
 0x153   : > { %v2072_v63 = vpop.f32.mrf.mxu0  ;;  %v6108_v60 = vadd.f32 %v2070_v42, %v1901_v34  ;;  %v6115_v36 = vpop.f32.mrf.mxu3  ;;  %v791_v34 = vrot.slane %v789_v7, 3 }
 0x156   : > { %v1236_v32 = vpop.f32.mrf.mxu2 }
 0x157   : > { %v1327_v17 = vadd.f32 %v1236_v32, %v940_v52  ;;  %v1108_v52 = vrot.slane %v789_v7, 4 }
 0x158   : > { %v942_v59 = vpop.f32.mrf.mxu1 }
 0x159   : > { %v1902_v42 = vadd.f32 %v6057_v50, %v1327_v17  ;;  %v943_v54 = vadd.f32 %v942_v59, %v5983_v9  ;;  %v1107_v50 = vrot.slane %v786_v13, 3  ;;  %v1678_v17 = vrot.slane %v1676_v11, 3 }
 0x15a   : > { %v792_v59 = vor.u32 %v791_v34, %v788_v27  ;;  %v5031_v34 = vld [vmem:[%s7082_s1 + $0x148] sm:$0xff] }
 0x15b   : > { %v2075_v57 = vpop.f32.mrf.mxu0  ;;  %981 = vmatmul.bf16.gmra.mxu1 %v784_v61  ;;  %1278 = vmatmul.bf16.gmra.mxu2 %v1106_v35  ;;  %v6119_v58 = vadd.f32 %v2072_v63, %v1902_v42  ;;  %v6123_v32 = vpop.f32.mrf.mxu3  ;;  %v1681_v61 = vrot.slane %v1679_v44, 4  ;;  %v1109_v42 = vor.u32 %v1108_v52, %v1107_v50  ;;  %v5274_v50 = vld [vmem:[%s5553_s6 + $0x98] sm:$0xff]  }
 0x15c   : > { %2459 = vmatpush.bf16.msra.mxu1 %v5031_v34 }
 0x15d   : > { %v1110_v11 = vsel %vm1042_vm1, %v1105_v41, %v1109_v42 }
 0x15e   : > { %2114 = vmatmul.bf16.gmra.mxu0 %v5411_v12  ;;  %v1239_v22 = vpop.f32.mrf.mxu2  ;;  %v1682_v12 = vor.u32 %v1681_v61, %v1678_v17  ;;  %v1685_v17 = vshrl.u32 %v5274_v50, 16  ;;  %v1688_v61 = vshll.u32 %v5274_v50, 16 }
 0x15f   : > { %v1328_v15 = vadd.f32 %v1239_v22, %v943_v54  ;;  %v793_v22 = vsel %vm650_vm2, %v783_v6, %v792_v59  ;;  %v5463_v6 = vld [vmem:[%s5553_s6 + $0x80] sm:$0xff] }
 0x160   : > { %v944_v8 = vpop.f32.mrf.mxu1  ;;  %v1683_v5 = vsel %vm1042_vm1, %v1673_v45, %v1682_v12  ;;  %v5058_v45 = vld [vmem:[%s7082_s1 + $0x188] sm:$0xff]  ;;  %v795_v27 = vshrl.u32 %v5463_v6, 16  ;;  %v798_v41 = vshll.u32 %v5463_v6, 16 }
 0x161   : > { %v1903_v63 = vadd.f32 %v6067_v62, %v1328_v15  ;;  %v945_v54 = vadd.f32 %v944_v8, %v5994_v49  ;;  %v5413_v62 = vld [vmem:[%s5553_s6 + $0x7c] sm:$0xff]   ;;  %v5066_v49 = vld [vmem:[%s7082_s1 + $0x1c8] sm:$0xff]  ;;  %3010 = vmatpush.bf16.msra.mxu2 %v5058_v45 }
 0x162   : > { %1868 = vmatmul.bf16.gmra.mxu3 %v1683_v5  ;;  %v797_v5 = vrot.slane %v795_v27, 2 }
 0x163   : > { %v2077_v35 = vpop.f32.mrf.mxu0  ;;  %v6126_v9 = vadd.f32 %v2075_v57, %v1903_v63  ;;  %v6133_v44 = vpop.f32.mrf.mxu3  ;;  %3296 = vmatpush.bf16.msra.mxu3 %v5066_v49 }
 0x166   : > { %v1241_v13 = vpop.f32.mrf.mxu2 }
 0x167   : > { %v1329_v7 = vadd.f32 %v1241_v13, %v945_v54  ;;  %v800_v54 = vrot.slane %v798_v41, 3 }
 0x168   : > { %v947_v23 = vpop.f32.mrf.mxu1 }
 0x169   : > { %v1904_v57 = vadd.f32 %v6078_v38, %v1329_v7  ;;  %v948_v8 = vadd.f32 %v947_v23, %v5843_v55  ;;  %v1111_v7 = vrot.slane %v795_v27, 3  ;;  %v5074_v23 = vld [vmem:[%s7082_s1 + $0x208] sm:$0xff]  ;;  %v801_v6 = vor.u32 %v800_v54, %v797_v5 }
 0x16a   : > { %3634 = vmatpush.bf16.msra.mxu0 %v5074_v23 }
 0x16b   : > { %v2080_v15 = vpop.f32.mrf.mxu0  ;;  %986 = vmatmul.bf16.gmra.mxu1 %v793_v22  ;;  %1283 = vmatmul.bf16.gmra.mxu2 %v1110_v11  ;;  %v6146_v38 = vadd.f32 %v2077_v35, %v1904_v57  ;;  %v1112_v22 = vrot.slane %v798_v41, 4  ;;  %v6150_v11 = vpop.f32.mrf.mxu3  ;;  %v1687_v35 = vrot.slane %v1685_v17, 3  ;;  %v1690_v57 = vrot.slane %v1688_v61, 4  ;;  %v5415_v61 = vld [vmem:[%s5553_s6 + $0x84] sm:$0xff]  }
 0x16d   : > { %v1691_v45 = vor.u32 %v1690_v57, %v1687_v35  ;;  %v1113_v27 = vor.u32 %v1112_v22, %v1111_v7  ;;  %v6171_v22 = vld [vmem:[%s5553_s6 + $0xa0] sm:$0xff]  }
 0x16e   : > { %2119 = vmatmul.bf16.gmra.mxu0 %v5413_v62  ;;  %v1244_v52 = vpop.f32.mrf.mxu2  ;;  %v1697_v35 = vshll.u32 %v6171_v22, 16 }
 0x16f   : > { %v1330_v63 = vadd.f32 %v1244_v52, %v948_v8  ;;  %v1692_v41 = vsel %vm1042_vm1, %v1682_v12, %v1691_v45  ;;  %v802_v52 = vsel %vm650_vm2, %v792_v59, %v801_v6  ;;  %v1114_v17 = vsel %vm1042_vm1, %v1109_v42, %v1113_v27  ;;  %v5464_v12 = vld [vmem:[%s5553_s6 + $0x88] sm:$0xff] }
 0x170   : > { %v949_v13 = vpop.f32.mrf.mxu1  ;;  %v804_v54 = vshrl.u32 %v5464_v12, 16  ;;  %v1694_v42 = vshrl.u32 %v6171_v22, 16 }
 0x171   : > { %v1905_v62 = vadd.f32 %v6094_v51, %v1330_v63  ;;  %v950_v34 = vadd.f32 %v949_v13, %v5855_v14  ;;  %v807_v14 = vshll.u32 %v5464_v12, 16 }
 0x172   : > { %1873 = vmatmul.bf16.gmra.mxu3 %v1692_v41  ;;  %v1115_v41 = vrot.slane %v804_v54, 3 }
 0x173   : > { %v2082_v55 = vpop.f32.mrf.mxu0  ;;  %v6156_v49 = vadd.f32 %v2080_v15, %v1905_v62  ;;  %v6163_v63 = vpop.f32.mrf.mxu3  ;;  %v809_v62 = vrot.slane %v807_v14, 3 }
 0x176   : > { %v1246_v8 = vpop.f32.mrf.mxu2 }
 0x177   : > { %v1331_v51 = vadd.f32 %v1246_v8, %v950_v34  ;;  %v1116_v34 = vrot.slane %v807_v14, 4 }
 0x178   : > { %v952_v50 = vpop.f32.mrf.mxu1 }
 0x179   : > { %v1906_v15 = vadd.f32 %v6105_v26, %v1331_v51  ;;  %v953_v7 = vadd.f32 %v952_v50, %v5862_v30  ;;  %v806_v26 = vrot.slane %v804_v54, 2  ;;  %v1699_v51 = vrot.slane %v1697_v35, 4  ;;  %v5417_v35 = vld [vmem:[%s5553_s6 + $0x8c] sm:$0xff]  }
 0x17b   : > { %v2085_v5 = vpop.f32.mrf.mxu0  ;;  %991 = vmatmul.bf16.gmra.mxu1 %v802_v52  ;;  %1288 = vmatmul.bf16.gmra.mxu2 %v1114_v17  ;;  %v6167_v13 = vadd.f32 %v2082_v55, %v1906_v15  ;;  %v6175_v8 = vpop.f32.mrf.mxu3  ;;  %v1696_v55 = vrot.slane %v1694_v42, 3  ;;  %v1117_v15 = vor.u32 %v1116_v34, %v1115_v41  ;;  %v5465_v41 = vld [vmem:[%s5553_s6 + $0x90] sm:$0xff] }
 0x17c   : > { %v813_v34 = vshrl.u32 %v5465_v41, 16 }
 0x17d   : > { %v1700_v52 = vor.u32 %v1699_v51, %v1696_v55 }
 0x17e   : > { %2124 = vmatmul.bf16.gmra.mxu0 %v5415_v61  ;;  %v1249_v59 = vpop.f32.mrf.mxu2  ;;  %v810_v61 = vor.u32 %v809_v62, %v806_v26  ;;  %v6189_v62 = vld [vmem:[%s5553_s6 + $0xa8] sm:$0xf] }
 0x17f   : > { %v1332_v57 = vadd.f32 %v1249_v59, %v953_v7  ;;  %v1701_v12 = vsel %vm1042_vm1, %v1691_v45, %v1700_v52  ;;  %v1400_v45 = vld [vmem:[%s5553_s6 + $0xac] sm:$0x3] }
 0x180   : > { %v954_v23 = vpop.f32.mrf.mxu1  ;;  %v811_v42 = vsel %vm650_vm2, %v801_v6, %v810_v61  ;;  %v816_v6 = vshll.u32 %v5465_v41, 16 }
 0x181   : > { %v1907_v30 = vadd.f32 %v6115_v36, %v1332_v57  ;;  %v955_v54 = vadd.f32 %v954_v23, %v5879_v48  ;;  %v1118_v36 = vsel %vm1042_vm1, %v1113_v27, %v1117_v15  ;;  %v7088_v48 = vunpack.c.l.b16 %v6189_v62 }
 0x182   : > { %1878 = vmatmul.bf16.gmra.mxu3 %v1701_v12  ;;  %v6193_v23 = vunpack.c.l.b16 %v1400_v45  ;;  %v1120_v45 = vrot.slane %v816_v6, 4 }
 0x183   : > { %v2087_v50 = vpop.f32.mrf.mxu0  ;;  %v6178_v17 = vadd.f32 %v2085_v5, %v1907_v30  ;;  %v6185_v57 = vpop.f32.mrf.mxu3 }
 0x185   : > { %7103 = vst [vmem:[#allocation13_spill] sm:$0xff] %v6178_v17 }
 0x186   : > { %v1251_v14 = vpop.f32.mrf.mxu2 }
 0x187   : > { %v1333_v7 = vadd.f32 %v1251_v14, %v955_v54  ;;  %v815_v14 = vrot.slane %v813_v34, 2 }
 0x188   : > { %v957_v59 = vpop.f32.mrf.mxu1 }
 0x189   : > { %v1908_v5 = vadd.f32 %v6123_v32, %v1333_v7  ;;  %v1522_v32 = vpack.c.b16 %v6193_v23, %v7088_v48  ;;  %v958_v27 = vadd.f32 %v957_v59, %v5894_v18  ;;  %v818_v7 = vrot.slane %v816_v6, 3  ;;  %v5057_v18 = vld [vmem:[%s7082_s1 + $0x180] sm:$0xff] }
 0x18a   : > { %v5065_v59 = vld [vmem:[%s7082_s1 + $0x1c0] sm:$0xff]  ;;  %3011 = vmatpush.bf16.msra.mxu2 %v5057_v18 }
 0x18b   : > { %v2090_v26 = vpop.f32.mrf.mxu0  ;;  %996 = vmatmul.bf16.gmra.mxu1 %v811_v42  ;;  %1293 = vmatmul.bf16.gmra.mxu2 %v1118_v36  ;;  %v6196_v55 = vadd.f32 %v2087_v50, %v1908_v5  ;;  %v1703_v30 = vshrl.u32 %v1522_v32, 16  ;;  %v1706_v12 = vshll.u32 %v1522_v32, 16  ;;  %v1119_v36 = vrot.slane %v813_v34, 3  ;;  %v6202_v17 = vpop.f32.mrf.mxu3  ;;  %v5030_v34 = vld [vmem:[%s7082_s1 + $0x140] sm:$0xff] }
 0x18c   : > { %3297 = vmatpush.bf16.msra.mxu3 %v5065_v59  ;;  %2460 = vmatpush.bf16.msra.mxu1 %v5030_v34 }
 0x18d   : > { %7104 = vst [vmem:[#allocation14_spill] sm:$0xff] %v6196_v55  ;;  %v1705_v50 = vrot.slane %v1703_v30, 3  ;;  %v1708_v5 = vrot.slane %v1706_v12, 4 }
 0x18e   : > { %2129 = vmatmul.bf16.gmra.mxu0 %v5417_v35  ;;  %v1254_v51 = vpop.f32.mrf.mxu2 }
 0x18f   : > { %v1334_v54 = vadd.f32 %v1254_v51, %v958_v27  ;;  %v1709_v6 = vor.u32 %v1708_v5, %v1705_v50  ;;  %v1121_v27 = vor.u32 %v1120_v45, %v1119_v36  ;;  %v5419_v5 = vld [vmem:[%s5553_s6 + $0x94] sm:$0xff]  }
 0x190   : > { %v959_v42 = vpop.f32.mrf.mxu1 }
 0x191   : > { %v1909_v35 = vadd.f32 %v6133_v44, %v1334_v54  ;;  %v819_v44 = vor.u32 %v818_v7, %v815_v14  ;;  %v1710_v51 = vsel %vm1042_vm1, %v1700_v52, %v1709_v6  ;;  %v960_v30 = vadd.f32 %v959_v42, %v5911_v24  ;;  %v5073_v24 = vld [vmem:[%s7082_s1 + $0x200] sm:$0xff]  ;;  %v5466_v7 = vld [vmem:[%s5553_s6 + $0x98] sm:$0xff] }
 0x192   : > { %1883 = vmatmul.bf16.gmra.mxu3 %v1710_v51  ;;  %v1122_v50 = vsel %vm1042_vm1, %v1117_v15, %v1121_v27  ;;  %v825_v42 = vshll.u32 %v5466_v7, 16  ;;  %3635 = vmatpush.bf16.msra.mxu0 %v5073_v24 }
 0x193   : > { %v2092_v41 = vpop.f32.mrf.mxu0  ;;  %v6214_v32 = vadd.f32 %v2090_v26, %v1909_v35  ;;  %v820_v55 = vsel %vm650_vm2, %v810_v61, %v819_v44  ;;  %v822_v61 = vshrl.u32 %v5466_v7, 16 }
 0x194   : > { %v6221_v18 = vpop.f32.mrf.mxu3  ;;  %v1124_v34 = vrot.slane %v825_v42, 4 }
 0x195   : > { %v824_v35 = vrot.slane %v822_v61, 2  ;;  %v1123_v59 = vrot.slane %v822_v61, 3 }
 0x196   : > { %v1256_v12 = vpop.f32.mrf.mxu2 }
 0x197   : > { %v1335_v54 = vadd.f32 %v1256_v12, %v960_v30  ;;  %v1021_v12 = vld [vmem:[%s5553_s6 + $0xa4] sm:$0x3] }
 0x198   : > { %v962_v48 = vpop.f32.mrf.mxu1 }
 0x199   : > { %v1910_v26 = vadd.f32 %v6150_v11, %v1335_v54  ;;  %v963_v15 = vadd.f32 %v962_v48, %v5920_v43  ;;  %v1040_v43 = vunpack.c.l.b16 %v1021_v12 }
 0x19b   : > { %v2095_v14 = vpop.f32.mrf.mxu0  ;;  %1001 = vmatmul.bf16.gmra.mxu1 %v820_v55  ;;  %1298 = vmatmul.bf16.gmra.mxu2 %v1122_v50  ;;  %v6227_v52 = vadd.f32 %v2092_v41, %v1910_v26  ;;  %v827_v55 = vrot.slane %v825_v42, 3 }
 0x19c   : > { %v6231_v51 = vpop.f32.mrf.mxu3 }
 0x19d   : > { %v828_v50 = vor.u32 %v827_v55, %v824_v35  ;;  %v6252_v55 = vld [vmem:[%s5553_s6 + $0x14] sm:$0xff]  }
 0x19e   : > { %2134 = vmatmul.bf16.gmra.mxu0 %v5419_v5  ;;  %v1259_v36 = vpop.f32.mrf.mxu2  ;;  %v1125_v5 = vor.u32 %v1124_v34, %v1123_v59  ;;  %v5489_v59 = vld [vmem:[%s5553_s6 + $0x14] sm:$0xf0]  ;;  %v5490_v34 = vld [vmem:[%s5553_s6 + $0x14] sm:$0xe] }
 0x19f   : > { %v1336_v45 = vadd.f32 %v1259_v36, %v963_v15  ;;  %v829_v61 = vsel %vm650_vm2, %v819_v44, %v828_v50  ;;  %v7105_v15 = vunpack.c.l.b16 %v5670_v56  ;;  %v834_v44 = vshll.u32 %v5689_v1, 16 }
 0x1a0   : > { %v964_v11 = vpop.f32.mrf.mxu1  ;;  %v1126_v42 = vsel %vm1042_vm1, %v1121_v27, %v1125_v5 }
 0x1a1   : > { %v1911_v41 = vadd.f32 %v6163_v63, %v1336_v45  ;;  %v965_v48 = vadd.f32 %v964_v11, %v5934_v53  ;;  %v5420_v63 = vld [vmem:[%s5553_s6 + $0x9c] sm:$0xff]  }
 0x1a2   : > { %1888 = vmatmul.bf16.gmra.mxu3 %v1709_v6  ;;  %v831_v6 = vshrl.u32 %v5689_v1, 16  ;;  %v6261_v1 = vor.u32 %v5490_v34, %v5489_v59 }
 0x1a3   : > { %v2097_v30 = vpop.f32.mrf.mxu0  ;;  %v6235_v54 = vadd.f32 %v2095_v14, %v1911_v41  ;;  %v1041_v14 = vpack.c.b16 %v1040_v43, %v7105_v15 }
 0x1a4   : > { %v6243_v36 = vpop.f32.mrf.mxu3  ;;  %v833_v12 = vrot.slane %v831_v6, 2  ;;  %v5156_v6 = vunpack.c.h.b16 %v6171_v22 }
 0x1a5   : > { %v1128_v27 = vshrl.u32 %v1041_v14, 16  ;;  %v1131_v35 = vshll.u32 %v1041_v14, 16 }
 0x1a6   : > { %v1261_v26 = vpop.f32.mrf.mxu2 }
 0x1a7   : > { %v1337_v24 = vadd.f32 %v1261_v26, %v965_v48  ;;  %v836_v48 = vrot.slane %v834_v44, 3  ;;  %v1130_v26 = vrot.slane %v1128_v27, 3 }
 0x1a8   : > { %v967_v7 = vpop.f32.mrf.mxu1 }
 0x1a9   : > { %v1912_v45 = vadd.f32 %v6175_v8, %v1337_v24  ;;  %v968_v56 = vadd.f32 %v967_v7, %v5941_v25  ;;  %v3180_v7 = vrot.slane %v6261_v1, 1  ;;  %v837_v14 = vor.u32 %v836_v48, %v833_v12 }
 0x1ab   : > { %v2100_v53 = vpop.f32.mrf.mxu0  ;;  %1006 = vmatmul.bf16.gmra.mxu1 %v829_v61  ;;  %1303 = vmatmul.bf16.gmra.mxu2 %v1126_v42  ;;  %v6247_v11 = vadd.f32 %v2097_v30, %v1912_v45  ;;  %v1133_v30 = vrot.slane %v1131_v35, 4  ;;  %v6259_v61 = vld [vmem:[%s5553_s6 + $0x1c] sm:$0xff]  ;;  %v838_v59 = vsel %vm650_vm2, %v828_v50, %v837_v14 }
 0x1ac   : > { %v6256_v24 = vpop.f32.mrf.mxu3 }
 0x1ad   : > { %v1134_v45 = vor.u32 %v1133_v30, %v1130_v26 }
 0x1ae   : > { %2139 = vmatmul.bf16.gmra.mxu0 %v5420_v63  ;;  %v1264_v8 = vpop.f32.mrf.mxu2  ;;  %v3181_v63 = vrot.slane %v6259_v61, 1 }
 0x1af   : > { %v1338_v41 = vadd.f32 %v1264_v8, %v968_v56  ;;  %v1135_v34 = vsel %vm1042_vm1, %v1125_v5, %v1134_v45 }
 0x1b0   : > { %v969_v43 = vpop.f32.mrf.mxu1  ;;  %v3182_v44 = vsel %vm3179_vm3, %v3180_v7, %v3181_v63 }
 0x1b1   : > { %v1913_v42 = vadd.f32 %v6185_v57, %v1338_v41  ;;  %v970_v27 = vadd.f32 %v969_v43, %v5964_v40 }
 0x1b2   : > { %3298 = vmatmul.bf16.vlgmr.msra.gmra.mxu3 %v3182_v44 }
 0x1b3   : > { %v2102_v25 = vpop.f32.mrf.mxu0  ;;  %v6266_v15 = vadd.f32 %v2100_v53, %v1913_v42  ;;  %v7106_v53 = vunpack.c.l.b16 %v6189_v62  ;;  %v6287_v62 = vld [vmem:[%s5553_s6 + $0x24] sm:$0xff] }
 0x1b4   : > { %v6277_v41 = vpop.f32.mrf.mxu3 }
 0x1b5   : > { %v6275_v8 = vpack.c.b16 %v7106_v53, %v5156_v6  ;;  %v2776_v53 = vshll.u32 %v6259_v61, 16 }
 0x1b6   : > { %v1266_v35 = vpop.f32.mrf.mxu2 }
 0x1b7   : > { %v1339_v56 = vadd.f32 %v1266_v35, %v970_v27  ;;  %v1971_v35 = vpack.c.b16 %v6193_v23, %v6193_v23 }
 0x1b8   : > { %v972_v57 = vpop.f32.mrf.mxu1 }
 0x1b9   : > { %v1914_v22 = vadd.f32 %v6202_v17, %v1339_v56  ;;  %v973_v43 = vadd.f32 %v972_v57, %v5976_v47  ;;  %v3183_v17 = vrot.slane %v6287_v62, 1 }
 0x1bb   : > { %v2105_v12 = vpop.f32.mrf.mxu0  ;;  %1011 = vmatmul.bf16.gmra.mxu1 %v838_v59  ;;  %1308 = vmatmul.bf16.gmra.mxu2 %v1135_v34  ;;  %v6280_v40 = vadd.f32 %v2102_v25, %v1914_v22  ;;  %v3184_v25 = vsel %vm3179_vm3, %v3181_v63, %v3183_v17  ;;  %v2220_v59 = vshll.u32 %v5817_v19, 16  ;;  %v7089_v34 = vshrl.u32 %v6259_v61, 16 }
 0x1bc   : > { %v6284_v26 = vpop.f32.mrf.mxu3  ;;  %v3470_v22 = vshll.u32 %v6261_v1, 16 }
 0x1be   : > { %2144 = vmatmul.bf16.gmra.mxu0 %v6275_v8  ;;  %v1269_v50 = vpop.f32.mrf.mxu2 }
 0x1bf   : > { %v1340_v48 = vadd.f32 %v1269_v50, %v973_v43  ;;  %v6311_v43 = vld [vmem:[%s5553_s6 + $0x14] sm:$0xff]  }
 0x1c0   : > { %v974_v5 = vpop.f32.mrf.mxu1  ;;  %v2225_v50 = vshll.u32 %v6311_v43, 16 }
 0x1c1   : > { %v1915_v30 = vadd.f32 %v6221_v18, %v1340_v48  ;;  %v975_v6 = vadd.f32 %v974_v5, %v5990_v21  ;;  %v2771_v21 = vshll.u32 %v6252_v55, 16 }
 0x1c2   : > { %3303 = vmatmul.bf16.gmra.mxu3 %v3184_v25 }
 0x1c3   : > { %v2107_v42 = vpop.f32.mrf.mxu0  ;;  %v6291_v7 = vadd.f32 %v2105_v12, %v1915_v30  ;;  %v2769_v30 = vshrl.u32 %v6252_v55, 16  ;;  %v3782_v55 = vld [vmem:[%s7083_s2] sm:$0xff] }
 0x1c5   : > { %7107 = vst [vmem:[#allocation15_spill] sm:$0xff] %v6291_v7  ;;  %v6297_v56 = vpop.f32.mrf.mxu3 }
 0x1c6   : > { %v1271_v47 = vpop.f32.mrf.mxu2 }
 0x1c7   : > { %v1341_v44 = vadd.f32 %v1271_v47, %v975_v6  ;;  %v6320_v6 = vld [vmem:[%s5553_s6 + $0x2c] sm:$0xff] }
 0x1c8   : > { %v977_v27 = vpop.f32.mrf.mxu1 }
 0x1c9   : > { %v1916_v18 = vadd.f32 %v6231_v51, %v1341_v44  ;;  %v978_v23 = vadd.f32 %v977_v27, %v5853_v16  ;;  %v3467_v51 = vshrl.u32 %v6261_v1, 16  ;;  %v3474_v16 = vrot.slane %v7089_v34, 1 }
 0x1ca   : > { %v3472_v44 = vrot.slane %v3470_v22, 2  ;;  %v3475_v27 = vrot.slane %v2776_v53, 2 }
 0x1cb   : > { %v2110_v57 = vpop.f32.mrf.mxu0  ;;  %1016 = vmatmul.bf16.gmra.mxu1 %v837_v14  ;;  %1313 = vmatmul.bf16.gmra.mxu2 %v1134_v45  ;;  %v6301_v63 = vadd.f32 %v2107_v42, %v1916_v18  ;;  %v2218_v14 = vshrl.u32 %v5817_v19, 16  ;;  %v2222_v45 = vrot.slane %v2220_v59, 1  ;;  %v2773_v42 = vrot.slane %v2771_v21, 1 }
 0x1cc   : > { %v3469_v47 = vrot.slane %v3467_v51, 1  ;;  %v3185_v18 = vrot.slane %v6320_v6, 1  ;;  %v2227_v59 = vrot.slane %v2225_v50, 1  ;;  %v3476_v34 = vor.u32 %v3475_v27, %v3474_v16 }
 0x1cd   : > { %7108 = vst [vmem:[#allocation16_spill] sm:$0xff] %v6301_v63  ;;  %v6317_v25 = vpop.f32.mrf.mxu3  ;;  %v2229_v16 = vshrl.u32 %v6311_v43, 16 }
 0x1ce   : > { %2149 = vmatmul.bf16.gmra.mxu0 %v1971_v35  ;;  %v1274_v12 = vpop.f32.mrf.mxu2  ;;  %v5496_v35 = vmov 0   ;;  %v3186_v51 = vsel %vm3179_vm3, %v3183_v17, %v3185_v18 }
 0x1cf   : > { %v1342_v48 = vadd.f32 %v1274_v12, %v978_v23  ;;  %5456 = vset.pattern.permute.xlu0 %v5496_v35  ;;  %5457 = vset.pattern.permute.xlu1 %v5496_v35  ;;  %v2223_v23 = vor.u32 %v2222_v45, %v2218_v14  ;;  %v2778_v12 = vrot.slane %v2776_v53, 1  ;;  %v3783_v14 = vld [vmem:[%s7083_s2 + $0x8] sm:$0xff]  ;;  %v2231_v43 = vor.u32 %v2229_v16, %v2227_v59 }
 0x1d0   : > { %v979_v5 = vpop.f32.mrf.mxu1  ;;  %3825 = vperm.xlu0 %5456, %v3782_v55   ;;  %5458 = vset.pattern.permute.xlu2 %v5496_v35 }
 0x1d1   : > { %v1917_v1 = vadd.f32 %v6243_v36, %v1342_v48  ;;  %v2774_v36 = vor.u32 %v2773_v42, %v2769_v30  ;;  %v980_v22 = vadd.f32 %v979_v5, %v5860_v28  ;;  %v3473_v48 = vor.u32 %v3472_v44, %v3469_v47  ;;  %v5468_v47 = vld [vmem:[%s5553_s6 + $0x1c] sm:$0xff]  }
 0x1d2   : > { %3308 = vmatmul.bf16.gmra.mxu3 %v3186_v51  ;;  %v2228_v35 = vsel %vm2216_vm4, %v2223_v23, %v2227_v59  ;;  %v2784_v5 = vshll.u32 %v6287_v62, 16  ;;  %v2233_v44 = vshll.u32 %v5468_v47, 16  ;;  %v6350_v23 = vld [vmem:[%s5553_s6 + $0x34] sm:$0xff] }
 0x1d3   : > { %v2112_v19 = vpop.f32.mrf.mxu0  ;;  %v6327_v21 = vadd.f32 %v2110_v57, %v1917_v1  ;;  %v2779_v57 = vsel %vm2216_vm4, %v2774_v36, %v2778_v12  ;;  %v3477_v28 = vsel %vm3465_vm5, %v3473_v48, %v3476_v34 }
 0x1d4   : > { %v2235_v48 = vrot.slane %v2233_v44, 1 }
 0x1d5   : > { %v6333_v50 = vpop.f32.mrf.mxu3 }
 0x1d6   : > { %v1276_v63 = vpop.f32.mrf.mxu2 }
 0x1d7   : > { %v1343_v55 = vadd.f32 %v1276_v63, %v980_v22 }
 0x1d8   : > { %v982_v7 = vpop.f32.mrf.mxu1  ;;  %3830 = vperm.xlu0 %5456, %v3783_v14  }
 0x1d9   : > { %v1918_v53 = vadd.f32 %v6256_v24, %v1343_v55  ;;  %v983_v45 = vadd.f32 %v982_v7, %v5874_v37  ;;  %v2788_v24 = vshrl.u32 %v6287_v62, 16  ;;  %v3479_v37 = vrot.slane %v2784_v5, 2  ;;  %v3784_v62 = vld [vmem:[%s7083_s2 + $0x10] sm:$0xff] }
 0x1da   : > { %3835 = vperm.xlu1 %5457, %v3784_v62   ;;  %v3187_v7 = vrot.slane %v6350_v23, 1  ;;  %v7109_v55 = vshrl.u32 %v6259_v61, 16 }
 0x1db   : > { %v2115_v17 = vpop.f32.mrf.mxu0  ;;  %2461 = vmatmul.bf16.vlgmr.msra.gmra.mxu1 %v2228_v35  ;;  %3012 = vmatmul.bf16.vlgmr.msra.gmra.mxu2 %v2779_v57  ;;  %v6340_v63 = vadd.f32 %v2112_v19, %v1918_v53  ;;  %v3478_v51 = vrot.slane %v2788_v24, 1  ;;  %v2786_v57 = vrot.slane %v2784_v5, 1 }
 0x1dc   : > { %v2782_v35 = vor.u32 %v7109_v55, %v2778_v12  ;;  %v6381_v55 = vld [vmem:[%s5553_s6 + $0x3c] sm:$0xff] }
 0x1dd   : > { %v6347_v27 = vpop.f32.mrf.mxu3 }
 0x1de   : > { %3636 = vmatmul.bf16.vlgmr.msra.gmra.mxu0 %v3477_v28  ;;  %v1279_v30 = vpop.f32.mrf.mxu2  ;;  %v3480_v28 = vor.u32 %v3479_v37, %v3478_v51  ;;  %v2787_v59 = vsel %vm2216_vm4, %v2782_v35, %v2786_v57  ;;  %v5469_v37 = vld [vmem:[%s5553_s6 + $0x24] sm:$0xff]  }
 0x1df   : > { %v1344_v42 = vadd.f32 %v1279_v30, %v983_v45  ;;  %v2241_v62 = vshll.u32 %v5469_v37, 16 }
 0x1e0   : > { %v984_v1 = vpop.f32.mrf.mxu1  ;;  %v3481_v12 = vsel %vm3465_vm5, %v3476_v34, %v3480_v28  ;;  %v2237_v34 = vshrl.u32 %v5468_v47, 16 }
 0x1e1   : > { %v1919_v19 = vadd.f32 %v6277_v41, %v1344_v42  ;;  %v3188_v41 = vsel %vm3179_vm3, %v3185_v18, %v3187_v7  ;;  %v985_v53 = vadd.f32 %v984_v1, %v5892_v2  ;;  %v2236_v42 = vsel %vm2216_vm4, %v2231_v43, %v2235_v48  ;;  %v3785_v2 = vld [vmem:[%s7083_s2 + $0x18] sm:$0xff] }
 0x1e2   : > { %3313 = vmatmul.bf16.gmra.mxu3 %v3188_v41  ;;  %3840 = vperm.xlu1 %5457, %v3785_v2   ;;  %v2792_v1 = vshll.u32 %v6320_v6, 16 }
 0x1e3   : > { %v2117_v36 = vpop.f32.mrf.mxu0  ;;  %v6357_v22 = vadd.f32 %v2115_v17, %v1919_v19 }
 0x1e4   : > { %v2794_v47 = vrot.slane %v2792_v1, 1 }
 0x1e5   : > { %v6365_v17 = vpop.f32.mrf.mxu3 }
 0x1e6   : > { %v1281_v14 = vpop.f32.mrf.mxu2 }
 0x1e7   : > { %v1345_v45 = vadd.f32 %v1281_v14, %v985_v53  ;;  %v3483_v53 = vrot.slane %v2792_v1, 2  ;;  %v2239_v14 = vor.u32 %v2237_v34, %v2235_v48  ;;  %v7090_v34 = vshrl.u32 %v6350_v23, 16 }
 0x1e8   : > { %v987_v30 = vpop.f32.mrf.mxu1 }
 0x1e9   : > { %v1920_v16 = vadd.f32 %v6284_v26, %v1345_v45  ;;  %v988_v5 = vadd.f32 %v987_v30, %v5909_v10  ;;  %v2796_v26 = vshrl.u32 %v6320_v6, 16  ;;  %v3189_v10 = vrot.slane %v6381_v55, 1 }
 0x1ea   : > { %v2243_v6 = vrot.slane %v2241_v62, 1  ;;  %v2790_v30 = vor.u32 %v2788_v24, %v2786_v57  ;;  %v7112_v57 = vld [vmem:[#allocation7_spill] sm:$0xff] }
 0x1eb   : > { %v2120_v61 = vpop.f32.mrf.mxu0  ;;  %2466 = vmatmul.bf16.gmra.mxu1 %v2236_v42  ;;  %3017 = vmatmul.bf16.gmra.mxu2 %v2787_v59  ;;  %v6372_v18 = vadd.f32 %v2117_v36, %v1920_v16  ;;  %v3482_v41 = vrot.slane %v2796_v26, 1  ;;  %v3190_v42 = vsel %vm3179_vm3, %v3187_v7, %v3189_v10 }
 0x1ed   : > { %v6378_v43 = vpop.f32.mrf.mxu3  ;;  %v3484_v16 = vor.u32 %v3483_v53, %v3482_v41 }
 0x1ee   : > { %3641 = vmatmul.bf16.gmra.mxu0 %v3481_v12  ;;  %v1284_v44 = vpop.f32.mrf.mxu2 }
 0x1ef   : > { %v1346_v19 = vadd.f32 %v1284_v44, %v988_v5  ;;  %v2244_v5 = vsel %vm2216_vm4, %v2239_v14, %v2243_v6  ;;  %v2795_v44 = vsel %vm2216_vm4, %v2790_v30, %v2794_v47  ;;  %v3485_v7 = vsel %vm3465_vm5, %v3480_v28, %v3484_v16  ;;  %v6404_v28 = vld [vmem:[%s5553_s6 + $0x44] sm:$0xff] }
 0x1f0   : > { %v989_v51 = vpop.f32.mrf.mxu1 }
 0x1f1   : > { %v1921_v36 = vadd.f32 %v6297_v56, %v1346_v19  ;;  %v990_v59 = vadd.f32 %v989_v51, %v5918_v39  ;;  %v2800_v19 = vshll.u32 %v6350_v23, 16 }
 0x1f2   : > { %3318 = vmatmul.bf16.gmra.mxu3 %v3190_v42  ;;  %v3486_v42 = vrot.slane %v7090_v34, 1 }
 0x1f3   : > { %v2122_v35 = vpop.f32.mrf.mxu0  ;;  %v6385_v45 = vadd.f32 %v2120_v61, %v1921_v36  ;;  %v2245_v36 = vshrl.u32 %v5469_v37, 16  ;;  %v3191_v37 = vrot.slane %v6404_v28, 1 }
 0x1f5   : > { %7110 = vst [vmem:[#allocation17_spill] sm:$0xff] %v6385_v45  ;;  %v6391_v48 = vpop.f32.mrf.mxu3 }
 0x1f6   : > { %v1286_v12 = vpop.f32.mrf.mxu2 }
 0x1f7   : > { %v1347_v2 = vadd.f32 %v1286_v12, %v990_v59  ;;  %v3487_v59 = vrot.slane %v2800_v19, 2  ;;  %v3788_v12 = vld [vmem:[%s7083_s2 + $0x30] sm:$0xff] }
 0x1f8   : > { %v992_v56 = vpop.f32.mrf.mxu1  ;;  %3855 = vperm.xlu0 %5456, %v3788_v12  }
 0x1f9   : > { %v1922_v61 = vadd.f32 %v6317_v25, %v1347_v2  ;;  %v993_v1 = vadd.f32 %v992_v56, %v7112_v57  ;;  %v5470_v25 = vld [vmem:[%s5553_s6 + $0x2c] sm:$0xff]   ;;  %v2247_v2 = vor.u32 %v2245_v36, %v2243_v6 }
 0x1fa   : > { %v2249_v53 = vshll.u32 %v5470_v25, 16 }
 0x1fb   : > { %v2125_v24 = vpop.f32.mrf.mxu0  ;;  %2471 = vmatmul.bf16.gmra.mxu1 %v2244_v5  ;;  %3022 = vmatmul.bf16.gmra.mxu2 %v2795_v44  ;;  %v6395_v39 = vadd.f32 %v2122_v35, %v1922_v61  ;;  %v2798_v44 = vor.u32 %v2796_v26, %v2794_v47  ;;  %v2802_v61 = vrot.slane %v2800_v19, 1  ;;  %v3789_v47 = vld [vmem:[%s7083_s2 + $0x38] sm:$0xff] }
 0x1fc   : > { %v2251_v5 = vrot.slane %v2249_v53, 1  ;;  %3860 = vperm.xlu1 %5457, %v3789_v47   ;;  %v7119_v47 = vld [vmem:[#allocation10_spill] sm:$0xff] }
 0x1fd   : > { %7111 = vst [vmem:[#allocation18_spill] sm:$0xff] %v6395_v39  ;;  %v6401_v14 = vpop.f32.mrf.mxu3  ;;  %v2803_v12 = vsel %vm2216_vm4, %v2798_v44, %v2802_v61 }
 0x1fe   : > { %3646 = vmatmul.bf16.gmra.mxu0 %v3485_v7  ;;  %v1289_v51 = vpop.f32.mrf.mxu2  ;;  %v7114_v7 = vld [vmem:[#allocation8_spill] sm:$0xff]  ;;  %v2252_v39 = vsel %vm2216_vm4, %v2247_v2, %v2251_v5 }
 0x1ff   : > { %v1348_v62 = vadd.f32 %v1289_v51, %v993_v1  ;;  %v3488_v1 = vor.u32 %v3487_v59, %v3486_v42  ;;  %v2253_v42 = vshrl.u32 %v5470_v25, 16  ;;  %v5471_v2 = vld [vmem:[%s5553_s6 + $0x34] sm:$0xff]  }
 0x200   : > { %v994_v41 = vpop.f32.mrf.mxu1  ;;  %v2257_v44 = vshll.u32 %v5471_v2, 16 }
 0x201   : > { %v1923_v35 = vadd.f32 %v6333_v50, %v1348_v62  ;;  %v3192_v50 = vsel %vm3179_vm3, %v3189_v10, %v3191_v37  ;;  %v995_v57 = vadd.f32 %v994_v41, %v7114_v7  ;;  %v3489_v26 = vsel %vm3465_vm5, %v3484_v16, %v3488_v1  ;;  %v3786_v10 = vld [vmem:[%s7083_s2 + $0x20] sm:$0xff]  ;;  %v6438_v7 = vld [vmem:[%s5553_s6 + $0x4c] sm:$0xff] }
 0x202   : > { %3323 = vmatmul.bf16.gmra.mxu3 %v3192_v50  ;;  %3845 = vperm.xlu2 %5458, %v3786_v10   ;;  %v2808_v16 = vshll.u32 %v6381_v55, 16  ;;  %v2812_v41 = vshrl.u32 %v6381_v55, 16  ;;  %v3193_v55 = vrot.slane %v6438_v7, 1  ;;  %v2255_v25 = vor.u32 %v2253_v42, %v2251_v5 }
 0x203   : > { %v2127_v30 = vpop.f32.mrf.mxu0  ;;  %v6413_v56 = vadd.f32 %v2125_v24, %v1923_v35 }
 0x204   : > { %v2810_v10 = vrot.slane %v2808_v16, 1 }
 0x205   : > { %7113 = vst [vmem:[#allocation7_spill] sm:$0xff] %v6413_v56  ;;  %v6419_v45 = vpop.f32.mrf.mxu3 }
 0x206   : > { %v1291_v51 = vpop.f32.mrf.mxu2 }
 0x207   : > { %v1349_v62 = vadd.f32 %v1291_v51, %v995_v57  ;;  %v3490_v57 = vrot.slane %v2812_v41, 1  ;;  %v3491_v51 = vrot.slane %v2808_v16, 2 }
 0x208   : > { %v997_v34 = vpop.f32.mrf.mxu1 }
 0x209   : > { %v1924_v6 = vadd.f32 %v6347_v27, %v1349_v62  ;;  %v7116_v27 = vld [vmem:[#allocation9_spill] sm:$0xff] }
 0x20a   : > { %v998_v36 = vadd.f32 %v997_v34, %v7116_v27  ;;  %v3787_v34 = vld [vmem:[%s7083_s2 + $0x28] sm:$0xff] }
 0x20b   : > { %v2130_v24 = vpop.f32.mrf.mxu0  ;;  %2476 = vmatmul.bf16.gmra.mxu1 %v2252_v39  ;;  %3027 = vmatmul.bf16.gmra.mxu2 %v2803_v12  ;;  %v6429_v19 = vadd.f32 %v2127_v30, %v1924_v6  ;;  %v2259_v12 = vrot.slane %v2257_v44, 1  ;;  %v7118_v6 = vshrl.u32 %v6350_v23, 16 }
 0x20c   : > { %3850 = vperm.xlu2 %5458, %v3787_v34  }
 0x20d   : > { %7115 = vst [vmem:[#allocation8_spill] sm:$0xff] %v6429_v19  ;;  %v6435_v50 = vpop.f32.mrf.mxu3  ;;  %v2260_v34 = vsel %vm2216_vm4, %v2255_v25, %v2259_v12 }
 0x20e   : > { %3651 = vmatmul.bf16.gmra.mxu0 %v3489_v26  ;;  %v1294_v53 = vpop.f32.mrf.mxu2  ;;  %v2806_v26 = vor.u32 %v7118_v6, %v2802_v61  ;;  %v5472_v6 = vld [vmem:[%s5553_s6 + $0x3c] sm:$0xff]  }
 0x20f   : > { %v1350_v35 = vadd.f32 %v1294_v53, %v998_v36  ;;  %v3492_v36 = vor.u32 %v3491_v51, %v3490_v57 }
 0x210   : > { %v999_v59 = vpop.f32.mrf.mxu1  ;;  %v2811_v5 = vsel %vm2216_vm4, %v2806_v26, %v2810_v10  ;;  %v2265_v26 = vshll.u32 %v5472_v6, 16 }
 0x211   : > { %v1925_v39 = vadd.f32 %v6365_v17, %v1350_v35  ;;  %v3194_v17 = vsel %vm3179_vm3, %v3191_v37, %v3193_v55  ;;  %v1000_v27 = vadd.f32 %v999_v59, %v7119_v47  ;;  %v3493_v61 = vsel %vm3465_vm5, %v3488_v1, %v3492_v36  ;;  %v3791_v37 = vld [vmem:[%s7083_s2 + $0x48] sm:$0xff]  ;;  %v6469_v47 = vld [vmem:[%s5553_s6 + $0x54] sm:$0xff] }
 0x212   : > { %3328 = vmatmul.bf16.gmra.mxu3 %v3194_v17  ;;  %3870 = vperm.xlu0 %5456, %v3791_v37   ;;  %v7121_v59 = vld [vmem:[#allocation11_spill] sm:$0xff]  ;;  %v2261_v1 = vshrl.u32 %v5471_v2, 16 }
 0x213   : > { %v2132_v30 = vpop.f32.mrf.mxu0  ;;  %v6445_v62 = vadd.f32 %v2130_v24, %v1925_v39  ;;  %v2816_v39 = vshll.u32 %v6404_v28, 16 }
 0x214   : > { %v2263_v2 = vor.u32 %v2261_v1, %v2259_v12 }
 0x215   : > { %7117 = vst [vmem:[#allocation9_spill] sm:$0xff] %v6445_v62  ;;  %v6453_v24 = vpop.f32.mrf.mxu3 }
 0x216   : > { %v1296_v53 = vpop.f32.mrf.mxu2 }
 0x217   : > { %v1351_v35 = vadd.f32 %v1296_v53, %v1000_v27 }
 0x218   : > { %v1002_v19 = vpop.f32.mrf.mxu1 }
 0x219   : > { %v1926_v42 = vadd.f32 %v6378_v43, %v1351_v35  ;;  %v1003_v44 = vadd.f32 %v1002_v19, %v7121_v59  ;;  %v2820_v43 = vshrl.u32 %v6404_v28, 16  ;;  %v3495_v35 = vrot.slane %v2816_v39, 2  ;;  %v3792_v19 = vld [vmem:[%s7083_s2 + $0x50] sm:$0xff] }
 0x21a   : > { %3875 = vperm.xlu1 %5457, %v3792_v19   ;;  %v3195_v28 = vrot.slane %v6469_v47, 1  ;;  %v7123_v59 = vld [vmem:[#allocation12_spill] sm:$0xff] }
 0x21b   : > { %v2135_v23 = vpop.f32.mrf.mxu0  ;;  %2481 = vmatmul.bf16.gmra.mxu1 %v2260_v34  ;;  %3032 = vmatmul.bf16.gmra.mxu2 %v2811_v5  ;;  %v6460_v16 = vadd.f32 %v2132_v30, %v1926_v42  ;;  %v3494_v53 = vrot.slane %v2820_v43, 1  ;;  %v2267_v5 = vrot.slane %v2265_v26, 1  ;;  %v2814_v42 = vor.u32 %v2812_v41, %v2810_v10 }
 0x21c   : > { %v3196_v37 = vsel %vm3179_vm3, %v3193_v55, %v3195_v28  ;;  %v3790_v55 = vld [vmem:[%s7083_s2 + $0x40] sm:$0xff] }
 0x21d   : > { %7120 = vst [vmem:[#allocation10_spill] sm:$0xff] %v6460_v16  ;;  %v6466_v17 = vpop.f32.mrf.mxu3  ;;  %v2268_v62 = vsel %vm2216_vm4, %v2263_v2, %v2267_v5  ;;  %3865 = vperm.xlu2 %5458, %v3790_v55   ;;  %v7127_v55 = vld [vmem:[#allocation3_spill] sm:$0xff] }
 0x21e   : > { %3656 = vmatmul.bf16.gmra.mxu0 %v3493_v61  ;;  %v1299_v57 = vpop.f32.mrf.mxu2  ;;  %v2818_v61 = vrot.slane %v2816_v39, 1  ;;  %v7125_v39 = vld [vmem:[#allocation2_spill] sm:$0xff] }
 0x21f   : > { %v1352_v51 = vadd.f32 %v1299_v57, %v1003_v44  ;;  %v3496_v44 = vor.u32 %v3495_v35, %v3494_v53  ;;  %v5473_v35 = vld [vmem:[%s5553_s6 + $0x44] sm:$0xff]  }
 0x220   : > { %v1004_v25 = vpop.f32.mrf.mxu1  ;;  %v2819_v19 = vsel %vm2216_vm4, %v2814_v42, %v2818_v61  ;;  %v2273_v2 = vshll.u32 %v5473_v35, 16 }
 0x221   : > { %v1927_v30 = vadd.f32 %v6391_v48, %v1352_v51  ;;  %v1005_v48 = vadd.f32 %v1004_v25, %v7123_v59  ;;  %v3497_v10 = vsel %vm3465_vm5, %v3492_v36, %v3496_v44  ;;  %v2824_v25 = vshll.u32 %v6438_v7, 16 }
 0x222   : > { %3333 = vmatmul.bf16.gmra.mxu3 %v3196_v37  ;;  %v2269_v36 = vshrl.u32 %v5472_v6, 16  ;;  %v6496_v37 = vld [vmem:[%s5553_s6 + $0x5c] sm:$0xff] }
 0x223   : > { %v2137_v27 = vpop.f32.mrf.mxu0  ;;  %v6476_v34 = vadd.f32 %v2135_v23, %v1927_v30 }
 0x225   : > { %7122 = vst [vmem:[#allocation11_spill] sm:$0xff] %v6476_v34  ;;  %v6482_v56 = vpop.f32.mrf.mxu3 }
 0x226   : > { %v1301_v57 = vpop.f32.mrf.mxu2 }
 0x227   : > { %v1353_v51 = vadd.f32 %v1301_v57, %v1005_v48  ;;  %v3499_v48 = vrot.slane %v2824_v25, 2  ;;  %v2271_v57 = vor.u32 %v2269_v36, %v2267_v5 }
 0x228   : > { %v1007_v16 = vpop.f32.mrf.mxu1 }
 0x229   : > { %v1928_v12 = vadd.f32 %v6401_v14, %v1353_v51  ;;  %v1008_v1 = vadd.f32 %v1007_v16, %v7125_v39  ;;  %v2828_v14 = vshrl.u32 %v6438_v7, 16  ;;  %v3794_v16 = vld [vmem:[%s7083_s2 + $0x60] sm:$0xff]  ;;  %v3197_v7 = vrot.slane %v6496_v37, 1 }
 0x22a   : > { %3885 = vperm.xlu0 %5456, %v3794_v16   ;;  %v2275_v51 = vrot.slane %v2273_v2, 1 }
 0x22b   : > { %v2140_v41 = vpop.f32.mrf.mxu0  ;;  %2486 = vmatmul.bf16.gmra.mxu1 %v2268_v62  ;;  %3037 = vmatmul.bf16.gmra.mxu2 %v2819_v19  ;;  %v6489_v23 = vadd.f32 %v2137_v27, %v1928_v12  ;;  %v3498_v59 = vrot.slane %v2828_v14, 1  ;;  %v2822_v19 = vor.u32 %v2820_v43, %v2818_v61  ;;  %v2826_v12 = vrot.slane %v2824_v25, 1  ;;  %v7129_v25 = vld [vmem:[#allocation4_spill] sm:$0xff] }
 0x22d   : > { %7124 = vst [vmem:[#allocation12_spill] sm:$0xff] %v6489_v23  ;;  %v1891_v42 = vpop.f32.mrf.mxu3  ;;  %v3500_v39 = vor.u32 %v3499_v48, %v3498_v59  ;;  %v2827_v16 = vsel %vm2216_vm4, %v2822_v19, %v2826_v12  ;;  %v5474_v48 = vld [vmem:[%s5553_s6 + $0x4c] sm:$0xff]  }
 0x22e   : > { %3661 = vmatmul.bf16.gmra.mxu0 %v3497_v10  ;;  %v1304_v26 = vpop.f32.mrf.mxu2  ;;  %v3198_v10 = vsel %vm3179_vm3, %v3195_v28, %v3197_v7  ;;  %v2276_v42 = vsel %vm2216_vm4, %v2271_v57, %v2275_v51  ;;  %v3795_v28 = vld [vmem:[%s7083_s2 + $0x68] sm:$0xff]  ;;  %v2281_v57 = vshll.u32 %v5474_v48, 16 }
 0x22f   : > { %v1354_v30 = vadd.f32 %v1304_v26, %v1008_v1  ;;  %v3501_v61 = vsel %vm3465_vm5, %v3496_v44, %v3500_v39  ;;  %3890 = vperm.xlu1 %5457, %v3795_v28   ;;  %v2277_v44 = vshrl.u32 %v5473_v35, 16  ;;  %v7131_v28 = vld [vmem:[#allocation5_spill] sm:$0xff] }
 0x230   : > { %v1009_v53 = vpop.f32.mrf.mxu1 }
 0x231   : > { %v1929_v62 = vadd.f32 %v6419_v45, %v1354_v30  ;;  %v1010_v45 = vadd.f32 %v1009_v53, %v7127_v55  ;;  %v2832_v53 = vshll.u32 %v6469_v47, 16  ;;  %v2279_v35 = vor.u32 %v2277_v44, %v2275_v51 }
 0x232   : > { %3338 = vmatmul.bf16.gmra.mxu3 %v3198_v10  ;;  %v6525_v10 = vld [vmem:[%s5553_s6 + $0x64] sm:$0xff] }
 0x233   : > { %v2142_v27 = vpop.f32.mrf.mxu0  ;;  %v6503_v6 = vadd.f32 %v2140_v41, %v1929_v62 }
 0x235   : > { %7126 = vst [vmem:[#allocation2_spill] sm:$0xff] %v6503_v6  ;;  %v6509_v23 = vpop.f32.mrf.mxu3 }
 0x236   : > { %v1306_v1 = vpop.f32.mrf.mxu2 }
 0x237   : > { %v1355_v26 = vadd.f32 %v1306_v1, %v1010_v45  ;;  %v3503_v1 = vrot.slane %v2832_v53, 2 }
 0x238   : > { %v1012_v30 = vpop.f32.mrf.mxu1 }
 0x239   : > { %v1930_v5 = vadd.f32 %v6435_v50, %v1355_v26  ;;  %v1013_v36 = vadd.f32 %v1012_v30, %v7129_v25  ;;  %v2836_v50 = vshrl.u32 %v6469_v47, 16  ;;  %v3793_v26 = vld [vmem:[%s7083_s2 + $0x58] sm:$0xff]  ;;  %v3199_v47 = vrot.slane %v6525_v10, 1 }
 0x23a   : > { %3880 = vperm.xlu2 %5458, %v3793_v26  }
 0x23b   : > { %v2145_v43 = vpop.f32.mrf.mxu0  ;;  %2491 = vmatmul.bf16.gmra.mxu1 %v2276_v42  ;;  %3042 = vmatmul.bf16.gmra.mxu2 %v2827_v16  ;;  %v6516_v41 = vadd.f32 %v2142_v27, %v1930_v5  ;;  %v3502_v45 = vrot.slane %v2836_v50, 1  ;;  %v2283_v42 = vrot.slane %v2281_v57, 1  ;;  %v2830_v16 = vor.u32 %v2828_v14, %v2826_v12 }
 0x23c   : > { %v2834_v5 = vrot.slane %v2832_v53, 1  ;;  %v7133_v53 = vld [vmem:[#allocation6_spill] sm:$0xff] }
 0x23d   : > { %7128 = vst [vmem:[#allocation3_spill] sm:$0xff] %v6516_v41  ;;  %v6522_v19 = vpop.f32.mrf.mxu3  ;;  %v3504_v25 = vor.u32 %v3503_v1, %v3502_v45  ;;  %v2284_v41 = vsel %vm2216_vm4, %v2279_v35, %v2283_v42  ;;  %v5475_v1 = vld [vmem:[%s5553_s6 + $0x54] sm:$0xff]  }
 0x23e   : > { %3666 = vmatmul.bf16.gmra.mxu0 %v3501_v61  ;;  %v1309_v2 = vpop.f32.mrf.mxu2  ;;  %v3200_v61 = vsel %vm3179_vm3, %v3197_v7, %v3199_v47  ;;  %v2835_v26 = vsel %vm2216_vm4, %v2830_v16, %v2834_v5  ;;  %v3797_v7 = vld [vmem:[%s7083_s2 + $0x78] sm:$0xff]  ;;  %v2289_v35 = vshll.u32 %v5475_v1, 16 }
 0x23f   : > { %v1356_v62 = vadd.f32 %v1309_v2, %v1013_v36  ;;  %v3505_v12 = vsel %vm3465_vm5, %v3500_v39, %v3504_v25  ;;  %3900 = vperm.xlu0 %5456, %v3797_v7   ;;  %v2285_v39 = vshrl.u32 %v5474_v48, 16 }
 0x240   : > { %v1014_v59 = vpop.f32.mrf.mxu1 }
 0x241   : > { %v1931_v27 = vadd.f32 %v6453_v24, %v1356_v62  ;;  %v1015_v24 = vadd.f32 %v1014_v59, %v7131_v28  ;;  %v2840_v59 = vshll.u32 %v6496_v37, 16  ;;  %v2287_v48 = vor.u32 %v2285_v39, %v2283_v42 }
 0x242   : > { %3343 = vmatmul.bf16.gmra.mxu3 %v3200_v61  ;;  %v6554_v61 = vld [vmem:[%s5553_s6 + $0x6c] sm:$0xff] }
 0x243   : > { %v2147_v55 = vpop.f32.mrf.mxu0  ;;  %v6532_v30 = vadd.f32 %v2145_v43, %v1931_v27 }
 0x245   : > { %7130 = vst [vmem:[#allocation4_spill] sm:$0xff] %v6532_v30  ;;  %v6538_v6 = vpop.f32.mrf.mxu3 }
 0x246   : > { %v1311_v36 = vpop.f32.mrf.mxu2 }
 0x247   : > { %v1357_v2 = vadd.f32 %v1311_v36, %v1015_v24  ;;  %v3507_v24 = vrot.slane %v2840_v59, 2  ;;  %v3798_v36 = vld [vmem:[%s7083_s2 + $0x80] sm:$0xff] }
 0x248   : > { %v1017_v62 = vpop.f32.mrf.mxu1  ;;  %3905 = vperm.xlu1 %5457, %v3798_v36   ;;  %v6582_v36 = vld [vmem:[%s5553_s6 + $0x74] sm:$0xff] }
 0x249   : > { %v1932_v51 = vadd.f32 %v6466_v17, %v1357_v2  ;;  %v1018_v44 = vadd.f32 %v1017_v62, %v7133_v53  ;;  %v2844_v17 = vshrl.u32 %v6496_v37, 16  ;;  %v3201_v37 = vrot.slane %v6554_v61, 1 }
 0x24a   : > { %v2291_v62 = vrot.slane %v2289_v35, 1  ;;  %v3826_v35 = vpop.permute.xlu0 %3825 }
 0x24b   : > { %v2150_v14 = vpop.f32.mrf.mxu0  ;;  %2496 = vmatmul.bf16.gmra.mxu1 %v2284_v41  ;;  %3047 = vmatmul.bf16.gmra.mxu2 %v2835_v26  ;;  %v6545_v43 = vadd.f32 %v2147_v55, %v1932_v51  ;;  %v3506_v28 = vrot.slane %v2844_v17, 1  ;;  %v2838_v26 = vor.u32 %v2836_v50, %v2834_v5  ;;  %v2842_v51 = vrot.slane %v2840_v59, 1  ;;  %v3796_v50 = vld [vmem:[%s7083_s2 + $0x70] sm:$0xff] }
 0x24c   : > { %3895 = vperm.xlu2 %5458, %v3796_v50   ;;  %v2848_v5 = vshll.u32 %v6525_v10, 16 }
 0x24d   : > { %7132 = vst [vmem:[#allocation5_spill] sm:$0xff] %v6545_v43  ;;  %v6551_v16 = vpop.f32.mrf.mxu3  ;;  %v3508_v7 = vor.u32 %v3507_v24, %v3506_v28 }
 0x24e   : > { %3671 = vmatmul.bf16.gmra.mxu0 %v3505_v12  ;;  %v1314_v57 = vpop.f32.mrf.mxu2  ;;  %v3202_v12 = vsel %vm3179_vm3, %v3199_v47, %v3201_v37 }
 0x24f   : > { %v1358_v27 = vadd.f32 %v1314_v57, %v1018_v44  ;;  %v2292_v44 = vsel %vm2216_vm4, %v2287_v48, %v2291_v62  ;;  %v2843_v57 = vsel %vm2216_vm4, %v2838_v26, %v2842_v51  ;;  %v3509_v42 = vsel %vm3465_vm5, %v3504_v25, %v3508_v7 }
 0x250   : > { %v1019_v45 = vpop.f32.mrf.mxu1  ;;  %v3511_v26 = vrot.slane %v2848_v5, 2 }
 0x251   : > { %v1933_v41 = vadd.f32 %v6482_v56, %v1358_v27 }
 0x252   : > { %3348 = vmatmul.bf16.gmra.mxu3 %v3202_v12  ;;  %v3800_v12 = vld [vmem:[%s7083_s2 + $0x90] sm:$0xff] }
 0x253   : > { %v2152_v55 = vpop.f32.mrf.mxu0  ;;  %v6561_v2 = vadd.f32 %v2150_v14, %v1933_v41  ;;  %v7091_v14 = vshrl.u32 %v6525_v10, 16  ;;  %v2293_v41 = vshrl.u32 %v5475_v1, 16  ;;  %3915 = vperm.xlu0 %5456, %v3800_v12   ;;  %v3203_v1 = vrot.slane %v6582_v36, 1 }
 0x254   : > { %v6576_v55 = vld [vmem:[%s5553_s6 + $0x5c] sm:$0xff]  }
 0x255   : > { %7134 = vst [vmem:[#allocation6_spill] sm:$0xff] %v6561_v2  ;;  %v6566_v27 = vpop.f32.mrf.mxu3  ;;  %v2297_v28 = vshll.u32 %v6576_v55, 16  ;;  %v3204_v50 = vsel %vm3179_vm3, %v3201_v37, %v3203_v1  ;;  %v3801_v37 = vld [vmem:[%s7083_s2 + $0x98] sm:$0xff] }
 0x256   : > { %v1316_v56 = vpop.f32.mrf.mxu2  ;;  %3920 = vperm.xlu1 %5457, %v3801_v37  }
 0x258   : > { %v2462_v53 = vpop.f32.mrf.mxu1 }
 0x259   : > { %v2566_v47 = vadd.f32 %v2462_v53, %v6017_v0  ;;  %v3510_v0 = vrot.slane %v7091_v14, 1  ;;  %v2295_v53 = vor.u32 %v2293_v41, %v2291_v62 }
 0x25b   : > { %v3637_v45 = vpop.f32.mrf.mxu0  ;;  %2501 = vmatmul.bf16.gmra.mxu1 %v2292_v44  ;;  %3052 = vmatmul.bf16.gmra.mxu2 %v2843_v57  ;;  %v2299_v44 = vrot.slane %v2297_v28, 1  ;;  %v2846_v57 = vor.u32 %v2844_v17, %v2842_v51  ;;  %v3831_v51 = vpop.permute.xlu0 %3830 }
 0x25d   : > { %v6579_v24 = vpop.f32.mrf.mxu3  ;;  %v2300_v30 = vsel %vm2216_vm4, %v2295_v53, %v2299_v44  ;;  %v6623_v53 = vld [vmem:[%s5553_s6 + $0x7c] sm:$0xff] }
 0x25e   : > { %3676 = vmatmul.bf16.gmra.mxu0 %v3509_v42  ;;  %v3013_v59 = vpop.f32.mrf.mxu2  ;;  %v2850_v42 = vrot.slane %v2848_v5, 1 }
 0x25f   : > { %v3117_v39 = vadd.f32 %v3013_v59, %v2566_v47  ;;  %v6593_v59 = vor.u32 %v3511_v26, %v3510_v0  ;;  %v6617_v26 = vld [vmem:[%s5553_s6 + $0x64] sm:$0xff]  }
 0x260   : > { %v2464_v25 = vpop.f32.mrf.mxu1  ;;  %v2851_v34 = vsel %vm2216_vm4, %v2846_v57, %v2850_v42 }
 0x261   : > { %v3403_v56 = vadd.f32 %v6509_v23, %v3117_v39  ;;  %v2567_v47 = vadd.f32 %v2464_v25, %v6032_v4  ;;  %v3513_v4 = vsel %vm3465_vm5, %v3508_v7, %v6593_v59  ;;  %v2860_v39 = vshrl.u32 %v6554_v61, 16 }
 0x262   : > { %3353 = vmatmul.bf16.gmra.mxu3 %v3204_v50 }
 0x263   : > { %v3639_v48 = vpop.f32.mrf.mxu0  ;;  %v3741_v2 = vadd.f32 %v3637_v45, %v3403_v56  ;;  %v2305_v56 = vshll.u32 %v6617_v26, 16 }
 0x265   : > { %v6598_v23 = vpop.f32.mrf.mxu3  ;;  %v4028_v45 = vmul.f32 %v3826_v35, %v3741_v2 }
 0x266   : > { %v3015_v14 = vpop.f32.mrf.mxu2 }
 0x267   : > { %v3118_v43 = vadd.f32 %v3015_v14, %v2567_v47  ;;  %v4118_v35 = vmul.f32 %v4028_v45, %v3741_v2 }
 0x268   : > { %v2467_v12 = vpop.f32.mrf.mxu1 }
 0x269   : > { %v3404_v17 = vadd.f32 %v6522_v19, %v3118_v43  ;;  %v2856_v19 = vshll.u32 %v6554_v61, 16  ;;  %v2568_v43 = vadd.f32 %v2467_v12, %v6042_v46  ;;  %v3799_v12 = vld [vmem:[%s7083_s2 + $0x88] sm:$0xff] }
 0x26a   : > { %3910 = vperm.xlu2 %5458, %v3799_v12  }
 0x26b   : > { %v3642_v62 = vpop.f32.mrf.mxu0  ;;  %2506 = vmatmul.bf16.gmra.mxu1 %v2300_v30  ;;  %3057 = vmatmul.bf16.gmra.mxu2 %v2851_v34  ;;  %v3742_v5 = vadd.f32 %v3639_v48, %v3404_v17  ;;  %v2301_v34 = vshrl.u32 %v6576_v55, 16  ;;  %v3836_v48 = vpop.permute.xlu1 %3835  ;;  %v3515_v55 = vrot.slane %v2856_v19, 2  ;;  %v3205_v17 = vrot.slane %v6623_v53, 1 }
 0x26d   : > { %v4029_v7 = vmul.f32 %v3831_v51, %v3742_v5  ;;  %v5160_v14 = vpack.c.bf16 %v3742_v5, %v3741_v2  ;;  %v6620_v46 = vpop.f32.mrf.mxu3  ;;  %v3514_v2 = vrot.slane %v2860_v39, 1  ;;  %v2303_v37 = vor.u32 %v2301_v34, %v2299_v44 }
 0x26e   : > { %3681 = vmatmul.bf16.gmra.mxu0 %v3513_v4  ;;  %v3018_v30 = vpop.f32.mrf.mxu2  ;;  %v2307_v51 = vrot.slane %v2305_v56, 1 }
 0x26f   : > { %v4069_v41 = vadd.f32 %v4029_v7, %v4028_v45  ;;  %v4119_v25 = vmul.f32 %v4029_v7, %v3742_v5  ;;  %5161 = vst [vmem:[%s6609_s8] sm:$0xff] %v5160_v14   ;;  %v3119_v28 = vadd.f32 %v3018_v30, %v2568_v43  ;;  %v7135_v45 = vshrl.u32 %v6525_v10, 16 }
 0x270   : > { %v2469_v0 = vpop.f32.mrf.mxu1  ;;  %v2858_v43 = vrot.slane %v2856_v19, 1  ;;  %v6638_v30 = vor.u32 %v3515_v55, %v3514_v2  ;;  %v2308_v34 = vsel %vm2216_vm4, %v2303_v37, %v2307_v51  ;;  %v2868_v55 = vshrl.u32 %v6582_v36, 16 }
 0x271   : > { %v4159_v57 = vadd.f32 %v4119_v25, %v4118_v35  ;;  %v3405_v50 = vadd.f32 %v6538_v6, %v3119_v28  ;;  %v2854_v5 = vor.u32 %v7135_v45, %v2850_v42  ;;  %v3206_v6 = vsel %vm3179_vm3, %v3203_v1, %v3205_v17  ;;  %v3803_v1 = vld [vmem:[%s7083_s2 + $0xa8] sm:$0xff] }
 0x272   : > { %v2569_v7 = vadd.f32 %v2469_v0, %v6053_v20  ;;  %3358 = vmatmul.bf16.gmra.mxu3 %v3206_v6  ;;  %3930 = vperm.xlu0 %5456, %v3803_v1   ;;  %v3804_v0 = vld [vmem:[%s7083_s2 + $0xb0] sm:$0xff]  ;;  %v3846_v6 = vpop.permute.xlu2 %3845 }
 0x273   : > { %v3644_v47 = vpop.f32.mrf.mxu0  ;;  %v3743_v4 = vadd.f32 %v3642_v62, %v3405_v50  ;;  %v2859_v10 = vsel %vm2216_vm4, %v2854_v5, %v2858_v43  ;;  %v3841_v56 = vpop.permute.xlu1 %3840  ;;  %3935 = vperm.xlu1 %5457, %v3804_v0  }
 0x275   : > { %v4030_v14 = vmul.f32 %v3836_v48, %v3743_v4  ;;  %v6642_v42 = vpop.f32.mrf.mxu3 }
 0x276   : > { %v3020_v35 = vpop.f32.mrf.mxu2 }
 0x277   : > { %v4070_v25 = vadd.f32 %v4069_v41, %v4030_v14  ;;  %v4120_v28 = vmul.f32 %v4030_v14, %v3743_v4  ;;  %v3120_v62 = vadd.f32 %v3020_v35, %v2569_v7  ;;  %v3517_v41 = vsel %vm3465_vm5, %v6593_v59, %v6638_v30 }
 0x278   : > { %v2472_v44 = vpop.f32.mrf.mxu1  ;;  %v2309_v7 = vshrl.u32 %v6617_v26, 16  ;;  %v3518_v26 = vrot.slane %v2868_v55, 1 }
 0x279   : > { %v4160_v20 = vadd.f32 %v4159_v57, %v4120_v28  ;;  %v3406_v19 = vadd.f32 %v6551_v16, %v3120_v62  ;;  %v2864_v16 = vshll.u32 %v6582_v36, 16  ;;  %v2570_v57 = vadd.f32 %v2472_v44, %v6060_v3  ;;  %v3806_v3 = vld [vmem:[%s7083_s2 + $0xc0] sm:$0xff] }
 0x27a   : > { %3945 = vperm.xlu0 %5456, %v3806_v3  }
 0x27b   : > { %v3647_v48 = vpop.f32.mrf.mxu0  ;;  %2511 = vmatmul.bf16.gmra.mxu1 %v2308_v34  ;;  %3062 = vmatmul.bf16.gmra.mxu2 %v2859_v10  ;;  %v3744_v50 = vadd.f32 %v3644_v47, %v3406_v19  ;;  %v6660_v47 = vld [vmem:[%s5553_s6 + $0x6c] sm:$0xff]   ;;  %v3519_v34 = vrot.slane %v2864_v16, 2 }
 0x27c   : > { %v2313_v35 = vshll.u32 %v6660_v47, 16  ;;  %v3807_v10 = vld [vmem:[%s7083_s2 + $0xc8] sm:$0xff] }
 0x27d   : > { %v4031_v2 = vmul.f32 %v3841_v56, %v3744_v50  ;;  %v5165_v59 = vpack.c.bf16 %v3744_v50, %v3743_v4  ;;  %v6663_v28 = vpop.f32.mrf.mxu3  ;;  %v6669_v4 = vld [vmem:[%s5553_s6 + $0x84] sm:$0xff]  ;;  %3950 = vperm.xlu1 %5457, %v3807_v10  }
 0x27e   : > { %3686 = vmatmul.bf16.gmra.mxu0 %v3517_v41  ;;  %v3023_v12 = vpop.f32.mrf.mxu2  ;;  %v3207_v1 = vrot.slane %v6669_v4, 1  ;;  %v2311_v41 = vor.u32 %v2309_v7, %v2307_v51  ;;  %v2315_v0 = vrot.slane %v2313_v35, 1  ;;  %v3810_v7 = vld [vmem:[%s7083_s2 + $0xe0] sm:$0xff] }
 0x27f   : > { %v4071_v37 = vadd.f32 %v4070_v25, %v4031_v2  ;;  %v4121_v45 = vmul.f32 %v4031_v2, %v3744_v50  ;;  %5366 = vst [vmem:[%s6609_s8 + $0x8] sm:$0xff] %v5165_v59   ;;  %v3121_v5 = vadd.f32 %v3023_v12, %v2570_v57  ;;  %v6686_v2 = vor.u32 %v3519_v34, %v3518_v26 }
 0x280   : > { %v2474_v14 = vpop.f32.mrf.mxu1  ;;  %v3208_v56 = vsel %vm3179_vm3, %v3205_v17, %v3207_v1  ;;  %v2316_v61 = vsel %vm2216_vm4, %v2311_v41, %v2315_v0  ;;  %v3809_v17 = vld [vmem:[%s7083_s2 + $0xd8] sm:$0xff] }
 0x281   : > { %v4161_v25 = vadd.f32 %v4160_v20, %v4121_v45  ;;  %v3407_v62 = vadd.f32 %v6566_v27, %v3121_v5  ;;  %v2862_v20 = vor.u32 %v2860_v39, %v2858_v43  ;;  %v2866_v27 = vrot.slane %v2864_v16, 1 }
 0x282   : > { %v2571_v50 = vadd.f32 %v2474_v14, %v6071_v31  ;;  %3363 = vmatmul.bf16.gmra.mxu3 %v3208_v56  ;;  %3960 = vperm.xlu0 %5456, %v3809_v17   ;;  %v3851_v14 = vpop.permute.xlu2 %3850 }
 0x283   : > { %v3649_v44 = vpop.f32.mrf.mxu0  ;;  %v3745_v19 = vadd.f32 %v3647_v48, %v3407_v62  ;;  %v2867_v39 = vsel %vm2216_vm4, %v2862_v20, %v2866_v27  ;;  %v2876_v62 = vshrl.u32 %v6623_v53, 16  ;;  %v2317_v20 = vshrl.u32 %v6660_v47, 16 }
 0x285   : > { %v4032_v57 = vmul.f32 %v3846_v6, %v3745_v19  ;;  %v6690_v43 = vpop.f32.mrf.mxu3  ;;  %v3802_v6 = vld [vmem:[%s7083_s2 + $0xa0] sm:$0xff]  ;;  %3965 = vperm.xlu1 %5457, %v3810_v7   ;;  %v3522_v47 = vrot.slane %v2876_v62, 1 }
 0x286   : > { %v3025_v59 = vpop.f32.mrf.mxu2  ;;  %3925 = vperm.xlu2 %5458, %v3802_v6  }
 0x287   : > { %v4072_v48 = vadd.f32 %v4071_v37, %v4032_v57  ;;  %v4122_v51 = vmul.f32 %v4032_v57, %v3745_v19  ;;  %v3122_v12 = vadd.f32 %v3025_v59, %v2571_v50  ;;  %v3521_v37 = vsel %vm3465_vm5, %v6638_v30, %v6686_v2  ;;  %v6711_v50 = vld [vmem:[%s5553_s6 + $0x74] sm:$0xff]  }
 0x288   : > { %v2477_v45 = vpop.f32.mrf.mxu1  ;;  %v2872_v30 = vshll.u32 %v6623_v53, 16 }
 0x289   : > { %v4162_v31 = vadd.f32 %v4161_v25, %v4122_v51  ;;  %v3408_v16 = vadd.f32 %v6579_v24, %v3122_v12  ;;  %v2572_v35 = vadd.f32 %v2477_v45, %v6087_v33  ;;  %v3812_v33 = vld [vmem:[%s7083_s2 + $0xf0] sm:$0xff]  ;;  %v3813_v45 = vld [vmem:[%s7083_s2 + $0xf8] sm:$0xff] }
 0x28a   : > { %v3523_v12 = vrot.slane %v2872_v30, 2  ;;  %3975 = vperm.xlu0 %5456, %v3812_v33   ;;  %v2884_v33 = vshrl.u32 %v6669_v4, 16 }
 0x28b   : > { %v3652_v5 = vpop.f32.mrf.mxu0  ;;  %2516 = vmatmul.bf16.gmra.mxu1 %v2316_v61  ;;  %3067 = vmatmul.bf16.gmra.mxu2 %v2867_v39  ;;  %v3746_v24 = vadd.f32 %v3649_v44, %v3408_v16  ;;  %v2321_v44 = vshll.u32 %v6711_v50, 16  ;;  %v3856_v61 = vpop.permute.xlu0 %3855  ;;  %v2319_v16 = vor.u32 %v2317_v20, %v2315_v0 }
 0x28d   : > { %v4033_v3 = vmul.f32 %v3851_v14, %v3746_v24  ;;  %v5170_v25 = vpack.c.bf16 %v3746_v24, %v3745_v19  ;;  %v6714_v57 = vpop.f32.mrf.mxu3  ;;  %v6720_v19 = vld [vmem:[%s5553_s6 + $0x8c] sm:$0xff]  ;;  %3980 = vperm.xlu1 %5457, %v3813_v45   ;;  %v2325_v45 = vshrl.u32 %v6711_v50, 16  ;;  %v3526_v50 = vrot.slane %v2884_v33, 1 }
 0x28e   : > { %3691 = vmatmul.bf16.gmra.mxu0 %v3521_v37  ;;  %v3028_v26 = vpop.f32.mrf.mxu2  ;;  %v3209_v39 = vrot.slane %v6720_v19, 1  ;;  %v2323_v37 = vrot.slane %v2321_v44, 1 }
 0x28f   : > { %v4073_v34 = vadd.f32 %v4072_v48, %v4033_v3  ;;  %v4123_v10 = vmul.f32 %v4033_v3, %v3746_v24  ;;  %5367 = vst [vmem:[%s6609_s8 + $0x10] sm:$0xff] %v5170_v25   ;;  %v3123_v41 = vadd.f32 %v3028_v26, %v2572_v35  ;;  %v6737_v24 = vor.u32 %v3523_v12, %v3522_v47 }
 0x290   : > { %v2479_v56 = vpop.f32.mrf.mxu1  ;;  %v3210_v6 = vsel %vm3179_vm3, %v3207_v1, %v3209_v39  ;;  %v2324_v36 = vsel %vm2216_vm4, %v2319_v16, %v2323_v37  ;;  %v3815_v1 = vld [vmem:[%s7083_s2 + $0x108] sm:$0xff]  ;;  %v6762_v16 = vld [vmem:[%s5553_s6 + $0x7c] sm:$0xff]  }
 0x291   : > { %v4163_v59 = vadd.f32 %v4162_v31, %v4123_v10  ;;  %v3409_v48 = vadd.f32 %v6598_v23, %v3123_v41  ;;  %v2870_v23 = vor.u32 %v2868_v55, %v2866_v27  ;;  %v2874_v31 = vrot.slane %v2872_v30, 1  ;;  %v3816_v10 = vld [vmem:[%s7083_s2 + $0x110] sm:$0xff]  ;;  %v3861_v41 = vpop.permute.xlu1 %3860 }
 0x292   : > { %v2573_v7 = vadd.f32 %v2479_v56, %v6101_v29  ;;  %3368 = vmatmul.bf16.gmra.mxu3 %v3210_v6  ;;  %3990 = vperm.xlu0 %5456, %v3815_v1   ;;  %v6771_v6 = vld [vmem:[%s5553_s6 + $0x94] sm:$0xff] }
 0x293   : > { %v3654_v51 = vpop.f32.mrf.mxu0  ;;  %v3747_v17 = vadd.f32 %v3652_v5, %v3409_v48  ;;  %v2875_v55 = vsel %vm2216_vm4, %v2870_v23, %v2874_v31  ;;  %v3805_v48 = vld [vmem:[%s7083_s2 + $0xb8] sm:$0xff]  ;;  %v3818_v23 = vld [vmem:[%s7083_s2 + $0x120] sm:$0xff] }
 0x294   : > { %3940 = vperm.xlu2 %5458, %v3805_v48  }
 0x295   : > { %v4034_v14 = vmul.f32 %v3856_v61, %v3747_v17  ;;  %v6741_v27 = vpop.f32.mrf.mxu3  ;;  %3995 = vperm.xlu1 %5457, %v3816_v10  }
 0x296   : > { %v3030_v35 = vpop.f32.mrf.mxu2 }
 0x297   : > { %v4074_v5 = vadd.f32 %v4073_v34, %v4034_v14  ;;  %v4124_v0 = vmul.f32 %v4034_v14, %v3747_v17  ;;  %v3124_v3 = vadd.f32 %v3030_v35, %v2573_v7  ;;  %v3525_v34 = vsel %vm3465_vm5, %v6686_v2, %v6737_v24 }
 0x298   : > { %v2482_v25 = vpop.f32.mrf.mxu1 }
 0x299   : > { %v4164_v29 = vadd.f32 %v4163_v59, %v4124_v0  ;;  %v3410_v30 = vadd.f32 %v6620_v46, %v3124_v3  ;;  %v2880_v46 = vshll.u32 %v6669_v4, 16  ;;  %v2574_v56 = vadd.f32 %v2482_v25, %v6108_v60  ;;  %v3819_v0 = vld [vmem:[%s7083_s2 + $0x128] sm:$0xff]  ;;  %v3866_v3 = vpop.permute.xlu2 %3865 }
 0x29a   : > { %v2329_v60 = vshll.u32 %v6762_v16, 16  ;;  %4005 = vperm.xlu0 %5456, %v3818_v23   ;;  %v3211_v25 = vrot.slane %v6771_v6, 1 }
 0x29b   : > { %v3657_v26 = vpop.f32.mrf.mxu0  ;;  %2521 = vmatmul.bf16.gmra.mxu1 %v2324_v36  ;;  %3072 = vmatmul.bf16.gmra.mxu2 %v2875_v55  ;;  %v3748_v20 = vadd.f32 %v3654_v51, %v3410_v30  ;;  %v2327_v55 = vor.u32 %v2325_v45, %v2323_v37  ;;  %v3808_v37 = vld [vmem:[%s7083_s2 + $0xd0] sm:$0xff] }
 0x29c   : > { %v2331_v1 = vrot.slane %v2329_v60, 1  ;;  %v3212_v30 = vsel %vm3179_vm3, %v3209_v39, %v3211_v25  ;;  %3955 = vperm.xlu2 %5458, %v3808_v37   ;;  %v2892_v60 = vshrl.u32 %v6720_v19, 16  ;;  %v3876_v37 = vpop.permute.xlu1 %3875 }
 0x29d   : > { %v4035_v44 = vmul.f32 %v3861_v41, %v3748_v20  ;;  %v5175_v2 = vpack.c.bf16 %v3748_v20, %v3747_v17  ;;  %v6765_v17 = vpop.f32.mrf.mxu3  ;;  %4010 = vperm.xlu1 %5457, %v3819_v0  }
 0x29e   : > { %3696 = vmatmul.bf16.gmra.mxu0 %v3525_v34  ;;  %v3033_v59 = vpop.f32.mrf.mxu2 }
 0x29f   : > { %v4075_v47 = vadd.f32 %v4074_v5, %v4035_v44  ;;  %v4125_v12 = vmul.f32 %v4035_v44, %v3748_v20  ;;  %5368 = vst [vmem:[%s6609_s8 + $0x18] sm:$0xff] %v5175_v2   ;;  %v3125_v51 = vadd.f32 %v3033_v59, %v2574_v56  ;;  %v3527_v5 = vrot.slane %v2880_v46, 2 }
 0x2a0   : > { %v2484_v61 = vpop.f32.mrf.mxu1 }
 0x2a1   : > { %v4165_v7 = vadd.f32 %v4164_v29, %v4125_v12  ;;  %v3411_v14 = vadd.f32 %v6642_v42, %v3125_v51  ;;  %v2878_v42 = vor.u32 %v2876_v62, %v2874_v31  ;;  %v2882_v29 = vrot.slane %v2880_v46, 1  ;;  %v3871_v12 = vpop.permute.xlu0 %3870 }
 0x2a2   : > { %v2575_v34 = vadd.f32 %v2484_v61, %v6119_v58  ;;  %v6788_v41 = vor.u32 %v3527_v5, %v3526_v50  ;;  %3373 = vmatmul.bf16.gmra.mxu3 %v3212_v30  ;;  %v2332_v46 = vsel %vm2216_vm4, %v2327_v55, %v2331_v1  ;;  %v3821_v58 = vld [vmem:[%s7083_s2 + $0x138] sm:$0xff]  ;;  %v2333_v5 = vshrl.u32 %v6762_v16, 16 }
 0x2a3   : > { %v3659_v35 = vpop.f32.mrf.mxu0  ;;  %v3749_v36 = vadd.f32 %v3657_v26, %v3411_v14  ;;  %v2883_v39 = vsel %vm2216_vm4, %v2878_v42, %v2882_v29  ;;  %4020 = vperm.xlu0 %5456, %v3821_v58   ;;  %v6822_v55 = vld [vmem:[%s5553_s6 + $0x9c] sm:$0xff] }
 0x2a4   : > { %v3529_v48 = vsel %vm3465_vm5, %v6737_v24, %v6788_v41  ;;  %v3213_v16 = vrot.slane %v6822_v55, 1 }
 0x2a5   : > { %v4036_v10 = vmul.f32 %v3866_v3, %v3749_v36  ;;  %v6795_v56 = vpop.f32.mrf.mxu3  ;;  %v6816_v3 = vld [vmem:[%s5553_s6 + $0x84] sm:$0xff]  }
 0x2a6   : > { %v3035_v20 = vpop.f32.mrf.mxu2 }
 0x2a7   : > { %v4076_v53 = vadd.f32 %v4075_v47, %v4036_v10  ;;  %v4126_v62 = vmul.f32 %v4036_v10, %v3749_v36  ;;  %v3126_v31 = vadd.f32 %v3035_v20, %v2575_v34  ;;  %v3822_v47 = vld [vmem:[%s7083_s2 + $0x140] sm:$0xf]  ;;  %v3530_v10 = vrot.slane %v2892_v60, 1 }
 0x2a8   : > { %v2487_v26 = vpop.f32.mrf.mxu1  ;;  %4025 = vperm.xlu1 %5457, %v3822_v47  }
 0x2a9   : > { %v4166_v44 = vadd.f32 %v4165_v7, %v4126_v62  ;;  %v3412_v2 = vadd.f32 %v6663_v28, %v3126_v31  ;;  %v2888_v28 = vshll.u32 %v6720_v19, 16  ;;  %v2576_v45 = vadd.f32 %v2487_v26, %v6126_v9  ;;  %v3811_v7 = vld [vmem:[%s7083_s2 + $0xe8] sm:$0xff] }
 0x2aa   : > { %3970 = vperm.xlu2 %5458, %v3811_v7   ;;  %v2337_v9 = vshll.u32 %v6816_v3, 16  ;;  %v2335_v62 = vor.u32 %v2333_v5, %v2331_v1  ;;  %v2886_v26 = vor.u32 %v2884_v33, %v2882_v29  ;;  %v3814_v1 = vld [vmem:[%s7083_s2 + $0x100] sm:$0xff] }
 0x2ab   : > { %v3662_v59 = vpop.f32.mrf.mxu0  ;;  %2526 = vmatmul.bf16.gmra.mxu1 %v2332_v46  ;;  %3077 = vmatmul.bf16.gmra.mxu2 %v2883_v39  ;;  %v3750_v51 = vadd.f32 %v3659_v35, %v3412_v2  ;;  %v3531_v20 = vrot.slane %v2888_v28, 2  ;;  %v2890_v46 = vrot.slane %v2888_v28, 1  ;;  %v3214_v39 = vsel %vm3179_vm3, %v3211_v25, %v3213_v16 }
 0x2ac   : > { %v2339_v31 = vrot.slane %v2337_v9, 1  ;;  %v2341_v9 = vshrl.u32 %v6816_v3, 16 }
 0x2ad   : > { %v4037_v61 = vmul.f32 %v3871_v12, %v3750_v51  ;;  %v5180_v24 = vpack.c.bf16 %v3750_v51, %v3749_v36  ;;  %v6819_v36 = vpop.f32.mrf.mxu3  ;;  %v2891_v25 = vsel %vm2216_vm4, %v2886_v26, %v2890_v46 }
 0x2ae   : > { %3701 = vmatmul.bf16.gmra.mxu0 %v3529_v48  ;;  %v3038_v23 = vpop.f32.mrf.mxu2  ;;  %v2340_v29 = vsel %vm2216_vm4, %v2335_v62, %v2339_v31 }
 0x2af   : > { %v4077_v14 = vadd.f32 %v4076_v53, %v4037_v61  ;;  %v4127_v50 = vmul.f32 %v4037_v61, %v3750_v51  ;;  %5369 = vst [vmem:[%s6609_s8 + $0x20] sm:$0xff] %v5180_v24   ;;  %v3127_v35 = vadd.f32 %v3038_v23, %v2576_v45  ;;  %v3881_v45 = vpop.permute.xlu2 %3880  ;;  %v2896_v24 = vshll.u32 %v6771_v6, 16 }
 0x2b0   : > { %v2489_v0 = vpop.f32.mrf.mxu1 }
 0x2b1   : > { %v4167_v42 = vadd.f32 %v4166_v44, %v4127_v50  ;;  %v3413_v30 = vadd.f32 %v6690_v43, %v3127_v35  ;;  %v2577_v43 = vadd.f32 %v2489_v0, %v6146_v38  ;;  %v6834_v44 = vor.u32 %v3531_v20, %v3530_v10  ;;  %v6862_v10 = vld [vmem:[%s5553_s6 + $0xa4] sm:$0xff] }
 0x2b2   : > { %3378 = vmatmul.bf16.gmra.mxu3 %v3214_v39  ;;  %3985 = vperm.xlu2 %5458, %v3814_v1   ;;  %v3535_v26 = vrot.slane %v2896_v24, 2  ;;  %v3886_v39 = vpop.permute.xlu0 %3885  ;;  %v3215_v3 = vrot.slane %v6862_v10, 1  ;;  %v2894_v1 = vor.u32 %v2892_v60, %v2890_v46 }
 0x2b3   : > { %v3664_v34 = vpop.f32.mrf.mxu0  ;;  %v3751_v53 = vadd.f32 %v3662_v59, %v3413_v30  ;;  %v3533_v28 = vsel %vm3465_vm5, %v6788_v41, %v6834_v44  ;;  %v3817_v41 = vld [vmem:[%s7083_s2 + $0x118] sm:$0xff]  ;;  %v6856_v30 = vld [vmem:[%s5553_s6 + $0x8c] sm:$0xff]  }
 0x2b5   : > { %v4038_v58 = vmul.f32 %v3876_v37, %v3751_v53  ;;  %v6841_v47 = vpop.f32.mrf.mxu3 }
 0x2b6   : > { %v3040_v2 = vpop.f32.mrf.mxu2 }
 0x2b7   : > { %v4078_v59 = vadd.f32 %v4077_v14, %v4038_v58  ;;  %v4128_v48 = vmul.f32 %v4038_v58, %v3751_v53  ;;  %v3128_v4 = vadd.f32 %v3040_v2, %v2577_v43  ;;  %v2343_v58 = vor.u32 %v2341_v9, %v2339_v31 }
 0x2b8   : > { %v2492_v33 = vpop.f32.mrf.mxu1  ;;  %v2349_v9 = vshrl.u32 %v6856_v30, 16 }
 0x2b9   : > { %v4168_v38 = vadd.f32 %v4167_v42, %v4128_v48  ;;  %v3414_v12 = vadd.f32 %v6714_v57, %v3128_v4  ;;  %v2578_v23 = vadd.f32 %v2492_v33, %v6156_v49  ;;  %v2900_v57 = vshrl.u32 %v6771_v6, 16 }
 0x2ba   : > { %4000 = vperm.xlu2 %5458, %v3817_v41   ;;  %v2345_v49 = vshll.u32 %v6856_v30, 16  ;;  %v3216_v48 = vsel %vm3179_vm3, %v3213_v16, %v3215_v3 }
 0x2bb   : > { %v3667_v51 = vpop.f32.mrf.mxu0  ;;  %2531 = vmatmul.bf16.gmra.mxu1 %v2340_v29  ;;  %3082 = vmatmul.bf16.gmra.mxu2 %v2891_v25  ;;  %v3752_v61 = vadd.f32 %v3664_v34, %v3414_v12  ;;  %v3534_v62 = vrot.slane %v2900_v57, 1  ;;  %v3820_v25 = vld [vmem:[%s7083_s2 + $0x130] sm:$0xff] }
 0x2bc   : > { %v2347_v2 = vrot.slane %v2345_v49, 1  ;;  %v6891_v49 = vld [vmem:[%s5553_s6 + $0x94] sm:$0xff]  }
 0x2bd   : > { %v4039_v7 = vmul.f32 %v3881_v45, %v3752_v61  ;;  %v5185_v14 = vpack.c.bf16 %v3752_v61, %v3751_v53  ;;  %v6859_v34 = vpop.f32.mrf.mxu3  ;;  %v6872_v33 = vor.u32 %v3535_v26, %v3534_v62 }
 0x2be   : > { %3706 = vmatmul.bf16.gmra.mxu0 %v3533_v28  ;;  %v3043_v50 = vpop.f32.mrf.mxu2  ;;  %v2348_v60 = vsel %vm2216_vm4, %v2343_v58, %v2347_v2 }
 0x2bf   : > { %v4079_v35 = vadd.f32 %v4078_v59, %v4039_v7  ;;  %v4129_v5 = vmul.f32 %v4039_v7, %v3752_v61  ;;  %5370 = vst [vmem:[%s6609_s8 + $0x28] sm:$0xff] %v5185_v14   ;;  %v3129_v0 = vadd.f32 %v3043_v50, %v2578_v23  ;;  %v2898_v59 = vrot.slane %v2896_v24, 1  ;;  %v3891_v61 = vpop.permute.xlu1 %3890  ;;  %v7136_v7 = vld [vmem:[#allocation13_spill] sm:$0xff] }
 0x2c0   : > { %v2494_v42 = vpop.f32.mrf.mxu1  ;;  %v3537_v45 = vsel %vm3465_vm5, %v6834_v44, %v6872_v33  ;;  %v2904_v23 = vshll.u32 %v6822_v55, 16 }
 0x2c1   : > { %v4169_v20 = vadd.f32 %v4168_v38, %v4129_v5  ;;  %v3415_v37 = vadd.f32 %v6741_v27, %v3129_v0  ;;  %v2579_v4 = vadd.f32 %v2494_v42, %v6167_v13  ;;  %v2899_v16 = vsel %vm2216_vm4, %v2894_v1, %v2898_v59  ;;  %v3896_v1 = vpop.permute.xlu2 %3895 }
 0x2c2   : > { %3383 = vmatmul.bf16.gmra.mxu3 %v3216_v48  ;;  %4015 = vperm.xlu2 %5458, %v3820_v25   ;;  %v3539_v58 = vrot.slane %v2904_v23, 2  ;;  %v2906_v25 = vrot.slane %v2904_v23, 1 }
 0x2c3   : > { %v3669_v53 = vpop.f32.mrf.mxu0  ;;  %v3753_v43 = vadd.f32 %v3667_v51, %v3415_v37 }
 0x2c5   : > { %v4040_v27 = vmul.f32 %v3886_v39, %v3753_v43  ;;  %v6879_v46 = vpop.f32.mrf.mxu3 }
 0x2c6   : > { %v3045_v29 = vpop.f32.mrf.mxu2 }
 0x2c7   : > { %v4080_v38 = vadd.f32 %v4079_v35, %v4040_v27  ;;  %v4130_v31 = vmul.f32 %v4040_v27, %v3753_v43  ;;  %v3130_v12 = vadd.f32 %v3045_v29, %v2579_v4  ;;  %v2351_v4 = vor.u32 %v2349_v9, %v2347_v2 }
 0x2c8   : > { %v2497_v19 = vpop.f32.mrf.mxu1  ;;  %v2902_v29 = vor.u32 %v2900_v57, %v2898_v59 }
 0x2c9   : > { %v4170_v13 = vadd.f32 %v4169_v20, %v4130_v31  ;;  %v3416_v51 = vadd.f32 %v6765_v17, %v3130_v12  ;;  %v2580_v14 = vadd.f32 %v2497_v19, %v7136_v7  ;;  %v2908_v17 = vshrl.u32 %v6822_v55, 16  ;;  %v7137_v31 = vld [vmem:[#allocation14_spill] sm:$0xff] }
 0x2ca   : > { %v2353_v20 = vshll.u32 %v6891_v49, 16  ;;  %v2912_v7 = vshll.u32 %v6862_v10, 16 }
 0x2cb   : > { %v3672_v28 = vpop.f32.mrf.mxu0  ;;  %2536 = vmatmul.bf16.gmra.mxu1 %v2348_v60  ;;  %3087 = vmatmul.bf16.gmra.mxu2 %v2899_v16  ;;  %v3754_v24 = vadd.f32 %v3669_v53, %v3416_v51  ;;  %v6897_v53 = vld [vmem:[%s5553_s6 + $0xac] sm:$0xff] }
 0x2cc   : > { %v3217_v30 = vrot.slane %v6897_v53, 1  ;;  %v2355_v27 = vrot.slane %v2353_v20, 1 }
 0x2cd   : > { %v4041_v50 = vmul.f32 %v3891_v61, %v3754_v24  ;;  %v5190_v41 = vpack.c.bf16 %v3754_v24, %v3753_v43  ;;  %v6894_v37 = vpop.f32.mrf.mxu3  ;;  %v3538_v43 = vrot.slane %v2908_v17, 1 }
 0x2ce   : > { %3711 = vmatmul.bf16.gmra.mxu0 %v3537_v45  ;;  %v3048_v35 = vpop.f32.mrf.mxu2  ;;  %v2356_v2 = vsel %vm2216_vm4, %v2351_v4, %v2355_v27  ;;  %v3543_v4 = vrot.slane %v2912_v7, 2 }
 0x2cf   : > { %v4081_v5 = vadd.f32 %v4080_v38, %v4041_v50  ;;  %v4131_v0 = vmul.f32 %v4041_v50, %v3754_v24  ;;  %5371 = vst [vmem:[%s6609_s8 + $0x30] sm:$0xff] %v5190_v41   ;;  %v3131_v44 = vadd.f32 %v3048_v35, %v2580_v14  ;;  %v3218_v38 = vsel %vm3179_vm3, %v3215_v3, %v3217_v30  ;;  %v3901_v24 = vpop.permute.xlu0 %3900  ;;  %v2647_v35 = vld [vmem:[%s5553_s6 + $0xb4] sm:$0x7] }
 0x2d0   : > { %v2499_v42 = vpop.f32.mrf.mxu1  ;;  %v6907_v19 = vor.u32 %v3539_v58, %v3538_v43 }
 0x2d1   : > { %v4171_v62 = vadd.f32 %v4170_v13, %v4131_v0  ;;  %v3417_v26 = vadd.f32 %v6795_v56, %v3131_v44  ;;  %v2581_v12 = vadd.f32 %v2499_v42, %v7137_v31  ;;  %v2746_v0 = vunpack.c.l.b16 %v2647_v35 }
 0x2d2   : > { %3388 = vmatmul.bf16.gmra.mxu3 %v3218_v38  ;;  %v3541_v61 = vsel %vm3465_vm5, %v6872_v33, %v6907_v19  ;;  %v2357_v42 = vshrl.u32 %v6891_v49, 16 }
 0x2d3   : > { %v3674_v39 = vpop.f32.mrf.mxu0  ;;  %v3755_v48 = vadd.f32 %v3672_v28, %v3417_v26  ;;  %v2907_v28 = vsel %vm2216_vm4, %v2902_v29, %v2906_v25  ;;  %v6926_v43 = vpack.c.b16 %v2746_v0, %v2746_v0  ;;  %v3906_v29 = vpop.permute.xlu1 %3905 }
 0x2d4   : > { %v2359_v49 = vor.u32 %v2357_v42, %v2355_v27 }
 0x2d5   : > { %v4042_v56 = vmul.f32 %v3896_v1, %v3755_v48  ;;  %v6911_v6 = vpop.f32.mrf.mxu3  ;;  %v3219_v38 = vrot.slane %v6926_v43, 1 }
 0x2d6   : > { %v3050_v60 = vpop.f32.mrf.mxu2 }
 0x2d7   : > { %v4082_v16 = vadd.f32 %v4081_v5, %v4042_v56  ;;  %v4132_v13 = vmul.f32 %v4042_v56, %v3755_v48  ;;  %v3132_v51 = vadd.f32 %v3050_v60, %v2581_v12  ;;  %v2910_v56 = vor.u32 %v2908_v17, %v2906_v25 }
 0x2d8   : > { %v2502_v45 = vpop.f32.mrf.mxu1  ;;  %v2914_v60 = vrot.slane %v2912_v7, 1 }
 0x2d9   : > { %v4172_v57 = vadd.f32 %v4171_v62, %v4132_v13  ;;  %v3418_v3 = vadd.f32 %v6819_v36, %v3132_v51  ;;  %v2582_v14 = vadd.f32 %v2502_v45, %v6214_v32  ;;  %v2916_v36 = vshrl.u32 %v6862_v10, 16  ;;  %v5484_v62 = vld [vmem:[%s5553_s6 + $0x9c] sm:$0xff]  }
 0x2da   : > { %v2361_v26 = vshll.u32 %v5484_v62, 16 }
 0x2db   : > { %v3677_v59 = vpop.f32.mrf.mxu0  ;;  %2541 = vmatmul.bf16.gmra.mxu1 %v2356_v2  ;;  %3092 = vmatmul.bf16.gmra.mxu2 %v2907_v28  ;;  %v3756_v23 = vadd.f32 %v3674_v39, %v3418_v3 }
 0x2dc   : > { %v2363_v12 = vrot.slane %v2361_v26, 1 }
 0x2dd   : > { %v4043_v50 = vmul.f32 %v3901_v24, %v3756_v23  ;;  %v5195_v41 = vpack.c.bf16 %v3756_v23, %v3755_v48  ;;  %v6924_v39 = vpop.f32.mrf.mxu3  ;;  %v3542_v48 = vrot.slane %v2916_v36, 1 }
 0x2de   : > { %3716 = vmatmul.bf16.gmra.mxu0 %v3541_v61  ;;  %v3053_v5 = vpop.f32.mrf.mxu2  ;;  %v2364_v27 = vsel %vm2216_vm4, %v2359_v49, %v2363_v12  ;;  %v3911_v61 = vpop.permute.xlu2 %3910 }
 0x2df   : > { %v4083_v44 = vadd.f32 %v4082_v16, %v4043_v50  ;;  %v4133_v33 = vmul.f32 %v4043_v50, %v3756_v23  ;;  %5372 = vst [vmem:[%s6609_s8 + $0x38] sm:$0xff] %v5195_v41   ;;  %v3133_v9 = vadd.f32 %v3053_v5, %v2582_v14  ;;  %v3220_v16 = vsel %vm3179_vm3, %v3217_v30, %v3219_v38 }
 0x2e0   : > { %v2504_v20 = vpop.f32.mrf.mxu1  ;;  %v6936_v51 = vor.u32 %v3543_v4, %v3542_v48  ;;  %v2920_v23 = vshll.u32 %v6897_v53, 16 }
 0x2e1   : > { %v4173_v32 = vadd.f32 %v4172_v57, %v4133_v33  ;;  %v3419_v58 = vadd.f32 %v6841_v47, %v3133_v9  ;;  %v2583_v13 = vadd.f32 %v2504_v20, %v6227_v52  ;;  %v2369_v33 = vshll.u32 %v6275_v8, 16 }
 0x2e2   : > { %3393 = vmatmul.bf16.gmra.mxu3 %v3220_v16  ;;  %v3545_v25 = vsel %vm3465_vm5, %v6907_v19, %v6936_v51  ;;  %v2365_v19 = vshrl.u32 %v5484_v62, 16  ;;  %v2918_v62 = vor.u32 %v2916_v36, %v2914_v60 }
 0x2e3   : > { %v3679_v1 = vpop.f32.mrf.mxu0  ;;  %v3757_v31 = vadd.f32 %v3677_v59, %v3419_v58  ;;  %v2915_v59 = vsel %vm2216_vm4, %v2910_v56, %v2914_v60  ;;  %v3444_v58 = vld [vmem:[%s5553_s6 + $0xb4] sm:$0xf] }
 0x2e4   : > { %v2367_v4 = vor.u32 %v2365_v19, %v2363_v12  ;;  %v3463_v49 = vunpack.c.l.b16 %v3444_v58 }
 0x2e5   : > { %v4044_v47 = vmul.f32 %v3906_v29, %v3757_v31  ;;  %v6940_v55 = vpop.f32.mrf.mxu3  ;;  %v2371_v29 = vrot.slane %v2369_v33, 1 }
 0x2e6   : > { %v3055_v45 = vpop.f32.mrf.mxu2  ;;  %v3464_v36 = vpack.c.b16 %v3463_v49, %v3463_v49 }
 0x2e7   : > { %v4084_v2 = vadd.f32 %v4083_v44, %v4044_v47  ;;  %v4134_v28 = vmul.f32 %v4044_v47, %v3757_v31  ;;  %v3134_v57 = vadd.f32 %v3055_v45, %v2583_v13  ;;  %v2372_v12 = vsel %vm2216_vm4, %v2367_v4, %v2371_v29 }
 0x2e8   : > { %v2507_v3 = vpop.f32.mrf.mxu1 }
 0x2e9   : > { %v4174_v17 = vadd.f32 %v4173_v32, %v4134_v28  ;;  %v3420_v30 = vadd.f32 %v6859_v34, %v3134_v57  ;;  %v2584_v7 = vadd.f32 %v2507_v3, %v6235_v54  ;;  %v2924_v34 = vshrl.u32 %v6897_v53, 16 }
 0x2ea   : > { %v3547_v32 = vrot.slane %v2920_v23, 2 }
 0x2eb   : > { %v3682_v52 = vpop.f32.mrf.mxu0  ;;  %2546 = vmatmul.bf16.gmra.mxu1 %v2364_v27  ;;  %3097 = vmatmul.bf16.gmra.mxu2 %v2915_v59  ;;  %v3758_v24 = vadd.f32 %v3679_v1, %v3420_v30  ;;  %v3546_v26 = vrot.slane %v2924_v34, 1  ;;  %v3916_v1 = vpop.permute.xlu0 %3915 }
 0x2ed   : > { %v4045_v14 = vmul.f32 %v3911_v61, %v3758_v24  ;;  %v5200_v50 = vpack.c.bf16 %v3758_v24, %v3757_v31  ;;  %v6951_v9 = vpop.f32.mrf.mxu3  ;;  %v2922_v31 = vrot.slane %v2920_v23, 1  ;;  %v6960_v13 = vor.u32 %v3547_v32, %v3546_v26 }
 0x2ee   : > { %3721 = vmatmul.bf16.gmra.mxu0 %v3545_v25  ;;  %v3058_v41 = vpop.f32.mrf.mxu2  ;;  %v3551_v25 = vshrl.u32 %v3464_v36, 16 }
 0x2ef   : > { %v4085_v35 = vadd.f32 %v4084_v2, %v4045_v14  ;;  %v4135_v5 = vmul.f32 %v4045_v14, %v3758_v24  ;;  %5373 = vst [vmem:[%s6609_s8 + $0x40] sm:$0xff] %v5200_v50   ;;  %v3135_v0 = vadd.f32 %v3058_v41, %v2584_v7  ;;  %v2923_v3 = vsel %vm2216_vm4, %v2918_v62, %v2922_v31 }
 0x2f0   : > { %v2509_v44 = vpop.f32.mrf.mxu1  ;;  %v3554_v7 = vshll.u32 %v3464_v36, 16 }
 0x2f1   : > { %v4175_v42 = vadd.f32 %v4174_v17, %v4135_v5  ;;  %v3421_v54 = vadd.f32 %v6879_v46, %v3135_v0  ;;  %v2585_v56 = vadd.f32 %v2509_v44, %v6247_v11  ;;  %v2195_v46 = vld [vmem:[%s5553_s6 + $0xac] sm:$0x7]  ;;  %v3921_v17 = vpop.permute.xlu1 %3920  ;;  %v2928_v0 = vshll.u32 %v6926_v43, 16 }
 0x2f2   : > { %3398 = vmatmul.bf16.gmra.mxu3 %v3219_v38  ;;  %v2214_v10 = vunpack.c.l.b16 %v2195_v46  ;;  %v3549_v38 = vsel %vm3465_vm5, %v6936_v51, %v6960_v13  ;;  %v2373_v51 = vshrl.u32 %v6275_v8, 16 }
 0x2f3   : > { %v3684_v20 = vpop.f32.mrf.mxu0  ;;  %v3759_v48 = vadd.f32 %v3682_v52, %v3421_v54  ;;  %v3556_v54 = vrot.slane %v3554_v7, 2  ;;  %v2930_v8 = vrot.slane %v2928_v0, 1  ;;  %v7139_v7 = vld [vmem:[#allocation16_spill] sm:$0xff] }
 0x2f4   : > { %v6971_v52 = vpack.c.b16 %v2214_v10, %v2214_v10  ;;  %v2375_v32 = vor.u32 %v2373_v51, %v2371_v29 }
 0x2f5   : > { %v4046_v16 = vmul.f32 %v3916_v1, %v3759_v48  ;;  %v6965_v60 = vpop.f32.mrf.mxu3  ;;  %v2926_v1 = vor.u32 %v2924_v34, %v2922_v31  ;;  %v3931_v31 = vpop.permute.xlu0 %3930 }
 0x2f6   : > { %v3060_v47 = vpop.f32.mrf.mxu2  ;;  %v2377_v5 = vshll.u32 %v6971_v52, 16 }
 0x2f7   : > { %v4086_v45 = vadd.f32 %v4085_v35, %v4046_v16  ;;  %v4136_v2 = vmul.f32 %v4046_v16, %v3759_v48  ;;  %v3136_v28 = vadd.f32 %v3060_v47, %v2585_v56 }
 0x2f8   : > { %v2512_v57 = vpop.f32.mrf.mxu1  ;;  %v2379_v58 = vrot.slane %v2377_v5, 1 }
 0x2f9   : > { %v4176_v27 = vadd.f32 %v4175_v42, %v4136_v2  ;;  %v3422_v11 = vadd.f32 %v6894_v37, %v3136_v28  ;;  %v2586_v24 = vadd.f32 %v2512_v57, %v6266_v15  ;;  %v3553_v42 = vrot.slane %v3551_v25, 1 }
 0x2fa   : > { %v2380_v47 = vsel %vm2216_vm4, %v2375_v32, %v2379_v58  ;;  %v2381_v25 = vshrl.u32 %v6971_v52, 16 }
 0x2fb   : > { %v3687_v59 = vpop.f32.mrf.mxu0  ;;  %v3760_v30 = vadd.f32 %v3684_v20, %v3422_v11  ;;  %2551 = vmatmul.bf16.gmra.mxu1 %v2372_v12  ;;  %3102 = vmatmul.bf16.gmra.mxu2 %v2923_v3  ;;  %v3926_v20 = vpop.permute.xlu2 %3925  ;;  %v3557_v62 = vor.u32 %v3556_v54, %v3553_v42  ;;  %v7138_v12 = vld [vmem:[#allocation15_spill] sm:$0xff] }
 0x2fd   : > { %v5205_v61 = vpack.c.bf16 %v3760_v30, %v3759_v48  ;;  %v4047_v23 = vmul.f32 %v3921_v17, %v3760_v30  ;;  %v6978_v19 = vpop.f32.mrf.mxu3 }
 0x2fe   : > { %3726 = vmatmul.bf16.gmra.mxu0 %v3549_v38  ;;  %v3063_v14 = vpop.f32.mrf.mxu2 }
 0x2ff   : > { %5374 = vst [vmem:[%s6609_s8 + $0x48] sm:$0xff] %v5205_v61   ;;  %v4087_v37 = vadd.f32 %v4086_v45, %v4047_v23  ;;  %v4137_v50 = vmul.f32 %v4047_v23, %v3760_v30  ;;  %v3137_v41 = vadd.f32 %v3063_v14, %v2586_v24  ;;  %v2931_v45 = vsel %vm2216_vm4, %v2926_v1, %v2930_v8  ;;  %v3936_v23 = vpop.permute.xlu1 %3935 }
 0x300   : > { %v2514_v35 = vpop.f32.mrf.mxu1  ;;  %v2932_v24 = vshrl.u32 %v6926_v43, 16 }
 0x301   : > { %v4177_v44 = vadd.f32 %v4176_v27, %v4137_v50  ;;  %v3423_v33 = vadd.f32 %v6911_v6, %v3137_v41  ;;  %v2587_v48 = vadd.f32 %v2514_v35, %v6280_v40  ;;  %v3558_v40 = vsel %vm3465_vm5, %v6960_v13, %v3557_v62 }
 0x302   : > { %v2383_v41 = vor.u32 %v2381_v25, %v2379_v58  ;;  %v2934_v0 = vor.u32 %v2932_v24, %v2930_v8 }
 0x303   : > { %v3689_v15 = vpop.f32.mrf.mxu0  ;;  %v3761_v26 = vadd.f32 %v3687_v59, %v3423_v33  ;;  %v3941_v43 = vpop.permute.xlu2 %3940 }
 0x305   : > { %v4048_v4 = vmul.f32 %v3926_v20, %v3761_v26  ;;  %v6986_v29 = vpop.f32.mrf.mxu3 }
 0x306   : > { %v3065_v49 = vpop.f32.mrf.mxu2 }
 0x307   : > { %v4088_v56 = vadd.f32 %v4087_v37, %v4048_v4  ;;  %v4138_v16 = vmul.f32 %v4048_v4, %v3761_v26  ;;  %v3138_v46 = vadd.f32 %v3065_v49, %v2587_v48 }
 0x308   : > { %v2517_v6 = vpop.f32.mrf.mxu1 }
 0x309   : > { %v4178_v2 = vadd.f32 %v4177_v44, %v4138_v16  ;;  %v3424_v53 = vadd.f32 %v6924_v39, %v3138_v46  ;;  %v2588_v3 = vadd.f32 %v2517_v6, %v7138_v12  ;;  %v3946_v46 = vpop.permute.xlu0 %3945 }
 0x30b   : > { %v3692_v34 = vpop.f32.mrf.mxu0  ;;  %v3762_v28 = vadd.f32 %v3689_v15, %v3424_v53  ;;  %2556 = vmatmul.bf16.gmra.mxu1 %v2380_v47  ;;  %3107 = vmatmul.bf16.gmra.mxu2 %v2931_v45  ;;  %v3956_v25 = vpop.permute.xlu2 %3955 }
 0x30d   : > { %v5210_v57 = vpack.c.bf16 %v3762_v28, %v3761_v26  ;;  %v4049_v10 = vmul.f32 %v3931_v31, %v3762_v28  ;;  %v6993_v39 = vpop.f32.mrf.mxu3 }
 0x30e   : > { %3731 = vmatmul.bf16.gmra.mxu0 %v3558_v40  ;;  %v3068_v36 = vpop.f32.mrf.mxu2 }
 0x30f   : > { %5375 = vst [vmem:[%s6609_s8 + $0x50] sm:$0xff] %v5210_v57   ;;  %v4089_v27 = vadd.f32 %v4088_v56, %v4049_v10  ;;  %v4139_v11 = vmul.f32 %v4049_v10, %v3762_v28  ;;  %v3139_v59 = vadd.f32 %v3068_v36, %v2588_v3 }
 0x310   : > { %v2519_v38 = vpop.f32.mrf.mxu1 }
 0x311   : > { %v4179_v17 = vadd.f32 %v4178_v2, %v4139_v11  ;;  %v3425_v13 = vadd.f32 %v6940_v55, %v3139_v59  ;;  %v2589_v14 = vadd.f32 %v2519_v38, %v7139_v7 }
 0x313   : > { %v3694_v30 = vpop.f32.mrf.mxu0  ;;  %v3763_v61 = vadd.f32 %v3692_v34, %v3425_v13 }
 0x315   : > { %v4050_v37 = vmul.f32 %v3936_v23, %v3763_v61  ;;  %v6999_v33 = vpop.f32.mrf.mxu3 }
 0x316   : > { %v3070_v50 = vpop.f32.mrf.mxu2 }
 0x317   : > { %v3140_v35 = vadd.f32 %v3070_v50, %v2589_v14  ;;  %v4090_v51 = vadd.f32 %v4089_v27, %v4050_v37  ;;  %v4140_v5 = vmul.f32 %v4050_v37, %v3763_v61 }
 0x318   : > { %v2522_v44 = vpop.f32.mrf.mxu1 }
 0x319   : > { %v3426_v55 = vadd.f32 %v6951_v9, %v3140_v35  ;;  %v4180_v52 = vadd.f32 %v4179_v17, %v4140_v5  ;;  %v2590_v20 = vadd.f32 %v2522_v44, %v6327_v21 }
 0x31b   : > { %v3697_v15 = vpop.f32.mrf.mxu0  ;;  %v3764_v42 = vadd.f32 %v3694_v30, %v3426_v55  ;;  %2561 = vmatmul.bf16.gmra.mxu1 %v2383_v41  ;;  %3112 = vmatmul.bf16.gmra.mxu2 %v2934_v0  ;;  %v7140_v55 = vld [vmem:[#allocation17_spill] sm:$0xff] }
 0x31d   : > { %v5215_v54 = vpack.c.bf16 %v3764_v42, %v3763_v61  ;;  %v4051_v26 = vmul.f32 %v3941_v43, %v3764_v42  ;;  %v7004_v4 = vpop.f32.mrf.mxu3 }
 0x31e   : > { %3736 = vmatmul.bf16.gmra.mxu0 %v3557_v62  ;;  %v3073_v32 = vpop.f32.mrf.mxu2 }
 0x31f   : > { %5376 = vst [vmem:[%s6609_s8 + $0x58] sm:$0xff] %v5215_v54   ;;  %v4091_v58 = vadd.f32 %v4090_v51, %v4051_v26  ;;  %v4141_v1 = vmul.f32 %v4051_v26, %v3764_v42  ;;  %v3141_v8 = vadd.f32 %v3073_v32, %v2590_v20 }
 0x320   : > { %v2524_v48 = vpop.f32.mrf.mxu1 }
 0x321   : > { %v4181_v9 = vadd.f32 %v4180_v52, %v4141_v1  ;;  %v3427_v49 = vadd.f32 %v6965_v60, %v3141_v8  ;;  %v2591_v62 = vadd.f32 %v2524_v48, %v6340_v63  ;;  %v3951_v60 = vpop.permute.xlu1 %3950  ;;  %v7141_v48 = vld [vmem:[#allocation18_spill] sm:$0xff] }
 0x323   : > { %v3699_v56 = vpop.f32.mrf.mxu0  ;;  %v3765_v16 = vadd.f32 %v3697_v15, %v3427_v49 }
 0x325   : > { %v4052_v6 = vmul.f32 %v3946_v46, %v3765_v16  ;;  %v7008_v34 = vpop.f32.mrf.mxu3 }
 0x326   : > { %v3075_v47 = vpop.f32.mrf.mxu2 }
 0x327   : > { %v4092_v21 = vadd.f32 %v4091_v58, %v4052_v6  ;;  %v4142_v45 = vmul.f32 %v4052_v6, %v3765_v16  ;;  %v3142_v2 = vadd.f32 %v3075_v47, %v2591_v62 }
 0x328   : > { %v2527_v53 = vpop.f32.mrf.mxu1 }
 0x329   : > { %v4182_v40 = vadd.f32 %v4181_v9, %v4142_v45  ;;  %v3428_v31 = vadd.f32 %v6978_v19, %v3142_v2  ;;  %v2592_v10 = vadd.f32 %v2527_v53, %v6357_v22  ;;  %v3966_v1 = vpop.permute.xlu1 %3965 }
 0x32b   : > { %v3702_v28 = vpop.f32.mrf.mxu0  ;;  %v3766_v57 = vadd.f32 %v3699_v56, %v3428_v31  ;;  %v7142_v31 = vld [vmem:[#allocation7_spill] sm:$0xff] }
 0x32d   : > { %v4053_v12 = vmul.f32 %v3951_v60, %v3766_v57  ;;  %v5220_v3 = vpack.c.bf16 %v3766_v57, %v3765_v16  ;;  %v7013_v38 = vpop.f32.mrf.mxu3 }
 0x32e   : > { %v3078_v36 = vpop.f32.mrf.mxu2 }
 0x32f   : > { %v4093_v63 = vadd.f32 %v4092_v21, %v4053_v12  ;;  %v4143_v27 = vmul.f32 %v4053_v12, %v3766_v57  ;;  %5377 = vst [vmem:[%s6609_s8 + $0x60] sm:$0xff] %v5220_v3   ;;  %v3143_v11 = vadd.f32 %v3078_v36, %v2592_v10 }
 0x330   : > { %v2529_v59 = vpop.f32.mrf.mxu1 }
 0x331   : > { %v4183_v17 = vadd.f32 %v4182_v40, %v4143_v27  ;;  %v3429_v13 = vadd.f32 %v6986_v29, %v3143_v11  ;;  %v2593_v24 = vadd.f32 %v2529_v59, %v6372_v18  ;;  %v3961_v29 = vpop.permute.xlu0 %3960 }
 0x333   : > { %v3704_v30 = vpop.f32.mrf.mxu0  ;;  %v3767_v19 = vadd.f32 %v3702_v28, %v3429_v13  ;;  %v7143_v13 = vld [vmem:[#allocation8_spill] sm:$0xff] }
 0x335   : > { %v4054_v61 = vmul.f32 %v3956_v25, %v3767_v19  ;;  %v7017_v50 = vpop.f32.mrf.mxu3 }
 0x336   : > { %v3080_v23 = vpop.f32.mrf.mxu2 }
 0x337   : > { %v4094_v7 = vadd.f32 %v4093_v63, %v4054_v61  ;;  %v4144_v22 = vmul.f32 %v4054_v61, %v3767_v19  ;;  %v3144_v14 = vadd.f32 %v3080_v23, %v2593_v24 }
 0x338   : > { %v2532_v37 = vpop.f32.mrf.mxu1 }
 0x339   : > { %v4184_v41 = vadd.f32 %v4183_v17, %v4144_v22  ;;  %v3430_v35 = vadd.f32 %v6993_v39, %v3144_v14  ;;  %v2594_v52 = vadd.f32 %v2532_v37, %v7140_v55  ;;  %v3976_v59 = vpop.permute.xlu0 %3975 }
 0x33b   : > { %v3707_v51 = vpop.f32.mrf.mxu0  ;;  %v3768_v5 = vadd.f32 %v3704_v30, %v3430_v35 }
 0x33d   : > { %v4055_v0 = vmul.f32 %v3961_v29, %v3768_v5  ;;  %v5225_v44 = vpack.c.bf16 %v3768_v5, %v3767_v19  ;;  %v7022_v20 = vpop.f32.mrf.mxu3 }
 0x33e   : > { %v3083_v15 = vpop.f32.mrf.mxu2 }
 0x33f   : > { %v4095_v18 = vadd.f32 %v4094_v7, %v4055_v0  ;;  %v4145_v42 = vmul.f32 %v4055_v0, %v3768_v5  ;;  %5378 = vst [vmem:[%s6609_s8 + $0x68] sm:$0xff] %v5225_v44   ;;  %v3145_v43 = vadd.f32 %v3083_v15, %v2594_v52  ;;  %v7144_v5 = vld [vmem:[#allocation9_spill] sm:$0xff] }
 0x340   : > { %v2534_v54 = vpop.f32.mrf.mxu1 }
 0x341   : > { %v4185_v26 = vadd.f32 %v4184_v41, %v4145_v42  ;;  %v3431_v32 = vadd.f32 %v6999_v33, %v3145_v43  ;;  %v2595_v9 = vadd.f32 %v2534_v54, %v7141_v48  ;;  %v3971_v33 = vpop.permute.xlu2 %3970 }
 0x343   : > { %v3709_v58 = vpop.f32.mrf.mxu0  ;;  %v3769_v39 = vadd.f32 %v3707_v51, %v3431_v32 }
 0x345   : > { %v4056_v8 = vmul.f32 %v3966_v1, %v3769_v39  ;;  %v7026_v62 = vpop.f32.mrf.mxu3 }
 0x346   : > { %v3085_v49 = vpop.f32.mrf.mxu2 }
 0x347   : > { %v4096_v56 = vadd.f32 %v4095_v18, %v4056_v8  ;;  %v4146_v16 = vmul.f32 %v4056_v8, %v3769_v39  ;;  %v3146_v46 = vadd.f32 %v3085_v49, %v2595_v9 }
 0x348   : > { %v2537_v6 = vpop.f32.mrf.mxu1 }
 0x349   : > { %v4186_v47 = vadd.f32 %v4185_v26, %v4146_v16  ;;  %v3432_v21 = vadd.f32 %v7004_v4, %v3146_v46  ;;  %v2596_v28 = vadd.f32 %v2537_v6, %v7142_v31  ;;  %v3986_v26 = vpop.permute.xlu2 %3985 }
 0x34b   : > { %v3712_v45 = vpop.f32.mrf.mxu0  ;;  %v3770_v2 = vadd.f32 %v3709_v58, %v3432_v21  ;;  %v7145_v58 = vld [vmem:[#allocation10_spill] sm:$0xff] }
 0x34d   : > { %v4057_v53 = vmul.f32 %v3971_v33, %v3770_v2  ;;  %v5230_v40 = vpack.c.bf16 %v3770_v2, %v3769_v39  ;;  %v7031_v36 = vpop.f32.mrf.mxu3 }
 0x34e   : > { %v3088_v57 = vpop.f32.mrf.mxu2 }
 0x34f   : > { %v4097_v60 = vadd.f32 %v4096_v56, %v4057_v53  ;;  %v4147_v12 = vmul.f32 %v4057_v53, %v3770_v2  ;;  %5379 = vst [vmem:[%s6609_s8 + $0x70] sm:$0xff] %v5230_v40   ;;  %v3147_v3 = vadd.f32 %v3088_v57, %v2596_v28  ;;  %v7146_v2 = vld [vmem:[#allocation11_spill] sm:$0xff] }
 0x350   : > { %v2539_v10 = vpop.f32.mrf.mxu1 }
 0x351   : > { %v4187_v63 = vadd.f32 %v4186_v47, %v4147_v12  ;;  %v3433_v27 = vadd.f32 %v7008_v34, %v3147_v3  ;;  %v2597_v30 = vadd.f32 %v2539_v10, %v7143_v13  ;;  %v3981_v34 = vpop.permute.xlu1 %3980 }
 0x353   : > { %v3714_v11 = vpop.f32.mrf.mxu0  ;;  %v3771_v4 = vadd.f32 %v3712_v45, %v3433_v27 }
 0x355   : > { %v4058_v17 = vmul.f32 %v3976_v59, %v3771_v4  ;;  %v7035_v7 = vpop.f32.mrf.mxu3 }
 0x356   : > { %v3090_v19 = vpop.f32.mrf.mxu2 }
 0x357   : > { %v4098_v25 = vadd.f32 %v4097_v60, %v4058_v17  ;;  %v4148_v61 = vmul.f32 %v4058_v17, %v3771_v4  ;;  %v3148_v24 = vadd.f32 %v3090_v19, %v2597_v30 }
 0x358   : > { %v2542_v23 = vpop.f32.mrf.mxu1 }
 0x359   : > { %v4188_v22 = vadd.f32 %v4187_v63, %v4148_v61  ;;  %v3434_v14 = vadd.f32 %v7013_v38, %v3148_v24  ;;  %v2598_v29 = vadd.f32 %v2542_v23, %v7144_v5  ;;  %v3996_v63 = vpop.permute.xlu1 %3995 }
 0x35b   : > { %v3717_v37 = vpop.f32.mrf.mxu0  ;;  %v3772_v41 = vadd.f32 %v3714_v11, %v3434_v14  ;;  %v7147_v11 = vld [vmem:[#allocation12_spill] sm:$0xff] }
 0x35d   : > { %v4059_v35 = vmul.f32 %v3981_v34, %v3772_v41  ;;  %v5235_v51 = vpack.c.bf16 %v3772_v41, %v3771_v4  ;;  %v7040_v18 = vpop.f32.mrf.mxu3 }
 0x35e   : > { %v3093_v0 = vpop.f32.mrf.mxu2 }
 0x35f   : > { %v4099_v44 = vadd.f32 %v4098_v25, %v4059_v35  ;;  %v4149_v55 = vmul.f32 %v4059_v35, %v3772_v41  ;;  %5380 = vst [vmem:[%s6609_s8 + $0x78] sm:$0xff] %v5235_v51   ;;  %v3149_v52 = vadd.f32 %v3093_v0, %v2598_v29  ;;  %v7148_v41 = vld [vmem:[#allocation2_spill] sm:$0xff] }
 0x360   : > { %v2544_v15 = vpop.f32.mrf.mxu1 }
 0x361   : > { %v4189_v42 = vadd.f32 %v4188_v22, %v4149_v55  ;;  %v3435_v43 = vadd.f32 %v7017_v50, %v3149_v52  ;;  %v2599_v39 = vadd.f32 %v2544_v15, %v7145_v58  ;;  %v3991_v50 = vpop.permute.xlu0 %3990 }
 0x363   : > { %v3719_v54 = vpop.f32.mrf.mxu0  ;;  %v3773_v38 = vadd.f32 %v3717_v37, %v3435_v43 }
 0x365   : > { %v4060_v32 = vmul.f32 %v3986_v26, %v3773_v38  ;;  %v7044_v56 = vpop.f32.mrf.mxu3 }
 0x366   : > { %v3095_v1 = vpop.f32.mrf.mxu2 }
 0x367   : > { %v4100_v8 = vadd.f32 %v4099_v44, %v4060_v32  ;;  %v4150_v48 = vmul.f32 %v4060_v32, %v3773_v38  ;;  %v3150_v9 = vadd.f32 %v3095_v1, %v2599_v39 }
 0x368   : > { %v2547_v49 = vpop.f32.mrf.mxu1 }
 0x369   : > { %v4190_v16 = vadd.f32 %v4189_v42, %v4150_v48  ;;  %v3436_v46 = vadd.f32 %v7022_v20, %v3150_v9  ;;  %v2600_v33 = vadd.f32 %v2547_v49, %v7146_v2 }
 0x36b   : > { %v3722_v6 = vpop.f32.mrf.mxu0  ;;  %v3774_v47 = vadd.f32 %v3719_v54, %v3436_v46  ;;  %v7149_v54 = vld [vmem:[#allocation3_spill] sm:$0xff] }
 0x36d   : > { %v4061_v21 = vmul.f32 %v3991_v50, %v3774_v47  ;;  %v5240_v45 = vpack.c.bf16 %v3774_v47, %v3773_v38  ;;  %v7049_v60 = vpop.f32.mrf.mxu3 }
 0x36e   : > { %v3098_v53 = vpop.f32.mrf.mxu2 }
 0x36f   : > { %v4101_v40 = vadd.f32 %v4100_v8, %v4061_v21  ;;  %v4151_v31 = vmul.f32 %v4061_v21, %v3774_v47  ;;  %5381 = vst [vmem:[%s6609_s8 + $0x80] sm:$0xff] %v5240_v45   ;;  %v3151_v28 = vadd.f32 %v3098_v53, %v2600_v33 }
 0x370   : > { %v2549_v57 = vpop.f32.mrf.mxu1 }
 0x371   : > { %v4191_v12 = vadd.f32 %v4190_v16, %v4151_v31  ;;  %v3437_v3 = vadd.f32 %v7026_v62, %v3151_v28  ;;  %v2601_v4 = vadd.f32 %v2549_v57, %v7147_v11  ;;  %v4001_v62 = vpop.permute.xlu2 %4000  ;;  %v4011_v16 = vpop.permute.xlu1 %4010 }
 0x373   : > { %v3724_v10 = vpop.f32.mrf.mxu0  ;;  %v3775_v20 = vadd.f32 %v3722_v6, %v3437_v3  ;;  %v7150_v6 = vld [vmem:[#allocation4_spill] sm:$0xff] }
 0x375   : > { %v4062_v27 = vmul.f32 %v3996_v63, %v3775_v20  ;;  %v7053_v25 = vpop.f32.mrf.mxu3 }
 0x376   : > { %v3100_v59 = vpop.f32.mrf.mxu2 }
 0x377   : > { %v4102_v17 = vadd.f32 %v4101_v40, %v4062_v27  ;;  %v4152_v13 = vmul.f32 %v4062_v27, %v3775_v20  ;;  %v3152_v30 = vadd.f32 %v3100_v59, %v2601_v4 }
 0x378   : > { %v2552_v19 = vpop.f32.mrf.mxu1 }
 0x379   : > { %v4192_v61 = vadd.f32 %v4191_v12, %v4152_v13  ;;  %v3438_v24 = vadd.f32 %v7031_v36, %v3152_v30  ;;  %v2602_v34 = vadd.f32 %v2552_v19, %v7148_v41  ;;  %v4006_v36 = vpop.permute.xlu0 %4005  ;;  %v4016_v57 = vpop.permute.xlu2 %4015  ;;  %v7151_v12 = vld [vmem:[#allocation5_spill] sm:$0xff] }
 0x37b   : > { %v3727_v23 = vpop.f32.mrf.mxu0  ;;  %v3776_v22 = vadd.f32 %v3724_v10, %v3438_v24 }
 0x37d   : > { %v4063_v14 = vmul.f32 %v4001_v62, %v3776_v22  ;;  %v5245_v37 = vpack.c.bf16 %v3776_v22, %v3775_v20  ;;  %v3401_v44 = vpop.f32.mrf.mxu3 }
 0x37e   : > { %v3103_v35 = vpop.f32.mrf.mxu2 }
 0x37f   : > { %v4103_v51 = vadd.f32 %v4102_v17, %v4063_v14  ;;  %v4153_v5 = vmul.f32 %v4063_v14, %v3776_v22  ;;  %5382 = vst [vmem:[%s6609_s8 + $0x88] sm:$0xff] %v5245_v37   ;;  %v3153_v29 = vadd.f32 %v3103_v35, %v2602_v34 }
 0x380   : > { %v2554_v0 = vpop.f32.mrf.mxu1 }
 0x381   : > { %v4193_v55 = vadd.f32 %v4192_v61, %v4153_v5  ;;  %v3439_v52 = vadd.f32 %v7035_v7, %v3153_v29  ;;  %v2603_v38 = vadd.f32 %v2554_v0, %v7149_v54  ;;  %v4021_v30 = vpop.permute.xlu0 %4020  ;;  %v7152_v61 = vld [vmem:[#allocation6_spill] sm:$0xff] }
 0x383   : > { %v3729_v15 = vpop.f32.mrf.mxu0  ;;  %v3777_v42 = vadd.f32 %v3727_v23, %v3439_v52 }
 0x385   : > { %v4064_v43 = vmul.f32 %v4006_v36, %v3777_v42 }
 0x386   : > { %v3105_v26 = vpop.f32.mrf.mxu2 }
 0x387   : > { %v4104_v32 = vadd.f32 %v4103_v51, %v4064_v43  ;;  %v4154_v58 = vmul.f32 %v4064_v43, %v3777_v42  ;;  %v3154_v39 = vadd.f32 %v3105_v26, %v2603_v38 }
 0x388   : > { %v2557_v1 = vpop.f32.mrf.mxu1 }
 0x389   : > { %v4194_v8 = vadd.f32 %v4193_v55, %v4154_v58  ;;  %v3440_v48 = vadd.f32 %v7040_v18, %v3154_v39  ;;  %v2604_v47 = vadd.f32 %v2557_v1, %v7150_v6 }
 0x38b   : > { %v3732_v9 = vpop.f32.mrf.mxu0  ;;  %v3778_v49 = vadd.f32 %v3729_v15, %v3440_v48 }
 0x38d   : > { %v4065_v46 = vmul.f32 %v4011_v16, %v3778_v49  ;;  %v5250_v7 = vpack.c.bf16 %v3778_v49, %v3777_v42 }
 0x38e   : > { %v3108_v50 = vpop.f32.mrf.mxu2 }
 0x38f   : > { %v4105_v21 = vadd.f32 %v4104_v32, %v4065_v46  ;;  %v4155_v45 = vmul.f32 %v4065_v46, %v3778_v49  ;;  %5383 = vst [vmem:[%s6609_s8 + $0x90] sm:$0xff] %v5250_v7   ;;  %v3155_v2 = vadd.f32 %v3108_v50, %v2604_v47 }
 0x390   : > { %v2559_v33 = vpop.f32.mrf.mxu1 }
 0x391   : > { %v4195_v53 = vadd.f32 %v4194_v8, %v4155_v45  ;;  %v3441_v40 = vadd.f32 %v7044_v56, %v3155_v2  ;;  %v2605_v3 = vadd.f32 %v2559_v33, %v7151_v12 }
 0x393   : > { %v3734_v31 = vpop.f32.mrf.mxu0  ;;  %v3779_v28 = vadd.f32 %v3732_v9, %v3441_v40 }
 0x395   : > { %v4066_v18 = vmul.f32 %v4016_v57, %v3779_v28 }
 0x396   : > { %v3110_v10 = vpop.f32.mrf.mxu2 }
 0x397   : > { %v4106_v20 = vadd.f32 %v4105_v21, %v4066_v18  ;;  %v4156_v63 = vmul.f32 %v4066_v18, %v3779_v28  ;;  %v3156_v27 = vadd.f32 %v3110_v10, %v2605_v3 }
 0x398   : > { %v2562_v11 = vpop.f32.mrf.mxu1 }
 0x399   : > { %v4196_v4 = vadd.f32 %v4195_v53, %v4156_v63  ;;  %v3442_v59 = vadd.f32 %v7049_v60, %v3156_v27  ;;  %v2606_v24 = vadd.f32 %v2562_v11, %v7152_v61  ;;  %v4026_v60 = vpop.permute.xlu1 %4025 }
 0x39b   : > { %v3737_v17 = vpop.f32.mrf.mxu0  ;;  %v3780_v13 = vadd.f32 %v3734_v31, %v3442_v59 }
 0x39d   : > { %v4067_v19 = vmul.f32 %v4021_v30, %v3780_v13  ;;  %v5255_v56 = vpack.c.bf16 %v3780_v13, %v3779_v28 }
 0x39e   : > { %v3113_v23 = vpop.f32.mrf.mxu2 }
 0x39f   : > { %v4107_v22 = vadd.f32 %v4106_v20, %v4067_v19  ;;  %v4157_v62 = vmul.f32 %v4067_v19, %v3780_v13  ;;  %5384 = vst [vmem:[%s6609_s8 + $0x98] sm:$0xff] %v5255_v56   ;;  %v3157_v14 = vadd.f32 %v3113_v23, %v2606_v24 }
 0x3a0   : > { %v2564_v37 = vpop.f32.mrf.mxu1 }
 0x3a1   : > { %v4197_v41 = vadd.f32 %v4196_v4, %v4157_v62  ;;  %v3443_v34 = vadd.f32 %v7053_v25, %v3157_v14 }
 0x3a3   : > { %v3739_v35 = vpop.f32.mrf.mxu0  ;;  %v3781_v51 = vadd.f32 %v3737_v17, %v3443_v34 }
 0x3a5   : > { %v4068_v5 = vmul.f32 %v4026_v60, %v3781_v51  ;;  %v4247_v29 = vpack.c.bf16 %v3781_v51, %v3781_v51 }
 0x3a6   : > { %v3115_v0 = vpop.f32.mrf.mxu2 }
 0x3a7   : > { %v4109_v44 = vsel %vm4108_vm6, %v4068_v5, 0.0  ;;  %v4158_v55 = vmul.f32 %v4068_v5, %v3781_v51  ;;  %4288 = vst [vmem:[%s6609_s8 + $0xa0] sm:$0x3] %v4247_v29 }
 0x3a8   : > { %v4110_v52 = vadd.f32 %v4109_v44, %v4107_v22 }
 0x3a9   : > { %v4198_v15 = vsel %vm4108_vm6, %v4158_v55, 0.0 }
 0x3aa   : > { %v4111_v42 = vrot.slane %v4110_v52, 4  ;;  %v4199_v36 = vadd.f32 %v4198_v15, %v4197_v41 }
 0x3ac   : > { %v4112_v43 = vadd.f32 %v4111_v42, %v4110_v52  ;;  %v4200_v54 = vrot.slane %v4199_v36, 4 }
 0x3ae   : > { %v4113_v38 = vrot.slane %v4112_v43, 2  ;;  %v4201_v25 = vadd.f32 %v4200_v54, %v4199_v36 }
 0x3b0   : > { %v4114_v26 = vadd.f32 %v4113_v38, %v4112_v43  ;;  %v4202_v32 = vrot.slane %v4201_v25, 2 }
 0x3b2   : > { %v4115_v58 = vrot.slane %v4114_v26, 1  ;;  %v4203_v39 = vadd.f32 %v4202_v32, %v4201_v25 }
 0x3b4   : > { %v4116_v1 = vadd.f32 %v4115_v58, %v4114_v26  ;;  %v4204_v8 = vrot.slane %v4203_v39, 1 }
 0x3b6   : > { %4117 = vst [vmem:[%s238_s12] sm:$0x1] %v4116_v1  ;;  %v4205_v48 = vadd.f32 %v4204_v8, %v4203_v39 }
 0x3b8   : > { %4206 = vst [vmem:[%s241_s14] sm:$0x1] %v4205_v48 }
 0x3b9 PF: > { %s16_s18 = sadd.s32 1, %s5494_s18  }
 0x3ba   : > { %p13_p4 = scmp.ge.s32.totalorder %s16_s18, 4  }
 0x3bc   :  { %15 = sbr.rel (!%p13_p4) target bundleno = 1 (0x1), region = 94 }

</bundles_post_ra>
